<compile_context>
chip_gen: v7x
topology: tpu7x:2x2x1
jax: 0.10.0
libtpu: 0.0.40
codegen_flags: <defaults>
</compile_context>

<pallas_src>
from functools import partial

import jax
import jax.numpy as jnp
import numpy as np
from jax.experimental import pallas as pl
from jax.experimental.pallas import tpu as pltpu

H = W = 16              # spatial size
HP, WP = H + 2, W + 2   # zero-padded spatial size (3x3 SAME halo)
P = HP * WP             # 324 flattened padded positions
P_PAD = 384             # per-image lane slot (multiple of 128)
C_PAD = 8               # channel dim padded to the sublane quantum (max width 8)
N_LAYERS = 10           # 5 encoder + 5 decoder blocks
K_PAD = 9 * C_PAD + C_PAD   # 72 im2col rows + 8 constant-ones rows (bias) = 80
_TAP_OFFSETS = tuple(dy * WP + dx for dy in range(3) for dx in range(3))

# Roll-wrap containment: circular wrap of tap rolls / folded re-pad must land
# inside the per-image masked padding region.
assert P_PAD - P >= 2 * WP + 2      # layer-0 forward wrap (max offset 38 <= 60)
assert P_PAD - P >= WP + 1          # folded re-pad backward wrap (19 <= 60)


def _fused_cnn_kernel(x_ref, w_ref, m_ref, o_ref, patches_ref):
    # x_ref:       (1, C_PAD, LANE)        zero-halo padded input slab (B_TILE images)
    # w_ref:       (N_LAYERS, C_PAD, K_PAD) weights; col k = dy*3*C_PAD+dx*C_PAD+cin,
    #                                       col 72 = bias, cols 73..79 = 0
    # m_ref:       (1, LANE)               1.0 at valid base output positions
    # o_ref:       (1, C_PAD, LANE)        final activations, base layout
    # patches_ref: (K_PAD, LANE) VMEM      im2col scratch (+ ones rows for bias)
    lane = x_ref.shape[-1]

    # Hoisted out of the layer loop (JAX does not CSE broadcast_in_dim).
    mask = jnp.broadcast_to(m_ref[...], (C_PAD, lane))

    # Constant ones rows 72..79: only weight column 72 (the bias) is non-zero,
    # so bias-add happens inside the MXU contraction.  Written once.
    patches_ref[pl.ds(9 * C_PAD, C_PAD), :] = jnp.ones((C_PAD, lane), jnp.float32)

    x = x_ref[0]                                              # (C_PAD, LANE)
    for layer in range(N_LAYERS):
        # Layer 0: x is in padded layout -> result[p] = x[p + off]  (shift -off).
        # Layer >0: x is the masked base-layout output of the previous layer;
        #           the re-pad roll (+WP+1) is folded into the tap shift.
        base_shift = 0 if layer == 0 else (WP + 1)
        for t, off in enumerate(_TAP_OFFSETS):
            shift = (base_shift - off) % lane
            tap = x if shift == 0 else pltpu.roll(x, shift, axis=1)
            patches_ref[pl.ds(t * C_PAD, C_PAD), :] = tap
        # One MXU contraction per layer: (C_PAD, 80) @ (80, LANE).
        y = jnp.dot(w_ref[layer], patches_ref[...],
                    preferred_element_type=jnp.float32)       # (C_PAD, LANE)
        x = jnp.maximum(y, 0.0) * mask                        # ReLU + zero invalid lanes
    o_ref[0] = x.astype(o_ref.dtype)


def _fused_pallas_call(num_tiles, b_tile):
    lane = b_tile * P_PAD
    assert lane % 128 == 0
    return pl.pallas_call(
        _fused_cnn_kernel,
        out_shape=jax.ShapeDtypeStruct((num_tiles, C_PAD, lane), jnp.float32),
        grid_spec=pltpu.PrefetchScalarGridSpec(
            num_scalar_prefetch=0,
            grid=(num_tiles,),
            in_specs=[
                pl.BlockSpec((1, C_PAD, lane), lambda n: (n, 0, 0)),
                # Grid-invariant blocks (constant index_map) -> not re-DMA'd per step.
                pl.BlockSpec((N_LAYERS, C_PAD, K_PAD), lambda n: (0, 0, 0)),
                pl.BlockSpec((1, lane), lambda n: (0, 0)),
            ],
            out_specs=pl.BlockSpec((1, C_PAD, lane), lambda n: (n, 0, 0)),
            scratch_shapes=[pltpu.VMEM((K_PAD, lane), jnp.float32)],
        ),
        compiler_params=pltpu.CompilerParams(
            dimension_semantics=("parallel",)),
    )


def _default_num_tiles(n_batch):
    """2 fat grid steps on v7x (2 TensorCores), 1 step on single-TC chips."""
    try:
        kind = jax.devices()[0].device_kind.lower()
    except Exception:
        kind = ""
    n_tc = 2 if ("v7" in kind or "7x" in kind) else 1
    return max(1, min(n_batch, n_tc))


@partial(jax.jit, static_argnames=("num_tiles",))
def cnn_forward(x_nchw, w_stack, mask_row, *, num_tiles):
    """x_nchw: (N, 3, H, W) f32 -> (N, 3, H, W) f32 through the 10 conv blocks."""
    N, C, _, _ = x_nchw.shape
    b_tile = -(-N // num_tiles)              # ceil(N / num_tiles)
    n_pad = num_tiles * b_tile
    # Build the zero-halo slabs once (channels -> sublanes, padded spatial -> lanes).
    xp = jnp.pad(x_nchw, ((0, n_pad - N), (0, C_PAD - C), (1, 1), (1, 1)))  # (n,8,18,18)
    x_slab = jnp.pad(xp.reshape(n_pad, C_PAD, P),
                     ((0, 0), (0, 0), (0, P_PAD - P)))                      # (n,8,384)
    # Concatenate B_TILE images along the lane axis per grid tile.
    x_slab = (x_slab.reshape(num_tiles, b_tile, C_PAD, P_PAD)
              .transpose(0, 2, 1, 3)
              .reshape(num_tiles, C_PAD, b_tile * P_PAD))                   # (t,8,B*384)
    mask = jnp.tile(mask_row, (1, b_tile))                                  # (1, B*384)

    out_slab = _fused_pallas_call(num_tiles, b_tile)(x_slab, w_stack, mask)

    out = (out_slab.reshape(num_tiles, C_PAD, b_tile, P_PAD)
           .transpose(0, 2, 1, 3)
           .reshape(n_pad, C_PAD, P_PAD))[:N, :3, :P]
    # Base layout: index y*WP + x for y,x < H,W; unflatten with stride WP and crop.
    return out.reshape(N, 3, HP, WP)[:, :, :H, :W]


def make_mask():
    p = np.arange(P_PAD)
    valid = ((p // WP) < H) & ((p % WP) < W) & (p < P)
    return jnp.asarray(valid.astype(np.float32)).reshape(1, P_PAD)


def init_params(layers, key):
    """Conv params for the 10 blocks (encoder then decoder order), HWIO layout."""
    chans = [3] + list(layers)                      # encoder: 3->l0->l1->l2->l3->l4
    enc = list(zip(chans[:-1], chans[1:]))
    dec = [(b, a) for (a, b) in reversed(enc)]      # decoder: l4->l3->...->l0->3
    params = []
    for cin, cout in enc + dec:
        kw, kb, key = jax.random.split(key, 3)
        fan_in = cin * 9
        bound = 1.0 / jnp.sqrt(fan_in)              # PyTorch Conv2d default init range
        w = jax.random.uniform(kw, (3, 3, cin, cout), jnp.float32, -bound, bound)
        b = jax.random.uniform(kb, (cout,), jnp.float32, -bound, bound)
        params.append((w, b))
    return params


def pack_params(params):
    """Zero-pad channels to C_PAD, pack weights as (layer, Cout, K_PAD) with the
    bias folded into column 9*C_PAD (fed by the constant-ones rows)."""
    mats = []
    for w, b in params:
        cin, cout = w.shape[2], w.shape[3]
        assert cin <= C_PAD and cout <= C_PAD
        w_p = jnp.zeros((3, 3, C_PAD, C_PAD), jnp.float32).at[:, :, :cin, :cout].set(w)
        # [cout, dy, dx, cin] -> flat column k = dy*3*C_PAD + dx*C_PAD + cin
        w_mat = jnp.transpose(w_p, (3, 0, 1, 2)).reshape(C_PAD, 9 * C_PAD)
        full = jnp.zeros((C_PAD, K_PAD), jnp.float32)
        full = full.at[:, :9 * C_PAD].set(w_mat)
        full = full.at[:cout, 9 * C_PAD].set(b)     # bias column; cols 73..79 stay 0
        mats.append(full)
    return jnp.stack(mats)                           # (10, 8, 80)


def cnn_reference(x_nchw, params):
    """Pure-JAX reference (lax.conv) for correctness check."""
    x = jnp.transpose(x_nchw, (0, 2, 3, 1))
    for w, b in params:
        y = jax.lax.conv_general_dilated(
            x, w, window_strides=(1, 1), padding="SAME",
            dimension_numbers=("NHWC", "HWIO", "NHWC"))
        x = jnp.maximum(y + b[None, None, None, :], 0.0)
    return jnp.transpose(x, (0, 3, 1, 2))


if __name__ == "__main__":
    key = jax.random.PRNGKey(0)
    kx, kp = jax.random.split(key)

    layers = [4, 8, 8, 8, 4]   # CNN(block, layers, skips) channel widths (max 8)
    skips = [0, 0, 0, 0, 0]    # unused (see TODO above)

    # Input: NCHW with 3 channels (layer0 maps 3 -> layers[0]).
    x = jax.random.normal(kx, (4, 3, H, W), jnp.float32)
    params = init_params(layers, kp)
    w_stack = pack_params(params)
    mask_row = make_mask()

    num_tiles = _default_num_tiles(x.shape[0])   # 2 on v7x, 1 on v5e/v6e
    out = cnn_forward(x, w_stack, mask_row, num_tiles=num_tiles)
    out = jax.block_until_ready(out)

    ref = cnn_reference(x, params)
    assert out.shape == (4, 3, 16, 16)
    assert jnp.allclose(out, ref, atol=1e-4, rtol=1e-4)

    print("KERNEL_OK")
</pallas_src>

<mosaic_0001>
module attributes {stable_mosaic.version = 11 : i64} {
  func.func @_fused_cnn_kernel(%arg0: i32, %arg1: memref<1x8x1536xf32, #tpu.memory_space<vmem>>, %arg2: memref<10x8x80xf32, #tpu.memory_space<vmem>>, %arg3: memref<1x1536xf32, #tpu.memory_space<vmem>>, %arg4: memref<1x8x1536xf32, #tpu.memory_space<vmem>>, %arg5: memref<80x1536xf32, #tpu.memory_space<vmem>>) attributes {dimension_semantics = [#tpu.dimension_semantics<parallel>], iteration_bounds = array<i64: 1>, scalar_prefetch = 0 : i64, scratch_operands = 1 : i64, tpu.core_type = #tpu.core_type<tc>, window_params = [{transform_indices = @transform_0, window_bounds = array<i64: 1, 8, 1536>}, {pipeline_mode = #tpu.pipeline_mode<synchronous>, transform_indices = @transform_1, window_bounds = array<i64: 10, 8, 80>}, {pipeline_mode = #tpu.pipeline_mode<synchronous>, transform_indices = @transform_2, window_bounds = array<i64: 1, 1536>}, {transform_indices = @transform_3, window_bounds = array<i64: 1, 8, 1536>}]} {
    %c0 = arith.constant 0 : index
    %c0_0 = arith.constant 0 : index
    %0 = vector.load %arg3[%c0, %c0_0] : memref<1x1536xf32, #tpu.memory_space<vmem>>, vector<1x1536xf32>
    %1 = vector.shape_cast %0 : vector<1x1536xf32> to vector<1x1536xf32>
    %2 = vector.broadcast %1 : vector<1x1536xf32> to vector<8x1536xf32>
    %cst = arith.constant 1.000000e+00 : f32
    %3 = vector.broadcast %cst : f32 to vector<8x1536xf32>
    %c72 = arith.constant 72 : index
    %c0_1 = arith.constant 0 : index
    %4 = vector.load %arg5[%c72, %c0_1] : memref<80x1536xf32, #tpu.memory_space<vmem>>, vector<8x1536xf32>
    tpu.vector_store %arg5[%c72, %c0_1], %3 {strides = array<i32>} : memref<80x1536xf32, #tpu.memory_space<vmem>>, vector<8x1536xf32>,
    %c0_2 = arith.constant 0 : index
    %c0_3 = arith.constant 0 : index
    %c0_4 = arith.constant 0 : index
    %5 = vector.load %arg1[%c0_2, %c0_3, %c0_4] : memref<1x8x1536xf32, #tpu.memory_space<vmem>>, vector<1x8x1536xf32>
    %6 = vector.shape_cast %5 : vector<1x8x1536xf32> to vector<8x1536xf32>
    %c0_5 = arith.constant 0 : index
    %c0_6 = arith.constant 0 : index
    %7 = vector.load %arg5[%c0_5, %c0_6] : memref<80x1536xf32, #tpu.memory_space<vmem>>, vector<8x1536xf32>
    tpu.vector_store %arg5[%c0_5, %c0_6], %6 {strides = array<i32>} : memref<80x1536xf32, #tpu.memory_space<vmem>>, vector<8x1536xf32>,
    %c1535_i32 = arith.constant 1535 : i32
    %8 = tpu.dynamic_rotate %6 by %c1535_i32 dim 1 : vector<8x1536xf32>, i32 -> vector<8x1536xf32>
    %c8 = arith.constant 8 : index
    %c0_7 = arith.constant 0 : index
    %9 = vector.load %arg5[%c8, %c0_7] : memref<80x1536xf32, #tpu.memory_space<vmem>>, vector<8x1536xf32>
    tpu.vector_store %arg5[%c8, %c0_7], %8 {strides = array<i32>} : memref<80x1536xf32, #tpu.memory_space<vmem>>, vector<8x1536xf32>,
    %c1534_i32 = arith.constant 1534 : i32
    %10 = tpu.dynamic_rotate %6 by %c1534_i32 dim 1 : vector<8x1536xf32>, i32 -> vector<8x1536xf32>
    %c16 = arith.constant 16 : index
    %c0_8 = arith.constant 0 : index
    %11 = vector.load %arg5[%c16, %c0_8] : memref<80x1536xf32, #tpu.memory_space<vmem>>, vector<8x1536xf32>
    tpu.vector_store %arg5[%c16, %c0_8], %10 {strides = array<i32>} : memref<80x1536xf32, #tpu.memory_space<vmem>>, vector<8x1536xf32>,
    %c1518_i32 = arith.constant 1518 : i32
    %12 = tpu.dynamic_rotate %6 by %c1518_i32 dim 1 : vector<8x1536xf32>, i32 -> vector<8x1536xf32>
    %c24 = arith.constant 24 : index
    %c0_9 = arith.constant 0 : index
    %13 = vector.load %arg5[%c24, %c0_9] : memref<80x1536xf32, #tpu.memory_space<vmem>>, vector<8x1536xf32>
    tpu.vector_store %arg5[%c24, %c0_9], %12 {strides = array<i32>} : memref<80x1536xf32, #tpu.memory_space<vmem>>, vector<8x1536xf32>,
    %c1517_i32 = arith.constant 1517 : i32
    %14 = tpu.dynamic_rotate %6 by %c1517_i32 dim 1 : vector<8x1536xf32>, i32 -> vector<8x1536xf32>
    %c32 = arith.constant 32 : index
    %c0_10 = arith.constant 0 : index
    %15 = vector.load %arg5[%c32, %c0_10] : memref<80x1536xf32, #tpu.memory_space<vmem>>, vector<8x1536xf32>
    tpu.vector_store %arg5[%c32, %c0_10], %14 {strides = array<i32>} : memref<80x1536xf32, #tpu.memory_space<vmem>>, vector<8x1536xf32>,
    %c1516_i32 = arith.constant 1516 : i32
    %16 = tpu.dynamic_rotate %6 by %c1516_i32 dim 1 : vector<8x1536xf32>, i32 -> vector<8x1536xf32>
    %c40 = arith.constant 40 : index
    %c0_11 = arith.constant 0 : index
    %17 = vector.load %arg5[%c40, %c0_11] : memref<80x1536xf32, #tpu.memory_space<vmem>>, vector<8x1536xf32>
    tpu.vector_store %arg5[%c40, %c0_11], %16 {strides = array<i32>} : memref<80x1536xf32, #tpu.memory_space<vmem>>, vector<8x1536xf32>,
    %c1500_i32 = arith.constant 1500 : i32
    %18 = tpu.dynamic_rotate %6 by %c1500_i32 dim 1 : vector<8x1536xf32>, i32 -> vector<8x1536xf32>
    %c48 = arith.constant 48 : index
    %c0_12 = arith.constant 0 : index
    %19 = vector.load %arg5[%c48, %c0_12] : memref<80x1536xf32, #tpu.memory_space<vmem>>, vector<8x1536xf32>
    tpu.vector_store %arg5[%c48, %c0_12], %18 {strides = array<i32>} : memref<80x1536xf32, #tpu.memory_space<vmem>>, vector<8x1536xf32>,
    %c1499_i32 = arith.constant 1499 : i32
    %20 = tpu.dynamic_rotate %6 by %c1499_i32 dim 1 : vector<8x1536xf32>, i32 -> vector<8x1536xf32>
    %c56 = arith.constant 56 : index
    %c0_13 = arith.constant 0 : index
    %21 = vector.load %arg5[%c56, %c0_13] : memref<80x1536xf32, #tpu.memory_space<vmem>>, vector<8x1536xf32>
    tpu.vector_store %arg5[%c56, %c0_13], %20 {strides = array<i32>} : memref<80x1536xf32, #tpu.memory_space<vmem>>, vector<8x1536xf32>,
    %c1498_i32 = arith.constant 1498 : i32
    %22 = tpu.dynamic_rotate %6 by %c1498_i32 dim 1 : vector<8x1536xf32>, i32 -> vector<8x1536xf32>
    %c64 = arith.constant 64 : index
    %c0_14 = arith.constant 0 : index
    %23 = vector.load %arg5[%c64, %c0_14] : memref<80x1536xf32, #tpu.memory_space<vmem>>, vector<8x1536xf32>
    tpu.vector_store %arg5[%c64, %c0_14], %22 {strides = array<i32>} : memref<80x1536xf32, #tpu.memory_space<vmem>>, vector<8x1536xf32>,
    %c0_15 = arith.constant 0 : index
    %c0_16 = arith.constant 0 : index
    %c0_17 = arith.constant 0 : index
    %24 = vector.load %arg2[%c0_15, %c0_16, %c0_17] : memref<10x8x80xf32, #tpu.memory_space<vmem>>, vector<1x8x80xf32>
    %25 = vector.shape_cast %24 : vector<1x8x80xf32> to vector<8x80xf32>
    %c0_18 = arith.constant 0 : index
    %c0_19 = arith.constant 0 : index
    %26 = vector.load %arg5[%c0_18, %c0_19] : memref<80x1536xf32, #tpu.memory_space<vmem>>, vector<80x1536xf32>
    %cst_20 = arith.constant dense<0.000000e+00> : vector<8x1536xf32>
    %27 = tpu.matmul %25, %26, %cst_20 {dimension_numbers = #tpu.dot_dimension_numbers<[1], [0], [0], [1], [0, 0, 1, 1], [], []>} : vector<8x80xf32>, vector<80x1536xf32>, vector<8x1536xf32> -> vector<8x1536xf32>
    %cst_21 = arith.constant 0.000000e+00 : f32
    %28 = vector.broadcast %cst_21 : f32 to vector<8x1536xf32>
    %29 = arith.maximumf %27, %28 : vector<8x1536xf32>
    %30 = arith.mulf %29, %2 : vector<8x1536xf32>
    %c19_i32 = arith.constant 19 : i32
    %31 = tpu.dynamic_rotate %30 by %c19_i32 dim 1 : vector<8x1536xf32>, i32 -> vector<8x1536xf32>
    %c0_22 = arith.constant 0 : index
    %c0_23 = arith.constant 0 : index
    %32 = vector.load %arg5[%c0_22, %c0_23] : memref<80x1536xf32, #tpu.memory_space<vmem>>, vector<8x1536xf32>
    tpu.vector_store %arg5[%c0_22, %c0_23], %31 {strides = array<i32>} : memref<80x1536xf32, #tpu.memory_space<vmem>>, vector<8x1536xf32>,
    %c18_i32 = arith.constant 18 : i32
    %33 = tpu.dynamic_rotate %30 by %c18_i32 dim 1 : vector<8x1536xf32>, i32 -> vector<8x1536xf32>
    %c8_24 = arith.constant 8 : index
    %c0_25 = arith.constant 0 : index
    %34 = vector.load %arg5[%c8_24, %c0_25] : memref<80x1536xf32, #tpu.memory_space<vmem>>, vector<8x1536xf32>
    tpu.vector_store %arg5[%c8_24, %c0_25], %33 {strides = array<i32>} : memref<80x1536xf32, #tpu.memory_space<vmem>>, vector<8x1536xf32>,
    %c17_i32 = arith.constant 17 : i32
    %35 = tpu.dynamic_rotate %30 by %c17_i32 dim 1 : vector<8x1536xf32>, i32 -> vector<8x1536xf32>
    %c16_26 = arith.constant 16 : index
    %c0_27 = arith.constant 0 : index
    %36 = vector.load %arg5[%c16_26, %c0_27] : memref<80x1536xf32, #tpu.memory_space<vmem>>, vector<8x1536xf32>
    tpu.vector_store %arg5[%c16_26, %c0_27], %35 {strides = array<i32>} : memref<80x1536xf32, #tpu.memory_space<vmem>>, vector<8x1536xf32>,
    %c1_i32 = arith.constant 1 : i32
    %37 = tpu.dynamic_rotate %30 by %c1_i32 dim 1 : vector<8x1536xf32>, i32 -> vector<8x1536xf32>
    %c24_28 = arith.constant 24 : index
    %c0_29 = arith.constant 0 : index
    %38 = vector.load %arg5[%c24_28, %c0_29] : memref<80x1536xf32, #tpu.memory_space<vmem>>, vector<8x1536xf32>
    tpu.vector_store %arg5[%c24_28, %c0_29], %37 {strides = array<i32>} : memref<80x1536xf32, #tpu.memory_space<vmem>>, vector<8x1536xf32>,
    %c32_30 = arith.constant 32 : index
    %c0_31 = arith.constant 0 : index
    %39 = vector.load %arg5[%c32_30, %c0_31] : memref<80x1536xf32, #tpu.memory_space<vmem>>, vector<8x1536xf32>
    tpu.vector_store %arg5[%c32_30, %c0_31], %30 {strides = array<i32>} : memref<80x1536xf32, #tpu.memory_space<vmem>>, vector<8x1536xf32>,
    %c1535_i32_32 = arith.constant 1535 : i32
    %40 = tpu.dynamic_rotate %30 by %c1535_i32_32 dim 1 : vector<8x1536xf32>, i32 -> vector<8x1536xf32>
    %c40_33 = arith.constant 40 : index
    %c0_34 = arith.constant 0 : index
    %41 = vector.load %arg5[%c40_33, %c0_34] : memref<80x1536xf32, #tpu.memory_space<vmem>>, vector<8x1536xf32>
    tpu.vector_store %arg5[%c40_33, %c0_34], %40 {strides = array<i32>} : memref<80x1536xf32, #tpu.memory_space<vmem>>, vector<8x1536xf32>,
    %c1519_i32 = arith.constant 1519 : i32
    %42 = tpu.dynamic_rotate %30 by %c1519_i32 dim 1 : vector<8x1536xf32>, i32 -> vector<8x1536xf32>
    %c48_35 = arith.constant 48 : index
    %c0_36 = arith.constant 0 : index
    %43 = vector.load %arg5[%c48_35, %c0_36] : memref<80x1536xf32, #tpu.memory_space<vmem>>, vector<8x1536xf32>
    tpu.vector_store %arg5[%c48_35, %c0_36], %42 {strides = array<i32>} : memref<80x1536xf32, #tpu.memory_space<vmem>>, vector<8x1536xf32>,
    %c1518_i32_37 = arith.constant 1518 : i32
    %44 = tpu.dynamic_rotate %30 by %c1518_i32_37 dim 1 : vector<8x1536xf32>, i32 -> vector<8x1536xf32>
    %c56_38 = arith.constant 56 : index
    %c0_39 = arith.constant 0 : index
    %45 = vector.load %arg5[%c56_38, %c0_39] : memref<80x1536xf32, #tpu.memory_space<vmem>>, vector<8x1536xf32>
    tpu.vector_store %arg5[%c56_38, %c0_39], %44 {strides = array<i32>} : memref<80x1536xf32, #tpu.memory_space<vmem>>, vector<8x1536xf32>,
    %c1517_i32_40 = arith.constant 1517 : i32
    %46 = tpu.dynamic_rotate %30 by %c1517_i32_40 dim 1 : vector<8x1536xf32>, i32 -> vector<8x1536xf32>
    %c64_41 = arith.constant 64 : index
    %c0_42 = arith.constant 0 : index
    %47 = vector.load %arg5[%c64_41, %c0_42] : memref<80x1536xf32, #tpu.memory_space<vmem>>, vector<8x1536xf32>
    tpu.vector_store %arg5[%c64_41, %c0_42], %46 {strides = array<i32>} : memref<80x1536xf32, #tpu.memory_space<vmem>>, vector<8x1536xf32>,
    %c1 = arith.constant 1 : index
    %c0_43 = arith.constant 0 : index
    %c0_44 = arith.constant 0 : index
    %48 = vector.load %arg2[%c1, %c0_43, %c0_44] : memref<10x8x80xf32, #tpu.memory_space<vmem>>, vector<1x8x80xf32>
    %49 = vector.shape_cast %48 : vector<1x8x80xf32> to vector<8x80xf32>
    %c0_45 = arith.constant 0 : index
    %c0_46 = arith.constant 0 : index
    %50 = vector.load %arg5[%c0_45, %c0_46] : memref<80x1536xf32, #tpu.memory_space<vmem>>, vector<80x1536xf32>
    %cst_47 = arith.constant dense<0.000000e+00> : vector<8x1536xf32>
    %51 = tpu.matmul %49, %50, %cst_47 {dimension_numbers = #tpu.dot_dimension_numbers<[1], [0], [0], [1], [0, 0, 1, 1], [], []>} : vector<8x80xf32>, vector<80x1536xf32>, vector<8x1536xf32> -> vector<8x1536xf32>
    %cst_48 = arith.constant 0.000000e+00 : f32
    %52 = vector.broadcast %cst_48 : f32 to vector<8x1536xf32>
    %53 = arith.maximumf %51, %52 : vector<8x1536xf32>
    %54 = arith.mulf %53, %2 : vector<8x1536xf32>
    %c19_i32_49 = arith.constant 19 : i32
    %55 = tpu.dynamic_rotate %54 by %c19_i32_49 dim 1 : vector<8x1536xf32>, i32 -> vector<8x1536xf32>
    %c0_50 = arith.constant 0 : index
    %c0_51 = arith.constant 0 : index
    %56 = vector.load %arg5[%c0_50, %c0_51] : memref<80x1536xf32, #tpu.memory_space<vmem>>, vector<8x1536xf32>
    tpu.vector_store %arg5[%c0_50, %c0_51], %55 {strides = array<i32>} : memref<80x1536xf32, #tpu.memory_space<vmem>>, vector<8x1536xf32>,
    %c18_i32_52 = arith.constant 18 : i32
    %57 = tpu.dynamic_rotate %54 by %c18_i32_52 dim 1 : vector<8x1536xf32>, i32 -> vector<8x1536xf32>
    %c8_53 = arith.constant 8 : index
    %c0_54 = arith.constant 0 : index
    %58 = vector.load %arg5[%c8_53, %c0_54] : memref<80x1536xf32, #tpu.memory_space<vmem>>, vector<8x1536xf32>
    tpu.vector_store %arg5[%c8_53, %c0_54], %57 {strides = array<i32>} : memref<80x1536xf32, #tpu.memory_space<vmem>>, vector<8x1536xf32>,
    %c17_i32_55 = arith.constant 17 : i32
    %59 = tpu.dynamic_rotate %54 by %c17_i32_55 dim 1 : vector<8x1536xf32>, i32 -> vector<8x1536xf32>
    %c16_56 = arith.constant 16 : index
    %c0_57 = arith.constant 0 : index
    %60 = vector.load %arg5[%c16_56, %c0_57] : memref<80x1536xf32, #tpu.memory_space<vmem>>, vector<8x1536xf32>
    tpu.vector_store %arg5[%c16_56, %c0_57], %59 {strides = array<i32>} : memref<80x1536xf32, #tpu.memory_space<vmem>>, vector<8x1536xf32>,
    %c1_i32_58 = arith.constant 1 : i32
    %61 = tpu.dynamic_rotate %54 by %c1_i32_58 dim 1 : vector<8x1536xf32>, i32 -> vector<8x1536xf32>
    %c24_59 = arith.constant 24 : index
    %c0_60 = arith.constant 0 : index
    %62 = vector.load %arg5[%c24_59, %c0_60] : memref<80x1536xf32, #tpu.memory_space<vmem>>, vector<8x1536xf32>
    tpu.vector_store %arg5[%c24_59, %c0_60], %61 {strides = array<i32>} : memref<80x1536xf32, #tpu.memory_space<vmem>>, vector<8x1536xf32>,
    %c32_61 = arith.constant 32 : index
    %c0_62 = arith.constant 0 : index
    %63 = vector.load %arg5[%c32_61, %c0_62] : memref<80x1536xf32, #tpu.memory_space<vmem>>, vector<8x1536xf32>
    tpu.vector_store %arg5[%c32_61, %c0_62], %54 {strides = array<i32>} : memref<80x1536xf32, #tpu.memory_space<vmem>>, vector<8x1536xf32>,
    %c1535_i32_63 = arith.constant 1535 : i32
    %64 = tpu.dynamic_rotate %54 by %c1535_i32_63 dim 1 : vector<8x1536xf32>, i32 -> vector<8x1536xf32>
    %c40_64 = arith.constant 40 : index
    %c0_65 = arith.constant 0 : index
    %65 = vector.load %arg5[%c40_64, %c0_65] : memref<80x1536xf32, #tpu.memory_space<vmem>>, vector<8x1536xf32>
    tpu.vector_store %arg5[%c40_64, %c0_65], %64 {strides = array<i32>} : memref<80x1536xf32, #tpu.memory_space<vmem>>, vector<8x1536xf32>,
    %c1519_i32_66 = arith.constant 1519 : i32
    %66 = tpu.dynamic_rotate %54 by %c1519_i32_66 dim 1 : vector<8x1536xf32>, i32 -> vector<8x1536xf32>
    %c48_67 = arith.constant 48 : index
    %c0_68 = arith.constant 0 : index
    %67 = vector.load %arg5[%c48_67, %c0_68] : memref<80x1536xf32, #tpu.memory_space<vmem>>, vector<8x1536xf32>
    tpu.vector_store %arg5[%c48_67, %c0_68], %66 {strides = array<i32>} : memref<80x1536xf32, #tpu.memory_space<vmem>>, vector<8x1536xf32>,
    %c1518_i32_69 = arith.constant 1518 : i32
    %68 = tpu.dynamic_rotate %54 by %c1518_i32_69 dim 1 : vector<8x1536xf32>, i32 -> vector<8x1536xf32>
    %c56_70 = arith.constant 56 : index
    %c0_71 = arith.constant 0 : index
    %69 = vector.load %arg5[%c56_70, %c0_71] : memref<80x1536xf32, #tpu.memory_space<vmem>>, vector<8x1536xf32>
    tpu.vector_store %arg5[%c56_70, %c0_71], %68 {strides = array<i32>} : memref<80x1536xf32, #tpu.memory_space<vmem>>, vector<8x1536xf32>,
    %c1517_i32_72 = arith.constant 1517 : i32
    %70 = tpu.dynamic_rotate %54 by %c1517_i32_72 dim 1 : vector<8x1536xf32>, i32 -> vector<8x1536xf32>
    %c64_73 = arith.constant 64 : index
    %c0_74 = arith.constant 0 : index
    %71 = vector.load %arg5[%c64_73, %c0_74] : memref<80x1536xf32, #tpu.memory_space<vmem>>, vector<8x1536xf32>
    tpu.vector_store %arg5[%c64_73, %c0_74], %70 {strides = array<i32>} : memref<80x1536xf32, #tpu.memory_space<vmem>>, vector<8x1536xf32>,
    %c2 = arith.constant 2 : index
    %c0_75 = arith.constant 0 : index
    %c0_76 = arith.constant 0 : index
    %72 = vector.load %arg2[%c2, %c0_75, %c0_76] : memref<10x8x80xf32, #tpu.memory_space<vmem>>, vector<1x8x80xf32>
    %73 = vector.shape_cast %72 : vector<1x8x80xf32> to vector<8x80xf32>
    %c0_77 = arith.constant 0 : index
    %c0_78 = arith.constant 0 : index
    %74 = vector.load %arg5[%c0_77, %c0_78] : memref<80x1536xf32, #tpu.memory_space<vmem>>, vector<80x1536xf32>
    %cst_79 = arith.constant dense<0.000000e+00> : vector<8x1536xf32>
    %75 = tpu.matmul %73, %74, %cst_79 {dimension_numbers = #tpu.dot_dimension_numbers<[1], [0], [0], [1], [0, 0, 1, 1], [], []>} : vector<8x80xf32>, vector<80x1536xf32>, vector<8x1536xf32> -> vector<8x1536xf32>
    %cst_80 = arith.constant 0.000000e+00 : f32
    %76 = vector.broadcast %cst_80 : f32 to vector<8x1536xf32>
    %77 = arith.maximumf %75, %76 : vector<8x1536xf32>
    %78 = arith.mulf %77, %2 : vector<8x1536xf32>
    %c19_i32_81 = arith.constant 19 : i32
    %79 = tpu.dynamic_rotate %78 by %c19_i32_81 dim 1 : vector<8x1536xf32>, i32 -> vector<8x1536xf32>
    %c0_82 = arith.constant 0 : index
    %c0_83 = arith.constant 0 : index
    %80 = vector.load %arg5[%c0_82, %c0_83] : memref<80x1536xf32, #tpu.memory_space<vmem>>, vector<8x1536xf32>
    tpu.vector_store %arg5[%c0_82, %c0_83], %79 {strides = array<i32>} : memref<80x1536xf32, #tpu.memory_space<vmem>>, vector<8x1536xf32>,
    %c18_i32_84 = arith.constant 18 : i32
    %81 = tpu.dynamic_rotate %78 by %c18_i32_84 dim 1 : vector<8x1536xf32>, i32 -> vector<8x1536xf32>
    %c8_85 = arith.constant 8 : index
    %c0_86 = arith.constant 0 : index
    %82 = vector.load %arg5[%c8_85, %c0_86] : memref<80x1536xf32, #tpu.memory_space<vmem>>, vector<8x1536xf32>
    tpu.vector_store %arg5[%c8_85, %c0_86], %81 {strides = array<i32>} : memref<80x1536xf32, #tpu.memory_space<vmem>>, vector<8x1536xf32>,
    %c17_i32_87 = arith.constant 17 : i32
    %83 = tpu.dynamic_rotate %78 by %c17_i32_87 dim 1 : vector<8x1536xf32>, i32 -> vector<8x1536xf32>
    %c16_88 = arith.constant 16 : index
    %c0_89 = arith.constant 0 : index
    %84 = vector.load %arg5[%c16_88, %c0_89] : memref<80x1536xf32, #tpu.memory_space<vmem>>, vector<8x1536xf32>
    tpu.vector_store %arg5[%c16_88, %c0_89], %83 {strides = array<i32>} : memref<80x1536xf32, #tpu.memory_space<vmem>>, vector<8x1536xf32>,
    %c1_i32_90 = arith.constant 1 : i32
    %85 = tpu.dynamic_rotate %78 by %c1_i32_90 dim 1 : vector<8x1536xf32>, i32 -> vector<8x1536xf32>
    %c24_91 = arith.constant 24 : index
    %c0_92 = arith.constant 0 : index
    %86 = vector.load %arg5[%c24_91, %c0_92] : memref<80x1536xf32, #tpu.memory_space<vmem>>, vector<8x1536xf32>
    tpu.vector_store %arg5[%c24_91, %c0_92], %85 {strides = array<i32>} : memref<80x1536xf32, #tpu.memory_space<vmem>>, vector<8x1536xf32>,
    %c32_93 = arith.constant 32 : index
    %c0_94 = arith.constant 0 : index
    %87 = vector.load %arg5[%c32_93, %c0_94] : memref<80x1536xf32, #tpu.memory_space<vmem>>, vector<8x1536xf32>
    tpu.vector_store %arg5[%c32_93, %c0_94], %78 {strides = array<i32>} : memref<80x1536xf32, #tpu.memory_space<vmem>>, vector<8x1536xf32>,
    %c1535_i32_95 = arith.constant 1535 : i32
    %88 = tpu.dynamic_rotate %78 by %c1535_i32_95 dim 1 : vector<8x1536xf32>, i32 -> vector<8x1536xf32>
    %c40_96 = arith.constant 40 : index
    %c0_97 = arith.constant 0 : index
    %89 = vector.load %arg5[%c40_96, %c0_97] : memref<80x1536xf32, #tpu.memory_space<vmem>>, vector<8x1536xf32>
    tpu.vector_store %arg5[%c40_96, %c0_97], %88 {strides = array<i32>} : memref<80x1536xf32, #tpu.memory_space<vmem>>, vector<8x1536xf32>,
    %c1519_i32_98 = arith.constant 1519 : i32
    %90 = tpu.dynamic_rotate %78 by %c1519_i32_98 dim 1 : vector<8x1536xf32>, i32 -> vector<8x1536xf32>
    %c48_99 = arith.constant 48 : index
    %c0_100 = arith.constant 0 : index
    %91 = vector.load %arg5[%c48_99, %c0_100] : memref<80x1536xf32, #tpu.memory_space<vmem>>, vector<8x1536xf32>
    tpu.vector_store %arg5[%c48_99, %c0_100], %90 {strides = array<i32>} : memref<80x1536xf32, #tpu.memory_space<vmem>>, vector<8x1536xf32>,
    %c1518_i32_101 = arith.constant 1518 : i32
    %92 = tpu.dynamic_rotate %78 by %c1518_i32_101 dim 1 : vector<8x1536xf32>, i32 -> vector<8x1536xf32>
    %c56_102 = arith.constant 56 : index
    %c0_103 = arith.constant 0 : index
    %93 = vector.load %arg5[%c56_102, %c0_103] : memref<80x1536xf32, #tpu.memory_space<vmem>>, vector<8x1536xf32>
    tpu.vector_store %arg5[%c56_102, %c0_103], %92 {strides = array<i32>} : memref<80x1536xf32, #tpu.memory_space<vmem>>, vector<8x1536xf32>,
    %c1517_i32_104 = arith.constant 1517 : i32
    %94 = tpu.dynamic_rotate %78 by %c1517_i32_104 dim 1 : vector<8x1536xf32>, i32 -> vector<8x1536xf32>
    %c64_105 = arith.constant 64 : index
    %c0_106 = arith.constant 0 : index
    %95 = vector.load %arg5[%c64_105, %c0_106] : memref<80x1536xf32, #tpu.memory_space<vmem>>, vector<8x1536xf32>
    tpu.vector_store %arg5[%c64_105, %c0_106], %94 {strides = array<i32>} : memref<80x1536xf32, #tpu.memory_space<vmem>>, vector<8x1536xf32>,
    %c3 = arith.constant 3 : index
    %c0_107 = arith.constant 0 : index
    %c0_108 = arith.constant 0 : index
    %96 = vector.load %arg2[%c3, %c0_107, %c0_108] : memref<10x8x80xf32, #tpu.memory_space<vmem>>, vector<1x8x80xf32>
    %97 = vector.shape_cast %96 : vector<1x8x80xf32> to vector<8x80xf32>
    %c0_109 = arith.constant 0 : index
    %c0_110 = arith.constant 0 : index
    %98 = vector.load %arg5[%c0_109, %c0_110] : memref<80x1536xf32, #tpu.memory_space<vmem>>, vector<80x1536xf32>
    %cst_111 = arith.constant dense<0.000000e+00> : vector<8x1536xf32>
    %99 = tpu.matmul %97, %98, %cst_111 {dimension_numbers = #tpu.dot_dimension_numbers<[1], [0], [0], [1], [0, 0, 1, 1], [], []>} : vector<8x80xf32>, vector<80x1536xf32>, vector<8x1536xf32> -> vector<8x1536xf32>
    %cst_112 = arith.constant 0.000000e+00 : f32
    %100 = vector.broadcast %cst_112 : f32 to vector<8x1536xf32>
    %101 = arith.maximumf %99, %100 : vector<8x1536xf32>
    %102 = arith.mulf %101, %2 : vector<8x1536xf32>
    %c19_i32_113 = arith.constant 19 : i32
    %103 = tpu.dynamic_rotate %102 by %c19_i32_113 dim 1 : vector<8x1536xf32>, i32 -> vector<8x1536xf32>
    %c0_114 = arith.constant 0 : index
    %c0_115 = arith.constant 0 : index
    %104 = vector.load %arg5[%c0_114, %c0_115] : memref<80x1536xf32, #tpu.memory_space<vmem>>, vector<8x1536xf32>
    tpu.vector_store %arg5[%c0_114, %c0_115], %103 {strides = array<i32>} : memref<80x1536xf32, #tpu.memory_space<vmem>>, vector<8x1536xf32>,
    %c18_i32_116 = arith.constant 18 : i32
    %105 = tpu.dynamic_rotate %102 by %c18_i32_116 dim 1 : vector<8x1536xf32>, i32 -> vector<8x1536xf32>
    %c8_117 = arith.constant 8 : index
    %c0_118 = arith.constant 0 : index
    %106 = vector.load %arg5[%c8_117, %c0_118] : memref<80x1536xf32, #tpu.memory_space<vmem>>, vector<8x1536xf32>
    tpu.vector_store %arg5[%c8_117, %c0_118], %105 {strides = array<i32>} : memref<80x1536xf32, #tpu.memory_space<vmem>>, vector<8x1536xf32>,
    %c17_i32_119 = arith.constant 17 : i32
    %107 = tpu.dynamic_rotate %102 by %c17_i32_119 dim 1 : vector<8x1536xf32>, i32 -> vector<8x1536xf32>
    %c16_120 = arith.constant 16 : index
    %c0_121 = arith.constant 0 : index
    %108 = vector.load %arg5[%c16_120, %c0_121] : memref<80x1536xf32, #tpu.memory_space<vmem>>, vector<8x1536xf32>
    tpu.vector_store %arg5[%c16_120, %c0_121], %107 {strides = array<i32>} : memref<80x1536xf32, #tpu.memory_space<vmem>>, vector<8x1536xf32>,
    %c1_i32_122 = arith.constant 1 : i32
    %109 = tpu.dynamic_rotate %102 by %c1_i32_122 dim 1 : vector<8x1536xf32>, i32 -> vector<8x1536xf32>
    %c24_123 = arith.constant 24 : index
    %c0_124 = arith.constant 0 : index
    %110 = vector.load %arg5[%c24_123, %c0_124] : memref<80x1536xf32, #tpu.memory_space<vmem>>, vector<8x1536xf32>
    tpu.vector_store %arg5[%c24_123, %c0_124], %109 {strides = array<i32>} : memref<80x1536xf32, #tpu.memory_space<vmem>>, vector<8x1536xf32>,
    %c32_125 = arith.constant 32 : index
    %c0_126 = arith.constant 0 : index
    %111 = vector.load %arg5[%c32_125, %c0_126] : memref<80x1536xf32, #tpu.memory_space<vmem>>, vector<8x1536xf32>
    tpu.vector_store %arg5[%c32_125, %c0_126], %102 {strides = array<i32>} : memref<80x1536xf32, #tpu.memory_space<vmem>>, vector<8x1536xf32>,
    %c1535_i32_127 = arith.constant 1535 : i32
    %112 = tpu.dynamic_rotate %102 by %c1535_i32_127 dim 1 : vector<8x1536xf32>, i32 -> vector<8x1536xf32>
    %c40_128 = arith.constant 40 : index
    %c0_129 = arith.constant 0 : index
    %113 = vector.load %arg5[%c40_128, %c0_129] : memref<80x1536xf32, #tpu.memory_space<vmem>>, vector<8x1536xf32>
    tpu.vector_store %arg5[%c40_128, %c0_129], %112 {strides = array<i32>} : memref<80x1536xf32, #tpu.memory_space<vmem>>, vector<8x1536xf32>,
    %c1519_i32_130 = arith.constant 1519 : i32
    %114 = tpu.dynamic_rotate %102 by %c1519_i32_130 dim 1 : vector<8x1536xf32>, i32 -> vector<8x1536xf32>
    %c48_131 = arith.constant 48 : index
    %c0_132 = arith.constant 0 : index
    %115 = vector.load %arg5[%c48_131, %c0_132] : memref<80x1536xf32, #tpu.memory_space<vmem>>, vector<8x1536xf32>
    tpu.vector_store %arg5[%c48_131, %c0_132], %114 {strides = array<i32>} : memref<80x1536xf32, #tpu.memory_space<vmem>>, vector<8x1536xf32>,
    %c1518_i32_133 = arith.constant 1518 : i32
    %116 = tpu.dynamic_rotate %102 by %c1518_i32_133 dim 1 : vector<8x1536xf32>, i32 -> vector<8x1536xf32>
    %c56_134 = arith.constant 56 : index
    %c0_135 = arith.constant 0 : index
    %117 = vector.load %arg5[%c56_134, %c0_135] : memref<80x1536xf32, #tpu.memory_space<vmem>>, vector<8x1536xf32>
    tpu.vector_store %arg5[%c56_134, %c0_135], %116 {strides = array<i32>} : memref<80x1536xf32, #tpu.memory_space<vmem>>, vector<8x1536xf32>,
    %c1517_i32_136 = arith.constant 1517 : i32
    %118 = tpu.dynamic_rotate %102 by %c1517_i32_136 dim 1 : vector<8x1536xf32>, i32 -> vector<8x1536xf32>
    %c64_137 = arith.constant 64 : index
    %c0_138 = arith.constant 0 : index
    %119 = vector.load %arg5[%c64_137, %c0_138] : memref<80x1536xf32, #tpu.memory_space<vmem>>, vector<8x1536xf32>
    tpu.vector_store %arg5[%c64_137, %c0_138], %118 {strides = array<i32>} : memref<80x1536xf32, #tpu.memory_space<vmem>>, vector<8x1536xf32>,
    %c4 = arith.constant 4 : index
    %c0_139 = arith.constant 0 : index
    %c0_140 = arith.constant 0 : index
    %120 = vector.load %arg2[%c4, %c0_139, %c0_140] : memref<10x8x80xf32, #tpu.memory_space<vmem>>, vector<1x8x80xf32>
    %121 = vector.shape_cast %120 : vector<1x8x80xf32> to vector<8x80xf32>
    %c0_141 = arith.constant 0 : index
    %c0_142 = arith.constant 0 : index
    %122 = vector.load %arg5[%c0_141, %c0_142] : memref<80x1536xf32, #tpu.memory_space<vmem>>, vector<80x1536xf32>
    %cst_143 = arith.constant dense<0.000000e+00> : vector<8x1536xf32>
    %123 = tpu.matmul %121, %122, %cst_143 {dimension_numbers = #tpu.dot_dimension_numbers<[1], [0], [0], [1], [0, 0, 1, 1], [], []>} : vector<8x80xf32>, vector<80x1536xf32>, vector<8x1536xf32> -> vector<8x1536xf32>
    %cst_144 = arith.constant 0.000000e+00 : f32
    %124 = vector.broadcast %cst_144 : f32 to vector<8x1536xf32>
    %125 = arith.maximumf %123, %124 : vector<8x1536xf32>
    %126 = arith.mulf %125, %2 : vector<8x1536xf32>
    %c19_i32_145 = arith.constant 19 : i32
    %127 = tpu.dynamic_rotate %126 by %c19_i32_145 dim 1 : vector<8x1536xf32>, i32 -> vector<8x1536xf32>
    %c0_146 = arith.constant 0 : index
    %c0_147 = arith.constant 0 : index
    %128 = vector.load %arg5[%c0_146, %c0_147] : memref<80x1536xf32, #tpu.memory_space<vmem>>, vector<8x1536xf32>
    tpu.vector_store %arg5[%c0_146, %c0_147], %127 {strides = array<i32>} : memref<80x1536xf32, #tpu.memory_space<vmem>>, vector<8x1536xf32>,
    %c18_i32_148 = arith.constant 18 : i32
    %129 = tpu.dynamic_rotate %126 by %c18_i32_148 dim 1 : vector<8x1536xf32>, i32 -> vector<8x1536xf32>
    %c8_149 = arith.constant 8 : index
    %c0_150 = arith.constant 0 : index
    %130 = vector.load %arg5[%c8_149, %c0_150] : memref<80x1536xf32, #tpu.memory_space<vmem>>, vector<8x1536xf32>
    tpu.vector_store %arg5[%c8_149, %c0_150], %129 {strides = array<i32>} : memref<80x1536xf32, #tpu.memory_space<vmem>>, vector<8x1536xf32>,
    %c17_i32_151 = arith.constant 17 : i32
    %131 = tpu.dynamic_rotate %126 by %c17_i32_151 dim 1 : vector<8x1536xf32>, i32 -> vector<8x1536xf32>
    %c16_152 = arith.constant 16 : index
    %c0_153 = arith.constant 0 : index
    %132 = vector.load %arg5[%c16_152, %c0_153] : memref<80x1536xf32, #tpu.memory_space<vmem>>, vector<8x1536xf32>
    tpu.vector_store %arg5[%c16_152, %c0_153], %131 {strides = array<i32>} : memref<80x1536xf32, #tpu.memory_space<vmem>>, vector<8x1536xf32>,
    %c1_i32_154 = arith.constant 1 : i32
    %133 = tpu.dynamic_rotate %126 by %c1_i32_154 dim 1 : vector<8x1536xf32>, i32 -> vector<8x1536xf32>
    %c24_155 = arith.constant 24 : index
    %c0_156 = arith.constant 0 : index
    %134 = vector.load %arg5[%c24_155, %c0_156] : memref<80x1536xf32, #tpu.memory_space<vmem>>, vector<8x1536xf32>
    tpu.vector_store %arg5[%c24_155, %c0_156], %133 {strides = array<i32>} : memref<80x1536xf32, #tpu.memory_space<vmem>>, vector<8x1536xf32>,
    %c32_157 = arith.constant 32 : index
    %c0_158 = arith.constant 0 : index
    %135 = vector.load %arg5[%c32_157, %c0_158] : memref<80x1536xf32, #tpu.memory_space<vmem>>, vector<8x1536xf32>
    tpu.vector_store %arg5[%c32_157, %c0_158], %126 {strides = array<i32>} : memref<80x1536xf32, #tpu.memory_space<vmem>>, vector<8x1536xf32>,
    %c1535_i32_159 = arith.constant 1535 : i32
    %136 = tpu.dynamic_rotate %126 by %c1535_i32_159 dim 1 : vector<8x1536xf32>, i32 -> vector<8x1536xf32>
    %c40_160 = arith.constant 40 : index
    %c0_161 = arith.constant 0 : index
    %137 = vector.load %arg5[%c40_160, %c0_161] : memref<80x1536xf32, #tpu.memory_space<vmem>>, vector<8x1536xf32>
    tpu.vector_store %arg5[%c40_160, %c0_161], %136 {strides = array<i32>} : memref<80x1536xf32, #tpu.memory_space<vmem>>, vector<8x1536xf32>,
    %c1519_i32_162 = arith.constant 1519 : i32
    %138 = tpu.dynamic_rotate %126 by %c1519_i32_162 dim 1 : vector<8x1536xf32>, i32 -> vector<8x1536xf32>
    %c48_163 = arith.constant 48 : index
    %c0_164 = arith.constant 0 : index
    %139 = vector.load %arg5[%c48_163, %c0_164] : memref<80x1536xf32, #tpu.memory_space<vmem>>, vector<8x1536xf32>
    tpu.vector_store %arg5[%c48_163, %c0_164], %138 {strides = array<i32>} : memref<80x1536xf32, #tpu.memory_space<vmem>>, vector<8x1536xf32>,
    %c1518_i32_165 = arith.constant 1518 : i32
    %140 = tpu.dynamic_rotate %126 by %c1518_i32_165 dim 1 : vector<8x1536xf32>, i32 -> vector<8x1536xf32>
    %c56_166 = arith.constant 56 : index
    %c0_167 = arith.constant 0 : index
    %141 = vector.load %arg5[%c56_166, %c0_167] : memref<80x1536xf32, #tpu.memory_space<vmem>>, vector<8x1536xf32>
    tpu.vector_store %arg5[%c56_166, %c0_167], %140 {strides = array<i32>} : memref<80x1536xf32, #tpu.memory_space<vmem>>, vector<8x1536xf32>,
    %c1517_i32_168 = arith.constant 1517 : i32
    %142 = tpu.dynamic_rotate %126 by %c1517_i32_168 dim 1 : vector<8x1536xf32>, i32 -> vector<8x1536xf32>
    %c64_169 = arith.constant 64 : index
    %c0_170 = arith.constant 0 : index
    %143 = vector.load %arg5[%c64_169, %c0_170] : memref<80x1536xf32, #tpu.memory_space<vmem>>, vector<8x1536xf32>
    tpu.vector_store %arg5[%c64_169, %c0_170], %142 {strides = array<i32>} : memref<80x1536xf32, #tpu.memory_space<vmem>>, vector<8x1536xf32>,
    %c5 = arith.constant 5 : index
    %c0_171 = arith.constant 0 : index
    %c0_172 = arith.constant 0 : index
    %144 = vector.load %arg2[%c5, %c0_171, %c0_172] : memref<10x8x80xf32, #tpu.memory_space<vmem>>, vector<1x8x80xf32>
    %145 = vector.shape_cast %144 : vector<1x8x80xf32> to vector<8x80xf32>
    %c0_173 = arith.constant 0 : index
    %c0_174 = arith.constant 0 : index
    %146 = vector.load %arg5[%c0_173, %c0_174] : memref<80x1536xf32, #tpu.memory_space<vmem>>, vector<80x1536xf32>
    %cst_175 = arith.constant dense<0.000000e+00> : vector<8x1536xf32>
    %147 = tpu.matmul %145, %146, %cst_175 {dimension_numbers = #tpu.dot_dimension_numbers<[1], [0], [0], [1], [0, 0, 1, 1], [], []>} : vector<8x80xf32>, vector<80x1536xf32>, vector<8x1536xf32> -> vector<8x1536xf32>
    %cst_176 = arith.constant 0.000000e+00 : f32
    %148 = vector.broadcast %cst_176 : f32 to vector<8x1536xf32>
    %149 = arith.maximumf %147, %148 : vector<8x1536xf32>
    %150 = arith.mulf %149, %2 : vector<8x1536xf32>
    %c19_i32_177 = arith.constant 19 : i32
    %151 = tpu.dynamic_rotate %150 by %c19_i32_177 dim 1 : vector<8x1536xf32>, i32 -> vector<8x1536xf32>
    %c0_178 = arith.constant 0 : index
    %c0_179 = arith.constant 0 : index
    %152 = vector.load %arg5[%c0_178, %c0_179] : memref<80x1536xf32, #tpu.memory_space<vmem>>, vector<8x1536xf32>
    tpu.vector_store %arg5[%c0_178, %c0_179], %151 {strides = array<i32>} : memref<80x1536xf32, #tpu.memory_space<vmem>>, vector<8x1536xf32>,
    %c18_i32_180 = arith.constant 18 : i32
    %153 = tpu.dynamic_rotate %150 by %c18_i32_180 dim 1 : vector<8x1536xf32>, i32 -> vector<8x1536xf32>
    %c8_181 = arith.constant 8 : index
    %c0_182 = arith.constant 0 : index
    %154 = vector.load %arg5[%c8_181, %c0_182] : memref<80x1536xf32, #tpu.memory_space<vmem>>, vector<8x1536xf32>
    tpu.vector_store %arg5[%c8_181, %c0_182], %153 {strides = array<i32>} : memref<80x1536xf32, #tpu.memory_space<vmem>>, vector<8x1536xf32>,
    %c17_i32_183 = arith.constant 17 : i32
    %155 = tpu.dynamic_rotate %150 by %c17_i32_183 dim 1 : vector<8x1536xf32>, i32 -> vector<8x1536xf32>
    %c16_184 = arith.constant 16 : index
    %c0_185 = arith.constant 0 : index
    %156 = vector.load %arg5[%c16_184, %c0_185] : memref<80x1536xf32, #tpu.memory_space<vmem>>, vector<8x1536xf32>
    tpu.vector_store %arg5[%c16_184, %c0_185], %155 {strides = array<i32>} : memref<80x1536xf32, #tpu.memory_space<vmem>>, vector<8x1536xf32>,
    %c1_i32_186 = arith.constant 1 : i32
    %157 = tpu.dynamic_rotate %150 by %c1_i32_186 dim 1 : vector<8x1536xf32>, i32 -> vector<8x1536xf32>
    %c24_187 = arith.constant 24 : index
    %c0_188 = arith.constant 0 : index
    %158 = vector.load %arg5[%c24_187, %c0_188] : memref<80x1536xf32, #tpu.memory_space<vmem>>, vector<8x1536xf32>
    tpu.vector_store %arg5[%c24_187, %c0_188], %157 {strides = array<i32>} : memref<80x1536xf32, #tpu.memory_space<vmem>>, vector<8x1536xf32>,
    %c32_189 = arith.constant 32 : index
    %c0_190 = arith.constant 0 : index
    %159 = vector.load %arg5[%c32_189, %c0_190] : memref<80x1536xf32, #tpu.memory_space<vmem>>, vector<8x1536xf32>
    tpu.vector_store %arg5[%c32_189, %c0_190], %150 {strides = array<i32>} : memref<80x1536xf32, #tpu.memory_space<vmem>>, vector<8x1536xf32>,
    %c1535_i32_191 = arith.constant 1535 : i32
    %160 = tpu.dynamic_rotate %150 by %c1535_i32_191 dim 1 : vector<8x1536xf32>, i32 -> vector<8x1536xf32>
    %c40_192 = arith.constant 40 : index
    %c0_193 = arith.constant 0 : index
    %161 = vector.load %arg5[%c40_192, %c0_193] : memref<80x1536xf32, #tpu.memory_space<vmem>>, vector<8x1536xf32>
    tpu.vector_store %arg5[%c40_192, %c0_193], %160 {strides = array<i32>} : memref<80x1536xf32, #tpu.memory_space<vmem>>, vector<8x1536xf32>,
    %c1519_i32_194 = arith.constant 1519 : i32
    %162 = tpu.dynamic_rotate %150 by %c1519_i32_194 dim 1 : vector<8x1536xf32>, i32 -> vector<8x1536xf32>
    %c48_195 = arith.constant 48 : index
    %c0_196 = arith.constant 0 : index
    %163 = vector.load %arg5[%c48_195, %c0_196] : memref<80x1536xf32, #tpu.memory_space<vmem>>, vector<8x1536xf32>
    tpu.vector_store %arg5[%c48_195, %c0_196], %162 {strides = array<i32>} : memref<80x1536xf32, #tpu.memory_space<vmem>>, vector<8x1536xf32>,
    %c1518_i32_197 = arith.constant 1518 : i32
    %164 = tpu.dynamic_rotate %150 by %c1518_i32_197 dim 1 : vector<8x1536xf32>, i32 -> vector<8x1536xf32>
    %c56_198 = arith.constant 56 : index
    %c0_199 = arith.constant 0 : index
    %165 = vector.load %arg5[%c56_198, %c0_199] : memref<80x1536xf32, #tpu.memory_space<vmem>>, vector<8x1536xf32>
    tpu.vector_store %arg5[%c56_198, %c0_199], %164 {strides = array<i32>} : memref<80x1536xf32, #tpu.memory_space<vmem>>, vector<8x1536xf32>,
    %c1517_i32_200 = arith.constant 1517 : i32
    %166 = tpu.dynamic_rotate %150 by %c1517_i32_200 dim 1 : vector<8x1536xf32>, i32 -> vector<8x1536xf32>
    %c64_201 = arith.constant 64 : index
    %c0_202 = arith.constant 0 : index
    %167 = vector.load %arg5[%c64_201, %c0_202] : memref<80x1536xf32, #tpu.memory_space<vmem>>, vector<8x1536xf32>
    tpu.vector_store %arg5[%c64_201, %c0_202], %166 {strides = array<i32>} : memref<80x1536xf32, #tpu.memory_space<vmem>>, vector<8x1536xf32>,
    %c6 = arith.constant 6 : index
    %c0_203 = arith.constant 0 : index
    %c0_204 = arith.constant 0 : index
    %168 = vector.load %arg2[%c6, %c0_203, %c0_204] : memref<10x8x80xf32, #tpu.memory_space<vmem>>, vector<1x8x80xf32>
    %169 = vector.shape_cast %168 : vector<1x8x80xf32> to vector<8x80xf32>
    %c0_205 = arith.constant 0 : index
    %c0_206 = arith.constant 0 : index
    %170 = vector.load %arg5[%c0_205, %c0_206] : memref<80x1536xf32, #tpu.memory_space<vmem>>, vector<80x1536xf32>
    %cst_207 = arith.constant dense<0.000000e+00> : vector<8x1536xf32>
    %171 = tpu.matmul %169, %170, %cst_207 {dimension_numbers = #tpu.dot_dimension_numbers<[1], [0], [0], [1], [0, 0, 1, 1], [], []>} : vector<8x80xf32>, vector<80x1536xf32>, vector<8x1536xf32> -> vector<8x1536xf32>
    %cst_208 = arith.constant 0.000000e+00 : f32
    %172 = vector.broadcast %cst_208 : f32 to vector<8x1536xf32>
    %173 = arith.maximumf %171, %172 : vector<8x1536xf32>
    %174 = arith.mulf %173, %2 : vector<8x1536xf32>
    %c19_i32_209 = arith.constant 19 : i32
    %175 = tpu.dynamic_rotate %174 by %c19_i32_209 dim 1 : vector<8x1536xf32>, i32 -> vector<8x1536xf32>
    %c0_210 = arith.constant 0 : index
    %c0_211 = arith.constant 0 : index
    %176 = vector.load %arg5[%c0_210, %c0_211] : memref<80x1536xf32, #tpu.memory_space<vmem>>, vector<8x1536xf32>
    tpu.vector_store %arg5[%c0_210, %c0_211], %175 {strides = array<i32>} : memref<80x1536xf32, #tpu.memory_space<vmem>>, vector<8x1536xf32>,
    %c18_i32_212 = arith.constant 18 : i32
    %177 = tpu.dynamic_rotate %174 by %c18_i32_212 dim 1 : vector<8x1536xf32>, i32 -> vector<8x1536xf32>
    %c8_213 = arith.constant 8 : index
    %c0_214 = arith.constant 0 : index
    %178 = vector.load %arg5[%c8_213, %c0_214] : memref<80x1536xf32, #tpu.memory_space<vmem>>, vector<8x1536xf32>
    tpu.vector_store %arg5[%c8_213, %c0_214], %177 {strides = array<i32>} : memref<80x1536xf32, #tpu.memory_space<vmem>>, vector<8x1536xf32>,
    %c17_i32_215 = arith.constant 17 : i32
    %179 = tpu.dynamic_rotate %174 by %c17_i32_215 dim 1 : vector<8x1536xf32>, i32 -> vector<8x1536xf32>
    %c16_216 = arith.constant 16 : index
    %c0_217 = arith.constant 0 : index
    %180 = vector.load %arg5[%c16_216, %c0_217] : memref<80x1536xf32, #tpu.memory_space<vmem>>, vector<8x1536xf32>
    tpu.vector_store %arg5[%c16_216, %c0_217], %179 {strides = array<i32>} : memref<80x1536xf32, #tpu.memory_space<vmem>>, vector<8x1536xf32>,
    %c1_i32_218 = arith.constant 1 : i32
    %181 = tpu.dynamic_rotate %174 by %c1_i32_218 dim 1 : vector<8x1536xf32>, i32 -> vector<8x1536xf32>
    %c24_219 = arith.constant 24 : index
    %c0_220 = arith.constant 0 : index
    %182 = vector.load %arg5[%c24_219, %c0_220] : memref<80x1536xf32, #tpu.memory_space<vmem>>, vector<8x1536xf32>
    tpu.vector_store %arg5[%c24_219, %c0_220], %181 {strides = array<i32>} : memref<80x1536xf32, #tpu.memory_space<vmem>>, vector<8x1536xf32>,
    %c32_221 = arith.constant 32 : index
    %c0_222 = arith.constant 0 : index
    %183 = vector.load %arg5[%c32_221, %c0_222] : memref<80x1536xf32, #tpu.memory_space<vmem>>, vector<8x1536xf32>
    tpu.vector_store %arg5[%c32_221, %c0_222], %174 {strides = array<i32>} : memref<80x1536xf32, #tpu.memory_space<vmem>>, vector<8x1536xf32>,
    %c1535_i32_223 = arith.constant 1535 : i32
    %184 = tpu.dynamic_rotate %174 by %c1535_i32_223 dim 1 : vector<8x1536xf32>, i32 -> vector<8x1536xf32>
    %c40_224 = arith.constant 40 : index
    %c0_225 = arith.constant 0 : index
    %185 = vector.load %arg5[%c40_224, %c0_225] : memref<80x1536xf32, #tpu.memory_space<vmem>>, vector<8x1536xf32>
    tpu.vector_store %arg5[%c40_224, %c0_225], %184 {strides = array<i32>} : memref<80x1536xf32, #tpu.memory_space<vmem>>, vector<8x1536xf32>,
    %c1519_i32_226 = arith.constant 1519 : i32
    %186 = tpu.dynamic_rotate %174 by %c1519_i32_226 dim 1 : vector<8x1536xf32>, i32 -> vector<8x1536xf32>
    %c48_227 = arith.constant 48 : index
    %c0_228 = arith.constant 0 : index
    %187 = vector.load %arg5[%c48_227, %c0_228] : memref<80x1536xf32, #tpu.memory_space<vmem>>, vector<8x1536xf32>
    tpu.vector_store %arg5[%c48_227, %c0_228], %186 {strides = array<i32>} : memref<80x1536xf32, #tpu.memory_space<vmem>>, vector<8x1536xf32>,
    %c1518_i32_229 = arith.constant 1518 : i32
    %188 = tpu.dynamic_rotate %174 by %c1518_i32_229 dim 1 : vector<8x1536xf32>, i32 -> vector<8x1536xf32>
    %c56_230 = arith.constant 56 : index
    %c0_231 = arith.constant 0 : index
    %189 = vector.load %arg5[%c56_230, %c0_231] : memref<80x1536xf32, #tpu.memory_space<vmem>>, vector<8x1536xf32>
    tpu.vector_store %arg5[%c56_230, %c0_231], %188 {strides = array<i32>} : memref<80x1536xf32, #tpu.memory_space<vmem>>, vector<8x1536xf32>,
    %c1517_i32_232 = arith.constant 1517 : i32
    %190 = tpu.dynamic_rotate %174 by %c1517_i32_232 dim 1 : vector<8x1536xf32>, i32 -> vector<8x1536xf32>
    %c64_233 = arith.constant 64 : index
    %c0_234 = arith.constant 0 : index
    %191 = vector.load %arg5[%c64_233, %c0_234] : memref<80x1536xf32, #tpu.memory_space<vmem>>, vector<8x1536xf32>
    tpu.vector_store %arg5[%c64_233, %c0_234], %190 {strides = array<i32>} : memref<80x1536xf32, #tpu.memory_space<vmem>>, vector<8x1536xf32>,
    %c7 = arith.constant 7 : index
    %c0_235 = arith.constant 0 : index
    %c0_236 = arith.constant 0 : index
    %192 = vector.load %arg2[%c7, %c0_235, %c0_236] : memref<10x8x80xf32, #tpu.memory_space<vmem>>, vector<1x8x80xf32>
    %193 = vector.shape_cast %192 : vector<1x8x80xf32> to vector<8x80xf32>
    %c0_237 = arith.constant 0 : index
    %c0_238 = arith.constant 0 : index
    %194 = vector.load %arg5[%c0_237, %c0_238] : memref<80x1536xf32, #tpu.memory_space<vmem>>, vector<80x1536xf32>
    %cst_239 = arith.constant dense<0.000000e+00> : vector<8x1536xf32>
    %195 = tpu.matmul %193, %194, %cst_239 {dimension_numbers = #tpu.dot_dimension_numbers<[1], [0], [0], [1], [0, 0, 1, 1], [], []>} : vector<8x80xf32>, vector<80x1536xf32>, vector<8x1536xf32> -> vector<8x1536xf32>
    %cst_240 = arith.constant 0.000000e+00 : f32
    %196 = vector.broadcast %cst_240 : f32 to vector<8x1536xf32>
    %197 = arith.maximumf %195, %196 : vector<8x1536xf32>
    %198 = arith.mulf %197, %2 : vector<8x1536xf32>
    %c19_i32_241 = arith.constant 19 : i32
    %199 = tpu.dynamic_rotate %198 by %c19_i32_241 dim 1 : vector<8x1536xf32>, i32 -> vector<8x1536xf32>
    %c0_242 = arith.constant 0 : index
    %c0_243 = arith.constant 0 : index
    %200 = vector.load %arg5[%c0_242, %c0_243] : memref<80x1536xf32, #tpu.memory_space<vmem>>, vector<8x1536xf32>
    tpu.vector_store %arg5[%c0_242, %c0_243], %199 {strides = array<i32>} : memref<80x1536xf32, #tpu.memory_space<vmem>>, vector<8x1536xf32>,
    %c18_i32_244 = arith.constant 18 : i32
    %201 = tpu.dynamic_rotate %198 by %c18_i32_244 dim 1 : vector<8x1536xf32>, i32 -> vector<8x1536xf32>
    %c8_245 = arith.constant 8 : index
    %c0_246 = arith.constant 0 : index
    %202 = vector.load %arg5[%c8_245, %c0_246] : memref<80x1536xf32, #tpu.memory_space<vmem>>, vector<8x1536xf32>
    tpu.vector_store %arg5[%c8_245, %c0_246], %201 {strides = array<i32>} : memref<80x1536xf32, #tpu.memory_space<vmem>>, vector<8x1536xf32>,
    %c17_i32_247 = arith.constant 17 : i32
    %203 = tpu.dynamic_rotate %198 by %c17_i32_247 dim 1 : vector<8x1536xf32>, i32 -> vector<8x1536xf32>
    %c16_248 = arith.constant 16 : index
    %c0_249 = arith.constant 0 : index
    %204 = vector.load %arg5[%c16_248, %c0_249] : memref<80x1536xf32, #tpu.memory_space<vmem>>, vector<8x1536xf32>
    tpu.vector_store %arg5[%c16_248, %c0_249], %203 {strides = array<i32>} : memref<80x1536xf32, #tpu.memory_space<vmem>>, vector<8x1536xf32>,
    %c1_i32_250 = arith.constant 1 : i32
    %205 = tpu.dynamic_rotate %198 by %c1_i32_250 dim 1 : vector<8x1536xf32>, i32 -> vector<8x1536xf32>
    %c24_251 = arith.constant 24 : index
    %c0_252 = arith.constant 0 : index
    %206 = vector.load %arg5[%c24_251, %c0_252] : memref<80x1536xf32, #tpu.memory_space<vmem>>, vector<8x1536xf32>
    tpu.vector_store %arg5[%c24_251, %c0_252], %205 {strides = array<i32>} : memref<80x1536xf32, #tpu.memory_space<vmem>>, vector<8x1536xf32>,
    %c32_253 = arith.constant 32 : index
    %c0_254 = arith.constant 0 : index
    %207 = vector.load %arg5[%c32_253, %c0_254] : memref<80x1536xf32, #tpu.memory_space<vmem>>, vector<8x1536xf32>
    tpu.vector_store %arg5[%c32_253, %c0_254], %198 {strides = array<i32>} : memref<80x1536xf32, #tpu.memory_space<vmem>>, vector<8x1536xf32>,
    %c1535_i32_255 = arith.constant 1535 : i32
    %208 = tpu.dynamic_rotate %198 by %c1535_i32_255 dim 1 : vector<8x1536xf32>, i32 -> vector<8x1536xf32>
    %c40_256 = arith.constant 40 : index
    %c0_257 = arith.constant 0 : index
    %209 = vector.load %arg5[%c40_256, %c0_257] : memref<80x1536xf32, #tpu.memory_space<vmem>>, vector<8x1536xf32>
    tpu.vector_store %arg5[%c40_256, %c0_257], %208 {strides = array<i32>} : memref<80x1536xf32, #tpu.memory_space<vmem>>, vector<8x1536xf32>,
    %c1519_i32_258 = arith.constant 1519 : i32
    %210 = tpu.dynamic_rotate %198 by %c1519_i32_258 dim 1 : vector<8x1536xf32>, i32 -> vector<8x1536xf32>
    %c48_259 = arith.constant 48 : index
    %c0_260 = arith.constant 0 : index
    %211 = vector.load %arg5[%c48_259, %c0_260] : memref<80x1536xf32, #tpu.memory_space<vmem>>, vector<8x1536xf32>
    tpu.vector_store %arg5[%c48_259, %c0_260], %210 {strides = array<i32>} : memref<80x1536xf32, #tpu.memory_space<vmem>>, vector<8x1536xf32>,
    %c1518_i32_261 = arith.constant 1518 : i32
    %212 = tpu.dynamic_rotate %198 by %c1518_i32_261 dim 1 : vector<8x1536xf32>, i32 -> vector<8x1536xf32>
    %c56_262 = arith.constant 56 : index
    %c0_263 = arith.constant 0 : index
    %213 = vector.load %arg5[%c56_262, %c0_263] : memref<80x1536xf32, #tpu.memory_space<vmem>>, vector<8x1536xf32>
    tpu.vector_store %arg5[%c56_262, %c0_263], %212 {strides = array<i32>} : memref<80x1536xf32, #tpu.memory_space<vmem>>, vector<8x1536xf32>,
    %c1517_i32_264 = arith.constant 1517 : i32
    %214 = tpu.dynamic_rotate %198 by %c1517_i32_264 dim 1 : vector<8x1536xf32>, i32 -> vector<8x1536xf32>
    %c64_265 = arith.constant 64 : index
    %c0_266 = arith.constant 0 : index
    %215 = vector.load %arg5[%c64_265, %c0_266] : memref<80x1536xf32, #tpu.memory_space<vmem>>, vector<8x1536xf32>
    tpu.vector_store %arg5[%c64_265, %c0_266], %214 {strides = array<i32>} : memref<80x1536xf32, #tpu.memory_space<vmem>>, vector<8x1536xf32>,
    %c8_267 = arith.constant 8 : index
    %c0_268 = arith.constant 0 : index
    %c0_269 = arith.constant 0 : index
    %216 = vector.load %arg2[%c8_267, %c0_268, %c0_269] : memref<10x8x80xf32, #tpu.memory_space<vmem>>, vector<1x8x80xf32>
    %217 = vector.shape_cast %216 : vector<1x8x80xf32> to vector<8x80xf32>
    %c0_270 = arith.constant 0 : index
    %c0_271 = arith.constant 0 : index
    %218 = vector.load %arg5[%c0_270, %c0_271] : memref<80x1536xf32, #tpu.memory_space<vmem>>, vector<80x1536xf32>
    %cst_272 = arith.constant dense<0.000000e+00> : vector<8x1536xf32>
    %219 = tpu.matmul %217, %218, %cst_272 {dimension_numbers = #tpu.dot_dimension_numbers<[1], [0], [0], [1], [0, 0, 1, 1], [], []>} : vector<8x80xf32>, vector<80x1536xf32>, vector<8x1536xf32> -> vector<8x1536xf32>
    %cst_273 = arith.constant 0.000000e+00 : f32
    %220 = vector.broadcast %cst_273 : f32 to vector<8x1536xf32>
    %221 = arith.maximumf %219, %220 : vector<8x1536xf32>
    %222 = arith.mulf %221, %2 : vector<8x1536xf32>
    %c19_i32_274 = arith.constant 19 : i32
    %223 = tpu.dynamic_rotate %222 by %c19_i32_274 dim 1 : vector<8x1536xf32>, i32 -> vector<8x1536xf32>
    %c0_275 = arith.constant 0 : index
    %c0_276 = arith.constant 0 : index
    %224 = vector.load %arg5[%c0_275, %c0_276] : memref<80x1536xf32, #tpu.memory_space<vmem>>, vector<8x1536xf32>
    tpu.vector_store %arg5[%c0_275, %c0_276], %223 {strides = array<i32>} : memref<80x1536xf32, #tpu.memory_space<vmem>>, vector<8x1536xf32>,
    %c18_i32_277 = arith.constant 18 : i32
    %225 = tpu.dynamic_rotate %222 by %c18_i32_277 dim 1 : vector<8x1536xf32>, i32 -> vector<8x1536xf32>
    %c8_278 = arith.constant 8 : index
    %c0_279 = arith.constant 0 : index
    %226 = vector.load %arg5[%c8_278, %c0_279] : memref<80x1536xf32, #tpu.memory_space<vmem>>, vector<8x1536xf32>
    tpu.vector_store %arg5[%c8_278, %c0_279], %225 {strides = array<i32>} : memref<80x1536xf32, #tpu.memory_space<vmem>>, vector<8x1536xf32>,
    %c17_i32_280 = arith.constant 17 : i32
    %227 = tpu.dynamic_rotate %222 by %c17_i32_280 dim 1 : vector<8x1536xf32>, i32 -> vector<8x1536xf32>
    %c16_281 = arith.constant 16 : index
    %c0_282 = arith.constant 0 : index
    %228 = vector.load %arg5[%c16_281, %c0_282] : memref<80x1536xf32, #tpu.memory_space<vmem>>, vector<8x1536xf32>
    tpu.vector_store %arg5[%c16_281, %c0_282], %227 {strides = array<i32>} : memref<80x1536xf32, #tpu.memory_space<vmem>>, vector<8x1536xf32>,
    %c1_i32_283 = arith.constant 1 : i32
    %229 = tpu.dynamic_rotate %222 by %c1_i32_283 dim 1 : vector<8x1536xf32>, i32 -> vector<8x1536xf32>
    %c24_284 = arith.constant 24 : index
    %c0_285 = arith.constant 0 : index
    %230 = vector.load %arg5[%c24_284, %c0_285] : memref<80x1536xf32, #tpu.memory_space<vmem>>, vector<8x1536xf32>
    tpu.vector_store %arg5[%c24_284, %c0_285], %229 {strides = array<i32>} : memref<80x1536xf32, #tpu.memory_space<vmem>>, vector<8x1536xf32>,
    %c32_286 = arith.constant 32 : index
    %c0_287 = arith.constant 0 : index
    %231 = vector.load %arg5[%c32_286, %c0_287] : memref<80x1536xf32, #tpu.memory_space<vmem>>, vector<8x1536xf32>
    tpu.vector_store %arg5[%c32_286, %c0_287], %222 {strides = array<i32>} : memref<80x1536xf32, #tpu.memory_space<vmem>>, vector<8x1536xf32>,
    %c1535_i32_288 = arith.constant 1535 : i32
    %232 = tpu.dynamic_rotate %222 by %c1535_i32_288 dim 1 : vector<8x1536xf32>, i32 -> vector<8x1536xf32>
    %c40_289 = arith.constant 40 : index
    %c0_290 = arith.constant 0 : index
    %233 = vector.load %arg5[%c40_289, %c0_290] : memref<80x1536xf32, #tpu.memory_space<vmem>>, vector<8x1536xf32>
    tpu.vector_store %arg5[%c40_289, %c0_290], %232 {strides = array<i32>} : memref<80x1536xf32, #tpu.memory_space<vmem>>, vector<8x1536xf32>,
    %c1519_i32_291 = arith.constant 1519 : i32
    %234 = tpu.dynamic_rotate %222 by %c1519_i32_291 dim 1 : vector<8x1536xf32>, i32 -> vector<8x1536xf32>
    %c48_292 = arith.constant 48 : index
    %c0_293 = arith.constant 0 : index
    %235 = vector.load %arg5[%c48_292, %c0_293] : memref<80x1536xf32, #tpu.memory_space<vmem>>, vector<8x1536xf32>
    tpu.vector_store %arg5[%c48_292, %c0_293], %234 {strides = array<i32>} : memref<80x1536xf32, #tpu.memory_space<vmem>>, vector<8x1536xf32>,
    %c1518_i32_294 = arith.constant 1518 : i32
    %236 = tpu.dynamic_rotate %222 by %c1518_i32_294 dim 1 : vector<8x1536xf32>, i32 -> vector<8x1536xf32>
    %c56_295 = arith.constant 56 : index
    %c0_296 = arith.constant 0 : index
    %237 = vector.load %arg5[%c56_295, %c0_296] : memref<80x1536xf32, #tpu.memory_space<vmem>>, vector<8x1536xf32>
    tpu.vector_store %arg5[%c56_295, %c0_296], %236 {strides = array<i32>} : memref<80x1536xf32, #tpu.memory_space<vmem>>, vector<8x1536xf32>,
    %c1517_i32_297 = arith.constant 1517 : i32
    %238 = tpu.dynamic_rotate %222 by %c1517_i32_297 dim 1 : vector<8x1536xf32>, i32 -> vector<8x1536xf32>
    %c64_298 = arith.constant 64 : index
    %c0_299 = arith.constant 0 : index
    %239 = vector.load %arg5[%c64_298, %c0_299] : memref<80x1536xf32, #tpu.memory_space<vmem>>, vector<8x1536xf32>
    tpu.vector_store %arg5[%c64_298, %c0_299], %238 {strides = array<i32>} : memref<80x1536xf32, #tpu.memory_space<vmem>>, vector<8x1536xf32>,
    %c9 = arith.constant 9 : index
    %c0_300 = arith.constant 0 : index
    %c0_301 = arith.constant 0 : index
    %240 = vector.load %arg2[%c9, %c0_300, %c0_301] : memref<10x8x80xf32, #tpu.memory_space<vmem>>, vector<1x8x80xf32>
    %241 = vector.shape_cast %240 : vector<1x8x80xf32> to vector<8x80xf32>
    %c0_302 = arith.constant 0 : index
    %c0_303 = arith.constant 0 : index
    %242 = vector.load %arg5[%c0_302, %c0_303] : memref<80x1536xf32, #tpu.memory_space<vmem>>, vector<80x1536xf32>
    %cst_304 = arith.constant dense<0.000000e+00> : vector<8x1536xf32>
    %243 = tpu.matmul %241, %242, %cst_304 {dimension_numbers = #tpu.dot_dimension_numbers<[1], [0], [0], [1], [0, 0, 1, 1], [], []>} : vector<8x80xf32>, vector<80x1536xf32>, vector<8x1536xf32> -> vector<8x1536xf32>
    %cst_305 = arith.constant 0.000000e+00 : f32
    %244 = vector.broadcast %cst_305 : f32 to vector<8x1536xf32>
    %245 = arith.maximumf %243, %244 : vector<8x1536xf32>
    %246 = arith.mulf %245, %2 : vector<8x1536xf32>
    %c0_306 = arith.constant 0 : index
    %c0_307 = arith.constant 0 : index
    %c0_308 = arith.constant 0 : index
    %247 = vector.load %arg4[%c0_306, %c0_307, %c0_308] : memref<1x8x1536xf32, #tpu.memory_space<vmem>>, vector<1x8x1536xf32>
    %248 = vector.shape_cast %247 : vector<1x8x1536xf32> to vector<8x1536xf32>
    %249 = vector.shape_cast %246 : vector<8x1536xf32> to vector<1x8x1536xf32>
    tpu.vector_store %arg4[%c0_306, %c0_307, %c0_308], %249 {strides = array<i32>} : memref<1x8x1536xf32, #tpu.memory_space<vmem>>, vector<1x8x1536xf32>,
    return
  }
  func.func @transform_0(%arg0: i32) -> (i32, i32, i32) {
    %c0_i32 = arith.constant 0 : i32
    %c0_i32_0 = arith.constant 0 : i32
    %c0_i32_1 = arith.constant 0 : i32
    return %arg0, %c0_i32, %c0_i32_0 : i32, i32, i32
  }
  func.func @transform_1(%arg0: i32) -> (i32, i32, i32) {
    %c0_i32 = arith.constant 0 : i32
    %c0_i32_0 = arith.constant 0 : i32
    %c0_i32_1 = arith.constant 0 : i32
    %c0_i32_2 = arith.constant 0 : i32
    return %c0_i32, %c0_i32_0, %c0_i32_1 : i32, i32, i32
  }
  func.func @transform_2(%arg0: i32) -> (i32, i32) {
    %c0_i32 = arith.constant 0 : i32
    %c0_i32_0 = arith.constant 0 : i32
    %c0_i32_1 = arith.constant 0 : i32
    return %c0_i32, %c0_i32_0 : i32, i32
  }
  func.func @transform_3(%arg0: i32) -> (i32, i32, i32) {
    %c0_i32 = arith.constant 0 : i32
    %c0_i32_0 = arith.constant 0 : i32
    %c0_i32_1 = arith.constant 0 : i32
    return %arg0, %c0_i32, %c0_i32_0 : i32, i32, i32
  }
}

</mosaic_0001>

<bundles_post_ra>
// kernel: cnn_forward.1
= control target key start
LH: loop header
LB: loop body
LE: loop exit
PB: predicated region body
PF: predicated region fallthrough
CT: control target
= control target key end

     0   :  { %s13202_s20 = smov 126   ;;  %s13203_s21 = smov 127   ;;  %v19961_v8 = vmov 0.0   ;;  %v19936_v18 = vlaneseq  ;;  %vm629_vm8 = vcmask 654336   ;;  %s19932_s0 = inlined_call_operand.vmem [shape: f32[1,8,1536], index: 0, kind: input, shape index: {}]   ;;  %s19933_s1 = inlined_call_operand.vmem [shape: f32[10,8,80], index: 1, kind: input, shape index: {}]   ;;  %s19934_s2 = inlined_call_operand.vmem [shape: f32[1,1536], index: 2, kind: input, shape index: {}]   ;;  %s19935_s3 = inlined_call_operand.vmem [shape: f32[1,8,1536], index: 3, kind: output, shape index: {}]  }
   0x1   :  { %v13240_v0 = vld [vmem:[%s19932_s0 + $0x18] sm:$0xff]  ;;  %v13245_v1 = vld [vmem:[%s19932_s0 + $0x20] sm:$0xff]  ;;  %v13250_v2 = vld [vmem:[%s19932_s0 + $0x10] sm:$0xff]  ;;  %s13204_s22 = smov 110   ;;  %s13205_s23 = smov 108   ;;  %768 = vmatprep.mubr.f32.mxu1 %v19961_v8  ;;  %697 = vmatprep.mubr.f32.mxu0 %v19961_v8 }
   0x2   :  { %v11137_v3 = vpack.i.bf16 %v13245_v1, %v13240_v0  ;;  %v13257_v4 = vld [vmem:[%s19932_s0 + $0x38] sm:$0xff]  ;;  %s13206_s24 = smov 109   ;;  %s13207_s25 = smov 91   ;;  %v13278_v6 = vld [vmem:[%s19932_s0 + $0x30] sm:$0xff]  ;;  %v13283_v7 = vld [vmem:[%s19932_s0 + $0x40] sm:$0xff]  ;;  %v13382_v19 = vand.u32 127, %v19936_v18 }
   0x3   :  { %v11132_v5 = vpack.i.bf16 %v13257_v4, %v13250_v2  ;;  %s13208_s26 = smov 92   ;;  %s13210_s4 = smov 90   ;;  %v11212_v9 = vpack.i.bf16 %v13278_v6, %v13283_v7  ;;  %v13294_v10 = vld [vmem:[%s19932_s0] sm:$0xff]  ;;  %v13299_v11 = vld [vmem:[%s19932_s0 + $0x8] sm:$0xff]  ;;  %v13316_v13 = vld [vmem:[%s19932_s0 + $0x50] sm:$0xff] }
   0x4   :  { %11138 = vrot.lane.b32.xlu1 %v11137_v3, %s13202_s20  ;;  %11128 = vrot.lane.b32.xlu0 %v11137_v3, %s13203_s21  ;;  %v11222_v12 = vpack.i.bf16 %v13294_v10, %v13299_v11  ;;  %v13321_v14 = vld [vmem:[%s19932_s0 + $0x58] sm:$0xff]  ;;  %v13336_v16 = vld [vmem:[%s19932_s0 + $0x28] sm:$0xff]  ;;  %vm140_vm0 = vcmp.lt.s32.totalorder %v13382_v19, 127  ;;  %vm189_vm1 = vcmp.lt.s32.totalorder %v13382_v19, 126  ;;  %vm238_vm2 = vcmp.lt.s32.totalorder %v13382_v19, 110  ;;  %s13216_s27 = smov 111  }
   0x5   :  { %v11272_v15 = vpack.i.bf16 %v13316_v13, %v13321_v14  ;;  %v13363_v17 = vld [vmem:[%s19932_s0 + $0x48] sm:$0xff]  ;;  %vm287_vm3 = vcmp.lt.s32.totalorder %v13382_v19, 109  ;;  %vm336_vm4 = vcmp.lt.s32.totalorder %v13382_v19, 108  ;;  %vm385_vm5 = vcmp.lt.s32.totalorder %v13382_v19, 92 }
   0x6   :  { %vm434_vm6 = vcmp.lt.s32.totalorder %v13382_v19, 91  ;;  %vm483_vm7 = vcmp.lt.s32.totalorder %v13382_v19, 90  ;;  %vm1107_vm9 = vcmp.lt.s32.totalorder %v13382_v19, 19  ;;  %vm1156_vm10 = vcmp.lt.s32.totalorder %v13382_v19, 18 }
   0x7   :  { %vm1205_vm11 = vcmp.lt.s32.totalorder %v13382_v19, 17  ;;  %vm1254_vm12 = vcmp.lt.s32.totalorder %v13382_v19, 1  ;;  %vm1363_vm13 = vcmp.lt.s32.totalorder %v13382_v19, 111 }
   0x8   :  { %11143 = vrot.lane.b32.xlu1 %v11137_v3, %s13204_s22  ;;  %11133 = vrot.lane.b32.xlu0 %v11132_v5, %s13203_s21 }
   0xc   :  { %11153 = vrot.lane.b32.xlu1 %v11132_v5, %s13204_s22  ;;  %11148 = vrot.lane.b32.xlu0 %v11132_v5, %s13202_s20 }
  0x10   :  { %11163 = vrot.lane.b32.xlu1 %v11137_v3, %s13205_s23  ;;  %11158 = vrot.lane.b32.xlu0 %v11137_v3, %s13206_s24 }
  0x14   :  { %11173 = vrot.lane.b32.xlu1 %v11132_v5, %s13205_s23  ;;  %11168 = vrot.lane.b32.xlu0 %v11132_v5, %s13206_s24 }
  0x18   :  { %11183 = vrot.lane.b32.xlu1 %v11137_v3, %s13207_s25  ;;  %11178 = vrot.lane.b32.xlu0 %v11137_v3, %s13208_s26 }
  0x1c   :  { %11193 = vrot.lane.b32.xlu1 %v11132_v5, %s13207_s25  ;;  %11188 = vrot.lane.b32.xlu0 %v11132_v5, %s13208_s26 }
  0x20   :  { %11203 = vrot.lane.b32.xlu1 %v11132_v5, %s13210_s4  ;;  %11198 = vrot.lane.b32.xlu0 %v11137_v3, %s13210_s4 }
  0x24   :  { %11213 = vrot.lane.b32.xlu1 %v11212_v9, %s13202_s20  ;;  %11208 = vrot.lane.b32.xlu0 %v11212_v9, %s13203_s21 }
  0x28   :  { %11218 = vrot.lane.b32.xlu0 %v11212_v9, %s13204_s22  ;;  %11223 = vrot.lane.b32.xlu1 %v11222_v12, %s13203_s21 }
  0x2c   :  { %11228 = vrot.lane.b32.xlu0 %v11212_v9, %s13206_s24  ;;  %11233 = vrot.lane.b32.xlu1 %v11212_v9, %s13205_s23 }
  0x30   :  { %11238 = vrot.lane.b32.xlu0 %v11222_v12, %s13202_s20  ;;  %11243 = vrot.lane.b32.xlu1 %v11222_v12, %s13204_s22 }
  0x34   :  { %11248 = vrot.lane.b32.xlu0 %v11212_v9, %s13208_s26  ;;  %11253 = vrot.lane.b32.xlu1 %v11212_v9, %s13207_s25 }
  0x38   :  { %11258 = vrot.lane.b32.xlu0 %v11222_v12, %s13206_s24  ;;  %11263 = vrot.lane.b32.xlu1 %v11222_v12, %s13205_s23 }
  0x3c   :  { %11268 = vrot.lane.b32.xlu0 %v11212_v9, %s13210_s4  ;;  %11273 = vrot.lane.b32.xlu1 %v11272_v15, %s13203_s21 }
  0x40   :  { %11278 = vrot.lane.b32.xlu0 %v11222_v12, %s13208_s26  ;;  %11283 = vrot.lane.b32.xlu1 %v11222_v12, %s13207_s25 }
  0x44   :  { %11288 = vrot.lane.b32.xlu0 %v11272_v15, %s13202_s20  ;;  %11293 = vrot.lane.b32.xlu1 %v11272_v15, %s13204_s22 }
  0x48   :  { %11298 = vrot.lane.b32.xlu0 %v11222_v12, %s13210_s4  ;;  %124 = vrot.lane.b32.xlu1 %v13336_v16, %s13203_s21 }
  0x4c   :  { %11303 = vrot.lane.b32.xlu0 %v11272_v15, %s13206_s24  ;;  %11308 = vrot.lane.b32.xlu1 %v11272_v15, %s13205_s23 }
  0x50   :  { %175 = vrot.lane.b32.xlu0 %v13336_v16, %s13202_s20  ;;  %224 = vrot.lane.b32.xlu1 %v13336_v16, %s13204_s22 }
  0x54   :  { %11313 = vrot.lane.b32.xlu0 %v11272_v15, %s13208_s26  ;;  %11318 = vrot.lane.b32.xlu1 %v11272_v15, %s13207_s25 }
  0x58   :  { %273 = vrot.lane.b32.xlu0 %v13336_v16, %s13206_s24  ;;  %322 = vrot.lane.b32.xlu1 %v13336_v16, %s13205_s23 }
  0x5c   :  { %11323 = vrot.lane.b32.xlu0 %v11272_v15, %s13210_s4  ;;  %371 = vrot.lane.b32.xlu1 %v13336_v16, %s13208_s26 }
  0x60   :  { %420 = vrot.lane.b32.xlu0 %v13336_v16, %s13207_s25  ;;  %469 = vrot.lane.b32.xlu1 %v13336_v16, %s13210_s4 }
  0x64   :  { %132 = vrot.lane.b32.xlu0 %v13363_v17, %s13203_s21  ;;  %183 = vrot.lane.b32.xlu1 %v13363_v17, %s13202_s20  ;;  %s13212_s20 = smov 19  }
  0x68   :  { %232 = vrot.lane.b32.xlu0 %v13363_v17, %s13204_s22  ;;  %281 = vrot.lane.b32.xlu1 %v13363_v17, %s13206_s24 }
  0x6c   :  { %330 = vrot.lane.b32.xlu0 %v13363_v17, %s13205_s23  ;;  %379 = vrot.lane.b32.xlu1 %v13363_v17, %s13208_s26  ;;  %s13213_s23 = smov 18   ;;  %s13215_s26 = smov 1  }
  0x70   :  { %428 = vrot.lane.b32.xlu0 %v13363_v17, %s13207_s25  ;;  %477 = vrot.lane.b32.xlu1 %v13363_v17, %s13210_s4  ;;  %s13214_s25 = smov 17  }
  0x76   :  { %v13384_v20 = vpop.permute.xlu1 %11138  ;;  %v13386_v21 = vpop.permute.xlu0 %11128 }
  0x77   :  { %v11141_v22 = vunpack.i.h.bf16 %v13384_v20  ;;  %v11140_v23 = vunpack.i.l.bf16 %v13384_v20  ;;  %v11131_v24 = vunpack.i.h.bf16 %v13386_v21  ;;  %v11130_v25 = vunpack.i.l.bf16 %v13386_v21 }
  0x79   :  { %v148_v26 = vsel %vm140_vm0, %v11130_v25, %v11131_v24  ;;  %v197_v33 = vsel %vm189_vm1, %v11140_v23, %v11141_v22 }
  0x7a   :  { %v13398_v27 = vpop.permute.xlu1 %11143  ;;  %v13400_v28 = vpop.permute.xlu0 %11133  ;;  %v9932_v29 = vpack.c.bf16 %v148_v26, %v13240_v0 }
  0x7b   :  { %v11146_v30 = vunpack.i.h.bf16 %v13398_v27  ;;  %v11145_v31 = vunpack.i.l.bf16 %v13398_v27  ;;  %v11135_v32 = vunpack.i.l.bf16 %v13400_v28 }
  0x7c   :  { %9933 = vmatprep.subr.bf16.mxu1 %v9932_v29 }
  0x7d   :  { %v149_v34 = vsel %vm140_vm0, %v11135_v32, %v11130_v25  ;;  %v246_v35 = vsel %vm238_vm2, %v11145_v31, %v11146_v30 }
  0x7e   :  { %v13419_v36 = vpop.permute.xlu1 %11153  ;;  %v13421_v37 = vpop.permute.xlu0 %11148  ;;  %v9934_v38 = vpack.c.bf16 %v149_v34, %v13250_v2  ;;  %v9936_v39 = vpack.c.bf16 %v246_v35, %v197_v33 }
  0x7f   :  { %v11155_v40 = vunpack.i.l.bf16 %v13419_v36  ;;  %v11150_v41 = vunpack.i.l.bf16 %v13421_v37 }
  0x80   :  { %9935 = vmatpush1.bf16.msra.mxu1 %v9934_v38 }
  0x81   :  { %9937 = vmatprep.subr.bf16.mxu1 %v9936_v39  ;;  %v198_v42 = vsel %vm189_vm1, %v11150_v41, %v11140_v23  ;;  %v247_v43 = vsel %vm238_vm2, %v11155_v40, %v11145_v31 }
  0x82   :  { %v13434_v44 = vpop.permute.xlu1 %11163  ;;  %v13436_v45 = vpop.permute.xlu0 %11158  ;;  %v9938_v46 = vpack.c.bf16 %v247_v43, %v198_v42 }
  0x83   :  { %v19942_v47 = vunpack.i.h.bf16 %v13434_v44  ;;  %v11165_v48 = vunpack.i.l.bf16 %v13434_v44  ;;  %v19949_v49 = vunpack.i.h.bf16 %v13436_v45  ;;  %v11160_v50 = vunpack.i.l.bf16 %v13436_v45 }
  0x84   :  { %9939 = vmatpush1.bf16.msra.mxu1 %v9938_v46 }
  0x85   :  { %v295_v51 = vsel %vm287_vm3, %v11160_v50, %v19949_v49  ;;  %v344_v52 = vsel %vm336_vm4, %v11165_v48, %v19942_v47 }
  0x86   :  { %v13452_v53 = vpop.permute.xlu1 %11173  ;;  %v13454_v54 = vpop.permute.xlu0 %11168  ;;  %v9940_v55 = vpack.c.bf16 %v344_v52, %v295_v51  ;;  %v19964_v51 = vmov 1.0  }
  0x87   :  { %v11175_v56 = vunpack.i.l.bf16 %v13452_v53  ;;  %v11170_v57 = vunpack.i.l.bf16 %v13454_v54 }
  0x88   :  { %9941 = vmatprep.subr.bf16.mxu1 %v9940_v55 }
  0x89   :  { %v296_v58 = vsel %vm287_vm3, %v11170_v57, %v11160_v50  ;;  %v345_v59 = vsel %vm336_vm4, %v11175_v56, %v11165_v48 }
  0x8a   :  { %v13466_v60 = vpop.permute.xlu1 %11183  ;;  %v13468_v61 = vpop.permute.xlu0 %11178  ;;  %v9942_v62 = vpack.c.bf16 %v345_v59, %v296_v58  ;;  %v11136_v58 = vunpack.i.h.bf16 %v13400_v28 }
  0x8b   :  { %v19939_v63 = vunpack.i.h.bf16 %v13466_v60  ;;  %v11185_v0 = vunpack.i.l.bf16 %v13466_v60  ;;  %v19941_v2 = vunpack.i.h.bf16 %v13468_v61  ;;  %v11180_v3 = vunpack.i.l.bf16 %v13468_v61 }
  0x8c   :  { %9943 = vmatpush1.bf16.msra.mxu1 %v9942_v62 }
  0x8d   :  { %v393_v5 = vsel %vm385_vm5, %v11180_v3, %v19941_v2  ;;  %v442_v9 = vsel %vm434_vm6, %v11185_v0, %v19939_v63 }
  0x8e   :  { %v13484_v12 = vpop.permute.xlu1 %11193  ;;  %v13486_v15 = vpop.permute.xlu0 %11188  ;;  %v9944_v23 = vpack.c.bf16 %v442_v9, %v393_v5 }
  0x8f   :  { %v11195_v25 = vunpack.i.l.bf16 %v13484_v12  ;;  %v11190_v26 = vunpack.i.l.bf16 %v13486_v15 }
  0x90   :  { %9945 = vmatprep.subr.bf16.mxu1 %v9944_v23  ;;  %v13536_v23 = vld [vmem:[%s19933_s1] sm:$0xff] }
  0x91   :  { %v394_v29 = vsel %vm385_vm5, %v11190_v26, %v11180_v3  ;;  %v443_v31 = vsel %vm434_vm6, %v11195_v25, %v11185_v0 }
  0x92   :  { %v13498_v33 = vpop.permute.xlu1 %11203  ;;  %v13500_v34 = vpop.permute.xlu0 %11198  ;;  %v9946_v35 = vpack.c.bf16 %v443_v31, %v394_v29  ;;  %v11156_v29 = vunpack.i.h.bf16 %v13419_v36  ;;  %v11151_v31 = vunpack.i.h.bf16 %v13421_v37  ;;  %v11196_v37 = vunpack.i.h.bf16 %v13484_v12 }
  0x93   :  { %v11205_v38 = vunpack.i.l.bf16 %v13498_v33  ;;  %v19938_v39 = vunpack.i.h.bf16 %v13500_v34  ;;  %v11200_v42 = vunpack.i.l.bf16 %v13500_v34 }
  0x94   :  { %9947 = vmatpush1.bf16.msra.mxu1 %v9946_v35 }
  0x95   :  { %v491_v43 = vsel %vm483_vm7, %v11200_v42, %v19938_v39  ;;  %v492_v46 = vsel %vm483_vm7, %v11205_v38, %v11200_v42  ;;  %v11171_v39 = vunpack.i.h.bf16 %v13454_v54  ;;  %v11206_v54 = vunpack.i.h.bf16 %v13498_v33 }
  0x96   :  { %v13514_v48 = vpop.permute.xlu1 %11213  ;;  %v13516_v50 = vpop.permute.xlu0 %11208  ;;  %v9948_v52 = vpack.c.bf16 %v19964_v51, %v491_v43  ;;  %v9950_v55 = vpack.c.bf16 %v19964_v51, %v492_v46 }
  0x97   :  { %v11211_v59 = vunpack.i.h.bf16 %v13516_v50  ;;  %v19937_v62 = vunpack.i.l.bf16 %v13516_v50  ;;  %v11216_v0 = vunpack.i.h.bf16 %v13514_v48  ;;  %v19940_v3 = vunpack.i.l.bf16 %v13514_v48 }
  0x98   :  { %9949 = vmatprep.subr.bf16.mxu1 %v9948_v52 }
  0x99   :  { %v145_v5 = vsel %vm140_vm0, %v11211_v59, %v11136_v58  ;;  %9951 = vmatpush1.bf16.msra.mxu1 %v9950_v55  ;;  %v144_v9 = vsel %vm140_vm0, %v11136_v58, %v19937_v62  ;;  %v11176_v62 = vunpack.i.h.bf16 %v13452_v53  ;;  %v194_v63 = vsel %vm189_vm1, %v11216_v0, %v11151_v31 }
  0x9a   :  { %v13540_v35 = vpop.permute.xlu0 %11218  ;;  %v13542_v42 = vpop.permute.xlu1 %11223  ;;  %v9972_v43 = vpack.c.bf16 %v144_v9, %v13257_v4  ;;  %v9974_v46 = vpack.c.bf16 %v145_v5, %v13278_v6  ;;  %v193_v4 = vsel %vm189_vm1, %v11151_v31, %v19940_v3 }
  0x9b   :  { %v11221_v52 = vunpack.i.h.bf16 %v13540_v35  ;;  %v19943_v55 = vunpack.i.l.bf16 %v13540_v35  ;;  %v11226_v58 = vunpack.i.h.bf16 %v13542_v42  ;;  %v11225_v18 = vunpack.i.l.bf16 %v13542_v42 }
  0x9c   :  { %9973 = vmatprep.subr.bf16.mxu1 %v9972_v43  ;;  %9844 = vmatmul.mubr.msk.f32.vlgmr.msra.gmra.mrb[0].mxu1 %vm629_vm8, %v13536_v23 }
  0x9d   :  { %v243_v6 = vsel %vm238_vm2, %v11221_v52, %v11156_v29  ;;  %9975 = vmatpush1.bf16.msra.mxu1 %v9974_v46  ;;  %v150_v5 = vsel %vm140_vm0, %v11225_v18, %v11135_v32  ;;  %v242_v9 = vsel %vm238_vm2, %v11156_v29, %v19943_v55  ;;  %v151_v31 = vsel %vm140_vm0, %v11226_v58, %v11225_v18 }
  0x9e   :  { %v13578_v43 = vpop.permute.xlu0 %11228  ;;  %v13580_v3 = vpop.permute.xlu1 %11233  ;;  %v9912_v46 = vpack.c.bf16 %v150_v5, %v13299_v11  ;;  %v9976_v28 = vpack.c.bf16 %v242_v9, %v193_v4  ;;  %v9978_v2 = vpack.c.bf16 %v243_v6, %v194_v63  ;;  %v9914_v32 = vpack.c.bf16 %v151_v31, %v13294_v10  ;;  %910 = vmatprep.mubr.f32.mxu1 %v19961_v8 }
  0x9f   :  { %v11231_v47 = vunpack.i.h.bf16 %v13578_v43  ;;  %v19945_v29 = vunpack.i.l.bf16 %v13578_v43  ;;  %v19947_v55 = vunpack.i.h.bf16 %v13580_v3  ;;  %v19944_v18 = vunpack.i.l.bf16 %v13580_v3 }
  0xa0   :  { %9913 = vmatprep.subr.bf16.mxu0 %v9912_v46  ;;  %9977 = vmatprep.subr.bf16.mxu1 %v9976_v28 }
  0xa1   :  { %v292_v11 = vsel %vm287_vm3, %v11231_v47, %v11171_v39  ;;  %v341_v10 = vsel %vm336_vm4, %v19947_v55, %v11176_v62  ;;  %9979 = vmatpush1.bf16.msra.mxu1 %v9978_v2  ;;  %9915 = vmatpush1.bf16.msra.mxu0 %v9914_v32  ;;  %v291_v63 = vsel %vm287_vm3, %v11171_v39, %v19945_v29 }
  0xa2   :  { %v13601_v4 = vpop.permute.xlu0 %11238  ;;  %v13603_v6 = vpop.permute.xlu1 %11243  ;;  %v340_v5 = vsel %vm336_vm4, %v11176_v62, %v19944_v18  ;;  %v9982_v9 = vpack.c.bf16 %v341_v10, %v292_v11 }
  0xa3   :  { %v11241_v31 = vunpack.i.h.bf16 %v13601_v4  ;;  %v11240_v2 = vunpack.i.l.bf16 %v13601_v4  ;;  %v11246_v46 = vunpack.i.h.bf16 %v13603_v6  ;;  %v11245_v28 = vunpack.i.l.bf16 %v13603_v6 }
  0xa4   :  { %v9980_v32 = vpack.c.bf16 %v340_v5, %v291_v63  ;;  %v11191_v63 = vunpack.i.h.bf16 %v13486_v15 }
  0xa5   :  { %v199_v39 = vsel %vm189_vm1, %v11240_v2, %v11150_v41  ;;  %v248_v62 = vsel %vm238_vm2, %v11245_v28, %v11155_v40  ;;  %v200_v11 = vsel %vm189_vm1, %v11241_v31, %v11240_v2  ;;  %v249_v10 = vsel %vm238_vm2, %v11246_v46, %v11245_v28 }
  0xa6   :  { %9981 = vmatprep.subr.bf16.mxu1 %v9980_v32  ;;  %v13631_v41 = vpop.permute.xlu0 %11248  ;;  %v13633_v36 = vpop.permute.xlu1 %11253  ;;  %v9916_v40 = vpack.c.bf16 %v248_v62, %v199_v39  ;;  %v9918_v5 = vpack.c.bf16 %v249_v10, %v200_v11 }
  0xa7   :  { %9983 = vmatpush1.bf16.msra.mxu1 %v9982_v9  ;;  %v19946_v18 = vunpack.i.h.bf16 %v13631_v41  ;;  %v19951_v2 = vunpack.i.l.bf16 %v13631_v41  ;;  %v19948_v29 = vunpack.i.h.bf16 %v13633_v36  ;;  %v19950_v28 = vunpack.i.l.bf16 %v13633_v36 }
  0xa8   :  { %9917 = vmatprep.subr.bf16.mxu0 %v9916_v40 }
  0xa9   :  { %v390_v32 = vsel %vm385_vm5, %v19946_v18, %v11191_v63  ;;  %v439_v39 = vsel %vm434_vm6, %v19948_v29, %v11196_v37  ;;  %9919 = vmatpush1.bf16.msra.mxu0 %v9918_v5  ;;  %v389_v9 = vsel %vm385_vm5, %v11191_v63, %v19951_v2  ;;  %v438_v62 = vsel %vm434_vm6, %v11196_v37, %v19950_v28 }
  0xaa   :  { %v13655_v11 = vpop.permute.xlu0 %11258  ;;  %v13657_v10 = vpop.permute.xlu1 %11263  ;;  %v9984_v40 = vpack.c.bf16 %v438_v62, %v389_v9  ;;  %v9986_v18 = vpack.c.bf16 %v439_v39, %v390_v32 }
  0xab   :  { %v11261_v55 = vunpack.i.h.bf16 %v13655_v11  ;;  %v11260_v5 = vunpack.i.l.bf16 %v13655_v11  ;;  %v11266_v29 = vunpack.i.h.bf16 %v13657_v10  ;;  %v11265_v49 = vunpack.i.l.bf16 %v13657_v10 }
  0xac   :  { %9985 = vmatprep.subr.bf16.mxu1 %v9984_v40 }
  0xad   :  { %9987 = vmatpush1.bf16.msra.mxu1 %v9986_v18  ;;  %v297_v37 = vsel %vm287_vm3, %v11260_v5, %v11170_v57  ;;  %v346_v63 = vsel %vm336_vm4, %v11265_v49, %v11175_v56  ;;  %v298_v32 = vsel %vm287_vm3, %v11261_v55, %v11260_v5  ;;  %v347_v18 = vsel %vm336_vm4, %v11266_v29, %v11265_v49 }
  0xae   :  { %v13680_v39 = vpop.permute.xlu0 %11268  ;;  %v13682_v57 = vpop.permute.xlu1 %11273  ;;  %v9920_v53 = vpack.c.bf16 %v346_v63, %v297_v37  ;;  %v9922_v9 = vpack.c.bf16 %v347_v18, %v298_v32 }
  0xaf   :  { %v19953_v56 = vunpack.i.h.bf16 %v13680_v39  ;;  %v11270_v62 = vunpack.i.l.bf16 %v13680_v39  ;;  %v19952_v40 = vunpack.i.h.bf16 %v13682_v57  ;;  %v11275_v5 = vunpack.i.l.bf16 %v13682_v57 }
  0xb0   :  { %9921 = vmatprep.subr.bf16.mxu0 %v9920_v53 }
  0xb1   :  { %v488_v49 = vsel %vm483_vm7, %v19953_v56, %v11206_v54  ;;  %v141_v37 = vsel %vm140_vm0, %v19952_v40, %v11275_v5  ;;  %9923 = vmatpush1.bf16.msra.mxu0 %v9922_v9  ;;  %v487_v63 = vsel %vm483_vm7, %v11206_v54, %v11270_v62  ;;  %v152_v32 = vsel %vm140_vm0, %v11275_v5, %v11226_v58 }
  0xb2   :  { %v13704_v18 = vpop.permute.xlu0 %11278  ;;  %v13706_v53 = vpop.permute.xlu1 %11283  ;;  %v9988_v28 = vpack.c.bf16 %v19964_v51, %v487_v63  ;;  %v9990_v2 = vpack.c.bf16 %v19964_v51, %v488_v49  ;;  %v10012_v42 = vpack.c.bf16 %v152_v32, %v13321_v14  ;;  %v10014_v58 = vpack.c.bf16 %v141_v37, %v13316_v13 }
  0xb3   :  { %v11281_v9 = vunpack.i.h.bf16 %v13704_v18  ;;  %v11280_v40 = vunpack.i.l.bf16 %v13704_v18  ;;  %v11286_v56 = vunpack.i.h.bf16 %v13706_v53  ;;  %v11285_v54 = vunpack.i.l.bf16 %v13706_v53 }
  0xb4   :  { %9989 = vmatprep.subr.bf16.mxu1 %v9988_v28 }
  0xb5   :  { %9991 = vmatpush1.bf16.msra.mxu1 %v9990_v2  ;;  %v395_v5 = vsel %vm385_vm5, %v11280_v40, %v11190_v26  ;;  %v444_v49 = vsel %vm434_vm6, %v11285_v54, %v11195_v25  ;;  %v396_v28 = vsel %vm385_vm5, %v11281_v9, %v11280_v40  ;;  %v445_v13 = vsel %vm434_vm6, %v11286_v56, %v11285_v54 }
  0xb6   :  { %v13732_v14 = vpop.permute.xlu0 %11288  ;;  %v13734_v15 = vpop.permute.xlu1 %11293  ;;  %10013 = vmatprep.subr.bf16.mxu1 %v10012_v42  ;;  %v9924_v26 = vpack.c.bf16 %v444_v49, %v395_v5  ;;  %v9926_v12 = vpack.c.bf16 %v445_v13, %v396_v28 }
  0xb7   :  { %v11291_v2 = vunpack.i.h.bf16 %v13732_v14  ;;  %v11290_v25 = vunpack.i.l.bf16 %v13732_v14  ;;  %v11296_v37 = vunpack.i.h.bf16 %v13734_v15  ;;  %v11295_v40 = vunpack.i.l.bf16 %v13734_v15 }
  0xb8   :  { %9925 = vmatprep.subr.bf16.mxu0 %v9924_v26  ;;  %9846 = vmatmul.mubr.msk.f32.vlgmr.msra.gmra.mrb[2].mxu1 %vm629_vm8, %v13536_v23  ;;  %v20207_v14 = vunpack.i.l.bf16 %v13580_v3 }
  0xb9   :  { %v190_v63 = vsel %vm189_vm1, %v11291_v2, %v11290_v25  ;;  %v239_v32 = vsel %vm238_vm2, %v11296_v37, %v11295_v40  ;;  %9927 = vmatpush1.bf16.msra.mxu0 %v9926_v12  ;;  %10015 = vmatpush1.bf16.msra.mxu1 %v10014_v58  ;;  %v201_v54 = vsel %vm189_vm1, %v11290_v25, %v11241_v31 }
  0xba   :  { %v13754_v42 = vpop.permute.xlu0 %11298  ;;  %v125_v5 = vpop.permute.xlu1 %124  ;;  %v250_v49 = vsel %vm238_vm2, %v11295_v40, %v11246_v46  ;;  %1052 = vmatprep.mubr.f32.mxu1 %v19961_v8  ;;  %v10018_v58 = vpack.c.bf16 %v239_v32, %v190_v63 }
  0xbb   :  { %v11301_v28 = vunpack.i.h.bf16 %v13754_v42  ;;  %v11300_v13 = vunpack.i.l.bf16 %v13754_v42  ;;  %v10016_v26 = vpack.c.bf16 %v250_v49, %v201_v54  ;;  %v146_v4 = vsel %vm140_vm0, %v125_v5, %v11211_v59 }
  0xbc   :  { %v147_v46 = vsel %vm140_vm0, %v11131_v24, %v125_v5  ;;  %v9952_v24 = vpack.c.bf16 %v146_v4, %v13336_v16  ;;  %v20198_v42 = vunpack.i.h.bf16 %v13633_v36 }
  0xbd   :  { %v493_v6 = vsel %vm483_vm7, %v11300_v13, %v11205_v38  ;;  %v494_v31 = vsel %vm483_vm7, %v11301_v28, %v11300_v13  ;;  %10017 = vmatprep.subr.bf16.mxu1 %v10016_v26  ;;  %v9954_v49 = vpack.c.bf16 %v147_v46, %v13245_v1 }
  0xbe   :  { %v13779_v12 = vpop.permute.xlu0 %11303  ;;  %v13781_v25 = vpop.permute.xlu1 %11308  ;;  %v9928_v33 = vpack.c.bf16 %v19964_v51, %v493_v6  ;;  %v9930_v59 = vpack.c.bf16 %v19964_v51, %v494_v31  ;;  %10019 = vmatpush1.bf16.msra.mxu1 %v10018_v58 }
  0xbf   :  { %v11306_v38 = vunpack.i.h.bf16 %v13779_v12  ;;  %v11305_v40 = vunpack.i.l.bf16 %v13779_v12  ;;  %v11311_v63 = vunpack.i.h.bf16 %v13781_v25  ;;  %v11310_v21 = vunpack.i.l.bf16 %v13781_v25 }
  0xc0   :  { %9929 = vmatprep.subr.bf16.mxu0 %v9928_v33 }
  0xc1   :  { %v288_v32 = vsel %vm287_vm3, %v11306_v38, %v11305_v40  ;;  %v337_v54 = vsel %vm336_vm4, %v11311_v63, %v11310_v21  ;;  %9931 = vmatpush1.bf16.msra.mxu0 %v9930_v59  ;;  %v299_v5 = vsel %vm287_vm3, %v11305_v40, %v11261_v55  ;;  %v348_v16 = vsel %vm336_vm4, %v11310_v21, %v11266_v29 }
  0xc2   :  { %v176_v13 = vpop.permute.xlu0 %175  ;;  %v225_v58 = vpop.permute.xlu1 %224  ;;  %9953 = vmatprep.subr.bf16.mxu0 %v9952_v24  ;;  %v10020_v26 = vpack.c.bf16 %v348_v16, %v299_v5  ;;  %v10022_v4 = vpack.c.bf16 %v337_v54, %v288_v32  ;;  %v20193_v5 = vunpack.i.h.bf16 %v13436_v45 }
  0xc3   :  { %v195_v11 = vsel %vm189_vm1, %v176_v13, %v11216_v0  ;;  %v196_v55 = vsel %vm189_vm1, %v11141_v22, %v176_v13  ;;  %v244_v1 = vsel %vm238_vm2, %v225_v58, %v11221_v52  ;;  %v245_v29 = vsel %vm238_vm2, %v11146_v30, %v225_v58 }
  0xc4   :  { %9843 = vmatmul.mubr.msk.f32.vlgmr.msra.gmra.mrb[0].mxu0 %vm629_vm8, %v13536_v23  ;;  %10021 = vmatprep.subr.bf16.mxu1 %v10020_v26  ;;  %v9956_v0 = vpack.c.bf16 %v244_v1, %v195_v11  ;;  %v9958_v20 = vpack.c.bf16 %v245_v29, %v196_v55  ;;  %v20196_v11 = vunpack.i.h.bf16 %v13631_v41 }
  0xc5   :  { %9955 = vmatpush1.bf16.msra.mxu0 %v9954_v49  ;;  %10023 = vmatpush1.bf16.msra.mxu1 %v10022_v4 }
  0xc6   :  { %v13825_v10 = vpop.permute.xlu0 %11313  ;;  %v13827_v22 = vpop.permute.xlu1 %11318  ;;  %9957 = vmatprep.subr.bf16.mxu0 %v9956_v0  ;;  %839 = vmatprep.mubr.f32.mxu0 %v19961_v8 }
  0xc7   :  { %v11316_v27 = vunpack.i.h.bf16 %v13825_v10  ;;  %v11315_v52 = vunpack.i.l.bf16 %v13825_v10  ;;  %v11321_v30 = vunpack.i.h.bf16 %v13827_v22  ;;  %v11320_v6 = vunpack.i.l.bf16 %v13827_v22 }
  0xc9   :  { %v386_v31 = vsel %vm385_vm5, %v11316_v27, %v11315_v52  ;;  %v435_v46 = vsel %vm434_vm6, %v11321_v30, %v11320_v6  ;;  %9959 = vmatpush1.bf16.msra.mxu0 %v9958_v20  ;;  %v397_v33 = vsel %vm385_vm5, %v11315_v52, %v11281_v9  ;;  %v446_v59 = vsel %vm434_vm6, %v11320_v6, %v11286_v56 }
  0xca   :  { %v274_v40 = vpop.permute.xlu0 %273  ;;  %v323_v21 = vpop.permute.xlu1 %322  ;;  %v10024_v24 = vpack.c.bf16 %v446_v59, %v397_v33  ;;  %v10026_v32 = vpack.c.bf16 %v435_v46, %v386_v31  ;;  %v20194_v9 = vunpack.i.h.bf16 %v13580_v3  ;;  %v20195_v56 = vunpack.i.h.bf16 %v13434_v44 }
  0xcb   :  { %v293_v54 = vsel %vm287_vm3, %v274_v40, %v11231_v47  ;;  %v294_v18 = vsel %vm287_vm3, %v20193_v5, %v274_v40  ;;  %v20197_v52 = vunpack.i.h.bf16 %v13468_v61  ;;  %v20199_v31 = vunpack.i.h.bf16 %v13466_v60 }
  0xcc   :  { %v342_v53 = vsel %vm336_vm4, %v323_v21, %v20194_v9  ;;  %v343_v16 = vsel %vm336_vm4, %v20195_v56, %v323_v21  ;;  %10025 = vmatprep.subr.bf16.mxu1 %v10024_v24  ;;  %v20200_v33 = vunpack.i.h.bf16 %v13680_v39  ;;  %v20201_v21 = vunpack.i.h.bf16 %v13500_v34 }
  0xcd   :  { %v9962_v49 = vpack.c.bf16 %v343_v16, %v294_v18  ;;  %v9960_v13 = vpack.c.bf16 %v342_v53, %v293_v54  ;;  %10027 = vmatpush1.bf16.msra.mxu1 %v10026_v32  ;;  %v20202_v5 = vunpack.i.h.bf16 %v13682_v57  ;;  %v20203_v9 = vunpack.i.l.bf16 %v13516_v50 }
  0xce   :  { %v13866_v47 = vpop.permute.xlu0 %11323  ;;  %v372_v45 = vpop.permute.xlu1 %371 }
  0xcf   :  { %9961 = vmatprep.subr.bf16.mxu0 %v9960_v13  ;;  %v11326_v58 = vunpack.i.h.bf16 %v13866_v47  ;;  %v11325_v26 = vunpack.i.l.bf16 %v13866_v47  ;;  %v391_v55 = vsel %vm385_vm5, %v372_v45, %v20196_v11  ;;  %v392_v6 = vsel %vm385_vm5, %v20197_v52, %v372_v45 }
  0xd0   :  { %9963 = vmatpush1.bf16.msra.mxu0 %v9962_v49  ;;  %v20204_v49 = vunpack.i.l.bf16 %v13514_v48 }
  0xd1   :  { %v484_v44 = vsel %vm483_vm7, %v11326_v58, %v11325_v26  ;;  %v495_v4 = vsel %vm483_vm7, %v11325_v26, %v11301_v28  ;;  %v20205_v26 = vunpack.i.l.bf16 %v13540_v35  ;;  %v20206_v35 = vunpack.i.l.bf16 %v13578_v43 }
  0xd2   :  { %v421_v1 = vpop.permute.xlu0 %420  ;;  %v470_v29 = vpop.permute.xlu1 %469  ;;  %v10028_v0 = vpack.c.bf16 %v19964_v51, %v495_v4  ;;  %v10030_v20 = vpack.c.bf16 %v19964_v51, %v484_v44 }
  0xd3   :  { %v440_v28 = vsel %vm434_vm6, %v421_v1, %v20198_v42  ;;  %v441_v46 = vsel %vm434_vm6, %v20199_v31, %v421_v1  ;;  %v489_v59 = vsel %vm483_vm7, %v470_v29, %v20200_v33  ;;  %v490_v24 = vsel %vm483_vm7, %v20201_v21, %v470_v29 }
  0xd4   :  { %v9966_v40 = vpack.c.bf16 %v441_v46, %v392_v6  ;;  %10029 = vmatprep.subr.bf16.mxu1 %v10028_v0  ;;  %v9964_v61 = vpack.c.bf16 %v440_v28, %v391_v55  ;;  %v9968_v60 = vpack.c.bf16 %v19964_v51, %v489_v59  ;;  %v9970_v34 = vpack.c.bf16 %v19964_v51, %v490_v24 }
  0xd5   :  { %10031 = vmatpush1.bf16.msra.mxu1 %v10030_v20  ;;  %v20208_v29 = vunpack.i.l.bf16 %v13631_v41  ;;  %v20209_v0 = vunpack.i.l.bf16 %v13633_v36 }
  0xd6   :  { %v133_v32 = vpop.permute.xlu0 %132  ;;  %v184_v54 = vpop.permute.xlu1 %183  ;;  %9965 = vmatprep.subr.bf16.mxu0 %v9964_v61 }
  0xd7   :  { %v142_v18 = vsel %vm140_vm0, %v133_v32, %v20202_v5  ;;  %9967 = vmatpush1.bf16.msra.mxu0 %v9966_v40  ;;  %v143_v53 = vsel %vm140_vm0, %v20203_v9, %v133_v32  ;;  %v192_v13 = vsel %vm189_vm1, %v20204_v49, %v184_v54  ;;  %v191_v48 = vsel %vm189_vm1, %v184_v54, %v11291_v2 }
  0xd8   :  { %9969 = vmatprep.subr.bf16.mxu0 %v9968_v60  ;;  %9848 = vmatmul.mubr.msk.f32.vlgmr.msra.gmra.mrb[4].mxu1 %vm629_vm8, %v13536_v23  ;;  %v9992_v57 = vpack.c.bf16 %v142_v18, %v13363_v17  ;;  %v9994_v17 = vpack.c.bf16 %v143_v53, %v13283_v7 }
  0xd9   :  { %1744 = vmatprep.mubr.f32.mxu1 %v19961_v8 }
  0xda   :  { %v233_v56 = vpop.permute.xlu0 %232  ;;  %v282_v16 = vpop.permute.xlu1 %281 }
  0xdb   :  { %v240_v45 = vsel %vm238_vm2, %v233_v56, %v11296_v37  ;;  %v241_v50 = vsel %vm238_vm2, %v20205_v26, %v233_v56  ;;  %9971 = vmatpush1.bf16.msra.mxu0 %v9970_v34  ;;  %v290_v11 = vsel %vm287_vm3, %v20206_v35, %v282_v16  ;;  %v289_v43 = vsel %vm287_vm3, %v282_v16, %v11306_v38 }
  0xdc   :  { %v9998_v44 = vpack.c.bf16 %v241_v50, %v192_v13  ;;  %9993 = vmatprep.subr.bf16.mxu0 %v9992_v57  ;;  %v9996_v37 = vpack.c.bf16 %v240_v45, %v191_v48 }
  0xde   :  { %v331_v4 = vpop.permute.xlu0 %330  ;;  %v380_v15 = vpop.permute.xlu1 %379  ;;  %9845 = vmatmul.mubr.msk.f32.vlgmr.msra.gmra.mrb[2].mxu0 %vm629_vm8, %v13536_v23 }
  0xdf   :  { %v338_v7 = vsel %vm336_vm4, %v331_v4, %v11311_v63  ;;  %v339_v2 = vsel %vm336_vm4, %v20207_v14, %v331_v4  ;;  %9995 = vmatpush1.bf16.msra.mxu0 %v9994_v17  ;;  %981 = vmatprep.mubr.f32.mxu0 %v19961_v8  ;;  %v388_v3 = vsel %vm385_vm5, %v20208_v29, %v380_v15 }
  0xe0   :  { %v10002_v55 = vpack.c.bf16 %v339_v2, %v290_v11  ;;  %9997 = vmatprep.subr.bf16.mxu0 %v9996_v37  ;;  %v10000_v25 = vpack.c.bf16 %v338_v7, %v289_v43  ;;  %v387_v41 = vsel %vm385_vm5, %v380_v15, %v11316_v27  ;;  %v20210_v27 = vlaneseq }
  0xe2   :  { %v429_v1 = vpop.permute.xlu0 %428  ;;  %v478_v38 = vpop.permute.xlu1 %477  ;;  %v13984_v47 = vshrl.u32 %v20210_v27, 7 }
  0xe3   :  { %v436_v63 = vsel %vm434_vm6, %v429_v1, %v11321_v30  ;;  %v437_v12 = vsel %vm434_vm6, %v20209_v0, %v429_v1  ;;  %9999 = vmatpush1.bf16.msra.mxu0 %v9998_v44  ;;  %v485_v22 = vsel %vm483_vm7, %v478_v38, %v11326_v58  ;;  %v486_v36 = vsel %vm483_vm7, %v11270_v62, %v478_v38  ;;  %v13990_v62 = vld [vmem:[%s19934_s2] sm:$0xff]  ;;  %v15_v1 = vld [vmem:[%s19934_s2 + $0x8] sm:$0xf] }
  0xe4   :  { %v10006_v20 = vpack.c.bf16 %v437_v12, %v388_v3  ;;  %10001 = vmatprep.subr.bf16.mxu0 %v10000_v25  ;;  %v10004_v52 = vpack.c.bf16 %v436_v63, %v387_v41  ;;  %v10008_v30 = vpack.c.bf16 %v19964_v51, %v485_v22  ;;  %v10010_v10 = vpack.c.bf16 %v19964_v51, %v486_v36 }
  0xe5   :  { %v28_v39 = vsub.s32 2, %v13984_v47  ;;  %v32_v58 = vsub.s32 3, %v13984_v47  ;;  %v20_v24 = vsub.s32 0, %v13984_v47  ;;  %v24_v32 = vsub.s32 1, %v13984_v47 }
  0xe6   :  { %v36_v13 = vsub.s32 4, %v13984_v47  ;;  %v40_v26 = vsub.s32 5, %v13984_v47  ;;  %v44_v14 = vsub.s32 6, %v13984_v47  ;;  %v48_v2 = vsub.s32 7, %v13984_v47 }
  0xe7   :  { %10003 = vmatpush1.bf16.msra.mxu0 %v10002_v55  ;;  %v13996_v6 = vrot.slane %v13990_v62, %v28_v39  ;;  %v14001_v42 = vrot.slane %v13990_v62, %v32_v58  ;;  %v14018_v54 = vrot.slane %v13990_v62, %v20_v24  ;;  %v14023_v5 = vrot.slane %v13990_v62, %v24_v32 }
  0xe8   :  { %10005 = vmatprep.subr.bf16.mxu0 %v10004_v52  ;;  %v14048_v50 = vrot.slane %v13990_v62, %v36_v13  ;;  %v14051_v48 = vrot.slane %v13990_v62, %v40_v26  ;;  %v14072_v55 = vrot.slane %v13990_v62, %v44_v14  ;;  %v14078_v25 = vrot.slane %v13990_v62, %v48_v2 }
  0xe9   :  { %20211 = vst [vmem:[#allocation3_spill] sm:$0xff] %v14018_v54  ;;  %v14081_v3 = vrot.slane %v15_v1, %v20_v24  ;;  %v14085_v63 = vrot.slane %v15_v1, %v32_v58  ;;  %v14129_v58 = vrot.slane %v15_v1, %v28_v39 }
  0xea   :  { %20212 = vst [vmem:[#allocation4_spill] sm:$0xff] %v14048_v50  ;;  %20213 = vst [vmem:[#allocation5_spill] sm:$0xff] %v14051_v48 }
  0xeb   :  { %10007 = vmatpush1.bf16.msra.mxu0 %v10006_v20  ;;  %20214 = vst [vmem:[#allocation6_spill] sm:$0xff] %v14078_v25  ;;  %20215 = vst [vmem:[#allocation7_spill] sm:$0xff] %v14081_v3 }
  0xec   :  { %10009 = vmatprep.subr.bf16.mxu0 %v10008_v30  ;;  %20216 = vst [vmem:[#allocation8_spill] sm:$0xff] %v14085_v63  ;;  %20217 = vst [vmem:[#allocation9_spill] sm:$0xff] %v14129_v58 }
  0xef   :  { %10011 = vmatpush1.bf16.msra.mxu0 %v10010_v10 }
  0xf2   :  { %9847 = vmatmul.mubr.msk.f32.vlgmr.msra.gmra.mrb[4].mxu0 %vm629_vm8, %v13536_v23 }
  0xf3   :  { %1673 = vmatprep.mubr.f32.mxu0 %v19961_v8 }
 0x16f   :  { %v770_v23 = vpop.f32.mrb[0].mxu1 }
 0x170   :  { %v1061_v28 = vmax.f32 %v770_v23, 0.0  ;;  %v772_v31 = vpop.f32.mrb[1].mxu1 }
 0x171   :  { %v1062_v46 = vmax.f32 %v772_v31, 0.0 }
 0x172   :  { %v14004_v33 = vmul.f32 %v1061_v28, %v13996_v6  ;;  %v14134_v28 = vrot.slane %v15_v1, %v24_v32 }
 0x173   :  { %v14007_v59 = vmul.f32 %v1062_v46, %v14001_v42 }
 0x174   :  { %20218 = vst [vmem:[#allocation10_spill] sm:$0xff] %v14134_v28 }
 0x175   :  { %v11332_v40 = vpack.i.bf16 %v14007_v59, %v14004_v33 }
 0x177   :  { %11333 = vrot.lane.b32.xlu1 %v11332_v40, %s13212_s20 }
 0x17b   :  { %11343 = vrot.lane.b32.xlu1 %v11332_v40, %s13213_s23 }
 0x17f   :  { %11353 = vrot.lane.b32.xlu1 %v11332_v40, %s13214_s25 }
 0x183   :  { %11363 = vrot.lane.b32.xlu1 %v11332_v40, %s13215_s26 }
 0x18b   :  { %v912_v61 = vpop.f32.mrb[2].mxu1 }
 0x18c   :  { %v914_v21 = vpop.f32.mrb[3].mxu1  ;;  %v1065_v43 = vmax.f32 %v912_v61, 0.0 }
 0x18d   :  { %v1066_v29 = vmax.f32 %v914_v21, 0.0 }
 0x18e   :  { %v14088_v12 = vmul.f32 %v1065_v43, %v14072_v55 }
 0x18f   :  { %v14091_v52 = vmul.f32 %v1066_v29, %v14078_v25 }
 0x191   :  { %v11482_v62 = vpack.i.bf16 %v14091_v52, %v14088_v12 }
 0x197   :  { %v699_v60 = vpop.f32.mrb[0].mxu0 }
 0x198   :  { %v1059_v18 = vmax.f32 %v699_v60, 0.0  ;;  %v701_v34 = vpop.f32.mrb[1].mxu0 }
 0x199   :  { %v1060_v9 = vmax.f32 %v701_v34, 0.0 }
 0x19a   :  { %v14026_v53 = vmul.f32 %v1059_v18, %v14018_v54 }
 0x19b   :  { %v14029_v56 = vmul.f32 %v1060_v9, %v14023_v5 }
 0x19d   :  { %v11372_v16 = vpack.i.bf16 %v14004_v33, %v14029_v56  ;;  %v11327_v57 = vpack.i.bf16 %v14029_v56, %v14026_v53 }
 0x19f   :  { %11373 = vrot.lane.b32.xlu1 %v11372_v16, %s13216_s27  ;;  %11328 = vrot.lane.b32.xlu0 %v11327_v57, %s13212_s20 }
 0x1a3   :  { %11378 = vrot.lane.b32.xlu1 %v11372_v16, %s13204_s22  ;;  %11338 = vrot.lane.b32.xlu0 %v11327_v57, %s13213_s23 }
 0x1a7   :  { %11383 = vrot.lane.b32.xlu1 %v11372_v16, %s13206_s24  ;;  %11348 = vrot.lane.b32.xlu0 %v11327_v57, %s13214_s25 }
 0x1ab   :  { %11358 = vrot.lane.b32.xlu0 %v11327_v57, %s13215_s26  ;;  %v14042_v49 = vpop.f32.mrb[4].mxu1 }
 0x1ac   :  { %v1056_v45 = vpop.f32.mrb[5].mxu1  ;;  %v1069_v23 = vmax.f32 %v14042_v49, 0.0 }
 0x1ad   :  { %v1070_v20 = vmax.f32 %v1056_v45, 0.0 }
 0x1ae   :  { %v14145_v39 = vmul.f32 %v1069_v23, %v14129_v58 }
 0x1af   :  { %11368 = vrot.lane.b32.xlu0 %v11372_v16, %s13203_s21  ;;  %v14098_v36 = vmul.f32 %v1070_v20, %v14085_v63 }
 0x1b1   :  { %v841_v44 = vpop.f32.mrb[2].mxu0 }
 0x1b2   :  { %v1063_v17 = vmax.f32 %v841_v44, 0.0  ;;  %v843_v4 = vpop.f32.mrb[3].mxu0 }
 0x1b3   :  { %v1064_v15 = vmax.f32 %v843_v4, 0.0 }
 0x1b4   :  { %v14054_v37 = vmul.f32 %v1063_v17, %v14048_v50 }
 0x1b5   :  { %v14057_v35 = vmul.f32 %v1064_v15, %v14051_v48 }
 0x1b6   :  { %v11392_v11 = vpack.i.bf16 %v14054_v37, %v14007_v59  ;;  %v11447_v27 = vpack.i.bf16 %v14054_v37, %v14098_v36 }
 0x1b7   :  { %v11412_v7 = vpack.i.bf16 %v14057_v35, %v14026_v53  ;;  %v11427_v30 = vpack.i.bf16 %v14088_v12, %v14057_v35 }
 0x1b8   :  { %11393 = vrot.lane.b32.xlu0 %v11392_v11, %s13216_s27  ;;  %11388 = vrot.lane.b32.xlu1 %v11392_v11, %s13203_s21 }
 0x1bc   :  { %11398 = vrot.lane.b32.xlu0 %v11392_v11, %s13204_s22  ;;  %11413 = vrot.lane.b32.xlu1 %v11412_v7, %s13216_s27 }
 0x1c0   :  { %11403 = vrot.lane.b32.xlu0 %v11392_v11, %s13206_s24  ;;  %11423 = vrot.lane.b32.xlu1 %v11412_v7, %s13206_s24 }
 0x1c4   :  { %11408 = vrot.lane.b32.xlu0 %v11412_v7, %s13203_s21 }
 0x1c5   :  { %v983_v0 = vpop.f32.mrb[4].mxu0 }
 0x1c6   :  { %v1067_v38 = vmax.f32 %v983_v0, 0.0  ;;  %v985_v41 = vpop.f32.mrb[5].mxu0 }
 0x1c7   :  { %v1068_v46 = vmax.f32 %v985_v41, 0.0 }
 0x1c8   :  { %v14094_v22 = vmul.f32 %v1067_v38, %v14081_v3  ;;  %11418 = vrot.lane.b32.xlu0 %v11412_v7, %s13204_s22 }
 0x1c9   :  { %v14151_v21 = vmul.f32 %v1068_v46, %v14134_v28 }
 0x1ca   :  { %v11437_v10 = vpack.i.bf16 %v14094_v22, %v14091_v52 }
 0x1cb   :  { %v11507_v9 = vpack.i.bf16 %v14145_v39, %v14151_v21  ;;  %v11517_v16 = vpack.i.bf16 %v14151_v21, %v14094_v22 }
 0x1cc   :  { %11428 = vrot.lane.b32.xlu0 %v11427_v30, %s13212_s20  ;;  %11438 = vrot.lane.b32.xlu1 %v11437_v10, %s13212_s20 }
 0x1d0   :  { %11433 = vrot.lane.b32.xlu0 %v11427_v30, %s13213_s23  ;;  %11448 = vrot.lane.b32.xlu1 %v11447_v27, %s13213_s23 }
 0x1d4   :  { %11443 = vrot.lane.b32.xlu0 %v11447_v27, %s13212_s20  ;;  %11458 = vrot.lane.b32.xlu1 %v11447_v27, %s13215_s26 }
 0x1d8   :  { %11453 = vrot.lane.b32.xlu0 %v11447_v27, %s13214_s25  ;;  %11463 = vrot.lane.b32.xlu1 %v11437_v10, %s13213_s23 }
 0x1dc   :  { %11468 = vrot.lane.b32.xlu0 %v11427_v30, %s13214_s25  ;;  %11473 = vrot.lane.b32.xlu1 %v11437_v10, %s13214_s25 }
 0x1e0   :  { %11478 = vrot.lane.b32.xlu0 %v11427_v30, %s13215_s26  ;;  %1244 = vrot.lane.b32.xlu1 %v14091_v52, %s13215_s26 }
 0x1e4   :  { %11483 = vrot.lane.b32.xlu0 %v11482_v62, %s13203_s21  ;;  %1307 = vrot.lane.b32.xlu1 %v14094_v22, %s13203_s21 }
 0x1e8   :  { %11488 = vrot.lane.b32.xlu0 %v11482_v62, %s13216_s27  ;;  %1355 = vrot.lane.b32.xlu1 %v14094_v22, %s13216_s27 }
 0x1e9   :  { %v14136_v31 = vpop.permute.xlu1 %11333 }
 0x1ea   :  { %v19963_v40 = vunpack.i.h.bf16 %v14136_v31  ;;  %v11335_v61 = vunpack.i.l.bf16 %v14136_v31 }
 0x1ec   :  { %11493 = vrot.lane.b32.xlu0 %v11482_v62, %s13204_s22  ;;  %1404 = vrot.lane.b32.xlu1 %v14094_v22, %s13204_s22  ;;  %v1116_v60 = vsel %vm1107_vm9, %v11335_v61, %v19963_v40 }
 0x1ed   :  { %v14147_v47 = vpop.permute.xlu1 %11343 }
 0x1ee   :  { %v19960_v24 = vunpack.i.h.bf16 %v14147_v47  ;;  %v11345_v32 = vunpack.i.l.bf16 %v14147_v47 }
 0x1f0   :  { %11498 = vrot.lane.b32.xlu0 %v11482_v62, %s13206_s24  ;;  %1452 = vrot.lane.b32.xlu1 %v14094_v22, %s13206_s24  ;;  %v1165_v18 = vsel %vm1156_vm10, %v11345_v32, %v19960_v24 }
 0x1f1   :  { %v10052_v34 = vpack.c.bf16 %v1165_v18, %v1116_v60  ;;  %v14186_v57 = vpop.permute.xlu1 %11353 }
 0x1f2   :  { %v19956_v13 = vunpack.i.h.bf16 %v14186_v57  ;;  %v11355_v45 = vunpack.i.l.bf16 %v14186_v57 }
 0x1f3   :  { %10053 = vmatprep.subr.bf16.mxu1 %v10052_v34 }
 0x1f4   :  { %1250 = vrot.lane.b32.xlu0 %v14145_v39, %s13215_s26  ;;  %11508 = vrot.lane.b32.xlu1 %v11507_v9, %s13213_s23  ;;  %v1214_v7 = vsel %vm1205_vm11, %v11355_v45, %v19956_v13 }
 0x1f5   :  { %v14190_v49 = vpop.permute.xlu1 %11363 }
 0x1f6   :  { %v19955_v26 = vunpack.i.h.bf16 %v14190_v49  ;;  %v11365_v44 = vunpack.i.l.bf16 %v14190_v49 }
 0x1f8   :  { %11518 = vrot.lane.b32.xlu1 %v11517_v16, %s13215_s26  ;;  %11503 = vrot.lane.b32.xlu0 %v11507_v9, %s13212_s20  ;;  %v1263_v14 = vsel %vm1254_vm12, %v11365_v44, %v19955_v26 }
 0x1f9   :  { %v10056_v38 = vpack.c.bf16 %v1263_v14, %v1214_v7 }
 0x1fc   :  { %11523 = vrot.lane.b32.xlu1 %v11507_v9, %s13203_s21  ;;  %11513 = vrot.lane.b32.xlu0 %v11507_v9, %s13214_s25 }
 0x200   :  { %11528 = vrot.lane.b32.xlu1 %v11507_v9, %s13216_s27  ;;  %1313 = vrot.lane.b32.xlu0 %v14098_v36, %s13203_s21 }
 0x204   :  { %11533 = vrot.lane.b32.xlu1 %v11507_v9, %s13204_s22  ;;  %1361 = vrot.lane.b32.xlu0 %v14098_v36, %s13216_s27 }
 0x208   :  { %11538 = vrot.lane.b32.xlu1 %v11507_v9, %s13206_s24  ;;  %1410 = vrot.lane.b32.xlu0 %v14098_v36, %s13204_s22 }
 0x20c   :  { %1458 = vrot.lane.b32.xlu0 %v14098_v36, %s13206_s24 }
 0x211   :  { %v14196_v17 = vpop.permute.xlu0 %11328  ;;  %v14228_v27 = vpop.permute.xlu1 %11373 }
 0x212   :  { %v11331_v4 = vunpack.i.h.bf16 %v14196_v17  ;;  %v11330_v15 = vunpack.i.l.bf16 %v14196_v17 }
 0x214   :  { %v1117_v2 = vsel %vm1107_vm9, %v11331_v4, %v11335_v61  ;;  %v1118_v29 = vsel %vm1107_vm9, %v11330_v15, %v11331_v4 }
 0x215   :  { %v14202_v11 = vpop.permute.xlu0 %11338  ;;  %v14234_v61 = vpop.permute.xlu1 %11378 }
 0x216   :  { %v11341_v43 = vunpack.i.h.bf16 %v14202_v11  ;;  %v11340_v1 = vunpack.i.l.bf16 %v14202_v11  ;;  %v11380_v3 = vunpack.i.l.bf16 %v14234_v61 }
 0x218   :  { %v1166_v0 = vsel %vm1156_vm10, %v11341_v43, %v11345_v32  ;;  %v1167_v20 = vsel %vm1156_vm10, %v11340_v1, %v11341_v43 }
 0x219   :  { %v14226_v41 = vpop.permute.xlu0 %11348  ;;  %v10032_v30 = vpack.c.bf16 %v1167_v20, %v1118_v29  ;;  %v10054_v10 = vpack.c.bf16 %v1166_v0, %v1117_v2  ;;  %v14244_v34 = vpop.permute.xlu1 %11383 }
 0x21a   :  { %v19970_v62 = vunpack.i.h.bf16 %v14226_v41  ;;  %v11385_v50 = vunpack.i.l.bf16 %v14244_v34 }
 0x21b   :  { %10033 = vmatprep.subr.bf16.mxu0 %v10032_v30  ;;  %10055 = vmatpush1.bf16.msra.mxu1 %v10054_v10  ;;  %v19968_v30 = vunpack.i.h.bf16 %v14228_v27  ;;  %v19967_v10 = vunpack.i.h.bf16 %v14234_v61 }
 0x21c   :  { %10057 = vmatprep.subr.bf16.mxu1 %v10056_v38  ;;  %v1215_v32 = vsel %vm1205_vm11, %v19970_v62, %v11355_v45 }
 0x21d   :  { %v14231_v23 = vpop.permute.xlu0 %11358 }
 0x21e   :  { %v11361_v46 = vunpack.i.h.bf16 %v14231_v23 }
 0x220   :  { %v1264_v60 = vsel %vm1254_vm12, %v11361_v46, %v11365_v44 }
 0x221   :  { %v10058_v18 = vpack.c.bf16 %v1264_v60, %v1215_v32  ;;  %v14246_v9 = vpop.permute.xlu0 %11368 }
 0x222   :  { %v19969_v7 = vunpack.i.h.bf16 %v14246_v9 }
 0x223   :  { %10059 = vmatpush1.bf16.msra.mxu1 %v10058_v18 }
 0x22a   :  { %v14248_v16 = vpop.permute.xlu0 %11393  ;;  %v14250_v4 = vpop.permute.xlu1 %11388 }
 0x22b   :  { %v19954_v14 = vunpack.i.h.bf16 %v14250_v4  ;;  %v11390_v45 = vunpack.i.l.bf16 %v14250_v4  ;;  %v19957_v2 = vunpack.i.h.bf16 %v14248_v16  ;;  %v11395_v44 = vunpack.i.l.bf16 %v14248_v16 }
 0x22d   :  { %v1323_v43 = vsel %vm140_vm0, %v19969_v7, %v11390_v45  ;;  %v1322_v29 = vsel %vm140_vm0, %v11390_v45, %v19954_v14  ;;  %v1372_v18 = vsel %vm1363_vm13, %v19968_v30, %v11395_v44  ;;  %v19966_v14 = vunpack.i.h.bf16 %v14244_v34 }
 0x22e   :  { %v14265_v0 = vpop.permute.xlu0 %11398  ;;  %v10060_v20 = vpack.c.bf16 %v1322_v29, %v14007_v59  ;;  %v10062_v38 = vpack.c.bf16 %v1323_v43, %v14004_v33  ;;  %v1371_v59 = vsel %vm1363_vm13, %v11395_v44, %v19957_v2  ;;  %v14295_v13 = vpop.permute.xlu1 %11413  ;;  %v11375_v30 = vunpack.i.l.bf16 %v14228_v27 }
 0x22f   :  { %v19958_v32 = vunpack.i.h.bf16 %v14265_v0  ;;  %v11400_v60 = vunpack.i.l.bf16 %v14265_v0 }
 0x230   :  { %10061 = vmatprep.subr.bf16.mxu1 %v10060_v20 }
 0x231   :  { %v1420_v33 = vsel %vm238_vm2, %v19967_v10, %v11400_v60  ;;  %10063 = vmatpush1.bf16.msra.mxu1 %v10062_v38  ;;  %v1419_v45 = vsel %vm238_vm2, %v11400_v60, %v19958_v32  ;;  %v11350_v32 = vunpack.i.l.bf16 %v14226_v41 }
 0x232   :  { %v14290_v43 = vpop.permute.xlu0 %11403  ;;  %v10064_v29 = vpack.c.bf16 %v1419_v45, %v1371_v59  ;;  %v10066_v20 = vpack.c.bf16 %v1420_v33, %v1372_v18  ;;  %v14312_v45 = vld [vmem:[%s19933_s1 + $0x8] sm:$0xff] }
 0x233   :  { %v19959_v26 = vunpack.i.h.bf16 %v14290_v43  ;;  %v11405_v38 = vunpack.i.l.bf16 %v14290_v43 }
 0x234   :  { %10065 = vmatprep.subr.bf16.mxu1 %v10064_v29  ;;  %v14314_v29 = vpop.permute.xlu1 %11423 }
 0x235   :  { %v1468_v44 = vsel %vm287_vm3, %v19966_v14, %v11405_v38  ;;  %10067 = vmatpush1.bf16.msra.mxu1 %v10066_v20  ;;  %v1467_v60 = vsel %vm287_vm3, %v11405_v38, %v19959_v26 }
 0x236   :  { %v14305_v18 = vpop.permute.xlu0 %11408  ;;  %v10068_v33 = vpack.c.bf16 %v19964_v51, %v1467_v60  ;;  %v10070_v59 = vpack.c.bf16 %v19964_v51, %v1468_v44  ;;  %v11370_v51 = vunpack.i.l.bf16 %v14246_v9 }
 0x238   :  { %10069 = vmatprep.subr.bf16.mxu1 %v10068_v33 }
 0x239   :  { %10071 = vmatpush1.bf16.msra.mxu1 %v10070_v59  ;;  %v11360_v59 = vunpack.i.l.bf16 %v14231_v23 }
 0x23a   :  { %v14316_v20 = vpop.permute.xlu0 %11418 }
 0x23b   :  { %v1265_v40 = vsel %vm1254_vm12, %v11360_v59, %v11361_v46 }
 0x23c   :  { %9851 = vmatmul.mubr.msk.f32.vlgmr.msra.gmra.mrb[6].mxu1 %vm629_vm8, %v14312_v45 }
 0x23d   :  { %1886 = vmatprep.mubr.f32.mxu1 %v19961_v8 }
 0x23e   :  { %v14321_v38 = vpop.permute.xlu0 %11428  ;;  %v14323_v60 = vpop.permute.xlu1 %11438 }
 0x23f   :  { %v11431_v14 = vunpack.i.h.bf16 %v14321_v38 }
 0x242   :  { %v14325_v44 = vpop.permute.xlu0 %11433  ;;  %v14327_v33 = vpop.permute.xlu1 %11448 }
 0x243   :  { %v19975_v2 = vunpack.i.l.bf16 %v14327_v33  ;;  %v11436_v10 = vunpack.i.h.bf16 %v14325_v44  ;;  %v20220_v7 = vunpack.i.l.bf16 %v14325_v44 }
 0x245   :  { %v1168_v23 = vsel %vm1156_vm10, %v19975_v2, %v11340_v1  ;;  %v20219_v1 = vunpack.i.h.bf16 %v14226_v41  ;;  %v19988_v2 = vunpack.i.l.bf16 %v14305_v18  ;;  %v1162_v48 = vsel %vm1156_vm10, %v20220_v7, %v11436_v10 }
 0x246   :  { %v14332_v26 = vpop.permute.xlu0 %11443  ;;  %v14334_v24 = vpop.permute.xlu1 %11458  ;;  %v20221_v41 = vunpack.i.h.bf16 %v14246_v9  ;;  %v20224_v7 = vunpack.i.l.bf16 %v14321_v38 }
 0x247   :  { %v19976_v8 = vunpack.i.l.bf16 %v14332_v26  ;;  %v1216_v17 = vsel %vm1205_vm11, %v11350_v32, %v20219_v1 }
 0x248   :  { %v10036_v62 = vpack.c.bf16 %v1265_v40, %v1216_v17  ;;  %v20223_v17 = vunpack.i.l.bf16 %v14323_v60 }
 0x249   :  { %v1119_v46 = vsel %vm1107_vm9, %v19976_v8, %v11330_v15 }
 0x24a   :  { %v14361_v58 = vpop.permute.xlu0 %11453  ;;  %v14363_v11 = vpop.permute.xlu1 %11463  ;;  %v10034_v28 = vpack.c.bf16 %v1168_v23, %v1119_v46  ;;  %v1324_v23 = vsel %vm140_vm0, %v11370_v51, %v20221_v41  ;;  %v20222_v46 = vunpack.i.l.bf16 %v14334_v24 }
 0x24b   :  { %v19981_v15 = vunpack.i.l.bf16 %v14361_v58  ;;  %v19982_v8 = vunpack.i.l.bf16 %v14363_v11 }
 0x24c   :  { %10035 = vmatpush1.bf16.msra.mxu0 %v10034_v28  ;;  %v1266_v1 = vsel %vm1254_vm12, %v20222_v46, %v11360_v59  ;;  %v1112_v28 = vsel %vm1107_vm9, %v11431_v14, %v20223_v17  ;;  %v1113_v59 = vsel %vm1107_vm9, %v20224_v7, %v11431_v14  ;;  %v10040_v14 = vpack.c.bf16 %v1324_v23, %v14029_v56 }
 0x24d   :  { %v1217_v40 = vsel %vm1205_vm11, %v19981_v15, %v11350_v32  ;;  %10037 = vmatprep.subr.bf16.mxu0 %v10036_v62  ;;  %v1161_v9 = vsel %vm1156_vm10, %v11436_v10, %v19982_v8  ;;  %v20225_v15 = vunpack.i.h.bf16 %v14228_v27  ;;  %v1325_v10 = vsel %vm140_vm0, %v19988_v2, %v11370_v51 }
 0x24e   :  { %v14401_v41 = vpop.permute.xlu0 %11468  ;;  %v14403_v46 = vpop.permute.xlu1 %11473  ;;  %v10038_v62 = vpack.c.bf16 %v1266_v1, %v1217_v40  ;;  %v10092_v32 = vpack.c.bf16 %v1161_v9, %v1112_v28  ;;  %v19986_v8 = vunpack.i.l.bf16 %v14316_v20  ;;  %v10094_v7 = vpack.c.bf16 %v1162_v48, %v1113_v59 }
 0x24f   :  { %v1373_v17 = vsel %vm1363_vm13, %v11375_v30, %v20225_v15  ;;  %v19987_v1 = vunpack.i.l.bf16 %v14295_v13  ;;  %v19985_v40 = vunpack.i.l.bf16 %v14314_v29  ;;  %v20226_v27 = vunpack.i.h.bf16 %v14234_v61 }
 0x250   :  { %10039 = vmatpush1.bf16.msra.mxu0 %v10038_v62  ;;  %10093 = vmatprep.subr.bf16.mxu1 %v10092_v32  ;;  %v11471_v51 = vunpack.i.h.bf16 %v14401_v41  ;;  %v11470_v28 = vunpack.i.l.bf16 %v14401_v41  ;;  %v11475_v56 = vunpack.i.l.bf16 %v14403_v46  ;;  %v10042_v9 = vpack.c.bf16 %v1325_v10, %v14026_v53 }
 0x251   :  { %v1421_v15 = vsel %vm238_vm2, %v11380_v3, %v20226_v27  ;;  %10041 = vmatprep.subr.bf16.mxu0 %v10040_v14  ;;  %10095 = vmatpush1.bf16.msra.mxu1 %v10094_v7  ;;  %v1422_v61 = vsel %vm238_vm2, %v19986_v8, %v11380_v3  ;;  %v1374_v41 = vsel %vm1363_vm13, %v19987_v1, %v11375_v30  ;;  %v11446_v53 = vunpack.i.h.bf16 %v14332_v26 }
 0x252   :  { %v11479_v48 = vpop.permute.xlu0 %11478  ;;  %v14425_v23 = vpop.permute.xlu1 %1244  ;;  %v10044_v32 = vpack.c.bf16 %v1421_v15, %v1373_v17  ;;  %v1470_v14 = vsel %vm287_vm3, %v19985_v40, %v11385_v50  ;;  %v20227_v10 = vunpack.i.h.bf16 %v14244_v34  ;;  %v1211_v17 = vsel %vm1205_vm11, %v11470_v28, %v11471_v51 }
 0x253   :  { %v11481_v59 = vunpack.i.h.bf16 %v11479_v48  ;;  %v11480_v62 = vunpack.i.l.bf16 %v11479_v48  ;;  %v1210_v27 = vsel %vm1205_vm11, %v11471_v51, %v11475_v56  ;;  %v11451_v34 = vunpack.i.h.bf16 %v14327_v33 }
 0x254   :  { %10043 = vmatpush1.bf16.msra.mxu0 %v10042_v9  ;;  %v1469_v3 = vsel %vm287_vm3, %v11385_v50, %v20227_v10  ;;  %v10046_v48 = vpack.c.bf16 %v1422_v61, %v1374_v41  ;;  %v20228_v1 = vmov 1.0  }
 0x255   :  { %v1260_v7 = vsel %vm1254_vm12, %v11480_v62, %v11481_v59  ;;  %v1259_v30 = vsel %vm1254_vm12, %v11481_v59, %v14425_v23  ;;  %10045 = vmatprep.subr.bf16.mxu0 %v10044_v32  ;;  %v10048_v2 = vpack.c.bf16 %v20228_v1, %v1469_v3  ;;  %v20229_v59 = vunpack.i.l.bf16 %v14321_v38 }
 0x256   :  { %v11484_v15 = vpop.permute.xlu0 %11483  ;;  %v14457_v50 = vpop.permute.xlu1 %1307  ;;  %v10096_v9 = vpack.c.bf16 %v1259_v30, %v1210_v27  ;;  %v10098_v10 = vpack.c.bf16 %v1260_v7, %v1211_v17  ;;  %v10050_v41 = vpack.c.bf16 %v20228_v1, %v1470_v14  ;;  %v11461_v3 = vunpack.i.h.bf16 %v14334_v24 }
 0x257   :  { %v11486_v40 = vunpack.i.h.bf16 %v11484_v15  ;;  %v11485_v8 = vunpack.i.l.bf16 %v11484_v15  ;;  %v1114_v32 = vsel %vm1107_vm9, %v11446_v53, %v20229_v59  ;;  %v20230_v30 = vunpack.i.l.bf16 %v14325_v44 }
 0x258   :  { %10047 = vmatpush1.bf16.msra.mxu0 %v10046_v48  ;;  %10097 = vmatprep.subr.bf16.mxu1 %v10096_v9  ;;  %v11456_v14 = vunpack.i.h.bf16 %v14361_v58  ;;  %v20232_v44 = vunpack.i.h.bf16 %v14147_v47 }
 0x259   :  { %v1319_v51 = vsel %vm140_vm0, %v11485_v8, %v11486_v40  ;;  %v1318_v61 = vsel %vm140_vm0, %v11486_v40, %v14457_v50  ;;  %10049 = vmatprep.subr.bf16.mxu0 %v10048_v2  ;;  %10099 = vmatpush1.bf16.msra.mxu1 %v10098_v10  ;;  %v1163_v27 = vsel %vm1156_vm10, %v11451_v34, %v20230_v30  ;;  %v20231_v40 = vunpack.i.h.bf16 %v14136_v31 }
 0x25a   :  { %v11489_v17 = vpop.permute.xlu0 %11488  ;;  %v14471_v7 = vpop.permute.xlu1 %1355  ;;  %v10100_v38 = vpack.c.bf16 %v1318_v61, %v14091_v52  ;;  %v10102_v15 = vpack.c.bf16 %v1319_v51, %v14088_v12  ;;  %v10072_v48 = vpack.c.bf16 %v1163_v27, %v1114_v32  ;;  %v1261_v52 = vsel %vm1254_vm12, %v11461_v3, %v11480_v62 }
 0x25b   :  { %v1115_v2 = vsel %vm1107_vm9, %v20231_v40, %v11446_v53  ;;  %v1164_v9 = vsel %vm1156_vm10, %v20232_v44, %v11451_v34  ;;  %v11491_v10 = vunpack.i.h.bf16 %v11489_v17  ;;  %v11490_v12 = vunpack.i.l.bf16 %v11489_v17 }
 0x25c   :  { %10051 = vmatpush1.bf16.msra.mxu0 %v10050_v41  ;;  %10101 = vmatprep.subr.bf16.mxu1 %v10100_v38  ;;  %v11411_v31 = vunpack.i.h.bf16 %v14305_v18  ;;  %v10074_v32 = vpack.c.bf16 %v1164_v9, %v1115_v2  ;;  %v1212_v51 = vsel %vm1205_vm11, %v11456_v14, %v11470_v28  ;;  %v20233_v62 = vunpack.i.h.bf16 %v14186_v57 }
 0x25d   :  { %10073 = vmatprep.subr.bf16.mxu0 %v10072_v48  ;;  %10103 = vmatpush1.bf16.msra.mxu1 %v10102_v15  ;;  %v10076_v41 = vpack.c.bf16 %v1261_v52, %v1212_v51  ;;  %v11426_v17 = vunpack.i.h.bf16 %v14314_v29  ;;  %v20234_v38 = vunpack.i.h.bf16 %v14190_v49  ;;  %v20235_v28 = vmov 0.0  }
 0x25e   :  { %v11494_v53 = vpop.permute.xlu0 %11493  ;;  %v14491_v59 = vpop.permute.xlu1 %1404  ;;  %v1213_v47 = vsel %vm1205_vm11, %v20233_v62, %v11456_v14  ;;  %v1320_v57 = vsel %vm140_vm0, %v11411_v31, %v11485_v8  ;;  %v1368_v27 = vsel %vm1363_vm13, %v11490_v12, %v11491_v10  ;;  %v1367_v15 = vsel %vm1363_vm13, %v11491_v10, %v14471_v7 }
 0x25f   :  { %v11496_v61 = vunpack.i.h.bf16 %v11494_v53  ;;  %v11495_v34 = vunpack.i.l.bf16 %v11494_v53  ;;  %9850 = vmatmul.mubr.msk.f32.vlgmr.msra.gmra.mrb[6].mxu0 %vm629_vm8, %v14312_v45  ;;  %v1262_v30 = vsel %vm1254_vm12, %v20234_v38, %v11461_v3  ;;  %v11421_v3 = vunpack.i.h.bf16 %v14316_v20 }
 0x260   :  { %10075 = vmatpush1.bf16.msra.mxu0 %v10074_v32  ;;  %1815 = vmatprep.mubr.f32.mxu0 %v20235_v28  ;;  %v10078_v14 = vpack.c.bf16 %v1262_v30, %v1213_v47  ;;  %v20236_v44 = vunpack.i.h.bf16 %v14250_v4  ;;  %v10080_v32 = vpack.c.bf16 %v1320_v57, %v14057_v35  ;;  %v11416_v51 = vunpack.i.h.bf16 %v14295_v13 }
 0x261   :  { %v1416_v40 = vsel %vm238_vm2, %v11495_v34, %v11496_v61  ;;  %v1415_v49 = vsel %vm238_vm2, %v11496_v61, %v14491_v59  ;;  %10077 = vmatprep.subr.bf16.mxu0 %v10076_v41  ;;  %v1417_v62 = vsel %vm238_vm2, %v11421_v3, %v11495_v34  ;;  %v20237_v30 = vunpack.i.h.bf16 %v14290_v43 }
 0x262   :  { %v11499_v8 = vpop.permute.xlu0 %11498  ;;  %v14520_v2 = vpop.permute.xlu1 %1452  ;;  %v10104_v48 = vpack.c.bf16 %v1415_v49, %v1367_v15  ;;  %v10106_v52 = vpack.c.bf16 %v1416_v40, %v1368_v27  ;;  %v1321_v9 = vsel %vm140_vm0, %v20236_v44, %v11411_v31  ;;  %v1369_v38 = vsel %vm1363_vm13, %v11416_v51, %v11490_v12 }
 0x263   :  { %v11501_v10 = vunpack.i.h.bf16 %v11499_v8  ;;  %v11500_v53 = vunpack.i.l.bf16 %v11499_v8  ;;  %v10082_v35 = vpack.c.bf16 %v1321_v9, %v14054_v37  ;;  %v1466_v57 = vsel %vm287_vm3, %v20237_v30, %v11426_v17 }
 0x264   :  { %10079 = vmatpush1.bf16.msra.mxu0 %v10078_v14  ;;  %10105 = vmatprep.subr.bf16.mxu1 %v10104_v48  ;;  %v20238_v27 = vunpack.i.h.bf16 %v14265_v0  ;;  %v11441_v40 = vunpack.i.h.bf16 %v14323_v60  ;;  %v10084_v37 = vpack.c.bf16 %v1417_v62, %v1369_v38  ;;  %v11466_v49 = vunpack.i.h.bf16 %v14363_v11 }
 0x265   :  { %v1464_v47 = vsel %vm287_vm3, %v11500_v53, %v11501_v10  ;;  %v1463_v4 = vsel %vm287_vm3, %v11501_v10, %v14520_v2  ;;  %10081 = vmatprep.subr.bf16.mxu0 %v10080_v32  ;;  %10107 = vmatpush1.bf16.msra.mxu1 %v10106_v52  ;;  %v1465_v43 = vsel %vm287_vm3, %v11426_v17, %v11500_v53  ;;  %v20239_v12 = vunpack.i.h.bf16 %v14248_v16 }
 0x266   :  { %v1251_v31 = vpop.permute.xlu0 %1250  ;;  %v11509_v61 = vpop.permute.xlu1 %11508  ;;  %v10108_v41 = vpack.c.bf16 %v20228_v1, %v1463_v4  ;;  %v10110_v34 = vpack.c.bf16 %v20228_v1, %v1464_v47  ;;  %v1418_v15 = vsel %vm238_vm2, %v20238_v27, %v11421_v3  ;;  %v10088_v10 = vpack.c.bf16 %v20228_v1, %v1465_v43 }
 0x267   :  { %v11511_v8 = vunpack.i.h.bf16 %v11509_v61  ;;  %v11510_v14 = vunpack.i.l.bf16 %v11509_v61  ;;  %v1370_v0 = vsel %vm1363_vm13, %v20239_v12, %v11416_v51  ;;  %v10090_v32 = vpack.c.bf16 %v20228_v1, %v1466_v57 }
 0x268   :  { %10083 = vmatpush1.bf16.msra.mxu0 %v10082_v35  ;;  %10109 = vmatprep.subr.bf16.mxu1 %v10108_v41  ;;  %v10086_v52 = vpack.c.bf16 %v1418_v15, %v1370_v0  ;;  %v20240_v62 = vunpack.i.l.bf16 %v14323_v60  ;;  %v20241_v16 = vunpack.i.l.bf16 %v14363_v11  ;;  %v20242_v61 = vunpack.i.l.bf16 %v14332_v26 }
 0x269   :  { %10085 = vmatprep.subr.bf16.mxu0 %v10084_v37  ;;  %10111 = vmatpush1.bf16.msra.mxu1 %v10110_v34  ;;  %v1158_v51 = vsel %vm1156_vm10, %v11510_v14, %v11511_v8  ;;  %v20243_v35 = vunpack.i.l.bf16 %v14327_v33  ;;  %v11476_v38 = vunpack.i.h.bf16 %v14403_v46  ;;  %v20244_v26 = vunpack.i.l.bf16 %v14334_v24 }
 0x26a   :  { %v11519_v3 = vpop.permute.xlu1 %11518  ;;  %v11504_v48 = vpop.permute.xlu0 %11503  ;;  %v1111_v17 = vsel %vm1107_vm9, %v20240_v62, %v11441_v40  ;;  %v1160_v53 = vsel %vm1156_vm10, %v20241_v16, %v11466_v49  ;;  %v20245_v24 = vunpack.i.l.bf16 %v14361_v58  ;;  %v20246_v16 = vunpack.i.l.bf16 %v14305_v18 }
 0x26b   :  { %v11506_v44 = vunpack.i.h.bf16 %v11504_v48  ;;  %v11505_v9 = vunpack.i.l.bf16 %v11504_v48  ;;  %v11521_v47 = vunpack.i.h.bf16 %v11519_v3  ;;  %v11520_v4 = vunpack.i.l.bf16 %v11519_v3 }
 0x26c   :  { %10087 = vmatpush1.bf16.msra.mxu0 %v10086_v52  ;;  %9853 = vmatmul.mubr.msk.f32.vlgmr.msra.gmra.mrb[8].mxu1 %vm629_vm8, %v14312_v45  ;;  %v1157_v41 = vsel %vm1156_vm10, %v11511_v8, %v20243_v35  ;;  %v1255_v37 = vsel %vm1254_vm12, %v1251_v31, %v20244_v26  ;;  %v1159_v8 = vsel %vm1156_vm10, %v11466_v49, %v11510_v14 }
 0x26d   :  { %v1109_v60 = vsel %vm1107_vm9, %v11505_v9, %v11506_v44  ;;  %10089 = vmatprep.subr.bf16.mxu0 %v10088_v10  ;;  %v1108_v11 = vsel %vm1107_vm9, %v11506_v44, %v20242_v61  ;;  %v1110_v27 = vsel %vm1107_vm9, %v11441_v40, %v11505_v9  ;;  %2028 = vmatprep.mubr.f32.mxu1 %v20235_v28 }
 0x26e   :  { %v11524_v34 = vpop.permute.xlu1 %11523  ;;  %v11514_v30 = vpop.permute.xlu0 %11513  ;;  %v10132_v57 = vpack.c.bf16 %v1157_v41, %v1108_v11  ;;  %v10134_v15 = vpack.c.bf16 %v1158_v51, %v1109_v60  ;;  %v1256_v12 = vsel %vm1254_vm12, %v11521_v47, %v1251_v31  ;;  %v10112_v40 = vpack.c.bf16 %v1159_v8, %v1110_v27 }
 0x26f   :  { %v11516_v33 = vunpack.i.h.bf16 %v11514_v30  ;;  %v11515_v43 = vunpack.i.l.bf16 %v11514_v30  ;;  %v11526_v0 = vunpack.i.h.bf16 %v11524_v34  ;;  %v11525_v3 = vunpack.i.l.bf16 %v11524_v34 }
 0x270   :  { %10091 = vmatpush1.bf16.msra.mxu0 %v10090_v32  ;;  %10133 = vmatprep.subr.bf16.mxu1 %v10132_v57  ;;  %v1257_v31 = vsel %vm1254_vm12, %v11520_v4, %v11521_v47  ;;  %v10114_v9 = vpack.c.bf16 %v1160_v53, %v1111_v17  ;;  %v1258_v58 = vsel %vm1254_vm12, %v14425_v23, %v11520_v4 }
 0x271   :  { %v1207_v48 = vsel %vm1205_vm11, %v11515_v43, %v11516_v33  ;;  %10135 = vmatpush1.bf16.msra.mxu1 %v10134_v15  ;;  %v1206_v52 = vsel %vm1205_vm11, %v11516_v33, %v20245_v24  ;;  %v1208_v49 = vsel %vm1205_vm11, %v11476_v38, %v11515_v43  ;;  %10113 = vmatprep.subr.bf16.mxu0 %v10112_v40  ;;  %v20248_v43 = vunpack.i.l.bf16 %v14316_v20 }
 0x272   :  { %v11529_v14 = vpop.permute.xlu1 %11528  ;;  %v1314_v44 = vpop.permute.xlu0 %1313  ;;  %v10136_v10 = vpack.c.bf16 %v1255_v37, %v1206_v52  ;;  %v10116_v32 = vpack.c.bf16 %v1257_v31, %v1208_v49  ;;  %v10138_v62 = vpack.c.bf16 %v1256_v12, %v1207_v48  ;;  %v1316_v53 = vsel %vm140_vm0, %v11525_v3, %v11526_v0 }
 0x273   :  { %v1326_v51 = vsel %vm140_vm0, %v1314_v44, %v20246_v16  ;;  %9852 = vmatmul.mubr.msk.f32.vlgmr.msra.gmra.mrb[8].mxu0 %vm629_vm8, %v14312_v45  ;;  %v1315_v47 = vsel %vm140_vm0, %v11526_v0, %v1314_v44  ;;  %v1209_v18 = vsel %vm1205_vm11, %v11475_v56, %v11476_v38  ;;  %v11531_v23 = vunpack.i.h.bf16 %v11529_v14 }
 0x274   :  { %10115 = vmatpush1.bf16.msra.mxu0 %v10114_v9  ;;  %10137 = vmatprep.subr.bf16.mxu1 %v10136_v10  ;;  %v10140_v17 = vpack.c.bf16 %v1326_v51, %v14098_v36  ;;  %v11530_v4 = vunpack.i.l.bf16 %v11529_v14  ;;  %v1317_v60 = vsel %vm140_vm0, %v14457_v50, %v11525_v3  ;;  %v10118_v36 = vpack.c.bf16 %v1258_v58, %v1209_v18 }
 0x275   :  { %10117 = vmatprep.subr.bf16.mxu0 %v10116_v32  ;;  %10139 = vmatpush1.bf16.msra.mxu1 %v10138_v62  ;;  %v10142_v35 = vpack.c.bf16 %v1315_v47, %v14145_v39  ;;  %v10120_v56 = vpack.c.bf16 %v1316_v53, %v14151_v21  ;;  %v10122_v38 = vpack.c.bf16 %v1317_v60, %v14094_v22  ;;  %v20247_v21 = vunpack.i.l.bf16 %v14295_v13 }
 0x276   :  { %v11534_v61 = vpop.permute.xlu1 %11533  ;;  %v1362_v11 = vpop.permute.xlu0 %1361  ;;  %10141 = vmatprep.subr.bf16.mxu1 %v10140_v17  ;;  %1957 = vmatprep.mubr.f32.mxu0 %v20235_v28  ;;  %v1365_v50 = vsel %vm1363_vm13, %v11530_v4, %v11531_v23  ;;  %v1366_v13 = vsel %vm1363_vm13, %v14471_v7, %v11530_v4  ;;  %v20249_v52 = vunpack.i.l.bf16 %v14314_v29 }
 0x277   :  { %v11536_v46 = vunpack.i.h.bf16 %v11534_v61  ;;  %v11535_v41 = vunpack.i.l.bf16 %v11534_v61  ;;  %v1364_v39 = vsel %vm1363_vm13, %v11531_v23, %v1362_v11  ;;  %v1375_v57 = vsel %vm1363_vm13, %v1362_v11, %v20247_v21 }
 0x278   :  { %10119 = vmatpush1.bf16.msra.mxu0 %v10118_v36 }
 0x279   :  { %10121 = vmatprep.subr.bf16.mxu0 %v10120_v56  ;;  %10143 = vmatpush1.bf16.msra.mxu1 %v10142_v35  ;;  %v1413_v34 = vsel %vm238_vm2, %v11535_v41, %v11536_v46  ;;  %v1414_v30 = vsel %vm238_vm2, %v14491_v59, %v11535_v41 }
 0x27a   :  { %v11539_v27 = vpop.permute.xlu1 %11538  ;;  %v1411_v22 = vpop.permute.xlu0 %1410  ;;  %v10124_v15 = vpack.c.bf16 %v1413_v34, %v1365_v50  ;;  %v10126_v40 = vpack.c.bf16 %v1414_v30, %v1366_v13 }
 0x27b   :  { %v11541_v26 = vunpack.i.h.bf16 %v11539_v27  ;;  %v11540_v37 = vunpack.i.l.bf16 %v11539_v27  ;;  %v1412_v33 = vsel %vm238_vm2, %v11536_v46, %v1411_v22  ;;  %v1423_v59 = vsel %vm238_vm2, %v1411_v22, %v20248_v43  ;;  %v20250_v27 = vld [vmem:[#allocation4_spill] sm:$0xff] }
 0x27c   :  { %v10146_v8 = vpack.c.bf16 %v1412_v33, %v1364_v39  ;;  %10123 = vmatpush1.bf16.msra.mxu0 %v10122_v38  ;;  %v10144_v12 = vpack.c.bf16 %v1423_v59, %v1375_v57 }
 0x27d   :  { %10125 = vmatprep.subr.bf16.mxu0 %v10124_v15  ;;  %v1461_v0 = vsel %vm287_vm3, %v11540_v37, %v11541_v26  ;;  %v1462_v20 = vsel %vm287_vm3, %v14520_v2, %v11540_v37  ;;  %v20251_v37 = vld [vmem:[#allocation5_spill] sm:$0xff] }
 0x27e   :  { %v1459_v3 = vpop.permute.xlu0 %1458  ;;  %10145 = vmatprep.subr.bf16.mxu1 %v10144_v12  ;;  %v10128_v48 = vpack.c.bf16 %v20228_v1, %v1461_v0  ;;  %v10130_v14 = vpack.c.bf16 %v20228_v1, %v1462_v20  ;;  %v20254_v20 = vld [vmem:[#allocation9_spill] sm:$0xff] }
 0x27f   :  { %v1460_v24 = vsel %vm287_vm3, %v11541_v26, %v1459_v3  ;;  %v1471_v7 = vsel %vm287_vm3, %v1459_v3, %v20249_v52  ;;  %10147 = vmatpush1.bf16.msra.mxu1 %v10146_v8  ;;  %v20252_v8 = vld [vmem:[#allocation7_spill] sm:$0xff] }
 0x280   :  { %v10150_v49 = vpack.c.bf16 %v20228_v1, %v1460_v24  ;;  %10127 = vmatpush1.bf16.msra.mxu0 %v10126_v40  ;;  %v10148_v31 = vpack.c.bf16 %v20228_v1, %v1471_v7  ;;  %v20253_v40 = vld [vmem:[#allocation10_spill] sm:$0xff] }
 0x281   :  { %10129 = vmatprep.subr.bf16.mxu0 %v10128_v48 }
 0x282   :  { %10149 = vmatprep.subr.bf16.mxu1 %v10148_v31 }
 0x283   :  { %10151 = vmatpush1.bf16.msra.mxu1 %v10150_v49 }
 0x284   :  { %10131 = vmatpush1.bf16.msra.mxu0 %v10130_v14 }
 0x286   :  { %9855 = vmatmul.mubr.msk.f32.vlgmr.msra.gmra.mrb[10].mxu1 %vm629_vm8, %v14312_v45 }
 0x287   :  { %9854 = vmatmul.mubr.msk.f32.vlgmr.msra.gmra.mrb[10].mxu0 %vm629_vm8, %v14312_v45  ;;  %2715 = vmatprep.mubr.f32.mxu1 %v20235_v28 }
 0x288   :  { %2644 = vmatprep.mubr.f32.mxu0 %v20235_v28 }
 0x30f   :  { %v1746_v29 = vpop.f32.mrb[6].mxu1 }
 0x310   :  { %v2037_v2 = vmax.f32 %v1746_v29, 0.0  ;;  %v1748_v44 = vpop.f32.mrb[7].mxu1 }
 0x311   :  { %v2038_v9 = vmax.f32 %v1748_v44, 0.0 }
 0x312   :  { %v14671_v10 = vmul.f32 %v2037_v2, %v13996_v6 }
 0x313   :  { %v14674_v32 = vmul.f32 %v2038_v9, %v14001_v42 }
 0x315   :  { %v11542_v62 = vpack.i.bf16 %v14674_v32, %v14671_v10 }
 0x317   :  { %11543 = vrot.lane.b32.xlu1 %v11542_v62, %s13212_s20  ;;  %11548 = vrot.lane.b32.xlu0 %v11542_v62, %s13213_s23 }
 0x31b   :  { %11553 = vrot.lane.b32.xlu1 %v11542_v62, %s13214_s25  ;;  %11558 = vrot.lane.b32.xlu0 %v11542_v62, %s13215_s26 }
 0x332   :  { %v1675_v45 = vpop.f32.mrb[6].mxu0 }
 0x333   :  { %v1677_v58 = vpop.f32.mrb[7].mxu0  ;;  %v2035_v35 = vmax.f32 %v1675_v45, 0.0 }
 0x334   :  { %v2036_v51 = vmax.f32 %v1677_v58, 0.0 }
 0x335   :  { %v14703_v46 = vmul.f32 %v2035_v35, %v14018_v54 }
 0x336   :  { %v14689_v4 = vmul.f32 %v2036_v51, %v14023_v5 }
 0x338   :  { %v11602_v56 = vpack.i.bf16 %v14703_v46, %v14689_v4 }
 0x33f   :  { %v1888_v16 = vpop.f32.mrb[8].mxu1 }
 0x340   :  { %v2041_v47 = vmax.f32 %v1888_v16, 0.0  ;;  %v1890_v17 = vpop.f32.mrb[9].mxu1 }
 0x341   :  { %v2042_v53 = vmax.f32 %v1890_v17, 0.0 }
 0x342   :  { %v14683_v18 = vmul.f32 %v2041_v47, %v14072_v55 }
 0x343   :  { %v14686_v23 = vmul.f32 %v2042_v53, %v14078_v25 }
 0x344   :  { %v11582_v36 = vpack.i.bf16 %v14683_v18, %v14689_v4 }
 0x345   :  { %v11567_v60 = vpack.i.bf16 %v14686_v23, %v14671_v10 }
 0x346   :  { %v1817_v61 = vpop.f32.mrb[8].mxu0 }
 0x347   :  { %v1819_v11 = vpop.f32.mrb[9].mxu0  ;;  %11568 = vrot.lane.b32.xlu1 %v11567_v60, %s13216_s27  ;;  %11563 = vrot.lane.b32.xlu0 %v11567_v60, %s13203_s21  ;;  %v2039_v21 = vmax.f32 %v1817_v61, 0.0 }
 0x348   :  { %v2040_v15 = vmax.f32 %v1819_v11, 0.0 }
 0x349   :  { %v14717_v22 = vmul.f32 %v2039_v21, %v20250_v27 }
 0x34a   :  { %v14726_v33 = vmul.f32 %v2040_v15, %v20251_v37 }
 0x34b   :  { %11583 = vrot.lane.b32.xlu1 %v11582_v36, %s13212_s20  ;;  %11573 = vrot.lane.b32.xlu0 %v11567_v60, %s13204_s22  ;;  %v11637_v26 = vpack.i.bf16 %v14717_v22, %v14674_v32 }
 0x34c   :  { %v11662_v43 = vpack.i.bf16 %v14726_v33, %v14686_v23 }
 0x34f   :  { %11593 = vrot.lane.b32.xlu1 %v11582_v36, %s13214_s25  ;;  %11578 = vrot.lane.b32.xlu0 %v11567_v60, %s13206_s24 }
 0x353   :  { %11588 = vrot.lane.b32.xlu0 %v11582_v36, %s13213_s23 }
 0x357   :  { %11598 = vrot.lane.b32.xlu0 %v11582_v36, %s13215_s26 }
 0x359   :  { %v2030_v41 = vpop.f32.mrb[10].mxu1 }
 0x35a   :  { %v1959_v38 = vpop.f32.mrb[10].mxu0  ;;  %v2032_v50 = vpop.f32.mrb[11].mxu1  ;;  %v2045_v3 = vmax.f32 %v2030_v41, 0.0 }
 0x35b   :  { %v2046_v34 = vmax.f32 %v2032_v50, 0.0  ;;  %11603 = vrot.lane.b32.xlu0 %v11602_v56, %s13203_s21  ;;  %v1961_v30 = vpop.f32.mrb[11].mxu0  ;;  %v2043_v59 = vmax.f32 %v1959_v38, 0.0 }
 0x35c   :  { %v2044_v13 = vmax.f32 %v1961_v30, 0.0  ;;  %v14749_v24 = vmul.f32 %v2045_v3, %v20254_v20 }
 0x35d   :  { %v14710_v39 = vmul.f32 %v2046_v34, %v14085_v63  ;;  %v14737_v12 = vmul.f32 %v2043_v59, %v20252_v8 }
 0x35e   :  { %v14746_v48 = vmul.f32 %v2044_v13, %v20253_v40 }
 0x35f   :  { %v11612_v57 = vpack.i.bf16 %v14710_v39, %v14703_v46  ;;  %v11687_v0 = vpack.i.bf16 %v14683_v18, %v14737_v12  ;;  %v11692_v7 = vpack.i.bf16 %v14749_v24, %v14710_v39 }
 0x360   :  { %v11707_v52 = vpack.i.bf16 %v14746_v48, %v14749_v24 }
 0x361   :  { %11613 = vrot.lane.b32.xlu0 %v11612_v57, %s13213_s23  ;;  %11608 = vrot.lane.b32.xlu1 %v11612_v57, %s13212_s20 }
 0x365   :  { %11618 = vrot.lane.b32.xlu0 %v11612_v57, %s13214_s25  ;;  %11623 = vrot.lane.b32.xlu1 %v11612_v57, %s13215_s26 }
 0x369   :  { %11638 = vrot.lane.b32.xlu0 %v11637_v26, %s13204_s22  ;;  %11628 = vrot.lane.b32.xlu1 %v11637_v26, %s13203_s21 }
 0x36d   :  { %11643 = vrot.lane.b32.xlu0 %v11602_v56, %s13216_s27  ;;  %11633 = vrot.lane.b32.xlu1 %v11637_v26, %s13216_s27 }
 0x371   :  { %11663 = vrot.lane.b32.xlu0 %v11662_v43, %s13213_s23  ;;  %11648 = vrot.lane.b32.xlu1 %v11602_v56, %s13204_s22 }
 0x375   :  { %11673 = vrot.lane.b32.xlu0 %v11662_v43, %s13215_s26  ;;  %11653 = vrot.lane.b32.xlu1 %v11637_v26, %s13206_s24 }
 0x379   :  { %11678 = vrot.lane.b32.xlu0 %v11602_v56, %s13206_s24  ;;  %11658 = vrot.lane.b32.xlu1 %v11662_v43, %s13212_s20 }
 0x37d   :  { %11688 = vrot.lane.b32.xlu0 %v11687_v0, %s13216_s27  ;;  %11668 = vrot.lane.b32.xlu1 %v11662_v43, %s13214_s25 }
 0x381   :  { %2115 = vrot.lane.b32.xlu0 %v14717_v22, %s13213_s23  ;;  %2067 = vrot.lane.b32.xlu1 %v14717_v22, %s13212_s20 }
 0x385   :  { %11708 = vrot.lane.b32.xlu0 %v11707_v52, %s13212_s20  ;;  %11683 = vrot.lane.b32.xlu1 %v11687_v0, %s13203_s21 }
 0x389   :  { %11718 = vrot.lane.b32.xlu0 %v11707_v52, %s13214_s25  ;;  %11693 = vrot.lane.b32.xlu1 %v11692_v7, %s13203_s21  ;;  %v14763_v49 = vpop.permute.xlu1 %11543  ;;  %v14765_v31 = vpop.permute.xlu0 %11548 }
 0x38a   :  { %v19993_v14 = vunpack.i.h.bf16 %v14763_v49  ;;  %v11545_v29 = vunpack.i.l.bf16 %v14763_v49  ;;  %v19995_v2 = vunpack.i.h.bf16 %v14765_v31  ;;  %v11550_v44 = vunpack.i.l.bf16 %v14765_v31 }
 0x38c   :  { %v2091_v9 = vsel %vm1107_vm9, %v11545_v29, %v19993_v14  ;;  %v2139_v62 = vsel %vm1156_vm10, %v11550_v44, %v19995_v2 }
 0x38d   :  { %2163 = vrot.lane.b32.xlu0 %v14717_v22, %s13214_s25  ;;  %11698 = vrot.lane.b32.xlu1 %v11687_v0, %s13204_s22  ;;  %v10172_v45 = vpack.c.bf16 %v2139_v62, %v2091_v9  ;;  %v14810_v58 = vpop.permute.xlu1 %11553  ;;  %v14812_v16 = vpop.permute.xlu0 %11558 }
 0x38e   :  { %v19990_v61 = vunpack.i.h.bf16 %v14810_v58  ;;  %v11555_v11 = vunpack.i.l.bf16 %v14810_v58  ;;  %v19989_v36 = vunpack.i.h.bf16 %v14812_v16  ;;  %v11560_v35 = vunpack.i.l.bf16 %v14812_v16 }
 0x38f   :  { %10173 = vmatprep.subr.bf16.mxu1 %v10172_v45 }
 0x390   :  { %v2187_v34 = vsel %vm1205_vm11, %v11555_v11, %v19990_v61  ;;  %v2235_v30 = vsel %vm1254_vm12, %v11560_v35, %v19989_v36 }
 0x391   :  { %11728 = vrot.lane.b32.xlu0 %v11692_v7, %s13216_s27  ;;  %11703 = vrot.lane.b32.xlu1 %v11687_v0, %s13206_s24  ;;  %v10176_v13 = vpack.c.bf16 %v2235_v30, %v2187_v34 }
 0x395   :  { %2273 = vrot.lane.b32.xlu0 %v14726_v33, %s13203_s21  ;;  %11713 = vrot.lane.b32.xlu1 %v11707_v52, %s13213_s23 }
 0x399   :  { %2321 = vrot.lane.b32.xlu0 %v14726_v33, %s13216_s27  ;;  %11723 = vrot.lane.b32.xlu1 %v11707_v52, %s13215_s26 }
 0x39d   :  { %2417 = vrot.lane.b32.xlu0 %v14726_v33, %s13206_s24  ;;  %2211 = vrot.lane.b32.xlu1 %v14717_v22, %s13215_s26 }
 0x3a1   :  { %2123 = vrot.lane.b32.xlu0 %v14737_v12, %s13213_s23  ;;  %11733 = vrot.lane.b32.xlu1 %v11692_v7, %s13204_s22 }
 0x3a5   :  { %2219 = vrot.lane.b32.xlu0 %v14737_v12, %s13215_s26  ;;  %11738 = vrot.lane.b32.xlu1 %v11692_v7, %s13206_s24 }
 0x3a9   :  { %2329 = vrot.lane.b32.xlu0 %v14746_v48, %s13216_s27  ;;  %2369 = vrot.lane.b32.xlu1 %v14726_v33, %s13204_s22 }
 0x3ad   :  { %2425 = vrot.lane.b32.xlu0 %v14746_v48, %s13206_s24  ;;  %2075 = vrot.lane.b32.xlu1 %v14737_v12, %s13212_s20 }
 0x3b1   :  { %2171 = vrot.lane.b32.xlu1 %v14737_v12, %s13214_s25 }
 0x3b5   :  { %2281 = vrot.lane.b32.xlu1 %v14746_v48, %s13203_s21 }
 0x3b9   :  { %v14816_v51 = vpop.permute.xlu1 %11568  ;;  %v14818_v47 = vpop.permute.xlu0 %11563  ;;  %2377 = vrot.lane.b32.xlu1 %v14746_v48, %s13204_s22 }
 0x3bd   :  { %v14822_v17 = vpop.permute.xlu0 %11573  ;;  %v14824_v53 = vpop.permute.xlu1 %11583 }
 0x3be   :  { %v11585_v41 = vunpack.i.l.bf16 %v14824_v53 }
 0x3c0   :  { %v2092_v21 = vsel %vm1107_vm9, %v11585_v41, %v11545_v29 }
 0x3c1   :  { %v14826_v60 = vpop.permute.xlu0 %11578  ;;  %v14833_v56 = vpop.permute.xlu1 %11593 }
 0x3c2   :  { %v11595_v57 = vunpack.i.l.bf16 %v14833_v56 }
 0x3c4   :  { %v2188_v0 = vsel %vm1205_vm11, %v11595_v57, %v11555_v11 }
 0x3c5   :  { %v14835_v38 = vpop.permute.xlu0 %11588 }
 0x3c6   :  { %v11590_v50 = vunpack.i.l.bf16 %v14835_v38 }
 0x3c8   :  { %v2140_v15 = vsel %vm1156_vm10, %v11590_v50, %v11550_v44 }
 0x3c9   :  { %v14851_v26 = vpop.permute.xlu0 %11598  ;;  %v10174_v43 = vpack.c.bf16 %v2140_v15, %v2092_v21 }
 0x3ca   :  { %v11600_v59 = vunpack.i.l.bf16 %v14851_v26 }
 0x3cb   :  { %10175 = vmatpush1.bf16.msra.mxu1 %v10174_v43  ;;  %v11565_v43 = vunpack.i.l.bf16 %v14818_v47 }
 0x3cc   :  { %v2236_v3 = vsel %vm1254_vm12, %v11600_v59, %v11560_v35  ;;  %10177 = vmatprep.subr.bf16.mxu1 %v10176_v13 }
 0x3cd   :  { %v10178_v52 = vpack.c.bf16 %v2236_v3, %v2188_v0  ;;  %v14858_v7 = vpop.permute.xlu0 %11603 }
 0x3ce   :  { %v11605_v34 = vunpack.i.l.bf16 %v14858_v7 }
 0x3cf   :  { %10179 = vmatpush1.bf16.msra.mxu1 %v10178_v52 }
 0x3d3   :  { %v14860_v29 = vpop.permute.xlu0 %11613  ;;  %v14862_v44 = vpop.permute.xlu1 %11608 }
 0x3d4   :  { %v19991_v9 = vunpack.i.h.bf16 %v14860_v29  ;;  %v11615_v62 = vunpack.i.l.bf16 %v14860_v29  ;;  %v19992_v45 = vunpack.i.h.bf16 %v14862_v44  ;;  %v11610_v11 = vunpack.i.l.bf16 %v14862_v44 }
 0x3d6   :  { %v2142_v35 = vsel %vm1156_vm10, %v19991_v9, %v11615_v62  ;;  %v2094_v30 = vsel %vm1107_vm9, %v19992_v45, %v11610_v11  ;;  %v2093_v21 = vsel %vm1107_vm9, %v11610_v11, %v11585_v41  ;;  %v2141_v15 = vsel %vm1156_vm10, %v11615_v62, %v11590_v50 }
 0x3d7   :  { %v14882_v13 = vpop.permute.xlu0 %11618  ;;  %v14884_v0 = vpop.permute.xlu1 %11623  ;;  %v10152_v3 = vpack.c.bf16 %v2141_v15, %v2093_v21  ;;  %v10154_v52 = vpack.c.bf16 %v2142_v35, %v2094_v30  ;;  %v20002_v41 = vunpack.i.h.bf16 %v14858_v7  ;;  %v2296_v50 = vsel %vm140_vm0, %v11605_v34, %v11565_v43 }
 0x3d8   :  { %v19994_v36 = vunpack.i.h.bf16 %v14882_v13  ;;  %v11620_v61 = vunpack.i.l.bf16 %v14882_v13  ;;  %v20000_v9 = vunpack.i.h.bf16 %v14884_v0  ;;  %v11625_v45 = vunpack.i.l.bf16 %v14884_v0 }
 0x3d9   :  { %10153 = vmatprep.subr.bf16.mxu0 %v10152_v3 }
 0x3da   :  { %v2190_v62 = vsel %vm1205_vm11, %v19994_v36, %v11620_v61  ;;  %v2238_v11 = vsel %vm1254_vm12, %v20000_v9, %v11625_v45  ;;  %10155 = vmatpush1.bf16.msra.mxu0 %v10154_v52  ;;  %v2189_v35 = vsel %vm1205_vm11, %v11620_v61, %v11595_v57  ;;  %v2237_v30 = vsel %vm1254_vm12, %v11625_v45, %v11600_v59 }
 0x3db   :  { %v14905_v21 = vpop.permute.xlu0 %11638  ;;  %v14907_v15 = vpop.permute.xlu1 %11628  ;;  %v10156_v3 = vpack.c.bf16 %v2237_v30, %v2189_v35  ;;  %v10158_v14 = vpack.c.bf16 %v2238_v11, %v2190_v62  ;;  %v2297_v52 = vsel %vm140_vm0, %v20002_v41, %v11605_v34  ;;  %v10160_v59 = vpack.c.bf16 %v2296_v50, %v14689_v4 }
 0x3dc   :  { %v19997_v36 = vunpack.i.h.bf16 %v14907_v15  ;;  %v11630_v2 = vunpack.i.l.bf16 %v14907_v15  ;;  %v19996_v61 = vunpack.i.h.bf16 %v14905_v21  ;;  %v11640_v57 = vunpack.i.l.bf16 %v14905_v21 }
 0x3dd   :  { %10157 = vmatprep.subr.bf16.mxu0 %v10156_v3  ;;  %v11575_v11 = vunpack.i.l.bf16 %v14822_v17  ;;  %v11570_v50 = vunpack.i.l.bf16 %v14816_v51  ;;  %v10162_v3 = vpack.c.bf16 %v2297_v52, %v14703_v46 }
 0x3de   :  { %v2295_v45 = vsel %vm140_vm0, %v11565_v43, %v11630_v2  ;;  %10159 = vmatpush1.bf16.msra.mxu0 %v10158_v14  ;;  %v2294_v62 = vsel %vm140_vm0, %v11630_v2, %v19997_v36 }
 0x3df   :  { %v14925_v35 = vpop.permute.xlu0 %11643  ;;  %v14927_v34 = vpop.permute.xlu1 %11633  ;;  %10161 = vmatprep.subr.bf16.mxu0 %v10160_v59  ;;  %v10180_v30 = vpack.c.bf16 %v2294_v62, %v14674_v32  ;;  %v10182_v4 = vpack.c.bf16 %v2295_v45, %v14671_v10  ;;  %v2391_v2 = vsel %vm238_vm2, %v11575_v11, %v11640_v57  ;;  %v2390_v59 = vsel %vm238_vm2, %v11640_v57, %v19996_v61 }
 0x3e0   :  { %v19998_v14 = vunpack.i.h.bf16 %v14927_v34  ;;  %v11635_v43 = vunpack.i.l.bf16 %v14927_v34  ;;  %v19999_v32 = vunpack.i.h.bf16 %v14925_v35  ;;  %v11645_v10 = vunpack.i.l.bf16 %v14925_v35 }
 0x3e1   :  { %10181 = vmatprep.subr.bf16.mxu1 %v10180_v30 }
 0x3e2   :  { %v2343_v45 = vsel %vm1363_vm13, %v11570_v50, %v11635_v43  ;;  %10163 = vmatpush1.bf16.msra.mxu0 %v10162_v3  ;;  %10183 = vmatpush1.bf16.msra.mxu1 %v10182_v4  ;;  %v2342_v46 = vsel %vm1363_vm13, %v11635_v43, %v19998_v14  ;;  %v2345_v4 = vsel %vm1363_vm13, %v19999_v32, %v11645_v10  ;;  %v11580_v14 = vunpack.i.l.bf16 %v14826_v60 }
 0x3e3   :  { %v14949_v52 = vpop.permute.xlu0 %11663  ;;  %v14951_v62 = vpop.permute.xlu1 %11648  ;;  %v10184_v30 = vpack.c.bf16 %v2390_v59, %v2342_v46  ;;  %v10186_v57 = vpack.c.bf16 %v2391_v2, %v2343_v45  ;;  %v2344_v3 = vsel %vm1363_vm13, %v11645_v10, %v11570_v50  ;;  %v11586_v50 = vunpack.i.h.bf16 %v14824_v53 }
 0x3e4   :  { %v20001_v61 = vunpack.i.h.bf16 %v14951_v62  ;;  %v11650_v36 = vunpack.i.l.bf16 %v14951_v62  ;;  %v11591_v10 = vunpack.i.h.bf16 %v14835_v38 }
 0x3e5   :  { %10185 = vmatprep.subr.bf16.mxu1 %v10184_v30 }
 0x3e6   :  { %v2393_v43 = vsel %vm238_vm2, %v20001_v61, %v11650_v36  ;;  %10187 = vmatpush1.bf16.msra.mxu1 %v10186_v57  ;;  %v2392_v2 = vsel %vm238_vm2, %v11650_v36, %v11575_v11  ;;  %v11666_v57 = vunpack.i.h.bf16 %v14949_v52  ;;  %v20004_v61 = vunpack.i.l.bf16 %v14949_v52 }
 0x3e7   :  { %v14967_v59 = vpop.permute.xlu0 %11673  ;;  %v14969_v45 = vpop.permute.xlu1 %11653  ;;  %v10164_v46 = vpack.c.bf16 %v2392_v2, %v2344_v3  ;;  %v10166_v30 = vpack.c.bf16 %v2393_v43, %v2345_v4  ;;  %v11601_v4 = vunpack.i.h.bf16 %v14851_v26 }
 0x3e8   :  { %v20003_v32 = vunpack.i.h.bf16 %v14969_v45  ;;  %v11655_v9 = vunpack.i.l.bf16 %v14969_v45  ;;  %v2136_v38 = vsel %vm1156_vm10, %v11666_v57, %v11591_v10 }
 0x3e9   :  { %10165 = vmatprep.subr.bf16.mxu0 %v10164_v46 }
 0x3ea   :  { %v2439_v36 = vsel %vm287_vm3, %v11580_v14, %v11655_v9  ;;  %10167 = vmatpush1.bf16.msra.mxu0 %v10166_v30  ;;  %v2438_v11 = vsel %vm287_vm3, %v11655_v9, %v20003_v32 }
 0x3eb   :  { %v14985_v43 = vpop.permute.xlu0 %11678  ;;  %v14987_v3 = vpop.permute.xlu1 %11658  ;;  %v10188_v2 = vpack.c.bf16 %v20228_v1, %v2438_v11  ;;  %v10190_v53 = vpack.c.bf16 %v20228_v1, %v2439_v36  ;;  %v2135_v36 = vsel %vm1156_vm10, %v11591_v10, %v20004_v61 }
 0x3ec   :  { %v20005_v46 = vunpack.i.h.bf16 %v14985_v43  ;;  %v11680_v30 = vunpack.i.l.bf16 %v14985_v43  ;;  %v11661_v41 = vunpack.i.h.bf16 %v14987_v3  ;;  %v20255_v32 = vunpack.i.l.bf16 %v14987_v3 }
 0x3ed   :  { %10189 = vmatprep.subr.bf16.mxu1 %v10188_v2 }
 0x3ee   :  { %v2441_v11 = vsel %vm287_vm3, %v20005_v46, %v11680_v30  ;;  %v2088_v9 = vsel %vm1107_vm9, %v11661_v41, %v11586_v50  ;;  %10191 = vmatpush1.bf16.msra.mxu1 %v10190_v53  ;;  %v2440_v26 = vsel %vm287_vm3, %v11680_v30, %v11580_v14  ;;  %v2087_v2 = vsel %vm1107_vm9, %v11586_v50, %v20255_v32  ;;  %v15024_v53 = vld [vmem:[%s19933_s1 + $0x10] sm:$0xff] }
 0x3ef   :  { %v15015_v40 = vpop.permute.xlu0 %11688  ;;  %v15017_v10 = vpop.permute.xlu1 %11668  ;;  %v10168_v61 = vpack.c.bf16 %v20228_v1, %v2440_v26  ;;  %v10212_v20 = vpack.c.bf16 %v2135_v36, %v2087_v2  ;;  %v10170_v46 = vpack.c.bf16 %v20228_v1, %v2441_v11  ;;  %v10214_v14 = vpack.c.bf16 %v2136_v38, %v2088_v9 }
 0x3f0   :  { %v11596_v30 = vunpack.i.h.bf16 %v14833_v56  ;;  %v20017_v63 = vunpack.i.h.bf16 %v15017_v10  ;;  %v20008_v32 = vunpack.i.l.bf16 %v15017_v10  ;;  %v20256_v50 = vunpack.i.h.bf16 %v14967_v59 }
 0x3f1   :  { %10169 = vmatprep.subr.bf16.mxu0 %v10168_v61  ;;  %10213 = vmatprep.subr.bf16.mxu1 %v10212_v20  ;;  %v20257_v9 = vunpack.i.l.bf16 %v14967_v59 }
 0x3f2   :  { %v2232_v26 = vsel %vm1254_vm12, %v20256_v50, %v11601_v4  ;;  %v2184_v36 = vsel %vm1205_vm11, %v20017_v63, %v11596_v30  ;;  %10171 = vmatpush1.bf16.msra.mxu0 %v10170_v46  ;;  %9858 = vmatmul.mubr.msk.f32.vlgmr.msra.gmra.mrb[12].mxu1 %vm629_vm8, %v15024_v53  ;;  %v2183_v56 = vsel %vm1205_vm11, %v11596_v30, %v20008_v32  ;;  %v20258_v50 = vunpack.i.h.bf16 %v14765_v31 }
 0x3f3   :  { %v2231_v61 = vsel %vm1254_vm12, %v11601_v4, %v20257_v9  ;;  %10215 = vmatpush1.bf16.msra.mxu1 %v10214_v14  ;;  %v2116_v20 = vpop.permute.xlu0 %2115  ;;  %v2068_v38 = vpop.permute.xlu1 %2067  ;;  %v10218_v2 = vpack.c.bf16 %v2232_v26, %v2184_v36  ;;  %2857 = vmatprep.mubr.f32.mxu1 %v20235_v28  ;;  %v20259_v4 = vunpack.i.h.bf16 %v14763_v49 }
 0x3f4   :  { %v10216_v11 = vpack.c.bf16 %v2231_v61, %v2183_v56  ;;  %v2137_v46 = vsel %vm1156_vm10, %v2116_v20, %v11666_v57  ;;  %v2138_v30 = vsel %vm1156_vm10, %v20258_v50, %v2116_v20  ;;  %v2089_v32 = vsel %vm1107_vm9, %v2068_v38, %v11661_v41 }
 0x3f5   :  { %v2090_v14 = vsel %vm1107_vm9, %v20259_v4, %v2068_v38  ;;  %9857 = vmatmul.mubr.msk.f32.vlgmr.msra.gmra.mrb[12].mxu0 %vm629_vm8, %v15024_v53  ;;  %v10192_v26 = vpack.c.bf16 %v2137_v46, %v2089_v32  ;;  %v11566_v41 = vunpack.i.h.bf16 %v14818_v47  ;;  %v11576_v4 = vunpack.i.h.bf16 %v14822_v17 }
 0x3f6   :  { %v10194_v56 = vpack.c.bf16 %v2138_v30, %v2090_v14  ;;  %10217 = vmatprep.subr.bf16.mxu1 %v10216_v11  ;;  %2786 = vmatprep.mubr.f32.mxu0 %v20235_v28  ;;  %v20014_v11 = vunpack.i.h.bf16 %v15015_v40  ;;  %v11571_v30 = vunpack.i.h.bf16 %v14816_v51 }
 0x3f7   :  { %10219 = vmatpush1.bf16.msra.mxu1 %v10218_v2  ;;  %v15063_v31 = vpop.permute.xlu0 %11708  ;;  %v15065_v57 = vpop.permute.xlu1 %11683  ;;  %10193 = vmatprep.subr.bf16.mxu0 %v10192_v26  ;;  %v20010_v2 = vunpack.i.l.bf16 %v15015_v40 }
 0x3f8   :  { %v20016_v49 = vunpack.i.h.bf16 %v15065_v57  ;;  %v20009_v36 = vunpack.i.l.bf16 %v15065_v57  ;;  %10195 = vmatpush1.bf16.msra.mxu0 %v10194_v56 }
 0x3f9   :  { %v2338_v51 = vsel %vm1363_vm13, %v11571_v30, %v20010_v2  ;;  %v11710_v2 = vunpack.i.l.bf16 %v15063_v31 }
 0x3fa   :  { %v2291_v32 = vsel %vm140_vm0, %v20016_v49, %v11566_v41  ;;  %v2290_v9 = vsel %vm140_vm0, %v11566_v41, %v20009_v36  ;;  %v20261_v49 = vunpack.i.h.bf16 %v14860_v29 }
 0x3fb   :  { %v15078_v61 = vpop.permute.xlu0 %11718  ;;  %v15080_v20 = vpop.permute.xlu1 %11693  ;;  %v10220_v47 = vpack.c.bf16 %v2290_v9, %v14686_v23  ;;  %v10222_v38 = vpack.c.bf16 %v2291_v32, %v14683_v18  ;;  %v2339_v18 = vsel %vm1363_vm13, %v20014_v11, %v11571_v30  ;;  %v20018_v30 = vunpack.i.h.bf16 %v15063_v31 }
 0x3fd   :  { %10221 = vmatprep.subr.bf16.mxu1 %v10220_v47  ;;  %v11581_v47 = vunpack.i.h.bf16 %v14826_v60 }
 0x3fe   :  { %10223 = vmatpush1.bf16.msra.mxu1 %v10222_v38 }
 0x3ff   :  { %v2164_v46 = vpop.permute.xlu0 %2163  ;;  %v15086_v50 = vpop.permute.xlu1 %11698 }
 0x400   :  { %v20012_v14 = vunpack.i.h.bf16 %v15086_v50  ;;  %v20011_v56 = vunpack.i.l.bf16 %v15086_v50 }
 0x402   :  { %v2387_v23 = vsel %vm238_vm2, %v20012_v14, %v11576_v4  ;;  %v2386_v17 = vsel %vm238_vm2, %v11576_v4, %v20011_v56 }
 0x403   :  { %v15108_v26 = vpop.permute.xlu0 %11728  ;;  %v15110_v41 = vpop.permute.xlu1 %11703  ;;  %v10224_v32 = vpack.c.bf16 %v2386_v17, %v2338_v51  ;;  %v10226_v9 = vpack.c.bf16 %v2387_v23, %v2339_v18  ;;  %v11695_v17 = vunpack.i.l.bf16 %v15080_v20 }
 0x404   :  { %v20013_v38 = vunpack.i.h.bf16 %v15110_v41  ;;  %v20015_v36 = vunpack.i.l.bf16 %v15110_v41 }
 0x405   :  { %10225 = vmatprep.subr.bf16.mxu1 %v10224_v32 }
 0x406   :  { %v2435_v4 = vsel %vm287_vm3, %v20013_v38, %v11581_v47  ;;  %10227 = vmatpush1.bf16.msra.mxu1 %v10226_v9  ;;  %v2434_v60 = vsel %vm287_vm3, %v11581_v47, %v20015_v36  ;;  %v11720_v9 = vunpack.i.l.bf16 %v15078_v61  ;;  %v2084_v47 = vsel %vm1107_vm9, %v20018_v30, %v11710_v2 }
 0x407   :  { %v15125_v18 = vpop.permute.xlu1 %11713  ;;  %v10228_v23 = vpack.c.bf16 %v20228_v1, %v2434_v60  ;;  %v10230_v51 = vpack.c.bf16 %v20228_v1, %v2435_v4  ;;  %v2274_v11 = vpop.permute.xlu0 %2273  ;;  %v20260_v60 = vunpack.i.h.bf16 %v14862_v44 }
 0x408   :  { %v11716_v32 = vunpack.i.h.bf16 %v15125_v18  ;;  %v11715_v56 = vunpack.i.l.bf16 %v15125_v18  ;;  %v20285_v18 = vunpack.i.l.bf16 %v14949_v52 }
 0x409   :  { %10229 = vmatprep.subr.bf16.mxu1 %v10228_v23  ;;  %v2083_v36 = vsel %vm1107_vm9, %v11710_v2, %v20260_v60  ;;  %v20263_v2 = vunpack.i.h.bf16 %v15078_v61 }
 0x40a   :  { %v2132_v4 = vsel %vm1156_vm10, %v11716_v32, %v11715_v56  ;;  %10231 = vmatpush1.bf16.msra.mxu1 %v10230_v51  ;;  %v2131_v23 = vsel %vm1156_vm10, %v11715_v56, %v20261_v49  ;;  %v20262_v51 = vunpack.i.h.bf16 %v14858_v7  ;;  %v20264_v49 = vunpack.i.h.bf16 %v15080_v20 }
 0x40b   :  { %v15151_v63 = vpop.permute.xlu1 %11723  ;;  %v10252_v38 = vpack.c.bf16 %v2131_v23, %v2083_v36  ;;  %v10254_v30 = vpack.c.bf16 %v2132_v4, %v2084_v47  ;;  %v2180_v29 = vsel %vm1205_vm11, %v20263_v2, %v11720_v9  ;;  %v20265_v56 = vunpack.i.h.bf16 %v14882_v13  ;;  %v2322_v23 = vpop.permute.xlu0 %2321 }
 0x40c   :  { %v11726_v14 = vunpack.i.h.bf16 %v15151_v63  ;;  %v11725_v8 = vunpack.i.l.bf16 %v15151_v63  ;;  %v2298_v44 = vsel %vm140_vm0, %v11695_v17, %v20262_v51  ;;  %v2287_v36 = vsel %vm140_vm0, %v20264_v49, %v11695_v17 }
 0x40d   :  { %10253 = vmatprep.subr.bf16.mxu1 %v10252_v38  ;;  %9860 = vmatmul.mubr.msk.f32.vlgmr.msra.gmra.mrb[14].mxu1 %vm629_vm8, %v15024_v53  ;;  %v2179_v47 = vsel %vm1205_vm11, %v11720_v9, %v20265_v56  ;;  %v20266_v4 = vunpack.i.h.bf16 %v14884_v0  ;;  %v20267_v38 = vunpack.i.h.bf16 %v15017_v10  ;;  %v10260_v13 = vpack.c.bf16 %v2298_v44, %v14710_v39 }
 0x40e   :  { %v2228_v7 = vsel %vm1254_vm12, %v11726_v14, %v11725_v8  ;;  %10255 = vmatpush1.bf16.msra.mxu1 %v10254_v30  ;;  %2999 = vmatprep.mubr.f32.mxu1 %v20235_v28  ;;  %v20268_v9 = vunpack.i.h.bf16 %v14810_v58  ;;  %v20270_v56 = vunpack.i.h.bf16 %v14967_v59  ;;  %v11731_v58 = vunpack.i.h.bf16 %v15108_v26 }
 0x40f   :  { %v2227_v17 = vsel %vm1254_vm12, %v11725_v8, %v20266_v4  ;;  %v2185_v60 = vsel %vm1205_vm11, %v2164_v46, %v20267_v38  ;;  %v2212_v51 = vpop.permute.xlu1 %2211  ;;  %v10258_v2 = vpack.c.bf16 %v2228_v7, %v2180_v29  ;;  %v20269_v8 = vunpack.i.h.bf16 %v15065_v57 }
 0x410   :  { %v10256_v30 = vpack.c.bf16 %v2227_v17, %v2179_v47  ;;  %v2186_v0 = vsel %vm1205_vm11, %v20268_v9, %v2164_v46  ;;  %v2233_v4 = vsel %vm1254_vm12, %v2212_v51, %v20270_v56  ;;  %v20271_v47 = vunpack.i.h.bf16 %v14812_v16 }
 0x411   :  { %v2292_v49 = vsel %vm140_vm0, %v2274_v11, %v20269_v8  ;;  %v11730_v44 = vunpack.i.l.bf16 %v15108_v26  ;;  %v10196_v29 = vpack.c.bf16 %v2233_v4, %v2185_v60  ;;  %v20272_v7 = vunpack.i.h.bf16 %v14907_v15  ;;  %v2418_v60 = vpop.permute.xlu0 %2417 }
 0x412   :  { %v2234_v39 = vsel %vm1254_vm12, %v20271_v47, %v2212_v51  ;;  %10257 = vmatprep.subr.bf16.mxu1 %v10256_v30  ;;  %v10200_v16 = vpack.c.bf16 %v2292_v49, %v14726_v33  ;;  %v10262_v30 = vpack.c.bf16 %v2287_v36, %v14749_v24  ;;  %v20274_v36 = vunpack.i.h.bf16 %v14951_v62 }
 0x413   :  { %v10198_v46 = vpack.c.bf16 %v2234_v39, %v2186_v0  ;;  %10259 = vmatpush1.bf16.msra.mxu1 %v10258_v2  ;;  %v2293_v17 = vsel %vm140_vm0, %v20272_v7, %v2274_v11  ;;  %v15209_v38 = vpop.permute.xlu1 %11733  ;;  %10197 = vmatprep.subr.bf16.mxu0 %v10196_v29  ;;  %v2335_v15 = vsel %vm1363_vm13, %v11731_v58, %v11730_v44  ;;  %v20273_v2 = vunpack.i.h.bf16 %v14925_v35 }
 0x414   :  { %10261 = vmatprep.subr.bf16.mxu1 %v10260_v13  ;;  %v11736_v51 = vunpack.i.h.bf16 %v15209_v38  ;;  %v11735_v9 = vunpack.i.l.bf16 %v15209_v38  ;;  %v10202_v11 = vpack.c.bf16 %v2293_v17, %v14717_v22  ;;  %v20275_v62 = vunpack.i.h.bf16 %v14985_v43 }
 0x415   :  { %10199 = vmatpush1.bf16.msra.mxu0 %v10198_v46  ;;  %v2346_v24 = vsel %vm1363_vm13, %v11730_v44, %v20273_v2  ;;  %v20276_v47 = vunpack.i.h.bf16 %v15015_v40  ;;  %v2124_v44 = vpop.permute.xlu0 %2123  ;;  %v20277_v17 = vunpack.i.h.bf16 %v14927_v34  ;;  %v20278_v43 = vunpack.i.h.bf16 %v15110_v41 }
 0x416   :  { %10201 = vmatprep.subr.bf16.mxu0 %v10200_v16  ;;  %v2383_v33 = vsel %vm238_vm2, %v11736_v51, %v11735_v9  ;;  %v2394_v13 = vsel %vm238_vm2, %v11735_v9, %v20274_v36 }
 0x417   :  { %10263 = vmatpush1.bf16.msra.mxu1 %v10262_v30  ;;  %v15232_v0 = vpop.permute.xlu1 %11738  ;;  %v10264_v8 = vpack.c.bf16 %v2394_v13, %v2346_v24  ;;  %v10266_v22 = vpack.c.bf16 %v2383_v33, %v2335_v15  ;;  %v2340_v39 = vsel %vm1363_vm13, %v2322_v23, %v20276_v47  ;;  %v2341_v16 = vsel %vm1363_vm13, %v20277_v17, %v2322_v23 }
 0x418   :  { %v11741_v49 = vunpack.i.h.bf16 %v15232_v0  ;;  %v11740_v56 = vunpack.i.l.bf16 %v15232_v0  ;;  %v2436_v9 = vsel %vm287_vm3, %v2418_v60, %v20278_v43  ;;  %v20279_v30 = vunpack.i.h.bf16 %v15086_v50 }
 0x419   :  { %10203 = vmatpush1.bf16.msra.mxu0 %v10202_v11  ;;  %10265 = vmatprep.subr.bf16.mxu1 %v10264_v8  ;;  %v20280_v11 = vunpack.i.h.bf16 %v14905_v21  ;;  %v20281_v23 = vunpack.i.h.bf16 %v14969_v45  ;;  %v10208_v13 = vpack.c.bf16 %v20228_v1, %v2436_v9  ;;  %v20282_v8 = vunpack.i.h.bf16 %v15063_v31 }
 0x41a   :  { %v2431_v35 = vsel %vm287_vm3, %v11741_v49, %v11740_v56  ;;  %v2442_v4 = vsel %vm287_vm3, %v11740_v56, %v20275_v62  ;;  %v20283_v31 = vunpack.i.l.bf16 %v14987_v3 }
 0x41b   :  { %10267 = vmatpush1.bf16.msra.mxu1 %v10266_v22  ;;  %v2370_v46 = vpop.permute.xlu1 %2369  ;;  %v10268_v29 = vpack.c.bf16 %v20228_v1, %v2442_v4  ;;  %v10270_v7 = vpack.c.bf16 %v20228_v1, %v2431_v35  ;;  %v2437_v24 = vsel %vm287_vm3, %v20281_v23, %v2418_v60  ;;  %v2220_v22 = vpop.permute.xlu0 %2219  ;;  %v2133_v60 = vsel %vm1156_vm10, %v2124_v44, %v11716_v32 }
 0x41c   :  { %v2388_v15 = vsel %vm238_vm2, %v2370_v46, %v20279_v30  ;;  %v2389_v33 = vsel %vm238_vm2, %v20280_v11, %v2370_v46  ;;  %v10210_v45 = vpack.c.bf16 %v20228_v1, %v2437_v24  ;;  %v20284_v4 = vunpack.i.h.bf16 %v15078_v61 }
 0x41d   :  { %v10206_v2 = vpack.c.bf16 %v2389_v33, %v2341_v16  ;;  %10269 = vmatprep.subr.bf16.mxu1 %v10268_v29  ;;  %v10204_v34 = vpack.c.bf16 %v2388_v15, %v2340_v39  ;;  %v2134_v32 = vsel %vm1156_vm10, %v20285_v18, %v2124_v44  ;;  %v2229_v3 = vsel %vm1254_vm12, %v2220_v22, %v11726_v14 }
 0x41e   :  { %v20286_v29 = vunpack.i.l.bf16 %v15017_v10  ;;  %v20287_v44 = vunpack.i.h.bf16 %v15080_v20  ;;  %v20288_v14 = vunpack.i.l.bf16 %v14967_v59  ;;  %v20289_v16 = vunpack.i.l.bf16 %v15065_v57 }
 0x41f   :  { %10271 = vmatpush1.bf16.msra.mxu1 %v10270_v7  ;;  %v2076_v36 = vpop.permute.xlu1 %2075  ;;  %10205 = vmatprep.subr.bf16.mxu0 %v10204_v34  ;;  %v2330_v46 = vpop.permute.xlu0 %2329  ;;  %v20290_v11 = vunpack.i.l.bf16 %v15086_v50 }
 0x420   :  { %v2085_v21 = vsel %vm1107_vm9, %v2076_v36, %v20282_v8  ;;  %10207 = vmatpush1.bf16.msra.mxu0 %v10206_v2  ;;  %v2086_v56 = vsel %vm1107_vm9, %v20283_v31, %v2076_v36  ;;  %v2230_v10 = vsel %vm1254_vm12, %v20288_v14, %v2220_v22  ;;  %v2336_v15 = vsel %vm1363_vm13, %v2330_v46, %v11731_v58 }
 0x421   :  { %10209 = vmatprep.subr.bf16.mxu0 %v10208_v13  ;;  %v10232_v62 = vpack.c.bf16 %v2133_v60, %v2085_v21  ;;  %v10234_v39 = vpack.c.bf16 %v2134_v32, %v2086_v56 }
 0x422   :  { %9862 = vmatmul.mubr.msk.f32.vlgmr.msra.gmra.mrb[16].mxu1 %vm629_vm8, %v15024_v53 }
 0x423   :  { %3686 = vmatprep.mubr.f32.mxu1 %v20235_v28  ;;  %v2172_v35 = vpop.permute.xlu1 %2171  ;;  %v2426_v59 = vpop.permute.xlu0 %2425 }
 0x424   :  { %v2181_v47 = vsel %vm1205_vm11, %v2172_v35, %v20284_v4  ;;  %10211 = vmatpush1.bf16.msra.mxu0 %v10210_v45  ;;  %v2182_v61 = vsel %vm1205_vm11, %v20286_v29, %v2172_v35  ;;  %v2432_v38 = vsel %vm287_vm3, %v2426_v59, %v11741_v49 }
 0x425   :  { %10233 = vmatprep.subr.bf16.mxu0 %v10232_v62  ;;  %v10236_v52 = vpack.c.bf16 %v2229_v3, %v2181_v47  ;;  %v10238_v17 = vpack.c.bf16 %v2230_v10, %v2182_v61  ;;  %v10248_v2 = vpack.c.bf16 %v20228_v1, %v2432_v38  ;;  %v20295_v38 = vld [vmem:[#allocation9_spill] sm:$0xff] }
 0x427   :  { %v2282_v7 = vpop.permute.xlu1 %2281  ;;  %9859 = vmatmul.mubr.msk.f32.vlgmr.msra.gmra.mrb[14].mxu0 %vm629_vm8, %v15024_v53 }
 0x428   :  { %v2288_v63 = vsel %vm140_vm0, %v2282_v7, %v20287_v44  ;;  %10235 = vmatpush1.bf16.msra.mxu0 %v10234_v39  ;;  %2928 = vmatprep.mubr.f32.mxu0 %v20235_v28  ;;  %v2289_v43 = vsel %vm140_vm0, %v20289_v16, %v2282_v7 }
 0x429   :  { %10237 = vmatprep.subr.bf16.mxu0 %v10236_v52  ;;  %v10240_v20 = vpack.c.bf16 %v2288_v63, %v14746_v48  ;;  %v10242_v57 = vpack.c.bf16 %v2289_v43, %v14737_v12  ;;  %v20292_v12 = vunpack.i.l.bf16 %v15110_v41  ;;  %v20293_v43 = vld [vmem:[#allocation7_spill] sm:$0xff] }
 0x42b   :  { %v2378_v9 = vpop.permute.xlu1 %2377  ;;  %v2433_v50 = vsel %vm287_vm3, %v20292_v12, %v2426_v59 }
 0x42c   :  { %v2384_v30 = vsel %vm238_vm2, %v2378_v9, %v11736_v51  ;;  %10239 = vmatpush1.bf16.msra.mxu0 %v10238_v17  ;;  %v2385_v48 = vsel %vm238_vm2, %v20290_v11, %v2378_v9  ;;  %v20291_v51 = vunpack.i.l.bf16 %v15015_v40  ;;  %v10250_v0 = vpack.c.bf16 %v20228_v1, %v2433_v50 }
 0x42d   :  { %10241 = vmatprep.subr.bf16.mxu0 %v10240_v20  ;;  %v10244_v33 = vpack.c.bf16 %v2384_v30, %v2336_v15  ;;  %v20294_v20 = vld [vmem:[#allocation8_spill] sm:$0xff] }
 0x42e   :  { %v2337_v26 = vsel %vm1363_vm13, %v20291_v51, %v2330_v46 }
 0x42f   :  { %v10246_v58 = vpack.c.bf16 %v2385_v48, %v2337_v26  ;;  %v20296_v26 = vld [vmem:[#allocation10_spill] sm:$0xff] }
 0x430   :  { %10243 = vmatpush1.bf16.msra.mxu0 %v10242_v57 }
 0x431   :  { %10245 = vmatprep.subr.bf16.mxu0 %v10244_v33 }
 0x434   :  { %10247 = vmatpush1.bf16.msra.mxu0 %v10246_v58 }
 0x435   :  { %10249 = vmatprep.subr.bf16.mxu0 %v10248_v2 }
 0x438   :  { %10251 = vmatpush1.bf16.msra.mxu0 %v10250_v0 }
 0x43b   :  { %9861 = vmatmul.mubr.msk.f32.vlgmr.msra.gmra.mrb[16].mxu0 %vm629_vm8, %v15024_v53 }
 0x43c   :  { %3615 = vmatprep.mubr.f32.mxu0 %v20235_v28 }
 0x4c5   :  { %v2717_v40 = vpop.f32.mrb[12].mxu1 }
 0x4c6   :  { %v3008_v49 = vmax.f32 %v2717_v40, 0.0  ;;  %v2719_v34 = vpop.f32.mrb[13].mxu1 }
 0x4c7   :  { %v3009_v23 = vmax.f32 %v2719_v34, 0.0 }
 0x4c8   :  { %v2646_v41 = vpop.f32.mrb[12].mxu0  ;;  %v15350_v24 = vmul.f32 %v3008_v49, %v13996_v6 }
 0x4c9   :  { %v3006_v36 = vmax.f32 %v2646_v41, 0.0  ;;  %v2648_v13 = vpop.f32.mrb[13].mxu0  ;;  %v15353_v8 = vmul.f32 %v3009_v23, %v14001_v42 }
 0x4ca   :  { %v3007_v21 = vmax.f32 %v2648_v13, 0.0 }
 0x4cb   :  { %v15356_v22 = vmul.f32 %v3006_v36, %v14018_v54  ;;  %v11747_v53 = vpack.i.bf16 %v15353_v8, %v15350_v24 }
 0x4cc   :  { %v15361_v45 = vmul.f32 %v3007_v21, %v14023_v5 }
 0x4cd   :  { %11748 = vrot.lane.b32.xlu0 %v11747_v53, %s13212_s20 }
 0x4ce   :  { %v11742_v60 = vpack.i.bf16 %v15361_v45, %v15356_v22  ;;  %v11787_v31 = vpack.i.bf16 %v15350_v24, %v15361_v45 }
 0x4d0   :  { %11743 = vrot.lane.b32.xlu1 %v11742_v60, %s13212_s20 }
 0x4d1   :  { %11758 = vrot.lane.b32.xlu0 %v11747_v53, %s13213_s23 }
 0x4d4   :  { %11753 = vrot.lane.b32.xlu1 %v11742_v60, %s13213_s23 }
 0x4d5   :  { %11768 = vrot.lane.b32.xlu0 %v11747_v53, %s13214_s25 }
 0x4d8   :  { %11763 = vrot.lane.b32.xlu1 %v11742_v60, %s13214_s25 }
 0x4d9   :  { %11778 = vrot.lane.b32.xlu0 %v11747_v53, %s13215_s26 }
 0x4dc   :  { %11773 = vrot.lane.b32.xlu1 %v11742_v60, %s13215_s26 }
 0x4dd   :  { %11788 = vrot.lane.b32.xlu0 %v11787_v31, %s13216_s27 }
 0x4e0   :  { %11783 = vrot.lane.b32.xlu1 %v11787_v31, %s13203_s21  ;;  %v2859_v56 = vpop.f32.mrb[14].mxu1 }
 0x4e1   :  { %11793 = vrot.lane.b32.xlu0 %v11787_v31, %s13204_s22  ;;  %v2861_v35 = vpop.f32.mrb[15].mxu1  ;;  %v3012_v7 = vmax.f32 %v2859_v56, 0.0 }
 0x4e2   :  { %v3013_v52 = vmax.f32 %v2861_v35, 0.0 }
 0x4e3   :  { %v15397_v63 = vmul.f32 %v3012_v7, %v14072_v55 }
 0x4e4   :  { %v15400_v16 = vmul.f32 %v3013_v52, %v14078_v25 }
 0x4e5   :  { %11798 = vrot.lane.b32.xlu0 %v11787_v31, %s13206_s24 }
 0x4e6   :  { %v11897_v11 = vpack.i.bf16 %v15400_v16, %v15397_v63 }
 0x4f5   :  { %v3001_v62 = vpop.f32.mrb[16].mxu1 }
 0x4f6   :  { %v3003_v4 = vpop.f32.mrb[17].mxu1  ;;  %v3016_v48 = vmax.f32 %v3001_v62, 0.0 }
 0x4f7   :  { %v3017_v14 = vmax.f32 %v3003_v4, 0.0 }
 0x4f8   :  { %v15440_v51 = vmul.f32 %v3016_v48, %v20295_v38 }
 0x4f9   :  { %v15407_v30 = vmul.f32 %v3017_v14, %v20294_v20 }
 0x4fa   :  { %v2788_v47 = vpop.f32.mrb[14].mxu0 }
 0x4fb   :  { %v3010_v18 = vmax.f32 %v2788_v47, 0.0  ;;  %v2790_v32 = vpop.f32.mrb[15].mxu0 }
 0x4fc   :  { %v3011_v3 = vmax.f32 %v2790_v32, 0.0 }
 0x4fd   :  { %v15380_v39 = vmul.f32 %v3010_v18, %v20250_v27 }
 0x4fe   :  { %v15383_v46 = vmul.f32 %v3011_v3, %v20251_v37 }
 0x4ff   :  { %v11807_v29 = vpack.i.bf16 %v15380_v39, %v15353_v8  ;;  %v11862_v57 = vpack.i.bf16 %v15380_v39, %v15407_v30 }
 0x500   :  { %v11827_v61 = vpack.i.bf16 %v15383_v46, %v15356_v22  ;;  %v11842_v59 = vpack.i.bf16 %v15397_v63, %v15383_v46 }
 0x501   :  { %11808 = vrot.lane.b32.xlu1 %v11807_v29, %s13216_s27  ;;  %11803 = vrot.lane.b32.xlu0 %v11807_v29, %s13203_s21 }
 0x505   :  { %11813 = vrot.lane.b32.xlu1 %v11807_v29, %s13204_s22  ;;  %11828 = vrot.lane.b32.xlu0 %v11827_v61, %s13216_s27 }
 0x509   :  { %11818 = vrot.lane.b32.xlu1 %v11807_v29, %s13206_s24  ;;  %11838 = vrot.lane.b32.xlu0 %v11827_v61, %s13206_s24 }
 0x50d   :  { %11823 = vrot.lane.b32.xlu1 %v11827_v61, %s13203_s21 }
 0x50e   :  { %v2930_v44 = vpop.f32.mrb[16].mxu0 }
 0x50f   :  { %v3014_v10 = vmax.f32 %v2930_v44, 0.0  ;;  %v2932_v17 = vpop.f32.mrb[17].mxu0 }
 0x510   :  { %v3015_v33 = vmax.f32 %v2932_v17, 0.0 }
 0x511   :  { %v15403_v9 = vmul.f32 %v3014_v10, %v20293_v43  ;;  %11833 = vrot.lane.b32.xlu1 %v11827_v61, %s13204_s22 }
 0x512   :  { %v15443_v58 = vmul.f32 %v3015_v33, %v20296_v26 }
 0x513   :  { %v11852_v15 = vpack.i.bf16 %v15403_v9, %v15400_v16 }
 0x514   :  { %v11922_v12 = vpack.i.bf16 %v15440_v51, %v15443_v58  ;;  %v11932_v50 = vpack.i.bf16 %v15443_v58, %v15403_v9 }
 0x515   :  { %11843 = vrot.lane.b32.xlu1 %v11842_v59, %s13212_s20  ;;  %11853 = vrot.lane.b32.xlu0 %v11852_v15, %s13212_s20 }
 0x519   :  { %11848 = vrot.lane.b32.xlu1 %v11842_v59, %s13213_s23  ;;  %11863 = vrot.lane.b32.xlu0 %v11862_v57, %s13213_s23 }
 0x51d   :  { %11858 = vrot.lane.b32.xlu1 %v11862_v57, %s13212_s20  ;;  %11873 = vrot.lane.b32.xlu0 %v11862_v57, %s13215_s26 }
 0x521   :  { %11868 = vrot.lane.b32.xlu1 %v11862_v57, %s13214_s25  ;;  %11878 = vrot.lane.b32.xlu0 %v11852_v15, %s13213_s23 }
 0x525   :  { %11883 = vrot.lane.b32.xlu1 %v11842_v59, %s13214_s25  ;;  %11888 = vrot.lane.b32.xlu0 %v11852_v15, %s13214_s25 }
 0x529   :  { %11893 = vrot.lane.b32.xlu1 %v11842_v59, %s13215_s26  ;;  %3188 = vrot.lane.b32.xlu0 %v15400_v16, %s13215_s26 }
 0x52d   :  { %11898 = vrot.lane.b32.xlu1 %v11897_v11, %s13203_s21  ;;  %3250 = vrot.lane.b32.xlu0 %v15403_v9, %s13203_s21 }
 0x531   :  { %11903 = vrot.lane.b32.xlu1 %v11897_v11, %s13216_s27  ;;  %3298 = vrot.lane.b32.xlu0 %v15403_v9, %s13216_s27 }
 0x535   :  { %11908 = vrot.lane.b32.xlu1 %v11897_v11, %s13204_s22  ;;  %3346 = vrot.lane.b32.xlu0 %v15403_v9, %s13204_s22 }
 0x539   :  { %11913 = vrot.lane.b32.xlu1 %v11897_v11, %s13206_s24  ;;  %3394 = vrot.lane.b32.xlu0 %v15403_v9, %s13206_s24 }
 0x53d   :  { %3194 = vrot.lane.b32.xlu1 %v15440_v51, %s13215_s26  ;;  %11923 = vrot.lane.b32.xlu0 %v11922_v12, %s13213_s23 }
 0x53f   :  { %v15455_v2 = vpop.permute.xlu0 %11748 }
 0x540   :  { %v20023_v0 = vunpack.i.h.bf16 %v15455_v2  ;;  %v11750_v40 = vunpack.i.l.bf16 %v15455_v2 }
 0x541   :  { %11933 = vrot.lane.b32.xlu0 %v11932_v50, %s13215_s26  ;;  %11918 = vrot.lane.b32.xlu1 %v11922_v12, %s13212_s20 }
 0x542   :  { %v15461_v49 = vpop.permute.xlu1 %11743  ;;  %v3062_v21 = vsel %vm1107_vm9, %v11750_v40, %v20023_v0 }
 0x543   :  { %v11746_v34 = vunpack.i.h.bf16 %v15461_v49  ;;  %v11745_v23 = vunpack.i.l.bf16 %v15461_v49  ;;  %v15465_v41 = vpop.permute.xlu0 %11758 }
 0x544   :  { %v20022_v36 = vunpack.i.h.bf16 %v15465_v41  ;;  %v11760_v13 = vunpack.i.l.bf16 %v15465_v41 }
 0x545   :  { %11938 = vrot.lane.b32.xlu0 %v11922_v12, %s13203_s21  ;;  %11928 = vrot.lane.b32.xlu1 %v11922_v12, %s13214_s25  ;;  %v3063_v53 = vsel %vm1107_vm9, %v11746_v34, %v11750_v40  ;;  %v3064_v47 = vsel %vm1107_vm9, %v11745_v23, %v11746_v34 }
 0x546   :  { %v15477_v60 = vpop.permute.xlu1 %11753  ;;  %v3110_v31 = vsel %vm1156_vm10, %v11760_v13, %v20022_v36 }
 0x547   :  { %v11756_v56 = vunpack.i.h.bf16 %v15477_v60  ;;  %v11755_v35 = vunpack.i.l.bf16 %v15477_v60  ;;  %v15485_v62 = vpop.permute.xlu0 %11768  ;;  %v10292_v4 = vpack.c.bf16 %v3110_v31, %v3062_v21 }
 0x548   :  { %v20020_v18 = vunpack.i.h.bf16 %v15485_v62  ;;  %v11770_v32 = vunpack.i.l.bf16 %v15485_v62 }
 0x549   :  { %11943 = vrot.lane.b32.xlu0 %v11922_v12, %s13216_s27  ;;  %3256 = vrot.lane.b32.xlu1 %v15407_v30, %s13203_s21  ;;  %v3111_v3 = vsel %vm1156_vm10, %v11756_v56, %v11760_v13  ;;  %v3112_v29 = vsel %vm1156_vm10, %v11755_v35, %v11756_v56 }
 0x54a   :  { %v15502_v61 = vpop.permute.xlu1 %11763  ;;  %10293 = vmatprep.subr.bf16.mxu1 %v10292_v4  ;;  %v10294_v7 = vpack.c.bf16 %v3111_v3, %v3063_v53  ;;  %v10272_v52 = vpack.c.bf16 %v3112_v29, %v3064_v47  ;;  %v3158_v15 = vsel %vm1205_vm11, %v11770_v32, %v20020_v18 }
 0x54b   :  { %v11766_v44 = vunpack.i.h.bf16 %v15502_v61  ;;  %v20030_v14 = vunpack.i.l.bf16 %v15502_v61  ;;  %v15506_v10 = vpop.permute.xlu0 %11778 }
 0x54c   :  { %v20019_v17 = vunpack.i.h.bf16 %v15506_v10  ;;  %v11780_v59 = vunpack.i.l.bf16 %v15506_v10  ;;  %10295 = vmatpush1.bf16.msra.mxu1 %v10294_v7  ;;  %10273 = vmatprep.subr.bf16.mxu0 %v10272_v52 }
 0x54d   :  { %11948 = vrot.lane.b32.xlu0 %v11922_v12, %s13204_s22  ;;  %3304 = vrot.lane.b32.xlu1 %v15407_v30, %s13216_s27  ;;  %v3159_v57 = vsel %vm1205_vm11, %v11766_v44, %v11770_v32  ;;  %v15531_v34 = vsel %vm1205_vm11, %v20030_v14, %v11766_v44 }
 0x54e   :  { %v15519_v11 = vpop.permute.xlu1 %11773  ;;  %v3206_v48 = vsel %vm1254_vm12, %v11780_v59, %v20019_v17 }
 0x54f   :  { %v11776_v33 = vunpack.i.h.bf16 %v15519_v11  ;;  %v20031_v50 = vunpack.i.l.bf16 %v15519_v11  ;;  %v10296_v40 = vpack.c.bf16 %v3206_v48, %v3158_v15 }
 0x551   :  { %11953 = vrot.lane.b32.xlu0 %v11922_v12, %s13206_s24  ;;  %3352 = vrot.lane.b32.xlu1 %v15407_v30, %s13204_s22  ;;  %v3207_v13 = vsel %vm1254_vm12, %v11776_v33, %v11780_v59  ;;  %v15542_v21 = vsel %vm1254_vm12, %v20031_v50, %v11776_v33  ;;  %v15548_v12 = vpop.permute.xlu0 %11788 }
 0x552   :  { %10297 = vmatprep.subr.bf16.mxu1 %v10296_v40  ;;  %v10298_v53 = vpack.c.bf16 %v3207_v13, %v3159_v57  ;;  %v15552_v4 = vpop.permute.xlu1 %11783  ;;  %v20029_v13 = vunpack.i.h.bf16 %v15548_v12  ;;  %v11790_v14 = vunpack.i.l.bf16 %v15548_v12 }
 0x553   :  { %v20032_v29 = vunpack.i.h.bf16 %v15552_v4  ;;  %v20298_v50 = vunpack.i.h.bf16 %v15552_v4 }
 0x554   :  { %10299 = vmatpush1.bf16.msra.mxu1 %v10298_v53 }
 0x555   :  { %3400 = vrot.lane.b32.xlu1 %v15407_v30, %s13206_s24  ;;  %v15550_v56 = vpop.permute.xlu0 %11793 }
 0x556   :  { %v20024_v53 = vunpack.i.h.bf16 %v15550_v56  ;;  %v11795_v27 = vunpack.i.l.bf16 %v15550_v56 }
 0x559   :  { %v15554_v47 = vpop.permute.xlu0 %11798 }
 0x55a   :  { %v20028_v36 = vunpack.i.h.bf16 %v15554_v47  ;;  %v11800_v54 = vunpack.i.l.bf16 %v15554_v47 }
 0x573   :  { %v15556_v32 = vpop.permute.xlu1 %11808  ;;  %v15558_v3 = vpop.permute.xlu0 %11803 }
 0x574   :  { %v20021_v7 = vunpack.i.h.bf16 %v15558_v3  ;;  %v11805_v52 = vunpack.i.l.bf16 %v15558_v3  ;;  %v20025_v44 = vunpack.i.h.bf16 %v15556_v32  ;;  %v11810_v59 = vunpack.i.l.bf16 %v15556_v32 }
 0x576   :  { %v3266_v15 = vsel %vm140_vm0, %v20032_v29, %v11805_v52  ;;  %v3265_v57 = vsel %vm140_vm0, %v11805_v52, %v20021_v7  ;;  %v3314_v52 = vsel %vm1363_vm13, %v20029_v13, %v11810_v59 }
 0x577   :  { %v15573_v48 = vpop.permute.xlu1 %11813  ;;  %v10300_v33 = vpack.c.bf16 %v3265_v57, %v15353_v8  ;;  %v10302_v40 = vpack.c.bf16 %v3266_v15, %v15350_v24  ;;  %v3313_v24 = vsel %vm1363_vm13, %v11810_v59, %v20025_v44 }
 0x578   :  { %v20026_v17 = vunpack.i.h.bf16 %v15573_v48  ;;  %v11815_v18 = vunpack.i.l.bf16 %v15573_v48 }
 0x579   :  { %10301 = vmatprep.subr.bf16.mxu1 %v10300_v33 }
 0x57a   :  { %v3362_v8 = vsel %vm238_vm2, %v20024_v53, %v11815_v18  ;;  %10303 = vmatpush1.bf16.msra.mxu1 %v10302_v40  ;;  %v3361_v15 = vsel %vm238_vm2, %v11815_v18, %v20026_v17  ;;  %v15602_v53 = vpop.permute.xlu0 %11828 }
 0x57b   :  { %v15597_v57 = vpop.permute.xlu1 %11818  ;;  %v10304_v33 = vpack.c.bf16 %v3361_v15, %v3313_v24  ;;  %v10306_v7 = vpack.c.bf16 %v3362_v8, %v3314_v52  ;;  %v15619_v15 = vld [vmem:[%s19933_s1 + $0x18] sm:$0xff] }
 0x57c   :  { %v20027_v0 = vunpack.i.h.bf16 %v15597_v57  ;;  %v11820_v40 = vunpack.i.l.bf16 %v15597_v57 }
 0x57d   :  { %10305 = vmatprep.subr.bf16.mxu1 %v10304_v33 }
 0x57e   :  { %v3410_v59 = vsel %vm287_vm3, %v20028_v36, %v11820_v40  ;;  %10307 = vmatpush1.bf16.msra.mxu1 %v10306_v7  ;;  %v3409_v18 = vsel %vm287_vm3, %v11820_v40, %v20027_v0  ;;  %v15621_v33 = vpop.permute.xlu0 %11838  ;;  %v11785_v36 = vunpack.i.l.bf16 %v15552_v4 }
 0x57f   :  { %v15612_v52 = vpop.permute.xlu1 %11823  ;;  %v10308_v8 = vpack.c.bf16 %v20228_v1, %v3409_v18  ;;  %v10310_v24 = vpack.c.bf16 %v20228_v1, %v3410_v59 }
 0x580   :  { %v3267_v26 = vsel %vm140_vm0, %v11785_v36, %v20298_v50  ;;  %v20307_v20 = vunpack.i.l.bf16 %v15612_v52 }
 0x581   :  { %10309 = vmatprep.subr.bf16.mxu1 %v10308_v8 }
 0x582   :  { %10311 = vmatpush1.bf16.msra.mxu1 %v10310_v24 }
 0x583   :  { %v15623_v7 = vpop.permute.xlu1 %11833 }
 0x585   :  { %9865 = vmatmul.mubr.msk.f32.vlgmr.msra.gmra.mrb[18].mxu1 %vm629_vm8, %v15619_v15 }
 0x586   :  { %3828 = vmatprep.mubr.f32.mxu1 %v20235_v28 }
 0x587   :  { %v15628_v40 = vpop.permute.xlu1 %11843  ;;  %v15630_v18 = vpop.permute.xlu0 %11853 }
 0x588   :  { %v11846_v13 = vunpack.i.h.bf16 %v15628_v40  ;;  %v20303_v50 = vunpack.i.l.bf16 %v15630_v18 }
 0x58b   :  { %v15632_v59 = vpop.permute.xlu1 %11848  ;;  %v15634_v8 = vpop.permute.xlu0 %11863 }
 0x58c   :  { %v20034_v24 = vunpack.i.l.bf16 %v15634_v8  ;;  %v11851_v31 = vunpack.i.h.bf16 %v15632_v59 }
 0x58e   :  { %v3113_v29 = vsel %vm1156_vm10, %v20034_v24, %v11755_v35  ;;  %v20301_v24 = vunpack.i.l.bf16 %v15502_v61  ;;  %v20305_v61 = vunpack.i.l.bf16 %v15628_v40 }
 0x58f   :  { %v15637_v44 = vpop.permute.xlu1 %11858  ;;  %v15639_v17 = vpop.permute.xlu0 %11873 }
 0x590   :  { %v20036_v0 = vunpack.i.l.bf16 %v15637_v44 }
 0x592   :  { %v3065_v38 = vsel %vm1107_vm9, %v20036_v0, %v11745_v23  ;;  %v20297_v23 = vunpack.i.l.bf16 %v15632_v59 }
 0x593   :  { %v15662_v43 = vpop.permute.xlu1 %11868  ;;  %v15664_v60 = vpop.permute.xlu0 %11878  ;;  %v10274_v37 = vpack.c.bf16 %v3113_v29, %v3065_v38  ;;  %v20299_v38 = vunpack.i.l.bf16 %v15519_v11  ;;  %v20300_v29 = vunpack.i.l.bf16 %v15639_v17  ;;  %v3058_v11 = vsel %vm1107_vm9, %v11846_v13, %v20303_v50 }
 0x594   :  { %v20037_v49 = vunpack.i.l.bf16 %v15662_v43  ;;  %v3107_v0 = vsel %vm1156_vm10, %v20297_v23, %v11851_v31  ;;  %v20304_v4 = vunpack.i.l.bf16 %v15664_v60 }
 0x595   :  { %10275 = vmatpush1.bf16.msra.mxu0 %v10274_v37  ;;  %v3209_v35 = vsel %vm1254_vm12, %v20300_v29, %v20299_v38  ;;  %v20302_v37 = vpack.c.bf16 %v15542_v21, %v15531_v34  ;;  %v3059_v29 = vsel %vm1107_vm9, %v20305_v61, %v11846_v13  ;;  %v10280_v13 = vpack.c.bf16 %v3267_v26, %v15361_v45 }
 0x596   :  { %v3161_v23 = vsel %vm1205_vm11, %v20037_v49, %v20301_v24  ;;  %v3106_v38 = vsel %vm1156_vm10, %v11851_v31, %v20304_v4  ;;  %v3268_v31 = vsel %vm140_vm0, %v20307_v20, %v11785_v36  ;;  %v20041_v4 = vunpack.i.l.bf16 %v15623_v7 }
 0x597   :  { %10277 = vmatprep.subr.bf16.mxu0 %v20302_v37  ;;  %v15705_v24 = vpop.permute.xlu1 %11883  ;;  %v15707_v49 = vpop.permute.xlu0 %11888  ;;  %v10278_v34 = vpack.c.bf16 %v3209_v35, %v3161_v23  ;;  %v10332_v21 = vpack.c.bf16 %v3106_v38, %v3058_v11  ;;  %v20306_v37 = vunpack.i.h.bf16 %v15548_v12  ;;  %v10334_v61 = vpack.c.bf16 %v3107_v0, %v3059_v29 }
 0x598   :  { %v11830_v35 = vunpack.i.l.bf16 %v15602_v53  ;;  %v20040_v23 = vunpack.i.l.bf16 %v15621_v33  ;;  %v20308_v12 = vunpack.i.h.bf16 %v15550_v56  ;;  %v11886_v20 = vunpack.i.h.bf16 %v15705_v24 }
 0x599   :  { %v3315_v50 = vsel %vm1363_vm13, %v11790_v14, %v20306_v37  ;;  %10279 = vmatpush1.bf16.msra.mxu0 %v10278_v34  ;;  %10333 = vmatprep.subr.bf16.mxu1 %v10332_v21  ;;  %v11885_v36 = vunpack.i.l.bf16 %v15705_v24  ;;  %v11890_v45 = vunpack.i.l.bf16 %v15707_v49  ;;  %v10282_v38 = vpack.c.bf16 %v3268_v31, %v15356_v22 }
 0x59a   :  { %v3363_v11 = vsel %vm238_vm2, %v11795_v27, %v20308_v12  ;;  %10281 = vmatprep.subr.bf16.mxu0 %v10280_v13  ;;  %10335 = vmatpush1.bf16.msra.mxu1 %v10334_v61  ;;  %v3364_v56 = vsel %vm238_vm2, %v20041_v4, %v11795_v27  ;;  %v3316_v24 = vsel %vm1363_vm13, %v11830_v35, %v11790_v14  ;;  %v11861_v22 = vunpack.i.h.bf16 %v15637_v44 }
 0x59b   :  { %v11894_v26 = vpop.permute.xlu1 %11893  ;;  %v15729_v0 = vpop.permute.xlu0 %3188  ;;  %v10284_v21 = vpack.c.bf16 %v3363_v11, %v3315_v50  ;;  %v3412_v37 = vsel %vm287_vm3, %v20040_v23, %v11800_v54  ;;  %v20309_v31 = vunpack.i.h.bf16 %v15554_v47  ;;  %v3155_v50 = vsel %vm1205_vm11, %v11885_v36, %v11886_v20 }
 0x59c   :  { %v11896_v29 = vunpack.i.h.bf16 %v11894_v26  ;;  %v11895_v34 = vunpack.i.l.bf16 %v11894_v26  ;;  %v3154_v61 = vsel %vm1205_vm11, %v11886_v20, %v11890_v45  ;;  %v11866_v47 = vunpack.i.h.bf16 %v15634_v8 }
 0x59d   :  { %10283 = vmatpush1.bf16.msra.mxu0 %v10282_v38  ;;  %v3411_v27 = vsel %vm287_vm3, %v11800_v54, %v20309_v31  ;;  %v10286_v11 = vpack.c.bf16 %v3364_v56, %v3316_v24  ;;  %v10290_v24 = vpack.c.bf16 %v20228_v1, %v3412_v37  ;;  %v11871_v37 = vunpack.i.h.bf16 %v15662_v43 }
 0x59e   :  { %v3203_v13 = vsel %vm1254_vm12, %v11895_v34, %v11896_v29  ;;  %v3202_v14 = vsel %vm1254_vm12, %v11896_v29, %v15729_v0  ;;  %10285 = vmatprep.subr.bf16.mxu0 %v10284_v21  ;;  %v10288_v4 = vpack.c.bf16 %v20228_v1, %v3411_v27  ;;  %v20310_v29 = vunpack.i.l.bf16 %v15628_v40 }
 0x59f   :  { %v11899_v12 = vpop.permute.xlu1 %11898  ;;  %v15761_v54 = vpop.permute.xlu0 %3250  ;;  %v10336_v26 = vpack.c.bf16 %v3202_v14, %v3154_v61  ;;  %v10338_v38 = vpack.c.bf16 %v3203_v13, %v3155_v50  ;;  %v11876_v27 = vunpack.i.h.bf16 %v15639_v17  ;;  %v20311_v14 = vunpack.i.l.bf16 %v15632_v59 }
 0x5a0   :  { %v11901_v31 = vunpack.i.h.bf16 %v11899_v12  ;;  %v11900_v23 = vunpack.i.l.bf16 %v11899_v12  ;;  %v3060_v21 = vsel %vm1107_vm9, %v11861_v22, %v20310_v29  ;;  %v20313_v59 = vunpack.i.h.bf16 %v15465_v41 }
 0x5a1   :  { %10287 = vmatpush1.bf16.msra.mxu0 %v10286_v11  ;;  %10337 = vmatprep.subr.bf16.mxu1 %v10336_v26  ;;  %v3108_v61 = vsel %vm1156_vm10, %v11866_v47, %v20311_v14  ;;  %v20312_v11 = vunpack.i.h.bf16 %v15455_v2  ;;  %v11826_v2 = vunpack.i.h.bf16 %v15612_v52 }
 0x5a2   :  { %v3262_v20 = vsel %vm140_vm0, %v11900_v23, %v11901_v31  ;;  %v3261_v56 = vsel %vm140_vm0, %v11901_v31, %v15761_v54  ;;  %10289 = vmatprep.subr.bf16.mxu0 %v10288_v4  ;;  %10339 = vmatpush1.bf16.msra.mxu1 %v10338_v38  ;;  %v10312_v26 = vpack.c.bf16 %v3108_v61, %v3060_v21 }
 0x5a3   :  { %v11904_v50 = vpop.permute.xlu1 %11903  ;;  %v15775_v13 = vpop.permute.xlu0 %3298  ;;  %v10340_v40 = vpack.c.bf16 %v3261_v56, %v15400_v16  ;;  %v10342_v12 = vpack.c.bf16 %v3262_v20, %v15397_v63  ;;  %v3061_v4 = vsel %vm1107_vm9, %v20312_v11, %v11861_v22  ;;  %v3204_v16 = vsel %vm1254_vm12, %v11876_v27, %v11895_v34 }
 0x5a4   :  { %v3109_v38 = vsel %vm1156_vm10, %v20313_v59, %v11866_v47  ;;  %v11906_v31 = vunpack.i.h.bf16 %v11904_v50  ;;  %v11905_v63 = vunpack.i.l.bf16 %v11904_v50  ;;  %v3156_v20 = vsel %vm1205_vm11, %v11871_v37, %v11885_v36 }
 0x5a5   :  { %10291 = vmatpush1.bf16.msra.mxu0 %v10290_v24  ;;  %10341 = vmatprep.subr.bf16.mxu1 %v10340_v40  ;;  %v10314_v21 = vpack.c.bf16 %v3109_v38, %v3061_v4  ;;  %v20314_v34 = vunpack.i.h.bf16 %v15485_v62  ;;  %v10316_v24 = vpack.c.bf16 %v3204_v16, %v3156_v20  ;;  %v11841_v50 = vunpack.i.h.bf16 %v15621_v33 }
 0x5a6   :  { %10313 = vmatprep.subr.bf16.mxu0 %v10312_v26  ;;  %10343 = vmatpush1.bf16.msra.mxu1 %v10342_v12  ;;  %v20315_v40 = vunpack.i.h.bf16 %v15506_v10  ;;  %v3263_v62 = vsel %vm140_vm0, %v11826_v2, %v11900_v23  ;;  %v3310_v36 = vsel %vm1363_vm13, %v11905_v63, %v11906_v31  ;;  %v3309_v61 = vsel %vm1363_vm13, %v11906_v31, %v15775_v13 }
 0x5a7   :  { %v11909_v22 = vpop.permute.xlu1 %11908  ;;  %v15795_v29 = vpop.permute.xlu0 %3346  ;;  %v3157_v41 = vsel %vm1205_vm11, %v20314_v34, %v11871_v37  ;;  %v20316_v16 = vunpack.i.h.bf16 %v15558_v3 }
 0x5a8   :  { %v11911_v56 = vunpack.i.h.bf16 %v11909_v22  ;;  %v11910_v47 = vunpack.i.l.bf16 %v11909_v22  ;;  %9864 = vmatmul.mubr.msk.f32.vlgmr.msra.gmra.mrb[18].mxu0 %vm629_vm8, %v15619_v15  ;;  %v3205_v14 = vsel %vm1254_vm12, %v20315_v40, %v11876_v27  ;;  %v11836_v27 = vunpack.i.h.bf16 %v15623_v7 }
 0x5a9   :  { %10315 = vmatpush1.bf16.msra.mxu0 %v10314_v21  ;;  %3757 = vmatprep.mubr.f32.mxu0 %v20235_v28  ;;  %v10318_v4 = vpack.c.bf16 %v3205_v14, %v3157_v41  ;;  %v3264_v59 = vsel %vm140_vm0, %v20316_v16, %v11826_v2  ;;  %v10320_v22 = vpack.c.bf16 %v3263_v62, %v15383_v46  ;;  %v11831_v21 = vunpack.i.h.bf16 %v15602_v53 }
 0x5aa   :  { %v3358_v12 = vsel %vm238_vm2, %v11910_v47, %v11911_v56  ;;  %v3357_v10 = vsel %vm238_vm2, %v11911_v56, %v15795_v29  ;;  %10317 = vmatprep.subr.bf16.mxu0 %v10316_v24  ;;  %v3359_v20 = vsel %vm238_vm2, %v11836_v27, %v11910_v47  ;;  %v10322_v46 = vpack.c.bf16 %v3264_v59, %v15380_v39 }
 0x5ab   :  { %v11914_v23 = vpop.permute.xlu1 %11913  ;;  %v15824_v11 = vpop.permute.xlu0 %3394  ;;  %v10344_v37 = vpack.c.bf16 %v3357_v10, %v3309_v61  ;;  %v10346_v26 = vpack.c.bf16 %v3358_v12, %v3310_v36  ;;  %v3311_v24 = vsel %vm1363_vm13, %v11831_v21, %v11905_v63  ;;  %v20317_v40 = vunpack.i.h.bf16 %v15597_v57 }
 0x5ac   :  { %v11916_v38 = vunpack.i.h.bf16 %v11914_v23  ;;  %v11915_v31 = vunpack.i.l.bf16 %v11914_v23  ;;  %v20318_v62 = vunpack.i.h.bf16 %v15573_v48  ;;  %v11856_v61 = vunpack.i.h.bf16 %v15630_v18 }
 0x5ad   :  { %10319 = vmatpush1.bf16.msra.mxu0 %v10318_v4  ;;  %10345 = vmatprep.subr.bf16.mxu1 %v10344_v37  ;;  %v3408_v14 = vsel %vm287_vm3, %v20317_v40, %v11841_v50  ;;  %v10324_v39 = vpack.c.bf16 %v3359_v20, %v3311_v24  ;;  %v11881_v12 = vunpack.i.h.bf16 %v15664_v60  ;;  %v20319_v63 = vunpack.i.h.bf16 %v15556_v32 }
 0x5ae   :  { %v3406_v34 = vsel %vm287_vm3, %v11915_v31, %v11916_v38  ;;  %v3405_v3 = vsel %vm287_vm3, %v11916_v38, %v15824_v11  ;;  %10321 = vmatprep.subr.bf16.mxu0 %v10320_v22  ;;  %10347 = vmatpush1.bf16.msra.mxu1 %v10346_v26  ;;  %v3360_v36 = vsel %vm238_vm2, %v20318_v62, %v11836_v27  ;;  %v20320_v22 = vunpack.i.l.bf16 %v15630_v18 }
 0x5af   :  { %v3195_v2 = vpop.permute.xlu1 %3194  ;;  %v11924_v41 = vpop.permute.xlu0 %11923  ;;  %v10348_v56 = vpack.c.bf16 %v20228_v1, %v3405_v3  ;;  %v10350_v47 = vpack.c.bf16 %v20228_v1, %v3406_v34  ;;  %v3407_v57 = vsel %vm287_vm3, %v11841_v50, %v11915_v31  ;;  %v3312_v48 = vsel %vm1363_vm13, %v20319_v63, %v11831_v21 }
 0x5b0   :  { %v11926_v10 = vunpack.i.h.bf16 %v11924_v41  ;;  %v11925_v23 = vunpack.i.l.bf16 %v11924_v41  ;;  %v10326_v37 = vpack.c.bf16 %v3360_v36, %v3312_v48  ;;  %v10328_v59 = vpack.c.bf16 %v20228_v1, %v3407_v57 }
 0x5b1   :  { %10323 = vmatpush1.bf16.msra.mxu0 %v10322_v46  ;;  %10349 = vmatprep.subr.bf16.mxu1 %v10348_v56  ;;  %v10330_v38 = vpack.c.bf16 %v20228_v1, %v3408_v14  ;;  %v3057_v50 = vsel %vm1107_vm9, %v20320_v22, %v11856_v61  ;;  %v20321_v32 = vunpack.i.l.bf16 %v15664_v60  ;;  %v20322_v3 = vunpack.i.l.bf16 %v15637_v44 }
 0x5b2   :  { %10325 = vmatprep.subr.bf16.mxu0 %v10324_v39  ;;  %10351 = vmatpush1.bf16.msra.mxu1 %v10350_v47  ;;  %v3103_v21 = vsel %vm1156_vm10, %v11925_v23, %v11926_v10  ;;  %v20323_v41 = vunpack.i.l.bf16 %v15634_v8  ;;  %v11891_v56 = vunpack.i.h.bf16 %v15707_v49  ;;  %v20324_v44 = vunpack.i.l.bf16 %v15639_v17 }
 0x5b3   :  { %v11934_v27 = vpop.permute.xlu0 %11933  ;;  %v11919_v4 = vpop.permute.xlu1 %11918  ;;  %v3105_v31 = vsel %vm1156_vm10, %v20321_v32, %v11881_v12  ;;  %v20325_v17 = vunpack.i.l.bf16 %v15662_v43  ;;  %v20326_v22 = vunpack.i.l.bf16 %v15612_v52 }
 0x5b4   :  { %v11921_v26 = vunpack.i.h.bf16 %v11919_v4  ;;  %v11920_v16 = vunpack.i.l.bf16 %v11919_v4  ;;  %v11936_v20 = vunpack.i.h.bf16 %v11934_v27  ;;  %v11935_v34 = vunpack.i.l.bf16 %v11934_v27 }
 0x5b5   :  { %10327 = vmatpush1.bf16.msra.mxu0 %v10326_v37  ;;  %9867 = vmatmul.mubr.msk.f32.vlgmr.msra.gmra.mrb[20].mxu1 %vm629_vm8, %v15619_v15  ;;  %v3102_v46 = vsel %vm1156_vm10, %v11926_v10, %v20323_v41  ;;  %v3198_v36 = vsel %vm1254_vm12, %v3195_v2, %v20324_v44  ;;  %v3104_v10 = vsel %vm1156_vm10, %v11881_v12, %v11925_v23 }
 0x5b6   :  { %v3055_v18 = vsel %vm1107_vm9, %v11920_v16, %v11921_v26  ;;  %10329 = vmatprep.subr.bf16.mxu0 %v10328_v59  ;;  %v3054_v60 = vsel %vm1107_vm9, %v11921_v26, %v20322_v3  ;;  %v3056_v14 = vsel %vm1107_vm9, %v11856_v61, %v11920_v16  ;;  %3970 = vmatprep.mubr.f32.mxu1 %v20235_v28 }
 0x5b7   :  { %v11939_v24 = vpop.permute.xlu0 %11938  ;;  %v11929_v47 = vpop.permute.xlu1 %11928  ;;  %v10372_v40 = vpack.c.bf16 %v3102_v46, %v3054_v60  ;;  %v10374_v62 = vpack.c.bf16 %v3103_v21, %v3055_v18  ;;  %v3199_v57 = vsel %vm1254_vm12, %v11936_v20, %v3195_v2  ;;  %v10352_v61 = vpack.c.bf16 %v3104_v10, %v3056_v14 }
 0x5b8   :  { %v11931_v8 = vunpack.i.h.bf16 %v11929_v47  ;;  %v11930_v39 = vunpack.i.l.bf16 %v11929_v47  ;;  %v11941_v63 = vunpack.i.h.bf16 %v11939_v24  ;;  %v11940_v48 = vunpack.i.l.bf16 %v11939_v24 }
 0x5b9   :  { %10331 = vmatpush1.bf16.msra.mxu0 %v10330_v38  ;;  %10373 = vmatprep.subr.bf16.mxu1 %v10372_v40  ;;  %v3200_v2 = vsel %vm1254_vm12, %v11935_v34, %v11936_v20  ;;  %v10354_v26 = vpack.c.bf16 %v3105_v31, %v3057_v50  ;;  %v3201_v43 = vsel %vm1254_vm12, %v15729_v0, %v11935_v34 }
 0x5ba   :  { %v3151_v27 = vsel %vm1205_vm11, %v11930_v39, %v11931_v8  ;;  %10375 = vmatpush1.bf16.msra.mxu1 %v10374_v62  ;;  %v3150_v4 = vsel %vm1205_vm11, %v11931_v8, %v20325_v17  ;;  %v3152_v12 = vsel %vm1205_vm11, %v11891_v56, %v11930_v39  ;;  %10353 = vmatprep.subr.bf16.mxu0 %v10352_v61  ;;  %v20328_v61 = vunpack.i.l.bf16 %v15621_v33 }
 0x5bb   :  { %v11944_v23 = vpop.permute.xlu0 %11943  ;;  %v3257_v37 = vpop.permute.xlu1 %3256  ;;  %v10376_v16 = vpack.c.bf16 %v3198_v36, %v3150_v4  ;;  %v10356_v59 = vpack.c.bf16 %v3200_v2, %v3152_v12  ;;  %v10378_v38 = vpack.c.bf16 %v3199_v57, %v3151_v27  ;;  %v3259_v31 = vsel %vm140_vm0, %v11940_v48, %v11941_v63 }
 0x5bc   :  { %v3269_v32 = vsel %vm140_vm0, %v3257_v37, %v20326_v22  ;;  %9866 = vmatmul.mubr.msk.f32.vlgmr.msra.gmra.mrb[20].mxu0 %vm629_vm8, %v15619_v15  ;;  %v3258_v21 = vsel %vm140_vm0, %v11941_v63, %v3257_v37  ;;  %v3153_v52 = vsel %vm1205_vm11, %v11890_v45, %v11891_v56  ;;  %v11946_v0 = vunpack.i.h.bf16 %v11944_v23 }
 0x5bd   :  { %10355 = vmatpush1.bf16.msra.mxu0 %v10354_v26  ;;  %10377 = vmatprep.subr.bf16.mxu1 %v10376_v16  ;;  %v10380_v50 = vpack.c.bf16 %v3269_v32, %v15407_v30  ;;  %v11945_v20 = vunpack.i.l.bf16 %v11944_v23  ;;  %v3260_v34 = vsel %vm140_vm0, %v15761_v54, %v11940_v48  ;;  %v10358_v30 = vpack.c.bf16 %v3201_v43, %v3153_v52 }
 0x5be   :  { %10357 = vmatprep.subr.bf16.mxu0 %v10356_v59  ;;  %10379 = vmatpush1.bf16.msra.mxu1 %v10378_v38  ;;  %v10382_v60 = vpack.c.bf16 %v3258_v21, %v15440_v51  ;;  %v10360_v45 = vpack.c.bf16 %v3259_v31, %v15443_v58  ;;  %v10362_v46 = vpack.c.bf16 %v3260_v34, %v15403_v9  ;;  %v20327_v36 = vunpack.i.l.bf16 %v15623_v7 }
 0x5bf   :  { %v11949_v18 = vpop.permute.xlu0 %11948  ;;  %v3305_v3 = vpop.permute.xlu1 %3304  ;;  %10381 = vmatprep.subr.bf16.mxu1 %v10380_v50  ;;  %3899 = vmatprep.mubr.f32.mxu0 %v20235_v28  ;;  %v3307_v54 = vsel %vm1363_vm13, %v11945_v20, %v11946_v0  ;;  %v3308_v53 = vsel %vm1363_vm13, %v15775_v13, %v11945_v20 }
 0x5c0   :  { %v11951_v49 = vunpack.i.h.bf16 %v11949_v18  ;;  %v11950_v41 = vunpack.i.l.bf16 %v11949_v18  ;;  %v3306_v51 = vsel %vm1363_vm13, %v11946_v0, %v3305_v3  ;;  %v3317_v58 = vsel %vm1363_vm13, %v3305_v3, %v11830_v35  ;;  %v20329_v3 = vld [vmem:[#allocation3_spill] sm:$0xff] }
 0x5c1   :  { %10359 = vmatpush1.bf16.msra.mxu0 %v10358_v30 }
 0x5c2   :  { %10361 = vmatprep.subr.bf16.mxu0 %v10360_v45  ;;  %10383 = vmatpush1.bf16.msra.mxu1 %v10382_v60  ;;  %v3355_v56 = vsel %vm238_vm2, %v11950_v41, %v11951_v49  ;;  %v3356_v24 = vsel %vm238_vm2, %v15795_v29, %v11950_v41 }
 0x5c3   :  { %v11954_v47 = vpop.permute.xlu0 %11953  ;;  %v3353_v9 = vpop.permute.xlu1 %3352  ;;  %v10364_v40 = vpack.c.bf16 %v3355_v56, %v3307_v54  ;;  %v10366_v57 = vpack.c.bf16 %v3356_v24, %v3308_v53  ;;  %v20330_v56 = vld [vmem:[#allocation8_spill] sm:$0xff] }
 0x5c4   :  { %v11956_v14 = vunpack.i.h.bf16 %v11954_v47  ;;  %v11955_v62 = vunpack.i.l.bf16 %v11954_v47  ;;  %v3354_v44 = vsel %vm238_vm2, %v11951_v49, %v3353_v9  ;;  %v3365_v29 = vsel %vm238_vm2, %v3353_v9, %v20327_v36  ;;  %v20331_v47 = vld [vmem:[#allocation4_spill] sm:$0xff] }
 0x5c5   :  { %v10386_v8 = vpack.c.bf16 %v3354_v44, %v3306_v51  ;;  %10363 = vmatpush1.bf16.msra.mxu0 %v10362_v46  ;;  %v10384_v39 = vpack.c.bf16 %v3365_v29, %v3317_v58 }
 0x5c6   :  { %10365 = vmatprep.subr.bf16.mxu0 %v10364_v40  ;;  %v3403_v35 = vsel %vm287_vm3, %v11955_v62, %v11956_v14  ;;  %v3404_v7 = vsel %vm287_vm3, %v15824_v11, %v11955_v62  ;;  %v20332_v62 = vld [vmem:[#allocation5_spill] sm:$0xff] }
 0x5c7   :  { %v3401_v10 = vpop.permute.xlu1 %3400  ;;  %10385 = vmatprep.subr.bf16.mxu1 %v10384_v39  ;;  %v10368_v63 = vpack.c.bf16 %v20228_v1, %v3403_v35  ;;  %v10370_v4 = vpack.c.bf16 %v20228_v1, %v3404_v7  ;;  %v20335_v7 = vld [vmem:[#allocation9_spill] sm:$0xff] }
 0x5c8   :  { %v3402_v48 = vsel %vm287_vm3, %v11956_v14, %v3401_v10  ;;  %v3413_v13 = vsel %vm287_vm3, %v3401_v10, %v20328_v61  ;;  %10387 = vmatpush1.bf16.msra.mxu1 %v10386_v8  ;;  %v20333_v8 = vld [vmem:[#allocation7_spill] sm:$0xff] }
 0x5c9   :  { %v10390_v27 = vpack.c.bf16 %v20228_v1, %v3402_v48  ;;  %10367 = vmatpush1.bf16.msra.mxu0 %v10366_v57  ;;  %v10388_v17 = vpack.c.bf16 %v20228_v1, %v3413_v13  ;;  %v20334_v57 = vld [vmem:[#allocation10_spill] sm:$0xff] }
 0x5ca   :  { %10369 = vmatprep.subr.bf16.mxu0 %v10368_v63 }
 0x5cb   :  { %10389 = vmatprep.subr.bf16.mxu1 %v10388_v17 }
 0x5cc   :  { %10391 = vmatpush1.bf16.msra.mxu1 %v10390_v27 }
 0x5cd   :  { %10371 = vmatpush1.bf16.msra.mxu0 %v10370_v4 }
 0x5cf   :  { %9869 = vmatmul.mubr.msk.f32.vlgmr.msra.gmra.mrb[22].mxu1 %vm629_vm8, %v15619_v15 }
 0x5d0   :  { %9868 = vmatmul.mubr.msk.f32.vlgmr.msra.gmra.mrb[22].mxu0 %vm629_vm8, %v15619_v15  ;;  %4657 = vmatprep.mubr.f32.mxu1 %v20235_v28 }
 0x5d1   :  { %4586 = vmatprep.mubr.f32.mxu0 %v20235_v28 }
 0x658   :  { %v3688_v33 = vpop.f32.mrb[18].mxu1 }
 0x659   :  { %v3979_v11 = vmax.f32 %v3688_v33, 0.0  ;;  %v3690_v12 = vpop.f32.mrb[19].mxu1 }
 0x65a   :  { %v3980_v2 = vmax.f32 %v3690_v12, 0.0 }
 0x65b   :  { %v15975_v23 = vmul.f32 %v3979_v11, %v13996_v6 }
 0x65c   :  { %v15978_v37 = vmul.f32 %v3980_v2, %v14001_v42 }
 0x65e   :  { %v11957_v26 = vpack.i.bf16 %v15978_v37, %v15975_v23 }
 0x660   :  { %11958 = vrot.lane.b32.xlu0 %v11957_v26, %s13212_s20  ;;  %11963 = vrot.lane.b32.xlu1 %v11957_v26, %s13213_s23 }
 0x664   :  { %11968 = vrot.lane.b32.xlu0 %v11957_v26, %s13214_s25  ;;  %11973 = vrot.lane.b32.xlu1 %v11957_v26, %s13215_s26 }
 0x67b   :  { %v3617_v15 = vpop.f32.mrb[18].mxu0 }
 0x67c   :  { %v3619_v16 = vpop.f32.mrb[19].mxu0  ;;  %v3977_v18 = vmax.f32 %v3617_v15, 0.0 }
 0x67d   :  { %v3978_v38 = vmax.f32 %v3619_v16, 0.0 }
 0x67e   :  { %v16007_v30 = vmul.f32 %v3977_v18, %v20329_v3 }
 0x67f   :  { %v15993_v31 = vmul.f32 %v3978_v38, %v14023_v5 }
 0x681   :  { %v12017_v49 = vpack.i.bf16 %v16007_v30, %v15993_v31 }
 0x688   :  { %v3830_v59 = vpop.f32.mrb[20].mxu1 }
 0x689   :  { %v3983_v43 = vmax.f32 %v3830_v59, 0.0  ;;  %v3832_v22 = vpop.f32.mrb[21].mxu1 }
 0x68a   :  { %v3984_v32 = vmax.f32 %v3832_v22, 0.0 }
 0x68b   :  { %v15987_v21 = vmul.f32 %v3983_v43, %v14072_v55 }
 0x68c   :  { %v15990_v50 = vmul.f32 %v3984_v32, %v14078_v25 }
 0x68d   :  { %v11997_v34 = vpack.i.bf16 %v15987_v21, %v15993_v31 }
 0x68e   :  { %v11982_v52 = vpack.i.bf16 %v15990_v50, %v15975_v23 }
 0x68f   :  { %v3759_v0 = vpop.f32.mrb[20].mxu0 }
 0x690   :  { %v3761_v20 = vpop.f32.mrb[21].mxu0  ;;  %11983 = vrot.lane.b32.xlu0 %v11982_v52, %s13216_s27  ;;  %11978 = vrot.lane.b32.xlu1 %v11982_v52, %s13203_s21  ;;  %v3981_v51 = vmax.f32 %v3759_v0, 0.0 }
 0x691   :  { %v3982_v40 = vmax.f32 %v3761_v20, 0.0 }
 0x692   :  { %v16021_v9 = vmul.f32 %v3981_v51, %v20331_v47 }
 0x693   :  { %v16030_v44 = vmul.f32 %v3982_v40, %v20332_v62 }
 0x694   :  { %11998 = vrot.lane.b32.xlu0 %v11997_v34, %s13212_s20  ;;  %11988 = vrot.lane.b32.xlu1 %v11982_v52, %s13204_s22  ;;  %v12052_v14 = vpack.i.bf16 %v16021_v9, %v15978_v37 }
 0x695   :  { %v12077_v36 = vpack.i.bf16 %v16030_v44, %v15990_v50 }
 0x698   :  { %12008 = vrot.lane.b32.xlu0 %v11997_v34, %s13214_s25  ;;  %11993 = vrot.lane.b32.xlu1 %v11982_v52, %s13206_s24 }
 0x69c   :  { %12003 = vrot.lane.b32.xlu1 %v11997_v34, %s13213_s23 }
 0x6a0   :  { %12013 = vrot.lane.b32.xlu1 %v11997_v34, %s13215_s26 }
 0x6a2   :  { %v3972_v60 = vpop.f32.mrb[22].mxu1 }
 0x6a3   :  { %v3901_v41 = vpop.f32.mrb[22].mxu0  ;;  %v3974_v45 = vpop.f32.mrb[23].mxu1  ;;  %v3987_v10 = vmax.f32 %v3972_v60, 0.0 }
 0x6a4   :  { %v3988_v46 = vmax.f32 %v3974_v45, 0.0  ;;  %12018 = vrot.lane.b32.xlu1 %v12017_v49, %s13203_s21  ;;  %v3903_v54 = vpop.f32.mrb[23].mxu0  ;;  %v3985_v29 = vmax.f32 %v3901_v41, 0.0 }
 0x6a5   :  { %v3986_v53 = vmax.f32 %v3903_v54, 0.0  ;;  %v16053_v48 = vmul.f32 %v3987_v10, %v20335_v7 }
 0x6a6   :  { %v16014_v24 = vmul.f32 %v3988_v46, %v20330_v56  ;;  %v16041_v39 = vmul.f32 %v3985_v29, %v20333_v8 }
 0x6a7   :  { %v16050_v63 = vmul.f32 %v3986_v53, %v20334_v57 }
 0x6a8   :  { %v12027_v58 = vpack.i.bf16 %v16014_v24, %v16007_v30  ;;  %v12102_v35 = vpack.i.bf16 %v15987_v21, %v16041_v39  ;;  %v12107_v13 = vpack.i.bf16 %v16053_v48, %v16014_v24 }
 0x6a9   :  { %v12122_v61 = vpack.i.bf16 %v16050_v63, %v16053_v48 }
 0x6aa   :  { %12028 = vrot.lane.b32.xlu1 %v12027_v58, %s13213_s23  ;;  %12023 = vrot.lane.b32.xlu0 %v12027_v58, %s13212_s20 }
 0x6ae   :  { %12033 = vrot.lane.b32.xlu1 %v12027_v58, %s13214_s25  ;;  %12038 = vrot.lane.b32.xlu0 %v12027_v58, %s13215_s26 }
 0x6b2   :  { %12053 = vrot.lane.b32.xlu1 %v12052_v14, %s13204_s22  ;;  %12043 = vrot.lane.b32.xlu0 %v12052_v14, %s13203_s21 }
 0x6b6   :  { %12058 = vrot.lane.b32.xlu1 %v12017_v49, %s13216_s27  ;;  %12048 = vrot.lane.b32.xlu0 %v12052_v14, %s13216_s27 }
 0x6ba   :  { %12078 = vrot.lane.b32.xlu1 %v12077_v36, %s13213_s23  ;;  %12063 = vrot.lane.b32.xlu0 %v12017_v49, %s13204_s22 }
 0x6be   :  { %12088 = vrot.lane.b32.xlu1 %v12077_v36, %s13215_s26  ;;  %12068 = vrot.lane.b32.xlu0 %v12052_v14, %s13206_s24 }
 0x6c2   :  { %12093 = vrot.lane.b32.xlu1 %v12017_v49, %s13206_s24  ;;  %12073 = vrot.lane.b32.xlu0 %v12077_v36, %s13212_s20 }
 0x6c6   :  { %12103 = vrot.lane.b32.xlu1 %v12102_v35, %s13216_s27  ;;  %12083 = vrot.lane.b32.xlu0 %v12077_v36, %s13214_s25 }
 0x6ca   :  { %4057 = vrot.lane.b32.xlu1 %v16021_v9, %s13213_s23  ;;  %4009 = vrot.lane.b32.xlu0 %v16021_v9, %s13212_s20 }
 0x6ce   :  { %12123 = vrot.lane.b32.xlu1 %v12122_v61, %s13212_s20  ;;  %12098 = vrot.lane.b32.xlu0 %v12102_v35, %s13203_s21 }
 0x6d2   :  { %12133 = vrot.lane.b32.xlu1 %v12122_v61, %s13214_s25  ;;  %12108 = vrot.lane.b32.xlu0 %v12107_v13, %s13203_s21  ;;  %v16067_v27 = vpop.permute.xlu0 %11958  ;;  %v16069_v17 = vpop.permute.xlu1 %11963 }
 0x6d3   :  { %v20046_v4 = vunpack.i.h.bf16 %v16067_v27  ;;  %v11960_v33 = vunpack.i.l.bf16 %v16067_v27  ;;  %v20048_v11 = vunpack.i.h.bf16 %v16069_v17  ;;  %v11965_v12 = vunpack.i.l.bf16 %v16069_v17 }
 0x6d5   :  { %v4033_v2 = vsel %vm1107_vm9, %v11960_v33, %v20046_v4  ;;  %v4081_v26 = vsel %vm1156_vm10, %v11965_v12, %v20048_v11 }
 0x6d6   :  { %4105 = vrot.lane.b32.xlu1 %v16021_v9, %s13214_s25  ;;  %12113 = vrot.lane.b32.xlu0 %v12102_v35, %s13204_s22  ;;  %v10412_v15 = vpack.c.bf16 %v4081_v26, %v4033_v2  ;;  %v16114_v16 = vpop.permute.xlu0 %11968  ;;  %v16116_v59 = vpop.permute.xlu1 %11973 }
 0x6d7   :  { %v20043_v0 = vunpack.i.h.bf16 %v16114_v16  ;;  %v11970_v20 = vunpack.i.l.bf16 %v16114_v16  ;;  %v20042_v34 = vunpack.i.h.bf16 %v16116_v59  ;;  %v11975_v18 = vunpack.i.l.bf16 %v16116_v59 }
 0x6d8   :  { %10413 = vmatprep.subr.bf16.mxu1 %v10412_v15 }
 0x6d9   :  { %v4129_v46 = vsel %vm1205_vm11, %v11970_v20, %v20043_v0  ;;  %v4177_v54 = vsel %vm1254_vm12, %v11975_v18, %v20042_v34 }
 0x6da   :  { %12143 = vrot.lane.b32.xlu1 %v12107_v13, %s13216_s27  ;;  %12118 = vrot.lane.b32.xlu0 %v12102_v35, %s13206_s24  ;;  %v10416_v53 = vpack.c.bf16 %v4177_v54, %v4129_v46 }
 0x6de   :  { %4215 = vrot.lane.b32.xlu1 %v16030_v44, %s13203_s21  ;;  %12128 = vrot.lane.b32.xlu0 %v12122_v61, %s13213_s23 }
 0x6e2   :  { %4263 = vrot.lane.b32.xlu1 %v16030_v44, %s13216_s27  ;;  %12138 = vrot.lane.b32.xlu0 %v12122_v61, %s13215_s26 }
 0x6e6   :  { %4359 = vrot.lane.b32.xlu1 %v16030_v44, %s13206_s24  ;;  %4153 = vrot.lane.b32.xlu0 %v16021_v9, %s13215_s26 }
 0x6ea   :  { %4065 = vrot.lane.b32.xlu1 %v16041_v39, %s13213_s23  ;;  %12148 = vrot.lane.b32.xlu0 %v12107_v13, %s13204_s22 }
 0x6ee   :  { %4161 = vrot.lane.b32.xlu1 %v16041_v39, %s13215_s26  ;;  %12153 = vrot.lane.b32.xlu0 %v12107_v13, %s13206_s24 }
 0x6f2   :  { %4271 = vrot.lane.b32.xlu1 %v16050_v63, %s13216_s27  ;;  %4311 = vrot.lane.b32.xlu0 %v16030_v44, %s13204_s22 }
 0x6f6   :  { %4367 = vrot.lane.b32.xlu1 %v16050_v63, %s13206_s24  ;;  %4017 = vrot.lane.b32.xlu0 %v16041_v39, %s13212_s20 }
 0x6fa   :  { %4113 = vrot.lane.b32.xlu0 %v16041_v39, %s13214_s25 }
 0x6fe   :  { %4223 = vrot.lane.b32.xlu0 %v16050_v63, %s13203_s21 }
 0x702   :  { %v16120_v38 = vpop.permute.xlu0 %11983  ;;  %v16122_v43 = vpop.permute.xlu1 %11978  ;;  %4319 = vrot.lane.b32.xlu0 %v16050_v63, %s13204_s22 }
 0x706   :  { %v16126_v22 = vpop.permute.xlu1 %11988  ;;  %v16128_v32 = vpop.permute.xlu0 %11998 }
 0x707   :  { %v12000_v60 = vunpack.i.l.bf16 %v16128_v32 }
 0x709   :  { %v4034_v51 = vsel %vm1107_vm9, %v12000_v60, %v11960_v33 }
 0x70a   :  { %v16130_v52 = vpop.permute.xlu1 %11993  ;;  %v16137_v49 = vpop.permute.xlu0 %12008 }
 0x70b   :  { %v12010_v58 = vunpack.i.l.bf16 %v16137_v49 }
 0x70d   :  { %v4130_v35 = vsel %vm1205_vm11, %v12010_v58, %v11970_v20 }
 0x70e   :  { %v16139_v41 = vpop.permute.xlu1 %12003 }
 0x70f   :  { %v12005_v45 = vunpack.i.l.bf16 %v16139_v41 }
 0x711   :  { %v4082_v40 = vsel %vm1156_vm10, %v12005_v45, %v11965_v12 }
 0x712   :  { %v16155_v14 = vpop.permute.xlu1 %12013  ;;  %v10414_v36 = vpack.c.bf16 %v4082_v40, %v4034_v51 }
 0x713   :  { %v12015_v29 = vunpack.i.l.bf16 %v16155_v14 }
 0x714   :  { %10415 = vmatpush1.bf16.msra.mxu1 %v10414_v36  ;;  %v11980_v36 = vunpack.i.l.bf16 %v16122_v43 }
 0x715   :  { %v4178_v10 = vsel %vm1254_vm12, %v12015_v29, %v11975_v18  ;;  %10417 = vmatprep.subr.bf16.mxu1 %v10416_v53 }
 0x716   :  { %v10418_v61 = vpack.c.bf16 %v4178_v10, %v4130_v35  ;;  %v16162_v13 = vpop.permute.xlu1 %12018 }
 0x717   :  { %v12020_v46 = vunpack.i.l.bf16 %v16162_v13 }
 0x718   :  { %10419 = vmatpush1.bf16.msra.mxu1 %v10418_v61 }
 0x71c   :  { %v16164_v33 = vpop.permute.xlu1 %12028  ;;  %v16166_v12 = vpop.permute.xlu0 %12023 }
 0x71d   :  { %v20044_v2 = vunpack.i.h.bf16 %v16164_v33  ;;  %v12030_v26 = vunpack.i.l.bf16 %v16164_v33  ;;  %v20045_v15 = vunpack.i.h.bf16 %v16166_v12  ;;  %v12025_v20 = vunpack.i.l.bf16 %v16166_v12 }
 0x71f   :  { %v4084_v18 = vsel %vm1156_vm10, %v20044_v2, %v12030_v26  ;;  %v4036_v54 = vsel %vm1107_vm9, %v20045_v15, %v12025_v20  ;;  %v4035_v51 = vsel %vm1107_vm9, %v12025_v20, %v12000_v60  ;;  %v4083_v40 = vsel %vm1156_vm10, %v12030_v26, %v12005_v45 }
 0x720   :  { %v16186_v53 = vpop.permute.xlu1 %12033  ;;  %v16188_v35 = vpop.permute.xlu0 %12038  ;;  %v10392_v10 = vpack.c.bf16 %v4083_v40, %v4035_v51  ;;  %v10394_v61 = vpack.c.bf16 %v4084_v18, %v4036_v54  ;;  %v20055_v60 = vunpack.i.h.bf16 %v16162_v13  ;;  %v4238_v45 = vsel %vm140_vm0, %v12020_v46, %v11980_v36 }
 0x721   :  { %v20047_v34 = vunpack.i.h.bf16 %v16186_v53  ;;  %v12035_v0 = vunpack.i.l.bf16 %v16186_v53  ;;  %v20053_v2 = vunpack.i.h.bf16 %v16188_v35  ;;  %v12040_v15 = vunpack.i.l.bf16 %v16188_v35 }
 0x722   :  { %10393 = vmatprep.subr.bf16.mxu0 %v10392_v10 }
 0x723   :  { %v4132_v26 = vsel %vm1205_vm11, %v20047_v34, %v12035_v0  ;;  %v4180_v20 = vsel %vm1254_vm12, %v20053_v2, %v12040_v15  ;;  %10395 = vmatpush1.bf16.msra.mxu0 %v10394_v61  ;;  %v4131_v18 = vsel %vm1205_vm11, %v12035_v0, %v12010_v58  ;;  %v4179_v54 = vsel %vm1254_vm12, %v12040_v15, %v12015_v29 }
 0x724   :  { %v16209_v51 = vpop.permute.xlu1 %12053  ;;  %v16211_v40 = vpop.permute.xlu0 %12043  ;;  %v10396_v10 = vpack.c.bf16 %v4179_v54, %v4131_v18  ;;  %v10398_v4 = vpack.c.bf16 %v4180_v20, %v4132_v26  ;;  %v4239_v61 = vsel %vm140_vm0, %v20055_v60, %v12020_v46  ;;  %v10400_v29 = vpack.c.bf16 %v4238_v45, %v15993_v31 }
 0x725   :  { %v20050_v34 = vunpack.i.h.bf16 %v16211_v40  ;;  %v12045_v11 = vunpack.i.l.bf16 %v16211_v40  ;;  %v20049_v0 = vunpack.i.h.bf16 %v16209_v51  ;;  %v12055_v58 = vunpack.i.l.bf16 %v16209_v51 }
 0x726   :  { %10397 = vmatprep.subr.bf16.mxu0 %v10396_v10  ;;  %v11990_v20 = vunpack.i.l.bf16 %v16126_v22  ;;  %v11985_v45 = vunpack.i.l.bf16 %v16120_v38  ;;  %v10402_v10 = vpack.c.bf16 %v4239_v61, %v16007_v30 }
 0x727   :  { %v4237_v15 = vsel %vm140_vm0, %v11980_v36, %v12045_v11  ;;  %10399 = vmatpush1.bf16.msra.mxu0 %v10398_v4  ;;  %v4236_v26 = vsel %vm140_vm0, %v12045_v11, %v20050_v34 }
 0x728   :  { %v16229_v18 = vpop.permute.xlu1 %12058  ;;  %v16231_v46 = vpop.permute.xlu0 %12048  ;;  %10401 = vmatprep.subr.bf16.mxu0 %v10400_v29  ;;  %v10420_v54 = vpack.c.bf16 %v4236_v26, %v15978_v37  ;;  %v10422_v31 = vpack.c.bf16 %v4237_v15, %v15975_v23  ;;  %v4333_v11 = vsel %vm238_vm2, %v11990_v20, %v12055_v58  ;;  %v4332_v29 = vsel %vm238_vm2, %v12055_v58, %v20049_v0 }
 0x729   :  { %v20051_v4 = vunpack.i.h.bf16 %v16231_v46  ;;  %v12050_v36 = vunpack.i.l.bf16 %v16231_v46  ;;  %v20052_v37 = vunpack.i.h.bf16 %v16229_v18  ;;  %v12060_v23 = vunpack.i.l.bf16 %v16229_v18 }
 0x72a   :  { %10421 = vmatprep.subr.bf16.mxu1 %v10420_v54 }
 0x72b   :  { %v4285_v15 = vsel %vm1363_vm13, %v11985_v45, %v12050_v36  ;;  %10403 = vmatpush1.bf16.msra.mxu0 %v10402_v10  ;;  %10423 = vmatpush1.bf16.msra.mxu1 %v10422_v31  ;;  %v4284_v30 = vsel %vm1363_vm13, %v12050_v36, %v20051_v4  ;;  %v4287_v31 = vsel %vm1363_vm13, %v20052_v37, %v12060_v23  ;;  %v11995_v4 = vunpack.i.l.bf16 %v16130_v52 }
 0x72c   :  { %v16253_v61 = vpop.permute.xlu1 %12078  ;;  %v16255_v26 = vpop.permute.xlu0 %12063  ;;  %v10424_v54 = vpack.c.bf16 %v4332_v29, %v4284_v30  ;;  %v10426_v58 = vpack.c.bf16 %v4333_v11, %v4285_v15  ;;  %v4286_v10 = vsel %vm1363_vm13, %v12060_v23, %v11985_v45  ;;  %v12001_v45 = vunpack.i.h.bf16 %v16128_v32 }
 0x72d   :  { %v20054_v0 = vunpack.i.h.bf16 %v16255_v26  ;;  %v12065_v34 = vunpack.i.l.bf16 %v16255_v26  ;;  %v12006_v23 = vunpack.i.h.bf16 %v16139_v41 }
 0x72e   :  { %10425 = vmatprep.subr.bf16.mxu1 %v10424_v54 }
 0x72f   :  { %v4335_v36 = vsel %vm238_vm2, %v20054_v0, %v12065_v34  ;;  %10427 = vmatpush1.bf16.msra.mxu1 %v10426_v58  ;;  %v4334_v11 = vsel %vm238_vm2, %v12065_v34, %v11990_v20  ;;  %v12081_v58 = vunpack.i.h.bf16 %v16253_v61  ;;  %v20057_v0 = vunpack.i.l.bf16 %v16253_v61 }
 0x730   :  { %v16271_v29 = vpop.permute.xlu1 %12088  ;;  %v16273_v15 = vpop.permute.xlu0 %12068  ;;  %v10404_v30 = vpack.c.bf16 %v4334_v11, %v4286_v10  ;;  %v10406_v54 = vpack.c.bf16 %v4335_v36, %v4287_v31  ;;  %v12016_v31 = vunpack.i.h.bf16 %v16155_v14 }
 0x731   :  { %v20056_v37 = vunpack.i.h.bf16 %v16273_v15  ;;  %v12070_v2 = vunpack.i.l.bf16 %v16273_v15  ;;  %v4078_v41 = vsel %vm1156_vm10, %v12081_v58, %v12006_v23 }
 0x732   :  { %10405 = vmatprep.subr.bf16.mxu0 %v10404_v30 }
 0x733   :  { %v4381_v34 = vsel %vm287_vm3, %v11995_v4, %v12070_v2  ;;  %10407 = vmatpush1.bf16.msra.mxu0 %v10406_v54  ;;  %v4380_v20 = vsel %vm287_vm3, %v12070_v2, %v20056_v37 }
 0x734   :  { %v16289_v36 = vpop.permute.xlu1 %12093  ;;  %v16291_v10 = vpop.permute.xlu0 %12073  ;;  %v10428_v11 = vpack.c.bf16 %v20228_v1, %v4380_v20  ;;  %v10430_v32 = vpack.c.bf16 %v20228_v1, %v4381_v34  ;;  %v4077_v34 = vsel %vm1156_vm10, %v12006_v23, %v20057_v0 }
 0x735   :  { %v20058_v30 = vunpack.i.h.bf16 %v16289_v36  ;;  %v12095_v54 = vunpack.i.l.bf16 %v16289_v36  ;;  %v12076_v60 = vunpack.i.h.bf16 %v16291_v10  ;;  %v20336_v37 = vunpack.i.l.bf16 %v16291_v10 }
 0x736   :  { %10429 = vmatprep.subr.bf16.mxu1 %v10428_v11 }
 0x737   :  { %v4383_v20 = vsel %vm287_vm3, %v20058_v30, %v12095_v54  ;;  %v4030_v2 = vsel %vm1107_vm9, %v12076_v60, %v12001_v45  ;;  %10431 = vmatpush1.bf16.msra.mxu1 %v10430_v32  ;;  %v4382_v14 = vsel %vm287_vm3, %v12095_v54, %v11995_v4  ;;  %v4029_v11 = vsel %vm1107_vm9, %v12001_v45, %v20336_v37  ;;  %v16328_v32 = vld [vmem:[%s19933_s1 + $0x20] sm:$0xff] }
 0x738   :  { %v16319_v57 = vpop.permute.xlu1 %12103  ;;  %v16321_v23 = vpop.permute.xlu0 %12083  ;;  %v10408_v0 = vpack.c.bf16 %v20228_v1, %v4382_v14  ;;  %v10452_v7 = vpack.c.bf16 %v4077_v34, %v4029_v11  ;;  %v10410_v30 = vpack.c.bf16 %v20228_v1, %v4383_v20  ;;  %v10454_v4 = vpack.c.bf16 %v4078_v41, %v4030_v2 }
 0x739   :  { %v12011_v54 = vunpack.i.h.bf16 %v16137_v49  ;;  %v20068_v56 = vunpack.i.h.bf16 %v16321_v23  ;;  %v20059_v37 = vunpack.i.l.bf16 %v16321_v23  ;;  %v20337_v45 = vunpack.i.h.bf16 %v16271_v29 }
 0x73a   :  { %10409 = vmatprep.subr.bf16.mxu0 %v10408_v0  ;;  %10453 = vmatprep.subr.bf16.mxu1 %v10452_v7  ;;  %v20338_v2 = vunpack.i.l.bf16 %v16271_v29 }
 0x73b   :  { %v4174_v14 = vsel %vm1254_vm12, %v20337_v45, %v12016_v31  ;;  %v4126_v34 = vsel %vm1205_vm11, %v20068_v56, %v12011_v54  ;;  %10411 = vmatpush1.bf16.msra.mxu0 %v10410_v30  ;;  %9872 = vmatmul.mubr.msk.f32.vlgmr.msra.gmra.mrb[24].mxu1 %vm629_vm8, %v16328_v32  ;;  %v4125_v49 = vsel %vm1205_vm11, %v12011_v54, %v20059_v37  ;;  %v20339_v45 = vunpack.i.h.bf16 %v16069_v17 }
 0x73c   :  { %v4173_v0 = vsel %vm1254_vm12, %v12016_v31, %v20338_v2  ;;  %10455 = vmatpush1.bf16.msra.mxu1 %v10454_v4  ;;  %v4058_v7 = vpop.permute.xlu1 %4057  ;;  %v4010_v41 = vpop.permute.xlu0 %4009  ;;  %v10458_v11 = vpack.c.bf16 %v4174_v14, %v4126_v34  ;;  %4799 = vmatprep.mubr.f32.mxu1 %v20235_v28  ;;  %v20340_v31 = vunpack.i.h.bf16 %v16067_v27 }
 0x73d   :  { %v10456_v20 = vpack.c.bf16 %v4173_v0, %v4125_v49  ;;  %v4079_v30 = vsel %vm1156_vm10, %v4058_v7, %v12081_v58  ;;  %v4080_v54 = vsel %vm1156_vm10, %v20339_v45, %v4058_v7  ;;  %v4031_v37 = vsel %vm1107_vm9, %v4010_v41, %v12076_v60 }
 0x73e   :  { %v4032_v4 = vsel %vm1107_vm9, %v20340_v31, %v4010_v41  ;;  %9871 = vmatmul.mubr.msk.f32.vlgmr.msra.gmra.mrb[24].mxu0 %vm629_vm8, %v16328_v32  ;;  %v10432_v14 = vpack.c.bf16 %v4079_v30, %v4031_v37  ;;  %v11981_v60 = vunpack.i.h.bf16 %v16122_v43  ;;  %v11991_v31 = vunpack.i.h.bf16 %v16126_v22 }
 0x73f   :  { %v10434_v49 = vpack.c.bf16 %v4080_v54, %v4032_v4  ;;  %10457 = vmatprep.subr.bf16.mxu1 %v10456_v20  ;;  %4728 = vmatprep.mubr.f32.mxu0 %v20235_v28  ;;  %v20065_v20 = vunpack.i.h.bf16 %v16319_v57  ;;  %v11986_v54 = vunpack.i.h.bf16 %v16120_v38 }
 0x740   :  { %10459 = vmatpush1.bf16.msra.mxu1 %v10458_v11  ;;  %v16367_v17 = vpop.permute.xlu1 %12123  ;;  %v16369_v58 = vpop.permute.xlu0 %12098  ;;  %10433 = vmatprep.subr.bf16.mxu0 %v10432_v14  ;;  %v20061_v11 = vunpack.i.l.bf16 %v16319_v57 }
 0x741   :  { %v20067_v27 = vunpack.i.h.bf16 %v16369_v58  ;;  %v20060_v34 = vunpack.i.l.bf16 %v16369_v58  ;;  %10435 = vmatpush1.bf16.msra.mxu0 %v10434_v49 }
 0x742   :  { %v4280_v38 = vsel %vm1363_vm13, %v11986_v54, %v20061_v11  ;;  %v12125_v11 = vunpack.i.l.bf16 %v16367_v17 }
 0x743   :  { %v4233_v37 = vsel %vm140_vm0, %v20067_v27, %v11981_v60  ;;  %v4232_v2 = vsel %vm140_vm0, %v11981_v60, %v20060_v34  ;;  %v20342_v27 = vunpack.i.h.bf16 %v16164_v33 }
 0x744   :  { %v16382_v0 = vpop.permute.xlu1 %12133  ;;  %v16384_v7 = vpop.permute.xlu0 %12108  ;;  %v10460_v43 = vpack.c.bf16 %v4232_v2, %v15990_v50  ;;  %v10462_v41 = vpack.c.bf16 %v4233_v37, %v15987_v21  ;;  %v4281_v21 = vsel %vm1363_vm13, %v20065_v20, %v11986_v54  ;;  %v20069_v54 = vunpack.i.h.bf16 %v16367_v17 }
 0x746   :  { %10461 = vmatprep.subr.bf16.mxu1 %v10460_v43  ;;  %v11996_v43 = vunpack.i.h.bf16 %v16130_v52 }
 0x747   :  { %10463 = vmatpush1.bf16.msra.mxu1 %v10462_v41 }
 0x748   :  { %v4106_v30 = vpop.permute.xlu1 %4105  ;;  %v16390_v45 = vpop.permute.xlu0 %12113 }
 0x749   :  { %v20063_v4 = vunpack.i.h.bf16 %v16390_v45  ;;  %v20062_v49 = vunpack.i.l.bf16 %v16390_v45 }
 0x74b   :  { %v4329_v50 = vsel %vm238_vm2, %v20063_v4, %v11991_v31  ;;  %v4328_v22 = vsel %vm238_vm2, %v11991_v31, %v20062_v49 }
 0x74c   :  { %v16412_v14 = vpop.permute.xlu1 %12143  ;;  %v16414_v60 = vpop.permute.xlu0 %12118  ;;  %v10464_v37 = vpack.c.bf16 %v4328_v22, %v4280_v38  ;;  %v10466_v2 = vpack.c.bf16 %v4329_v50, %v4281_v21  ;;  %v12110_v22 = vunpack.i.l.bf16 %v16384_v7 }
 0x74d   :  { %v20064_v41 = vunpack.i.h.bf16 %v16414_v60  ;;  %v20066_v34 = vunpack.i.l.bf16 %v16414_v60 }
 0x74e   :  { %10465 = vmatprep.subr.bf16.mxu1 %v10464_v37 }
 0x74f   :  { %v4377_v31 = vsel %vm287_vm3, %v20064_v41, %v11996_v43  ;;  %10467 = vmatpush1.bf16.msra.mxu1 %v10466_v2  ;;  %v4376_v52 = vsel %vm287_vm3, %v11996_v43, %v20066_v34  ;;  %v12135_v2 = vunpack.i.l.bf16 %v16382_v0  ;;  %v4026_v43 = vsel %vm1107_vm9, %v20069_v54, %v12125_v11 }
 0x750   :  { %v16429_v21 = vpop.permute.xlu0 %12128  ;;  %v10468_v50 = vpack.c.bf16 %v20228_v1, %v4376_v52  ;;  %v10470_v38 = vpack.c.bf16 %v20228_v1, %v4377_v31  ;;  %v4216_v20 = vpop.permute.xlu1 %4215  ;;  %v20341_v52 = vunpack.i.h.bf16 %v16166_v12 }
 0x751   :  { %v12131_v37 = vunpack.i.h.bf16 %v16429_v21  ;;  %v12130_v49 = vunpack.i.l.bf16 %v16429_v21  ;;  %v20366_v21 = vunpack.i.l.bf16 %v16253_v61 }
 0x752   :  { %10469 = vmatprep.subr.bf16.mxu1 %v10468_v50  ;;  %v4025_v34 = vsel %vm1107_vm9, %v12125_v11, %v20341_v52  ;;  %v20344_v11 = vunpack.i.h.bf16 %v16382_v0 }
 0x753   :  { %v4074_v31 = vsel %vm1156_vm10, %v12131_v37, %v12130_v49  ;;  %10471 = vmatpush1.bf16.msra.mxu1 %v10470_v38  ;;  %v4073_v50 = vsel %vm1156_vm10, %v12130_v49, %v20342_v27  ;;  %v20343_v38 = vunpack.i.h.bf16 %v16162_v13  ;;  %v20345_v27 = vunpack.i.h.bf16 %v16384_v7 }
 0x754   :  { %v16455_v56 = vpop.permute.xlu0 %12138  ;;  %v10492_v41 = vpack.c.bf16 %v4073_v50, %v4025_v34  ;;  %v10494_v54 = vpack.c.bf16 %v4074_v31, %v4026_v43  ;;  %v4122_v33 = vsel %vm1205_vm11, %v20344_v11, %v12135_v2  ;;  %v20346_v49 = vunpack.i.h.bf16 %v16186_v53  ;;  %v4264_v50 = vpop.permute.xlu1 %4263 }
 0x755   :  { %v12141_v4 = vunpack.i.h.bf16 %v16455_v56  ;;  %v12140_v8 = vunpack.i.l.bf16 %v16455_v56  ;;  %v4240_v12 = vsel %vm140_vm0, %v12110_v22, %v20343_v38  ;;  %v4229_v34 = vsel %vm140_vm0, %v20345_v27, %v12110_v22 }
 0x756   :  { %10493 = vmatprep.subr.bf16.mxu1 %v10492_v41  ;;  %9874 = vmatmul.mubr.msk.f32.vlgmr.msra.gmra.mrb[26].mxu1 %vm629_vm8, %v16328_v32  ;;  %v4121_v43 = vsel %vm1205_vm11, %v12135_v2, %v20346_v49  ;;  %v20347_v31 = vunpack.i.h.bf16 %v16188_v35  ;;  %v20348_v41 = vunpack.i.h.bf16 %v16321_v23  ;;  %v10500_v53 = vpack.c.bf16 %v4240_v12, %v16014_v24 }
 0x757   :  { %v4170_v13 = vsel %vm1254_vm12, %v12141_v4, %v12140_v8  ;;  %10495 = vmatpush1.bf16.msra.mxu1 %v10494_v54  ;;  %4941 = vmatprep.mubr.f32.mxu1 %v20235_v28  ;;  %v20349_v2 = vunpack.i.h.bf16 %v16114_v16  ;;  %v20351_v49 = vunpack.i.h.bf16 %v16271_v29  ;;  %v12146_v16 = vunpack.i.h.bf16 %v16412_v14 }
 0x758   :  { %v4169_v22 = vsel %vm1254_vm12, %v12140_v8, %v20347_v31  ;;  %v4127_v52 = vsel %vm1205_vm11, %v4106_v30, %v20348_v41  ;;  %v4154_v38 = vpop.permute.xlu0 %4153  ;;  %v10498_v11 = vpack.c.bf16 %v4170_v13, %v4122_v33  ;;  %v20350_v8 = vunpack.i.h.bf16 %v16369_v58 }
 0x759   :  { %v10496_v54 = vpack.c.bf16 %v4169_v22, %v4121_v43  ;;  %v4128_v35 = vsel %vm1205_vm11, %v20349_v2, %v4106_v30  ;;  %v4175_v31 = vsel %vm1254_vm12, %v4154_v38, %v20351_v49  ;;  %v20352_v43 = vunpack.i.h.bf16 %v16116_v59 }
 0x75a   :  { %v4234_v27 = vsel %vm140_vm0, %v4216_v20, %v20350_v8  ;;  %v12145_v12 = vunpack.i.l.bf16 %v16412_v14  ;;  %v10436_v33 = vpack.c.bf16 %v4175_v31, %v4127_v52  ;;  %v20353_v13 = vunpack.i.h.bf16 %v16211_v40  ;;  %v4360_v52 = vpop.permute.xlu1 %4359 }
 0x75b   :  { %v4176_v24 = vsel %vm1254_vm12, %v20352_v43, %v4154_v38  ;;  %10497 = vmatprep.subr.bf16.mxu1 %v10496_v54  ;;  %v10440_v59 = vpack.c.bf16 %v4234_v27, %v16030_v44  ;;  %v10502_v54 = vpack.c.bf16 %v4229_v34, %v16053_v48  ;;  %v20355_v34 = vunpack.i.h.bf16 %v16255_v26 }
 0x75c   :  { %v10438_v30 = vpack.c.bf16 %v4176_v24, %v4128_v35  ;;  %10499 = vmatpush1.bf16.msra.mxu1 %v10498_v11  ;;  %v4235_v22 = vsel %vm140_vm0, %v20353_v13, %v4216_v20  ;;  %v16513_v41 = vpop.permute.xlu0 %12148  ;;  %10437 = vmatprep.subr.bf16.mxu0 %v10436_v33  ;;  %v4277_v40 = vsel %vm1363_vm13, %v12146_v16, %v12145_v12  ;;  %v20354_v11 = vunpack.i.h.bf16 %v16229_v18 }
 0x75d   :  { %10501 = vmatprep.subr.bf16.mxu1 %v10500_v53  ;;  %v12151_v38 = vunpack.i.h.bf16 %v16513_v41  ;;  %v12150_v2 = vunpack.i.l.bf16 %v16513_v41  ;;  %v10442_v20 = vpack.c.bf16 %v4235_v22, %v16021_v9  ;;  %v20356_v26 = vunpack.i.h.bf16 %v16289_v36 }
 0x75e   :  { %10439 = vmatpush1.bf16.msra.mxu0 %v10438_v30  ;;  %v4288_v48 = vsel %vm1363_vm13, %v12145_v12, %v20354_v11  ;;  %v20357_v43 = vunpack.i.h.bf16 %v16319_v57  ;;  %v4066_v12 = vpop.permute.xlu1 %4065  ;;  %v20358_v22 = vunpack.i.h.bf16 %v16231_v46  ;;  %v20359_v36 = vunpack.i.h.bf16 %v16414_v60 }
 0x75f   :  { %10441 = vmatprep.subr.bf16.mxu0 %v10440_v59  ;;  %v4325_v44 = vsel %vm238_vm2, %v12151_v38, %v12150_v2  ;;  %v4336_v53 = vsel %vm238_vm2, %v12150_v2, %v20355_v34 }
 0x760   :  { %10503 = vmatpush1.bf16.msra.mxu1 %v10502_v54  ;;  %v16536_v35 = vpop.permute.xlu0 %12153  ;;  %v10504_v8 = vpack.c.bf16 %v4336_v53, %v4288_v48  ;;  %v10506_v9 = vpack.c.bf16 %v4325_v44, %v4277_v40  ;;  %v4282_v24 = vsel %vm1363_vm13, %v4264_v50, %v20357_v43  ;;  %v4283_v59 = vsel %vm1363_vm13, %v20358_v22, %v4264_v50 }
 0x761   :  { %v12156_v27 = vunpack.i.h.bf16 %v16536_v35  ;;  %v12155_v49 = vunpack.i.l.bf16 %v16536_v35  ;;  %v4378_v2 = vsel %vm287_vm3, %v4360_v52, %v20359_v36  ;;  %v20360_v54 = vunpack.i.h.bf16 %v16390_v45 }
 0x762   :  { %10443 = vmatpush1.bf16.msra.mxu0 %v10442_v20  ;;  %10505 = vmatprep.subr.bf16.mxu1 %v10504_v8  ;;  %v20361_v20 = vunpack.i.h.bf16 %v16209_v51  ;;  %v20362_v50 = vunpack.i.h.bf16 %v16273_v15  ;;  %v10448_v53 = vpack.c.bf16 %v20228_v1, %v4378_v2  ;;  %v20363_v8 = vunpack.i.h.bf16 %v16367_v17 }
 0x763   :  { %v4373_v18 = vsel %vm287_vm3, %v12156_v27, %v12155_v49  ;;  %v4384_v31 = vsel %vm287_vm3, %v12155_v49, %v20356_v26  ;;  %v20364_v17 = vunpack.i.l.bf16 %v16291_v10 }
 0x764   :  { %10507 = vmatpush1.bf16.msra.mxu1 %v10506_v9  ;;  %v4312_v30 = vpop.permute.xlu0 %4311  ;;  %v10508_v33 = vpack.c.bf16 %v20228_v1, %v4384_v31  ;;  %v10510_v13 = vpack.c.bf16 %v20228_v1, %v4373_v18  ;;  %v4379_v48 = vsel %vm287_vm3, %v20362_v50, %v4360_v52  ;;  %v4162_v9 = vpop.permute.xlu1 %4161  ;;  %v4075_v52 = vsel %vm1156_vm10, %v4066_v12, %v12131_v37 }
 0x765   :  { %v4330_v40 = vsel %vm238_vm2, %v4312_v30, %v20360_v54  ;;  %v4331_v44 = vsel %vm238_vm2, %v20361_v20, %v4312_v30  ;;  %v10450_v15 = vpack.c.bf16 %v20228_v1, %v4379_v48  ;;  %v20365_v31 = vunpack.i.h.bf16 %v16382_v0 }
 0x766   :  { %v10446_v11 = vpack.c.bf16 %v4331_v44, %v4283_v59  ;;  %10509 = vmatprep.subr.bf16.mxu1 %v10508_v33  ;;  %v10444_v46 = vpack.c.bf16 %v4330_v40, %v4282_v24  ;;  %v4076_v37 = vsel %vm1156_vm10, %v20366_v21, %v4066_v12  ;;  %v4171_v10 = vsel %vm1254_vm12, %v4162_v9, %v12141_v4 }
 0x767   :  { %v20367_v33 = vunpack.i.l.bf16 %v16321_v23  ;;  %v20368_v12 = vunpack.i.h.bf16 %v16384_v7  ;;  %v20369_v4 = vunpack.i.l.bf16 %v16271_v29  ;;  %v20370_v59 = vunpack.i.l.bf16 %v16369_v58 }
 0x768   :  { %10511 = vmatpush1.bf16.msra.mxu1 %v10510_v13  ;;  %v4018_v34 = vpop.permute.xlu0 %4017  ;;  %10445 = vmatprep.subr.bf16.mxu0 %v10444_v46  ;;  %v4272_v30 = vpop.permute.xlu1 %4271  ;;  %v20371_v20 = vunpack.i.l.bf16 %v16390_v45 }
 0x769   :  { %v4027_v51 = vsel %vm1107_vm9, %v4018_v34, %v20363_v8  ;;  %10447 = vmatpush1.bf16.msra.mxu0 %v10446_v11  ;;  %v4028_v49 = vsel %vm1107_vm9, %v20364_v17, %v4018_v34  ;;  %v4172_v23 = vsel %vm1254_vm12, %v20369_v4, %v4162_v9  ;;  %v4278_v40 = vsel %vm1363_vm13, %v4272_v30, %v12146_v16 }
 0x76a   :  { %10449 = vmatprep.subr.bf16.mxu0 %v10448_v53  ;;  %v10472_v26 = vpack.c.bf16 %v4075_v52, %v4027_v51  ;;  %v10474_v24 = vpack.c.bf16 %v4076_v37, %v4028_v49 }
 0x76b   :  { %9876 = vmatmul.mubr.msk.f32.vlgmr.msra.gmra.mrb[28].mxu1 %vm629_vm8, %v16328_v32 }
 0x76c   :  { %5628 = vmatprep.mubr.f32.mxu1 %v20235_v28  ;;  %v4114_v18 = vpop.permute.xlu0 %4113  ;;  %v4368_v29 = vpop.permute.xlu1 %4367 }
 0x76d   :  { %v4123_v43 = vsel %vm1205_vm11, %v4114_v18, %v20365_v31  ;;  %10451 = vmatpush1.bf16.msra.mxu0 %v10450_v15  ;;  %v4124_v0 = vsel %vm1205_vm11, %v20367_v33, %v4114_v18  ;;  %v4374_v41 = vsel %vm287_vm3, %v4368_v29, %v12156_v27 }
 0x76e   :  { %10473 = vmatprep.subr.bf16.mxu0 %v10472_v26  ;;  %v10476_v61 = vpack.c.bf16 %v4171_v10, %v4123_v43  ;;  %v10478_v22 = vpack.c.bf16 %v4172_v23, %v4124_v0  ;;  %v10488_v11 = vpack.c.bf16 %v20228_v1, %v4374_v41  ;;  %v20376_v41 = vld [vmem:[#allocation9_spill] sm:$0xff] }
 0x770   :  { %v4224_v13 = vpop.permute.xlu0 %4223  ;;  %9873 = vmatmul.mubr.msk.f32.vlgmr.msra.gmra.mrb[26].mxu0 %vm629_vm8, %v16328_v32 }
 0x771   :  { %v4230_v56 = vsel %vm140_vm0, %v4224_v13, %v20368_v12  ;;  %10475 = vmatpush1.bf16.msra.mxu0 %v10474_v24  ;;  %4870 = vmatprep.mubr.f32.mxu0 %v20235_v28  ;;  %v4231_v36 = vsel %vm140_vm0, %v20370_v59, %v4224_v13 }
 0x772   :  { %10477 = vmatprep.subr.bf16.mxu0 %v10476_v61  ;;  %v10480_v7 = vpack.c.bf16 %v4230_v56, %v16050_v63  ;;  %v10482_v58 = vpack.c.bf16 %v4231_v36, %v16041_v39  ;;  %v20373_v39 = vunpack.i.l.bf16 %v16414_v60  ;;  %v20374_v36 = vld [vmem:[#allocation7_spill] sm:$0xff] }
 0x774   :  { %v4320_v2 = vpop.permute.xlu0 %4319  ;;  %v4375_v45 = vsel %vm287_vm3, %v20373_v39, %v4368_v29 }
 0x775   :  { %v4326_v54 = vsel %vm238_vm2, %v4320_v2, %v12151_v38  ;;  %10479 = vmatpush1.bf16.msra.mxu0 %v10478_v22  ;;  %v4327_v63 = vsel %vm238_vm2, %v20371_v20, %v4320_v2  ;;  %v20372_v38 = vunpack.i.l.bf16 %v16319_v57  ;;  %v10490_v35 = vpack.c.bf16 %v20228_v1, %v4375_v45 }
 0x776   :  { %10481 = vmatprep.subr.bf16.mxu0 %v10480_v7  ;;  %v10484_v44 = vpack.c.bf16 %v4326_v54, %v4278_v40  ;;  %v20375_v7 = vld [vmem:[#allocation8_spill] sm:$0xff] }
 0x777   :  { %v4279_v14 = vsel %vm1363_vm13, %v20372_v38, %v4272_v30 }
 0x778   :  { %v10486_v16 = vpack.c.bf16 %v4327_v63, %v4279_v14  ;;  %v20377_v14 = vld [vmem:[#allocation10_spill] sm:$0xff] }
 0x779   :  { %10483 = vmatpush1.bf16.msra.mxu0 %v10482_v58 }
 0x77a   :  { %10485 = vmatprep.subr.bf16.mxu0 %v10484_v44 }
 0x77d   :  { %10487 = vmatpush1.bf16.msra.mxu0 %v10486_v16 }
 0x77e   :  { %10489 = vmatprep.subr.bf16.mxu0 %v10488_v11 }
 0x781   :  { %10491 = vmatpush1.bf16.msra.mxu0 %v10490_v35 }
 0x784   :  { %9875 = vmatmul.mubr.msk.f32.vlgmr.msra.gmra.mrb[28].mxu0 %vm629_vm8, %v16328_v32 }
 0x785   :  { %5557 = vmatprep.mubr.f32.mxu0 %v20235_v28 }
 0x80e   :  { %v4659_v57 = vpop.f32.mrb[24].mxu1 }
 0x80f   :  { %v4950_v27 = vmax.f32 %v4659_v57, 0.0  ;;  %v4661_v46 = vpop.f32.mrb[25].mxu1 }
 0x810   :  { %v4951_v50 = vmax.f32 %v4661_v46, 0.0 }
 0x811   :  { %v4588_v60 = vpop.f32.mrb[24].mxu0  ;;  %v16654_v48 = vmul.f32 %v4950_v27, %v13996_v6 }
 0x812   :  { %v4948_v34 = vmax.f32 %v4588_v60, 0.0  ;;  %v4590_v53 = vpop.f32.mrb[25].mxu0  ;;  %v16657_v8 = vmul.f32 %v4951_v50, %v14001_v42 }
 0x813   :  { %v4949_v51 = vmax.f32 %v4590_v53, 0.0 }
 0x814   :  { %v16660_v9 = vmul.f32 %v4948_v34, %v20329_v3  ;;  %v12162_v32 = vpack.i.bf16 %v16657_v8, %v16654_v48 }
 0x815   :  { %v16665_v15 = vmul.f32 %v4949_v51, %v14023_v5 }
 0x816   :  { %12163 = vrot.lane.b32.xlu1 %v12162_v32, %s13212_s20 }
 0x817   :  { %v12157_v52 = vpack.i.bf16 %v16665_v15, %v16660_v9  ;;  %v12202_v17 = vpack.i.bf16 %v16654_v48, %v16665_v15 }
 0x819   :  { %12158 = vrot.lane.b32.xlu0 %v12157_v52, %s13212_s20 }
 0x81a   :  { %12173 = vrot.lane.b32.xlu1 %v12162_v32, %s13213_s23 }
 0x81d   :  { %12168 = vrot.lane.b32.xlu0 %v12157_v52, %s13213_s23 }
 0x81e   :  { %12183 = vrot.lane.b32.xlu1 %v12162_v32, %s13214_s25 }
 0x821   :  { %12178 = vrot.lane.b32.xlu0 %v12157_v52, %s13214_s25 }
 0x822   :  { %12193 = vrot.lane.b32.xlu1 %v12162_v32, %s13215_s26 }
 0x825   :  { %12188 = vrot.lane.b32.xlu0 %v12157_v52, %s13215_s26 }
 0x826   :  { %12203 = vrot.lane.b32.xlu1 %v12202_v17, %s13216_s27 }
 0x829   :  { %12198 = vrot.lane.b32.xlu0 %v12202_v17, %s13203_s21  ;;  %v4801_v49 = vpop.f32.mrb[26].mxu1 }
 0x82a   :  { %12208 = vrot.lane.b32.xlu1 %v12202_v17, %s13204_s22  ;;  %v4803_v18 = vpop.f32.mrb[27].mxu1  ;;  %v4954_v13 = vmax.f32 %v4801_v49, 0.0 }
 0x82b   :  { %v4955_v61 = vmax.f32 %v4803_v18, 0.0 }
 0x82c   :  { %v16701_v56 = vmul.f32 %v4954_v13, %v14072_v55 }
 0x82d   :  { %v16704_v59 = vmul.f32 %v4955_v61, %v14078_v25 }
 0x82e   :  { %12213 = vrot.lane.b32.xlu1 %v12202_v17, %s13206_s24 }
 0x82f   :  { %v12312_v20 = vpack.i.bf16 %v16704_v59, %v16701_v56 }
 0x83e   :  { %v4943_v26 = vpop.f32.mrb[28].mxu1 }
 0x83f   :  { %v4945_v31 = vpop.f32.mrb[29].mxu1  ;;  %v4958_v63 = vmax.f32 %v4943_v26, 0.0 }
 0x840   :  { %v4959_v4 = vmax.f32 %v4945_v31, 0.0 }
 0x841   :  { %v16744_v38 = vmul.f32 %v4958_v63, %v20376_v41 }
 0x842   :  { %v16711_v54 = vmul.f32 %v4959_v4, %v20375_v7 }
 0x843   :  { %v4730_v43 = vpop.f32.mrb[26].mxu0 }
 0x844   :  { %v4952_v21 = vmax.f32 %v4730_v43, 0.0  ;;  %v4732_v37 = vpop.f32.mrb[27].mxu0 }
 0x845   :  { %v4953_v10 = vmax.f32 %v4732_v37, 0.0 }
 0x846   :  { %v16684_v24 = vmul.f32 %v4952_v21, %v20331_v47 }
 0x847   :  { %v16687_v30 = vmul.f32 %v4953_v10, %v20332_v62 }
 0x848   :  { %v12222_v33 = vpack.i.bf16 %v16684_v24, %v16657_v8  ;;  %v12277_v58 = vpack.i.bf16 %v16684_v24, %v16711_v54 }
 0x849   :  { %v12242_v0 = vpack.i.bf16 %v16687_v30, %v16660_v9  ;;  %v12257_v29 = vpack.i.bf16 %v16701_v56, %v16687_v30 }
 0x84a   :  { %12223 = vrot.lane.b32.xlu0 %v12222_v33, %s13216_s27  ;;  %12218 = vrot.lane.b32.xlu1 %v12222_v33, %s13203_s21 }
 0x84e   :  { %12228 = vrot.lane.b32.xlu0 %v12222_v33, %s13204_s22  ;;  %12243 = vrot.lane.b32.xlu1 %v12242_v0, %s13216_s27 }
 0x852   :  { %12233 = vrot.lane.b32.xlu0 %v12222_v33, %s13206_s24  ;;  %12253 = vrot.lane.b32.xlu1 %v12242_v0, %s13206_s24 }
 0x856   :  { %12238 = vrot.lane.b32.xlu0 %v12242_v0, %s13203_s21 }
 0x857   :  { %v4872_v12 = vpop.f32.mrb[28].mxu0 }
 0x858   :  { %v4956_v23 = vmax.f32 %v4872_v12, 0.0  ;;  %v4874_v22 = vpop.f32.mrb[29].mxu0 }
 0x859   :  { %v4957_v44 = vmax.f32 %v4874_v22, 0.0 }
 0x85a   :  { %v16707_v2 = vmul.f32 %v4956_v23, %v20374_v36  ;;  %12248 = vrot.lane.b32.xlu0 %v12242_v0, %s13204_s22 }
 0x85b   :  { %v16747_v16 = vmul.f32 %v4957_v44, %v20377_v14 }
 0x85c   :  { %v12267_v40 = vpack.i.bf16 %v16707_v2, %v16704_v59 }
 0x85d   :  { %v12337_v39 = vpack.i.bf16 %v16744_v38, %v16747_v16  ;;  %v12347_v45 = vpack.i.bf16 %v16747_v16, %v16707_v2 }
 0x85e   :  { %12258 = vrot.lane.b32.xlu0 %v12257_v29, %s13212_s20  ;;  %12268 = vrot.lane.b32.xlu1 %v12267_v40, %s13212_s20 }
 0x862   :  { %12263 = vrot.lane.b32.xlu0 %v12257_v29, %s13213_s23  ;;  %12278 = vrot.lane.b32.xlu1 %v12277_v58, %s13213_s23 }
 0x866   :  { %12273 = vrot.lane.b32.xlu0 %v12277_v58, %s13212_s20  ;;  %12288 = vrot.lane.b32.xlu1 %v12277_v58, %s13215_s26 }
 0x86a   :  { %12283 = vrot.lane.b32.xlu0 %v12277_v58, %s13214_s25  ;;  %12293 = vrot.lane.b32.xlu1 %v12267_v40, %s13213_s23 }
 0x86e   :  { %12298 = vrot.lane.b32.xlu0 %v12257_v29, %s13214_s25  ;;  %12303 = vrot.lane.b32.xlu1 %v12267_v40, %s13214_s25 }
 0x872   :  { %12308 = vrot.lane.b32.xlu0 %v12257_v29, %s13215_s26  ;;  %5130 = vrot.lane.b32.xlu1 %v16704_v59, %s13215_s26 }
 0x876   :  { %12313 = vrot.lane.b32.xlu0 %v12312_v20, %s13203_s21  ;;  %5192 = vrot.lane.b32.xlu1 %v16707_v2, %s13203_s21 }
 0x87a   :  { %12318 = vrot.lane.b32.xlu0 %v12312_v20, %s13216_s27  ;;  %5240 = vrot.lane.b32.xlu1 %v16707_v2, %s13216_s27 }
 0x87e   :  { %12323 = vrot.lane.b32.xlu0 %v12312_v20, %s13204_s22  ;;  %5288 = vrot.lane.b32.xlu1 %v16707_v2, %s13204_s22 }
 0x882   :  { %12328 = vrot.lane.b32.xlu0 %v12312_v20, %s13206_s24  ;;  %5336 = vrot.lane.b32.xlu1 %v16707_v2, %s13206_s24 }
 0x886   :  { %5136 = vrot.lane.b32.xlu0 %v16744_v38, %s13215_s26  ;;  %12338 = vrot.lane.b32.xlu1 %v12337_v39, %s13213_s23 }
 0x888   :  { %v16759_v11 = vpop.permute.xlu1 %12163 }
 0x889   :  { %v20074_v35 = vunpack.i.h.bf16 %v16759_v11  ;;  %v12165_v57 = vunpack.i.l.bf16 %v16759_v11 }
 0x88a   :  { %12348 = vrot.lane.b32.xlu1 %v12347_v45, %s13215_s26  ;;  %12333 = vrot.lane.b32.xlu0 %v12337_v39, %s13212_s20 }
 0x88b   :  { %v16765_v27 = vpop.permute.xlu0 %12158  ;;  %v5004_v51 = vsel %vm1107_vm9, %v12165_v57, %v20074_v35 }
 0x88c   :  { %v12161_v46 = vunpack.i.h.bf16 %v16765_v27  ;;  %v12160_v50 = vunpack.i.l.bf16 %v16765_v27  ;;  %v16769_v60 = vpop.permute.xlu1 %12173 }
 0x88d   :  { %v20073_v34 = vunpack.i.h.bf16 %v16769_v60  ;;  %v12175_v53 = vunpack.i.l.bf16 %v16769_v60 }
 0x88e   :  { %12353 = vrot.lane.b32.xlu1 %v12337_v39, %s13203_s21  ;;  %12343 = vrot.lane.b32.xlu0 %v12337_v39, %s13214_s25  ;;  %v5005_v32 = vsel %vm1107_vm9, %v12161_v46, %v12165_v57  ;;  %v5006_v43 = vsel %vm1107_vm9, %v12160_v50, %v12161_v46 }
 0x88f   :  { %v16781_v52 = vpop.permute.xlu0 %12168  ;;  %v5052_v17 = vsel %vm1156_vm10, %v12175_v53, %v20073_v34 }
 0x890   :  { %v12171_v49 = vunpack.i.h.bf16 %v16781_v52  ;;  %v12170_v18 = vunpack.i.l.bf16 %v16781_v52  ;;  %v16789_v26 = vpop.permute.xlu1 %12183  ;;  %v10532_v31 = vpack.c.bf16 %v5052_v17, %v5004_v51 }
 0x891   :  { %v20071_v21 = vunpack.i.h.bf16 %v16789_v26  ;;  %v12185_v37 = vunpack.i.l.bf16 %v16789_v26 }
 0x892   :  { %12358 = vrot.lane.b32.xlu1 %v12337_v39, %s13216_s27  ;;  %5198 = vrot.lane.b32.xlu0 %v16711_v54, %s13203_s21  ;;  %v5053_v10 = vsel %vm1156_vm10, %v12171_v49, %v12175_v53  ;;  %v5054_v33 = vsel %vm1156_vm10, %v12170_v18, %v12171_v49 }
 0x893   :  { %v16806_v0 = vpop.permute.xlu0 %12178  ;;  %10533 = vmatprep.subr.bf16.mxu1 %v10532_v31  ;;  %v10534_v13 = vpack.c.bf16 %v5053_v10, %v5005_v32  ;;  %v10512_v61 = vpack.c.bf16 %v5054_v33, %v5006_v43  ;;  %v5100_v40 = vsel %vm1205_vm11, %v12185_v37, %v20071_v21 }
 0x894   :  { %v12181_v12 = vunpack.i.h.bf16 %v16806_v0  ;;  %v20081_v4 = vunpack.i.l.bf16 %v16806_v0  ;;  %v16810_v23 = vpop.permute.xlu1 %12193 }
 0x895   :  { %v20070_v22 = vunpack.i.h.bf16 %v16810_v23  ;;  %v12195_v29 = vunpack.i.l.bf16 %v16810_v23  ;;  %10535 = vmatpush1.bf16.msra.mxu1 %v10534_v13  ;;  %10513 = vmatprep.subr.bf16.mxu0 %v10512_v61 }
 0x896   :  { %12363 = vrot.lane.b32.xlu1 %v12337_v39, %s13204_s22  ;;  %5246 = vrot.lane.b32.xlu0 %v16711_v54, %s13216_s27  ;;  %v5101_v58 = vsel %vm1205_vm11, %v12181_v12, %v12185_v37  ;;  %v16835_v46 = vsel %vm1205_vm11, %v20081_v4, %v12181_v12 }
 0x897   :  { %v16823_v20 = vpop.permute.xlu0 %12188  ;;  %v5148_v63 = vsel %vm1254_vm12, %v12195_v29, %v20070_v22 }
 0x898   :  { %v12191_v44 = vunpack.i.h.bf16 %v16823_v20  ;;  %v20082_v45 = vunpack.i.l.bf16 %v16823_v20  ;;  %v10536_v57 = vpack.c.bf16 %v5148_v63, %v5100_v40 }
 0x89a   :  { %12368 = vrot.lane.b32.xlu1 %v12337_v39, %s13206_s24  ;;  %5294 = vrot.lane.b32.xlu0 %v16711_v54, %s13204_s22  ;;  %v5149_v53 = vsel %vm1254_vm12, %v12191_v44, %v12195_v29  ;;  %v16846_v51 = vsel %vm1254_vm12, %v20082_v45, %v12191_v44  ;;  %v16852_v39 = vpop.permute.xlu1 %12203 }
 0x89b   :  { %10537 = vmatprep.subr.bf16.mxu1 %v10536_v57  ;;  %v10538_v32 = vpack.c.bf16 %v5149_v53, %v5101_v58  ;;  %v16856_v31 = vpop.permute.xlu0 %12198  ;;  %v20080_v53 = vunpack.i.h.bf16 %v16852_v39  ;;  %v12205_v4 = vunpack.i.l.bf16 %v16852_v39 }
 0x89c   :  { %v20083_v33 = vunpack.i.h.bf16 %v16856_v31  ;;  %v20379_v45 = vunpack.i.h.bf16 %v16856_v31 }
 0x89d   :  { %10539 = vmatpush1.bf16.msra.mxu1 %v10538_v32 }
 0x89e   :  { %5342 = vrot.lane.b32.xlu0 %v16711_v54, %s13206_s24  ;;  %v16854_v49 = vpop.permute.xlu1 %12208 }
 0x89f   :  { %v20075_v32 = vunpack.i.h.bf16 %v16854_v49  ;;  %v12210_v47 = vunpack.i.l.bf16 %v16854_v49 }
 0x8a2   :  { %v16858_v43 = vpop.permute.xlu1 %12213 }
 0x8a3   :  { %v20079_v34 = vunpack.i.h.bf16 %v16858_v43  ;;  %v12215_v3 = vunpack.i.l.bf16 %v16858_v43 }
 0x8bc   :  { %v16860_v37 = vpop.permute.xlu0 %12223  ;;  %v16862_v10 = vpop.permute.xlu1 %12218 }
 0x8bd   :  { %v20072_v13 = vunpack.i.h.bf16 %v16862_v10  ;;  %v12220_v61 = vunpack.i.l.bf16 %v16862_v10  ;;  %v20076_v12 = vunpack.i.h.bf16 %v16860_v37  ;;  %v12225_v29 = vunpack.i.l.bf16 %v16860_v37 }
 0x8bf   :  { %v5208_v40 = vsel %vm140_vm0, %v20083_v33, %v12220_v61  ;;  %v5207_v58 = vsel %vm140_vm0, %v12220_v61, %v20072_v13  ;;  %v5256_v61 = vsel %vm1363_vm13, %v20080_v53, %v12225_v29 }
 0x8c0   :  { %v16877_v63 = vpop.permute.xlu0 %12228  ;;  %v10540_v44 = vpack.c.bf16 %v5207_v58, %v16657_v8  ;;  %v10542_v57 = vpack.c.bf16 %v5208_v40, %v16654_v48  ;;  %v5255_v48 = vsel %vm1363_vm13, %v12225_v29, %v20076_v12 }
 0x8c1   :  { %v20077_v22 = vunpack.i.h.bf16 %v16877_v63  ;;  %v12230_v21 = vunpack.i.l.bf16 %v16877_v63 }
 0x8c2   :  { %10541 = vmatprep.subr.bf16.mxu1 %v10540_v44 }
 0x8c3   :  { %v5304_v8 = vsel %vm238_vm2, %v20075_v32, %v12230_v21  ;;  %10543 = vmatpush1.bf16.msra.mxu1 %v10542_v57  ;;  %v5303_v40 = vsel %vm238_vm2, %v12230_v21, %v20077_v22  ;;  %v16906_v32 = vpop.permute.xlu1 %12243 }
 0x8c4   :  { %v16901_v58 = vpop.permute.xlu0 %12233  ;;  %v10544_v44 = vpack.c.bf16 %v5303_v40, %v5255_v48  ;;  %v10546_v13 = vpack.c.bf16 %v5304_v8, %v5256_v61  ;;  %v16923_v40 = vld [vmem:[%s19933_s1 + $0x28] sm:$0xff] }
 0x8c5   :  { %v20078_v35 = vunpack.i.h.bf16 %v16901_v58  ;;  %v12235_v57 = vunpack.i.l.bf16 %v16901_v58 }
 0x8c6   :  { %10545 = vmatprep.subr.bf16.mxu1 %v10544_v44 }
 0x8c7   :  { %v5352_v29 = vsel %vm287_vm3, %v20079_v34, %v12235_v57  ;;  %10547 = vmatpush1.bf16.msra.mxu1 %v10546_v13  ;;  %v5351_v21 = vsel %vm287_vm3, %v12235_v57, %v20078_v35  ;;  %v16925_v44 = vpop.permute.xlu1 %12253  ;;  %v12200_v34 = vunpack.i.l.bf16 %v16856_v31 }
 0x8c8   :  { %v16916_v61 = vpop.permute.xlu0 %12238  ;;  %v10548_v8 = vpack.c.bf16 %v20228_v1, %v5351_v21  ;;  %v10550_v48 = vpack.c.bf16 %v20228_v1, %v5352_v29 }
 0x8c9   :  { %v5209_v14 = vsel %vm140_vm0, %v12200_v34, %v20379_v45  ;;  %v20388_v7 = vunpack.i.l.bf16 %v16916_v61 }
 0x8ca   :  { %10549 = vmatprep.subr.bf16.mxu1 %v10548_v8 }
 0x8cb   :  { %10551 = vmatpush1.bf16.msra.mxu1 %v10550_v48 }
 0x8cc   :  { %v16927_v13 = vpop.permute.xlu0 %12248 }
 0x8ce   :  { %9879 = vmatmul.mubr.msk.f32.vlgmr.msra.gmra.mrb[30].mxu1 %vm629_vm8, %v16923_v40 }
 0x8cf   :  { %5770 = vmatprep.mubr.f32.mxu1 %v20235_v28 }
 0x8d0   :  { %v16932_v57 = vpop.permute.xlu0 %12258  ;;  %v16934_v21 = vpop.permute.xlu1 %12268 }
 0x8d1   :  { %v12261_v53 = vunpack.i.h.bf16 %v16932_v57  ;;  %v20384_v45 = vunpack.i.l.bf16 %v16934_v21 }
 0x8d4   :  { %v16936_v29 = vpop.permute.xlu0 %12263  ;;  %v16938_v8 = vpop.permute.xlu1 %12278 }
 0x8d5   :  { %v20085_v48 = vunpack.i.l.bf16 %v16938_v8  ;;  %v12266_v17 = vunpack.i.h.bf16 %v16936_v29 }
 0x8d7   :  { %v5055_v33 = vsel %vm1156_vm10, %v20085_v48, %v12170_v18  ;;  %v20382_v48 = vunpack.i.l.bf16 %v16806_v0  ;;  %v20386_v0 = vunpack.i.l.bf16 %v16932_v57 }
 0x8d8   :  { %v16941_v12 = vpop.permute.xlu0 %12273  ;;  %v16943_v22 = vpop.permute.xlu1 %12288 }
 0x8d9   :  { %v20087_v35 = vunpack.i.l.bf16 %v16941_v12 }
 0x8db   :  { %v5007_v41 = vsel %vm1107_vm9, %v20087_v35, %v12160_v50  ;;  %v20378_v50 = vunpack.i.l.bf16 %v16936_v29 }
 0x8dc   :  { %v16966_v36 = vpop.permute.xlu0 %12283  ;;  %v16968_v52 = vpop.permute.xlu1 %12293  ;;  %v10514_v62 = vpack.c.bf16 %v5055_v33, %v5007_v41  ;;  %v20380_v41 = vunpack.i.l.bf16 %v16823_v20  ;;  %v20381_v33 = vunpack.i.l.bf16 %v16943_v22  ;;  %v5000_v20 = vsel %vm1107_vm9, %v12261_v53, %v20384_v45 }
 0x8dd   :  { %v20088_v27 = vunpack.i.l.bf16 %v16966_v36  ;;  %v5049_v35 = vsel %vm1156_vm10, %v20378_v50, %v12266_v17  ;;  %v20385_v31 = vunpack.i.l.bf16 %v16968_v52 }
 0x8de   :  { %10515 = vmatpush1.bf16.msra.mxu0 %v10514_v62  ;;  %v5151_v18 = vsel %vm1254_vm12, %v20381_v33, %v20380_v41  ;;  %v20383_v62 = vpack.c.bf16 %v16846_v51, %v16835_v46  ;;  %v5001_v33 = vsel %vm1107_vm9, %v20386_v0, %v12261_v53  ;;  %v10520_v53 = vpack.c.bf16 %v5209_v14, %v16665_v15 }
 0x8df   :  { %v5103_v50 = vsel %vm1205_vm11, %v20088_v27, %v20382_v48  ;;  %v5048_v41 = vsel %vm1156_vm10, %v12266_v17, %v20385_v31  ;;  %v5210_v17 = vsel %vm140_vm0, %v20388_v7, %v12200_v34  ;;  %v20091_v31 = vunpack.i.l.bf16 %v16927_v13 }
 0x8e0   :  { %10517 = vmatprep.subr.bf16.mxu0 %v20383_v62  ;;  %v17009_v48 = vpop.permute.xlu0 %12298  ;;  %v17011_v27 = vpop.permute.xlu1 %12303  ;;  %v10518_v46 = vpack.c.bf16 %v5151_v18, %v5103_v50  ;;  %v10572_v51 = vpack.c.bf16 %v5048_v41, %v5000_v20  ;;  %v20387_v62 = vunpack.i.h.bf16 %v16852_v39  ;;  %v10574_v0 = vpack.c.bf16 %v5049_v35, %v5001_v33 }
 0x8e1   :  { %v12245_v18 = vunpack.i.l.bf16 %v16906_v32  ;;  %v20090_v50 = vunpack.i.l.bf16 %v16925_v44  ;;  %v20389_v39 = vunpack.i.h.bf16 %v16854_v49  ;;  %v12301_v7 = vunpack.i.h.bf16 %v17009_v48 }
 0x8e2   :  { %v5257_v45 = vsel %vm1363_vm13, %v12205_v4, %v20387_v62  ;;  %10519 = vmatpush1.bf16.msra.mxu0 %v10518_v46  ;;  %10573 = vmatprep.subr.bf16.mxu1 %v10572_v51  ;;  %v12300_v34 = vunpack.i.l.bf16 %v17009_v48  ;;  %v12305_v15 = vunpack.i.l.bf16 %v17011_v27  ;;  %v10522_v41 = vpack.c.bf16 %v5210_v17, %v16660_v9 }
 0x8e3   :  { %v5305_v20 = vsel %vm238_vm2, %v12210_v47, %v20389_v39  ;;  %10521 = vmatprep.subr.bf16.mxu0 %v10520_v53  ;;  %10575 = vmatpush1.bf16.msra.mxu1 %v10574_v0  ;;  %v5306_v49 = vsel %vm238_vm2, %v20091_v31, %v12210_v47  ;;  %v5258_v48 = vsel %vm1363_vm13, %v12245_v18, %v12205_v4  ;;  %v12276_v9 = vunpack.i.h.bf16 %v16941_v12 }
 0x8e4   :  { %v12309_v14 = vpop.permute.xlu0 %12308  ;;  %v17033_v35 = vpop.permute.xlu1 %5130  ;;  %v10524_v51 = vpack.c.bf16 %v5305_v20, %v5257_v45  ;;  %v5354_v62 = vsel %vm287_vm3, %v20090_v50, %v12215_v3  ;;  %v20390_v17 = vunpack.i.h.bf16 %v16858_v43  ;;  %v5097_v45 = vsel %vm1205_vm11, %v12300_v34, %v12301_v7 }
 0x8e5   :  { %v12311_v33 = vunpack.i.h.bf16 %v12309_v14  ;;  %v12310_v46 = vunpack.i.l.bf16 %v12309_v14  ;;  %v5096_v0 = vsel %vm1205_vm11, %v12301_v7, %v12305_v15  ;;  %v12281_v43 = vunpack.i.h.bf16 %v16938_v8 }
 0x8e6   :  { %10523 = vmatpush1.bf16.msra.mxu0 %v10522_v41  ;;  %v5353_v47 = vsel %vm287_vm3, %v12215_v3, %v20390_v17  ;;  %v10526_v20 = vpack.c.bf16 %v5306_v49, %v5258_v48  ;;  %v10530_v48 = vpack.c.bf16 %v20228_v1, %v5354_v62  ;;  %v12286_v62 = vunpack.i.h.bf16 %v16966_v36 }
 0x8e7   :  { %v5145_v53 = vsel %vm1254_vm12, %v12310_v46, %v12311_v33  ;;  %v5144_v4 = vsel %vm1254_vm12, %v12311_v33, %v17033_v35  ;;  %10525 = vmatprep.subr.bf16.mxu0 %v10524_v51  ;;  %v10528_v31 = vpack.c.bf16 %v20228_v1, %v5353_v47  ;;  %v20391_v33 = vunpack.i.l.bf16 %v16932_v57 }
 0x8e8   :  { %v12314_v39 = vpop.permute.xlu0 %12313  ;;  %v17065_v3 = vpop.permute.xlu1 %5192  ;;  %v10576_v14 = vpack.c.bf16 %v5144_v4, %v5096_v0  ;;  %v10578_v41 = vpack.c.bf16 %v5145_v53, %v5097_v45  ;;  %v12291_v47 = vunpack.i.h.bf16 %v16943_v22  ;;  %v20392_v4 = vunpack.i.l.bf16 %v16936_v29 }
 0x8e9   :  { %v12316_v17 = vunpack.i.h.bf16 %v12314_v39  ;;  %v12315_v50 = vunpack.i.l.bf16 %v12314_v39  ;;  %v5002_v51 = vsel %vm1107_vm9, %v12276_v9, %v20391_v33  ;;  %v20394_v29 = vunpack.i.h.bf16 %v16769_v60 }
 0x8ea   :  { %10527 = vmatpush1.bf16.msra.mxu0 %v10526_v20  ;;  %10577 = vmatprep.subr.bf16.mxu1 %v10576_v14  ;;  %v5050_v0 = vsel %vm1156_vm10, %v12281_v43, %v20392_v4  ;;  %v20393_v20 = vunpack.i.h.bf16 %v16759_v11  ;;  %v12241_v11 = vunpack.i.h.bf16 %v16916_v61 }
 0x8eb   :  { %v5204_v7 = vsel %vm140_vm0, %v12315_v50, %v12316_v17  ;;  %v5203_v49 = vsel %vm140_vm0, %v12316_v17, %v17065_v3  ;;  %10529 = vmatprep.subr.bf16.mxu0 %v10528_v31  ;;  %10579 = vmatpush1.bf16.msra.mxu1 %v10578_v41  ;;  %v10552_v14 = vpack.c.bf16 %v5050_v0, %v5002_v51 }
 0x8ec   :  { %v12319_v45 = vpop.permute.xlu0 %12318  ;;  %v17079_v53 = vpop.permute.xlu1 %5240  ;;  %v10580_v57 = vpack.c.bf16 %v5203_v49, %v16704_v59  ;;  %v10582_v39 = vpack.c.bf16 %v5204_v7, %v16701_v56  ;;  %v5003_v31 = vsel %vm1107_vm9, %v20393_v20, %v12276_v9  ;;  %v5146_v59 = vsel %vm1254_vm12, %v12291_v47, %v12310_v46 }
 0x8ed   :  { %v5051_v41 = vsel %vm1156_vm10, %v20394_v29, %v12281_v43  ;;  %v12321_v17 = vunpack.i.h.bf16 %v12319_v45  ;;  %v12320_v56 = vunpack.i.l.bf16 %v12319_v45  ;;  %v5098_v7 = vsel %vm1205_vm11, %v12286_v62, %v12300_v34 }
 0x8ee   :  { %10531 = vmatpush1.bf16.msra.mxu0 %v10530_v48  ;;  %10581 = vmatprep.subr.bf16.mxu1 %v10580_v57  ;;  %v10554_v51 = vpack.c.bf16 %v5051_v41, %v5003_v31  ;;  %v20395_v46 = vunpack.i.h.bf16 %v16789_v26  ;;  %v10556_v48 = vpack.c.bf16 %v5146_v59, %v5098_v7  ;;  %v12256_v45 = vunpack.i.h.bf16 %v16925_v44 }
 0x8ef   :  { %10553 = vmatprep.subr.bf16.mxu0 %v10552_v14  ;;  %10583 = vmatpush1.bf16.msra.mxu1 %v10582_v39  ;;  %v20396_v57 = vunpack.i.h.bf16 %v16810_v23  ;;  %v5205_v26 = vsel %vm140_vm0, %v12241_v11, %v12315_v50  ;;  %v5252_v34 = vsel %vm1363_vm13, %v12320_v56, %v12321_v17  ;;  %v5251_v0 = vsel %vm1363_vm13, %v12321_v17, %v17079_v53 }
 0x8f0   :  { %v12324_v9 = vpop.permute.xlu0 %12323  ;;  %v17099_v33 = vpop.permute.xlu1 %5288  ;;  %v5099_v60 = vsel %vm1205_vm11, %v20395_v46, %v12286_v62  ;;  %v20397_v59 = vunpack.i.h.bf16 %v16862_v10 }
 0x8f1   :  { %v12326_v49 = vunpack.i.h.bf16 %v12324_v9  ;;  %v12325_v43 = vunpack.i.l.bf16 %v12324_v9  ;;  %9878 = vmatmul.mubr.msk.f32.vlgmr.msra.gmra.mrb[30].mxu0 %vm629_vm8, %v16923_v40  ;;  %v5147_v4 = vsel %vm1254_vm12, %v20396_v57, %v12291_v47  ;;  %v12251_v47 = vunpack.i.h.bf16 %v16927_v13 }
 0x8f2   :  { %10555 = vmatpush1.bf16.msra.mxu0 %v10554_v51  ;;  %5699 = vmatprep.mubr.f32.mxu0 %v20235_v28  ;;  %v10558_v31 = vpack.c.bf16 %v5147_v4, %v5099_v60  ;;  %v5206_v29 = vsel %vm140_vm0, %v20397_v59, %v12241_v11  ;;  %v10560_v9 = vpack.c.bf16 %v5205_v26, %v16687_v30  ;;  %v12246_v51 = vunpack.i.h.bf16 %v16906_v32 }
 0x8f3   :  { %v5300_v39 = vsel %vm238_vm2, %v12325_v43, %v12326_v49  ;;  %v5299_v23 = vsel %vm238_vm2, %v12326_v49, %v17099_v33  ;;  %10557 = vmatprep.subr.bf16.mxu0 %v10556_v48  ;;  %v5301_v7 = vsel %vm238_vm2, %v12251_v47, %v12325_v43  ;;  %v10562_v30 = vpack.c.bf16 %v5206_v29, %v16684_v24 }
 0x8f4   :  { %v12329_v50 = vpop.permute.xlu0 %12328  ;;  %v17128_v20 = vpop.permute.xlu1 %5336  ;;  %v10584_v62 = vpack.c.bf16 %v5299_v23, %v5251_v0  ;;  %v10586_v14 = vpack.c.bf16 %v5300_v39, %v5252_v34  ;;  %v5253_v48 = vsel %vm1363_vm13, %v12246_v51, %v12320_v56  ;;  %v20398_v57 = vunpack.i.h.bf16 %v16901_v58 }
 0x8f5   :  { %v12331_v41 = vunpack.i.h.bf16 %v12329_v50  ;;  %v12330_v17 = vunpack.i.l.bf16 %v12329_v50  ;;  %v20399_v26 = vunpack.i.h.bf16 %v16877_v63  ;;  %v12271_v0 = vunpack.i.h.bf16 %v16934_v21 }
 0x8f6   :  { %10559 = vmatpush1.bf16.msra.mxu0 %v10558_v31  ;;  %10585 = vmatprep.subr.bf16.mxu1 %v10584_v62  ;;  %v5350_v4 = vsel %vm287_vm3, %v20398_v57, %v12256_v45  ;;  %v10564_v24 = vpack.c.bf16 %v5301_v7, %v5253_v48  ;;  %v12296_v39 = vunpack.i.h.bf16 %v16968_v52  ;;  %v20400_v56 = vunpack.i.h.bf16 %v16860_v37 }
 0x8f7   :  { %v5348_v46 = vsel %vm287_vm3, %v12330_v17, %v12331_v41  ;;  %v5347_v10 = vsel %vm287_vm3, %v12331_v41, %v17128_v20  ;;  %10561 = vmatprep.subr.bf16.mxu0 %v10560_v9  ;;  %10587 = vmatpush1.bf16.msra.mxu1 %v10586_v14  ;;  %v5302_v34 = vsel %vm238_vm2, %v20399_v26, %v12251_v47  ;;  %v20401_v9 = vunpack.i.l.bf16 %v16934_v21 }
 0x8f8   :  { %v5137_v11 = vpop.permute.xlu0 %5136  ;;  %v12339_v60 = vpop.permute.xlu1 %12338  ;;  %v10588_v49 = vpack.c.bf16 %v20228_v1, %v5347_v10  ;;  %v10590_v43 = vpack.c.bf16 %v20228_v1, %v5348_v46  ;;  %v5349_v58 = vsel %vm287_vm3, %v12256_v45, %v12330_v17  ;;  %v5254_v63 = vsel %vm1363_vm13, %v20400_v56, %v12246_v51 }
 0x8f9   :  { %v12341_v23 = vunpack.i.h.bf16 %v12339_v60  ;;  %v12340_v50 = vunpack.i.l.bf16 %v12339_v60  ;;  %v10566_v62 = vpack.c.bf16 %v5302_v34, %v5254_v63  ;;  %v10568_v29 = vpack.c.bf16 %v20228_v1, %v5349_v58 }
 0x8fa   :  { %10563 = vmatpush1.bf16.msra.mxu0 %v10562_v30  ;;  %10589 = vmatprep.subr.bf16.mxu1 %v10588_v49  ;;  %v10570_v41 = vpack.c.bf16 %v20228_v1, %v5350_v4  ;;  %v4999_v45 = vsel %vm1107_vm9, %v20401_v9, %v12271_v0  ;;  %v20402_v37 = vunpack.i.l.bf16 %v16968_v52  ;;  %v20403_v10 = vunpack.i.l.bf16 %v16941_v12 }
 0x8fb   :  { %10565 = vmatprep.subr.bf16.mxu0 %v10564_v24  ;;  %10591 = vmatpush1.bf16.msra.mxu1 %v10590_v43  ;;  %v5045_v51 = vsel %vm1156_vm10, %v12340_v50, %v12341_v23  ;;  %v20404_v60 = vunpack.i.l.bf16 %v16938_v8  ;;  %v12306_v49 = vunpack.i.h.bf16 %v17011_v27  ;;  %v20405_v12 = vunpack.i.l.bf16 %v16943_v22 }
 0x8fc   :  { %v12349_v47 = vpop.permute.xlu1 %12348  ;;  %v12334_v31 = vpop.permute.xlu0 %12333  ;;  %v5047_v17 = vsel %vm1156_vm10, %v20402_v37, %v12296_v39  ;;  %v20406_v22 = vunpack.i.l.bf16 %v16966_v36  ;;  %v20407_v9 = vunpack.i.l.bf16 %v16916_v61 }
 0x8fd   :  { %v12336_v14 = vunpack.i.h.bf16 %v12334_v31  ;;  %v12335_v59 = vunpack.i.l.bf16 %v12334_v31  ;;  %v12351_v7 = vunpack.i.h.bf16 %v12349_v47  ;;  %v12350_v46 = vunpack.i.l.bf16 %v12349_v47 }
 0x8fe   :  { %10567 = vmatpush1.bf16.msra.mxu0 %v10566_v62  ;;  %9881 = vmatmul.mubr.msk.f32.vlgmr.msra.gmra.mrb[32].mxu1 %vm629_vm8, %v16923_v40  ;;  %v5044_v30 = vsel %vm1156_vm10, %v12341_v23, %v20404_v60  ;;  %v5140_v34 = vsel %vm1254_vm12, %v5137_v11, %v20405_v12  ;;  %v5046_v23 = vsel %vm1156_vm10, %v12296_v39, %v12340_v50 }
 0x8ff   :  { %v4997_v21 = vsel %vm1107_vm9, %v12335_v59, %v12336_v14  ;;  %10569 = vmatprep.subr.bf16.mxu0 %v10568_v29  ;;  %v4996_v52 = vsel %vm1107_vm9, %v12336_v14, %v20403_v10  ;;  %v4998_v4 = vsel %vm1107_vm9, %v12271_v0, %v12335_v59  ;;  %5912 = vmatprep.mubr.f32.mxu1 %v20235_v28 }
 0x900   :  { %v12354_v48 = vpop.permute.xlu1 %12353  ;;  %v12344_v43 = vpop.permute.xlu0 %12343  ;;  %v10612_v57 = vpack.c.bf16 %v5044_v30, %v4996_v52  ;;  %v10614_v26 = vpack.c.bf16 %v5045_v51, %v4997_v21  ;;  %v5141_v58 = vsel %vm1254_vm12, %v12351_v7, %v5137_v11  ;;  %v10592_v0 = vpack.c.bf16 %v5046_v23, %v4998_v4 }
 0x901   :  { %v12346_v8 = vunpack.i.h.bf16 %v12344_v43  ;;  %v12345_v24 = vunpack.i.l.bf16 %v12344_v43  ;;  %v12356_v56 = vunpack.i.h.bf16 %v12354_v48  ;;  %v12355_v63 = vunpack.i.l.bf16 %v12354_v48 }
 0x902   :  { %10571 = vmatpush1.bf16.msra.mxu0 %v10570_v41  ;;  %10613 = vmatprep.subr.bf16.mxu1 %v10612_v57  ;;  %v5142_v11 = vsel %vm1254_vm12, %v12350_v46, %v12351_v7  ;;  %v10594_v14 = vpack.c.bf16 %v5047_v17, %v4999_v45  ;;  %v5143_v36 = vsel %vm1254_vm12, %v17033_v35, %v12350_v46 }
 0x903   :  { %v5093_v47 = vsel %vm1205_vm11, %v12345_v24, %v12346_v8  ;;  %10615 = vmatpush1.bf16.msra.mxu1 %v10614_v26  ;;  %v5092_v31 = vsel %vm1205_vm11, %v12346_v8, %v20406_v22  ;;  %v5094_v39 = vsel %vm1205_vm11, %v12306_v49, %v12345_v24  ;;  %10593 = vmatprep.subr.bf16.mxu0 %v10592_v0  ;;  %v20409_v0 = vunpack.i.l.bf16 %v16925_v44 }
 0x904   :  { %v12359_v50 = vpop.permute.xlu1 %12358  ;;  %v5199_v62 = vpop.permute.xlu0 %5198  ;;  %v10616_v59 = vpack.c.bf16 %v5140_v34, %v5092_v31  ;;  %v10596_v29 = vpack.c.bf16 %v5142_v11, %v5094_v39  ;;  %v10618_v41 = vpack.c.bf16 %v5141_v58, %v5093_v47  ;;  %v5201_v17 = vsel %vm140_vm0, %v12355_v63, %v12356_v56 }
 0x905   :  { %v5211_v37 = vsel %vm140_vm0, %v5199_v62, %v20407_v9  ;;  %9880 = vmatmul.mubr.msk.f32.vlgmr.msra.gmra.mrb[32].mxu0 %vm629_vm8, %v16923_v40  ;;  %v5200_v51 = vsel %vm140_vm0, %v12356_v56, %v5199_v62  ;;  %v5095_v61 = vsel %vm1205_vm11, %v12305_v15, %v12306_v49  ;;  %v12361_v35 = vunpack.i.h.bf16 %v12359_v50 }
 0x906   :  { %10595 = vmatpush1.bf16.msra.mxu0 %v10594_v14  ;;  %10617 = vmatprep.subr.bf16.mxu1 %v10616_v59  ;;  %v10620_v45 = vpack.c.bf16 %v5211_v37, %v16711_v54  ;;  %v12360_v7 = vunpack.i.l.bf16 %v12359_v50  ;;  %v5202_v46 = vsel %vm140_vm0, %v17065_v3, %v12355_v63  ;;  %v10598_v54 = vpack.c.bf16 %v5143_v36, %v5095_v61 }
 0x907   :  { %10597 = vmatprep.subr.bf16.mxu0 %v10596_v29  ;;  %10619 = vmatpush1.bf16.msra.mxu1 %v10618_v41  ;;  %v10622_v52 = vpack.c.bf16 %v5200_v51, %v16744_v38  ;;  %v10600_v15 = vpack.c.bf16 %v5201_v17, %v16747_v16  ;;  %v10602_v30 = vpack.c.bf16 %v5202_v46, %v16707_v2  ;;  %v20408_v34 = vunpack.i.l.bf16 %v16927_v13 }
 0x908   :  { %v12364_v21 = vpop.permute.xlu1 %12363  ;;  %v5247_v10 = vpop.permute.xlu0 %5246  ;;  %10621 = vmatprep.subr.bf16.mxu1 %v10620_v45  ;;  %5841 = vmatprep.mubr.f32.mxu0 %v20235_v28  ;;  %v5249_v3 = vsel %vm1363_vm13, %v12360_v7, %v12361_v35  ;;  %v5250_v32 = vsel %vm1363_vm13, %v17079_v53, %v12360_v7 }
 0x909   :  { %v12366_v27 = vunpack.i.h.bf16 %v12364_v21  ;;  %v12365_v60 = vunpack.i.l.bf16 %v12364_v21  ;;  %v5248_v38 = vsel %vm1363_vm13, %v12361_v35, %v5247_v10  ;;  %v5259_v16 = vsel %vm1363_vm13, %v5247_v10, %v12245_v18  ;;  %v20410_v10 = vld [vmem:[#allocation3_spill] sm:$0xff] }
 0x90a   :  { %10599 = vmatpush1.bf16.msra.mxu0 %v10598_v54 }
 0x90b   :  { %10601 = vmatprep.subr.bf16.mxu0 %v10600_v15  ;;  %10623 = vmatpush1.bf16.msra.mxu1 %v10622_v52  ;;  %v5297_v49 = vsel %vm238_vm2, %v12365_v60, %v12366_v27  ;;  %v5298_v48 = vsel %vm238_vm2, %v17099_v33, %v12365_v60 }
 0x90c   :  { %v12369_v43 = vpop.permute.xlu1 %12368  ;;  %v5295_v2 = vpop.permute.xlu0 %5294  ;;  %v10604_v57 = vpack.c.bf16 %v5297_v49, %v5249_v3  ;;  %v10606_v58 = vpack.c.bf16 %v5298_v48, %v5250_v32  ;;  %v20411_v49 = vld [vmem:[#allocation8_spill] sm:$0xff] }
 0x90d   :  { %v12371_v4 = vunpack.i.h.bf16 %v12369_v43  ;;  %v12370_v26 = vunpack.i.l.bf16 %v12369_v43  ;;  %v5296_v12 = vsel %vm238_vm2, %v12366_v27, %v5295_v2  ;;  %v5307_v33 = vsel %vm238_vm2, %v5295_v2, %v20408_v34  ;;  %v20412_v43 = vld [vmem:[#allocation4_spill] sm:$0xff] }
 0x90e   :  { %v10626_v8 = vpack.c.bf16 %v5296_v12, %v5248_v38  ;;  %10603 = vmatpush1.bf16.msra.mxu0 %v10602_v30  ;;  %v10624_v24 = vpack.c.bf16 %v5307_v33, %v5259_v16 }
 0x90f   :  { %10605 = vmatprep.subr.bf16.mxu0 %v10604_v57  ;;  %v5345_v18 = vsel %vm287_vm3, %v12370_v26, %v12371_v4  ;;  %v5346_v13 = vsel %vm287_vm3, %v17128_v20, %v12370_v26  ;;  %v20413_v26 = vld [vmem:[#allocation5_spill] sm:$0xff] }
 0x910   :  { %v5343_v23 = vpop.permute.xlu0 %5342  ;;  %10625 = vmatprep.subr.bf16.mxu1 %v10624_v24  ;;  %v10608_v56 = vpack.c.bf16 %v20228_v1, %v5345_v18  ;;  %v10610_v31 = vpack.c.bf16 %v20228_v1, %v5346_v13  ;;  %v20416_v13 = vld [vmem:[#allocation9_spill] sm:$0xff] }
 0x911   :  { %v5344_v63 = vsel %vm287_vm3, %v12371_v4, %v5343_v23  ;;  %v5355_v53 = vsel %vm287_vm3, %v5343_v23, %v20409_v0  ;;  %10627 = vmatpush1.bf16.msra.mxu1 %v10626_v8  ;;  %v20414_v8 = vld [vmem:[#allocation7_spill] sm:$0xff] }
 0x912   :  { %v10630_v47 = vpack.c.bf16 %v20228_v1, %v5344_v63  ;;  %10607 = vmatpush1.bf16.msra.mxu0 %v10606_v58  ;;  %v10628_v22 = vpack.c.bf16 %v20228_v1, %v5355_v53  ;;  %v20415_v58 = vld [vmem:[#allocation10_spill] sm:$0xff] }
 0x913   :  { %10609 = vmatprep.subr.bf16.mxu0 %v10608_v56 }
 0x914   :  { %10629 = vmatprep.subr.bf16.mxu1 %v10628_v22 }
 0x915   :  { %10631 = vmatpush1.bf16.msra.mxu1 %v10630_v47 }
 0x916   :  { %10611 = vmatpush1.bf16.msra.mxu0 %v10610_v31 }
 0x918   :  { %9883 = vmatmul.mubr.msk.f32.vlgmr.msra.gmra.mrb[34].mxu1 %vm629_vm8, %v16923_v40 }
 0x919   :  { %9882 = vmatmul.mubr.msk.f32.vlgmr.msra.gmra.mrb[34].mxu0 %vm629_vm8, %v16923_v40  ;;  %6599 = vmatprep.mubr.f32.mxu1 %v20235_v28 }
 0x91a   :  { %6528 = vmatprep.mubr.f32.mxu0 %v20235_v28 }
 0x9a1   :  { %v5630_v44 = vpop.f32.mrb[30].mxu1 }
 0x9a2   :  { %v5921_v20 = vmax.f32 %v5630_v44, 0.0  ;;  %v5632_v39 = vpop.f32.mrb[31].mxu1 }
 0x9a3   :  { %v5922_v11 = vmax.f32 %v5632_v39, 0.0 }
 0x9a4   :  { %v17279_v50 = vmul.f32 %v5921_v20, %v13996_v6 }
 0x9a5   :  { %v17282_v62 = vmul.f32 %v5922_v11, %v14001_v42 }
 0x9a7   :  { %v12372_v14 = vpack.i.bf16 %v17282_v62, %v17279_v50 }
 0x9a9   :  { %12373 = vrot.lane.b32.xlu1 %v12372_v14, %s13212_s20  ;;  %12378 = vrot.lane.b32.xlu0 %v12372_v14, %s13213_s23 }
 0x9ad   :  { %12383 = vrot.lane.b32.xlu1 %v12372_v14, %s13214_s25  ;;  %12388 = vrot.lane.b32.xlu0 %v12372_v14, %s13215_s26 }
 0x9c4   :  { %v5559_v40 = vpop.f32.mrb[30].mxu0 }
 0x9c5   :  { %v5561_v59 = vpop.f32.mrb[31].mxu0  ;;  %v5919_v21 = vmax.f32 %v5559_v40, 0.0 }
 0x9c6   :  { %v5920_v41 = vmax.f32 %v5561_v59, 0.0 }
 0x9c7   :  { %v17311_v54 = vmul.f32 %v5919_v21, %v20410_v10 }
 0x9c8   :  { %v17297_v17 = vmul.f32 %v5920_v41, %v14023_v5 }
 0x9ca   :  { %v12432_v27 = vpack.i.bf16 %v17311_v54, %v17297_v17 }
 0x9d1   :  { %v5772_v29 = vpop.f32.mrb[32].mxu1 }
 0x9d2   :  { %v5925_v36 = vmax.f32 %v5772_v29, 0.0  ;;  %v5774_v9 = vpop.f32.mrb[33].mxu1 }
 0x9d3   :  { %v5926_v37 = vmax.f32 %v5774_v9, 0.0 }
 0x9d4   :  { %v17291_v51 = vmul.f32 %v5925_v36, %v14072_v55 }
 0x9d5   :  { %v17294_v45 = vmul.f32 %v5926_v37, %v14078_v25 }
 0x9d6   :  { %v12412_v46 = vpack.i.bf16 %v17291_v51, %v17297_v17 }
 0x9d7   :  { %v12397_v61 = vpack.i.bf16 %v17294_v45, %v17279_v50 }
 0x9d8   :  { %v5701_v35 = vpop.f32.mrb[32].mxu0 }
 0x9d9   :  { %v5703_v7 = vpop.f32.mrb[33].mxu0  ;;  %12398 = vrot.lane.b32.xlu1 %v12397_v61, %s13216_s27  ;;  %12393 = vrot.lane.b32.xlu0 %v12397_v61, %s13203_s21  ;;  %v5923_v38 = vmax.f32 %v5701_v35, 0.0 }
 0x9da   :  { %v5924_v57 = vmax.f32 %v5703_v7, 0.0 }
 0x9db   :  { %v17325_v2 = vmul.f32 %v5923_v38, %v20412_v43 }
 0x9dc   :  { %v17334_v12 = vmul.f32 %v5924_v57, %v20413_v26 }
 0x9dd   :  { %12413 = vrot.lane.b32.xlu1 %v12412_v46, %s13212_s20  ;;  %12403 = vrot.lane.b32.xlu0 %v12397_v61, %s13204_s22  ;;  %v12467_v4 = vpack.i.bf16 %v17325_v2, %v17282_v62 }
 0x9de   :  { %v12492_v34 = vpack.i.bf16 %v17334_v12, %v17294_v45 }
 0x9e1   :  { %12423 = vrot.lane.b32.xlu1 %v12412_v46, %s13214_s25  ;;  %12408 = vrot.lane.b32.xlu0 %v12397_v61, %s13206_s24 }
 0x9e5   :  { %12418 = vrot.lane.b32.xlu0 %v12412_v46, %s13213_s23 }
 0x9e9   :  { %12428 = vrot.lane.b32.xlu0 %v12412_v46, %s13215_s26 }
 0x9eb   :  { %v5914_v52 = vpop.f32.mrb[34].mxu1 }
 0x9ec   :  { %v5843_v60 = vpop.f32.mrb[34].mxu0  ;;  %v5916_v15 = vpop.f32.mrb[35].mxu1  ;;  %v5929_v23 = vmax.f32 %v5914_v52, 0.0 }
 0x9ed   :  { %v5930_v30 = vmax.f32 %v5916_v15, 0.0  ;;  %12433 = vrot.lane.b32.xlu0 %v12432_v27, %s13203_s21  ;;  %v5845_v3 = vpop.f32.mrb[35].mxu0  ;;  %v5927_v33 = vmax.f32 %v5843_v60, 0.0 }
 0x9ee   :  { %v5928_v32 = vmax.f32 %v5845_v3, 0.0  ;;  %v17357_v63 = vmul.f32 %v5929_v23, %v20416_v13 }
 0x9ef   :  { %v17318_v48 = vmul.f32 %v5930_v30, %v20411_v49  ;;  %v17345_v24 = vmul.f32 %v5927_v33, %v20414_v8 }
 0x9f0   :  { %v17354_v56 = vmul.f32 %v5928_v32, %v20415_v58 }
 0x9f1   :  { %v12442_v16 = vpack.i.bf16 %v17318_v48, %v17311_v54  ;;  %v12517_v18 = vpack.i.bf16 %v17291_v51, %v17345_v24  ;;  %v12522_v53 = vpack.i.bf16 %v17357_v63, %v17318_v48 }
 0x9f2   :  { %v12537_v0 = vpack.i.bf16 %v17354_v56, %v17357_v63 }
 0x9f3   :  { %12443 = vrot.lane.b32.xlu0 %v12442_v16, %s13213_s23  ;;  %12438 = vrot.lane.b32.xlu1 %v12442_v16, %s13212_s20 }
 0x9f7   :  { %12448 = vrot.lane.b32.xlu0 %v12442_v16, %s13214_s25  ;;  %12453 = vrot.lane.b32.xlu1 %v12442_v16, %s13215_s26 }
 0x9fb   :  { %12468 = vrot.lane.b32.xlu0 %v12467_v4, %s13204_s22  ;;  %12458 = vrot.lane.b32.xlu1 %v12467_v4, %s13203_s21 }
 0x9ff   :  { %12473 = vrot.lane.b32.xlu0 %v12432_v27, %s13216_s27  ;;  %12463 = vrot.lane.b32.xlu1 %v12467_v4, %s13216_s27 }
 0xa03   :  { %12493 = vrot.lane.b32.xlu0 %v12492_v34, %s13213_s23  ;;  %12478 = vrot.lane.b32.xlu1 %v12432_v27, %s13204_s22 }
 0xa07   :  { %12503 = vrot.lane.b32.xlu0 %v12492_v34, %s13215_s26  ;;  %12483 = vrot.lane.b32.xlu1 %v12467_v4, %s13206_s24 }
 0xa0b   :  { %12508 = vrot.lane.b32.xlu0 %v12432_v27, %s13206_s24  ;;  %12488 = vrot.lane.b32.xlu1 %v12492_v34, %s13212_s20 }
 0xa0f   :  { %12518 = vrot.lane.b32.xlu0 %v12517_v18, %s13216_s27  ;;  %12498 = vrot.lane.b32.xlu1 %v12492_v34, %s13214_s25 }
 0xa13   :  { %5999 = vrot.lane.b32.xlu0 %v17325_v2, %s13213_s23  ;;  %5951 = vrot.lane.b32.xlu1 %v17325_v2, %s13212_s20 }
 0xa17   :  { %12538 = vrot.lane.b32.xlu0 %v12537_v0, %s13212_s20  ;;  %12513 = vrot.lane.b32.xlu1 %v12517_v18, %s13203_s21 }
 0xa1b   :  { %12548 = vrot.lane.b32.xlu0 %v12537_v0, %s13214_s25  ;;  %12523 = vrot.lane.b32.xlu1 %v12522_v53, %s13203_s21  ;;  %v17371_v47 = vpop.permute.xlu1 %12373  ;;  %v17373_v22 = vpop.permute.xlu0 %12378 }
 0xa1c   :  { %v20096_v31 = vunpack.i.h.bf16 %v17371_v47  ;;  %v12375_v44 = vunpack.i.l.bf16 %v17371_v47  ;;  %v20098_v20 = vunpack.i.h.bf16 %v17373_v22  ;;  %v12380_v39 = vunpack.i.l.bf16 %v17373_v22 }
 0xa1e   :  { %v5975_v11 = vsel %vm1107_vm9, %v12375_v44, %v20096_v31  ;;  %v6023_v14 = vsel %vm1156_vm10, %v12380_v39, %v20098_v20 }
 0xa1f   :  { %6047 = vrot.lane.b32.xlu0 %v17325_v2, %s13214_s25  ;;  %12528 = vrot.lane.b32.xlu1 %v12517_v18, %s13204_s22  ;;  %v10652_v40 = vpack.c.bf16 %v6023_v14, %v5975_v11  ;;  %v17418_v59 = vpop.permute.xlu1 %12383  ;;  %v17420_v29 = vpop.permute.xlu0 %12388 }
 0xa20   :  { %v20093_v35 = vunpack.i.h.bf16 %v17418_v59  ;;  %v12385_v7 = vunpack.i.l.bf16 %v17418_v59  ;;  %v20092_v46 = vunpack.i.h.bf16 %v17420_v29  ;;  %v12390_v21 = vunpack.i.l.bf16 %v17420_v29 }
 0xa21   :  { %10653 = vmatprep.subr.bf16.mxu1 %v10652_v40 }
 0xa22   :  { %v6071_v30 = vsel %vm1205_vm11, %v12385_v7, %v20093_v35  ;;  %v6119_v3 = vsel %vm1254_vm12, %v12390_v21, %v20092_v46 }
 0xa23   :  { %12558 = vrot.lane.b32.xlu0 %v12522_v53, %s13216_s27  ;;  %12533 = vrot.lane.b32.xlu1 %v12517_v18, %s13206_s24  ;;  %v10656_v32 = vpack.c.bf16 %v6119_v3, %v6071_v30 }
 0xa27   :  { %6157 = vrot.lane.b32.xlu0 %v17334_v12, %s13203_s21  ;;  %12543 = vrot.lane.b32.xlu1 %v12537_v0, %s13213_s23 }
 0xa2b   :  { %6205 = vrot.lane.b32.xlu0 %v17334_v12, %s13216_s27  ;;  %12553 = vrot.lane.b32.xlu1 %v12537_v0, %s13215_s26 }
 0xa2f   :  { %6301 = vrot.lane.b32.xlu0 %v17334_v12, %s13206_s24  ;;  %6095 = vrot.lane.b32.xlu1 %v17325_v2, %s13215_s26 }
 0xa33   :  { %6007 = vrot.lane.b32.xlu0 %v17345_v24, %s13213_s23  ;;  %12563 = vrot.lane.b32.xlu1 %v12522_v53, %s13204_s22 }
 0xa37   :  { %6103 = vrot.lane.b32.xlu0 %v17345_v24, %s13215_s26  ;;  %12568 = vrot.lane.b32.xlu1 %v12522_v53, %s13206_s24 }
 0xa3b   :  { %6213 = vrot.lane.b32.xlu0 %v17354_v56, %s13216_s27  ;;  %6253 = vrot.lane.b32.xlu1 %v17334_v12, %s13204_s22 }
 0xa3f   :  { %6309 = vrot.lane.b32.xlu0 %v17354_v56, %s13206_s24  ;;  %5959 = vrot.lane.b32.xlu1 %v17345_v24, %s13212_s20 }
 0xa43   :  { %6055 = vrot.lane.b32.xlu1 %v17345_v24, %s13214_s25 }
 0xa47   :  { %6165 = vrot.lane.b32.xlu1 %v17354_v56, %s13203_s21 }
 0xa4b   :  { %v17424_v41 = vpop.permute.xlu1 %12398  ;;  %v17426_v36 = vpop.permute.xlu0 %12393  ;;  %6261 = vrot.lane.b32.xlu1 %v17354_v56, %s13204_s22 }
 0xa4f   :  { %v17430_v9 = vpop.permute.xlu0 %12403  ;;  %v17432_v37 = vpop.permute.xlu1 %12413 }
 0xa50   :  { %v12415_v52 = vunpack.i.l.bf16 %v17432_v37 }
 0xa52   :  { %v5976_v38 = vsel %vm1107_vm9, %v12415_v52, %v12375_v44 }
 0xa53   :  { %v17434_v61 = vpop.permute.xlu0 %12408  ;;  %v17441_v27 = vpop.permute.xlu1 %12423 }
 0xa54   :  { %v12425_v16 = vunpack.i.l.bf16 %v17441_v27 }
 0xa56   :  { %v6072_v18 = vsel %vm1205_vm11, %v12425_v16, %v12385_v7 }
 0xa57   :  { %v17443_v60 = vpop.permute.xlu0 %12418 }
 0xa58   :  { %v12420_v15 = vunpack.i.l.bf16 %v17443_v60 }
 0xa5a   :  { %v6024_v57 = vsel %vm1156_vm10, %v12420_v15, %v12380_v39 }
 0xa5b   :  { %v17459_v4 = vpop.permute.xlu0 %12428  ;;  %v10654_v34 = vpack.c.bf16 %v6024_v57, %v5976_v38 }
 0xa5c   :  { %v12430_v33 = vunpack.i.l.bf16 %v17459_v4 }
 0xa5d   :  { %10655 = vmatpush1.bf16.msra.mxu1 %v10654_v34  ;;  %v12395_v34 = vunpack.i.l.bf16 %v17426_v36 }
 0xa5e   :  { %v6120_v23 = vsel %vm1254_vm12, %v12430_v33, %v12390_v21  ;;  %10657 = vmatprep.subr.bf16.mxu1 %v10656_v32 }
 0xa5f   :  { %v10658_v0 = vpack.c.bf16 %v6120_v23, %v6072_v18  ;;  %v17466_v53 = vpop.permute.xlu0 %12433 }
 0xa60   :  { %v12435_v30 = vunpack.i.l.bf16 %v17466_v53 }
 0xa61   :  { %10659 = vmatpush1.bf16.msra.mxu1 %v10658_v0 }
 0xa65   :  { %v17468_v44 = vpop.permute.xlu0 %12443  ;;  %v17470_v39 = vpop.permute.xlu1 %12438 }
 0xa66   :  { %v20094_v11 = vunpack.i.h.bf16 %v17468_v44  ;;  %v12445_v14 = vunpack.i.l.bf16 %v17468_v44  ;;  %v20095_v40 = vunpack.i.h.bf16 %v17470_v39  ;;  %v12440_v7 = vunpack.i.l.bf16 %v17470_v39 }
 0xa68   :  { %v6026_v21 = vsel %vm1156_vm10, %v20094_v11, %v12445_v14  ;;  %v5978_v3 = vsel %vm1107_vm9, %v20095_v40, %v12440_v7  ;;  %v5977_v38 = vsel %vm1107_vm9, %v12440_v7, %v12415_v52  ;;  %v6025_v57 = vsel %vm1156_vm10, %v12445_v14, %v12420_v15 }
 0xa69   :  { %v17490_v32 = vpop.permute.xlu0 %12448  ;;  %v17492_v18 = vpop.permute.xlu1 %12453  ;;  %v10632_v23 = vpack.c.bf16 %v6025_v57, %v5977_v38  ;;  %v10634_v0 = vpack.c.bf16 %v6026_v21, %v5978_v3  ;;  %v20105_v52 = vunpack.i.h.bf16 %v17466_v53  ;;  %v6180_v15 = vsel %vm140_vm0, %v12435_v30, %v12395_v34 }
 0xa6a   :  { %v20097_v46 = vunpack.i.h.bf16 %v17490_v32  ;;  %v12450_v35 = vunpack.i.l.bf16 %v17490_v32  ;;  %v20103_v11 = vunpack.i.h.bf16 %v17492_v18  ;;  %v12455_v40 = vunpack.i.l.bf16 %v17492_v18 }
 0xa6b   :  { %10633 = vmatprep.subr.bf16.mxu0 %v10632_v23 }
 0xa6c   :  { %v6074_v14 = vsel %vm1205_vm11, %v20097_v46, %v12450_v35  ;;  %v6122_v7 = vsel %vm1254_vm12, %v20103_v11, %v12455_v40  ;;  %10635 = vmatpush1.bf16.msra.mxu0 %v10634_v0  ;;  %v6073_v21 = vsel %vm1205_vm11, %v12450_v35, %v12425_v16  ;;  %v6121_v3 = vsel %vm1254_vm12, %v12455_v40, %v12430_v33 }
 0xa6d   :  { %v17513_v38 = vpop.permute.xlu0 %12468  ;;  %v17515_v57 = vpop.permute.xlu1 %12458  ;;  %v10636_v23 = vpack.c.bf16 %v6121_v3, %v6073_v21  ;;  %v10638_v31 = vpack.c.bf16 %v6122_v7, %v6074_v14  ;;  %v6181_v0 = vsel %vm140_vm0, %v20105_v52, %v12435_v30  ;;  %v10640_v33 = vpack.c.bf16 %v6180_v15, %v17297_v17 }
 0xa6e   :  { %v20100_v46 = vunpack.i.h.bf16 %v17515_v57  ;;  %v12460_v20 = vunpack.i.l.bf16 %v17515_v57  ;;  %v20099_v35 = vunpack.i.h.bf16 %v17513_v38  ;;  %v12470_v16 = vunpack.i.l.bf16 %v17513_v38 }
 0xa6f   :  { %10637 = vmatprep.subr.bf16.mxu0 %v10636_v23  ;;  %v12405_v7 = vunpack.i.l.bf16 %v17430_v9  ;;  %v12400_v15 = vunpack.i.l.bf16 %v17424_v41  ;;  %v10642_v23 = vpack.c.bf16 %v6181_v0, %v17311_v54 }
 0xa70   :  { %v6179_v40 = vsel %vm140_vm0, %v12395_v34, %v12460_v20  ;;  %10639 = vmatpush1.bf16.msra.mxu0 %v10638_v31  ;;  %v6178_v14 = vsel %vm140_vm0, %v12460_v20, %v20100_v46 }
 0xa71   :  { %v17533_v21 = vpop.permute.xlu0 %12473  ;;  %v17535_v30 = vpop.permute.xlu1 %12463  ;;  %10641 = vmatprep.subr.bf16.mxu0 %v10640_v33  ;;  %v10660_v3 = vpack.c.bf16 %v6178_v14, %v17282_v62  ;;  %v10662_v17 = vpack.c.bf16 %v6179_v40, %v17279_v50  ;;  %v6275_v20 = vsel %vm238_vm2, %v12405_v7, %v12470_v16  ;;  %v6274_v33 = vsel %vm238_vm2, %v12470_v16, %v20099_v35 }
 0xa72   :  { %v20101_v31 = vunpack.i.h.bf16 %v17535_v30  ;;  %v12465_v34 = vunpack.i.l.bf16 %v17535_v30  ;;  %v20102_v62 = vunpack.i.h.bf16 %v17533_v21  ;;  %v12475_v50 = vunpack.i.l.bf16 %v17533_v21 }
 0xa73   :  { %10661 = vmatprep.subr.bf16.mxu1 %v10660_v3 }
 0xa74   :  { %v6227_v40 = vsel %vm1363_vm13, %v12400_v15, %v12465_v34  ;;  %10643 = vmatpush1.bf16.msra.mxu0 %v10642_v23  ;;  %10663 = vmatpush1.bf16.msra.mxu1 %v10662_v17  ;;  %v6226_v54 = vsel %vm1363_vm13, %v12465_v34, %v20101_v31  ;;  %v6229_v17 = vsel %vm1363_vm13, %v20102_v62, %v12475_v50  ;;  %v12410_v31 = vunpack.i.l.bf16 %v17434_v61 }
 0xa75   :  { %v17557_v0 = vpop.permute.xlu0 %12493  ;;  %v17559_v14 = vpop.permute.xlu1 %12478  ;;  %v10664_v3 = vpack.c.bf16 %v6274_v33, %v6226_v54  ;;  %v10666_v16 = vpack.c.bf16 %v6275_v20, %v6227_v40  ;;  %v6228_v23 = vsel %vm1363_vm13, %v12475_v50, %v12400_v15  ;;  %v12416_v15 = vunpack.i.h.bf16 %v17432_v37 }
 0xa76   :  { %v20104_v35 = vunpack.i.h.bf16 %v17559_v14  ;;  %v12480_v46 = vunpack.i.l.bf16 %v17559_v14  ;;  %v12421_v50 = vunpack.i.h.bf16 %v17443_v60 }
 0xa77   :  { %10665 = vmatprep.subr.bf16.mxu1 %v10664_v3 }
 0xa78   :  { %v6277_v34 = vsel %vm238_vm2, %v20104_v35, %v12480_v46  ;;  %10667 = vmatpush1.bf16.msra.mxu1 %v10666_v16  ;;  %v6276_v20 = vsel %vm238_vm2, %v12480_v46, %v12405_v7  ;;  %v12496_v16 = vunpack.i.h.bf16 %v17557_v0  ;;  %v20107_v35 = vunpack.i.l.bf16 %v17557_v0 }
 0xa79   :  { %v17575_v33 = vpop.permute.xlu0 %12503  ;;  %v17577_v40 = vpop.permute.xlu1 %12483  ;;  %v10644_v54 = vpack.c.bf16 %v6276_v20, %v6228_v23  ;;  %v10646_v3 = vpack.c.bf16 %v6277_v34, %v6229_v17  ;;  %v12431_v17 = vunpack.i.h.bf16 %v17459_v4 }
 0xa7a   :  { %v20106_v62 = vunpack.i.h.bf16 %v17577_v40  ;;  %v12485_v11 = vunpack.i.l.bf16 %v17577_v40  ;;  %v6020_v60 = vsel %vm1156_vm10, %v12496_v16, %v12421_v50 }
 0xa7b   :  { %10645 = vmatprep.subr.bf16.mxu0 %v10644_v54 }
 0xa7c   :  { %v6323_v46 = vsel %vm287_vm3, %v12410_v31, %v12485_v11  ;;  %10647 = vmatpush1.bf16.msra.mxu0 %v10646_v3  ;;  %v6322_v7 = vsel %vm287_vm3, %v12485_v11, %v20106_v62 }
 0xa7d   :  { %v17593_v34 = vpop.permute.xlu0 %12508  ;;  %v17595_v23 = vpop.permute.xlu1 %12488  ;;  %v10668_v20 = vpack.c.bf16 %v20228_v1, %v6322_v7  ;;  %v10670_v37 = vpack.c.bf16 %v20228_v1, %v6323_v46  ;;  %v6019_v46 = vsel %vm1156_vm10, %v12421_v50, %v20107_v35 }
 0xa7e   :  { %v20108_v54 = vunpack.i.h.bf16 %v17593_v34  ;;  %v12510_v3 = vunpack.i.l.bf16 %v17593_v34  ;;  %v12491_v52 = vunpack.i.h.bf16 %v17595_v23  ;;  %v20417_v62 = vunpack.i.l.bf16 %v17595_v23 }
 0xa7f   :  { %10669 = vmatprep.subr.bf16.mxu1 %v10668_v20 }
 0xa80   :  { %v6325_v7 = vsel %vm287_vm3, %v20108_v54, %v12510_v3  ;;  %v5972_v11 = vsel %vm1107_vm9, %v12491_v52, %v12416_v15  ;;  %10671 = vmatpush1.bf16.msra.mxu1 %v10670_v37  ;;  %v6324_v4 = vsel %vm287_vm3, %v12510_v3, %v12410_v31  ;;  %v5971_v20 = vsel %vm1107_vm9, %v12416_v15, %v20417_v62  ;;  %v17632_v37 = vld [vmem:[%s19933_s1 + $0x30] sm:$0xff] }
 0xa81   :  { %v17623_v58 = vpop.permute.xlu0 %12518  ;;  %v17625_v50 = vpop.permute.xlu1 %12498  ;;  %v10648_v35 = vpack.c.bf16 %v20228_v1, %v6324_v4  ;;  %v10692_v13 = vpack.c.bf16 %v6019_v46, %v5971_v20  ;;  %v10650_v54 = vpack.c.bf16 %v20228_v1, %v6325_v7  ;;  %v10694_v31 = vpack.c.bf16 %v6020_v60, %v5972_v11 }
 0xa82   :  { %v12426_v3 = vunpack.i.h.bf16 %v17441_v27  ;;  %v20118_v49 = vunpack.i.h.bf16 %v17625_v50  ;;  %v20109_v62 = vunpack.i.l.bf16 %v17625_v50  ;;  %v20418_v15 = vunpack.i.h.bf16 %v17575_v33 }
 0xa83   :  { %10649 = vmatprep.subr.bf16.mxu0 %v10648_v35  ;;  %10693 = vmatprep.subr.bf16.mxu1 %v10692_v13  ;;  %v20419_v11 = vunpack.i.l.bf16 %v17575_v33 }
 0xa84   :  { %v6116_v4 = vsel %vm1254_vm12, %v20418_v15, %v12431_v17  ;;  %v6068_v46 = vsel %vm1205_vm11, %v20118_v49, %v12426_v3  ;;  %10651 = vmatpush1.bf16.msra.mxu0 %v10650_v54  ;;  %9886 = vmatmul.mubr.msk.f32.vlgmr.msra.gmra.mrb[36].mxu1 %vm629_vm8, %v17632_v37  ;;  %v6067_v27 = vsel %vm1205_vm11, %v12426_v3, %v20109_v62  ;;  %v20420_v15 = vunpack.i.h.bf16 %v17373_v22 }
 0xa85   :  { %v6115_v35 = vsel %vm1254_vm12, %v12431_v17, %v20419_v11  ;;  %10695 = vmatpush1.bf16.msra.mxu1 %v10694_v31  ;;  %v6000_v13 = vpop.permute.xlu0 %5999  ;;  %v5952_v60 = vpop.permute.xlu1 %5951  ;;  %v10698_v20 = vpack.c.bf16 %v6116_v4, %v6068_v46  ;;  %6741 = vmatprep.mubr.f32.mxu1 %v20235_v28  ;;  %v20421_v17 = vunpack.i.h.bf16 %v17371_v47 }
 0xa86   :  { %v10696_v7 = vpack.c.bf16 %v6115_v35, %v6067_v27  ;;  %v6021_v54 = vsel %vm1156_vm10, %v6000_v13, %v12496_v16  ;;  %v6022_v3 = vsel %vm1156_vm10, %v20420_v15, %v6000_v13  ;;  %v5973_v62 = vsel %vm1107_vm9, %v5952_v60, %v12491_v52 }
 0xa87   :  { %v5974_v31 = vsel %vm1107_vm9, %v20421_v17, %v5952_v60  ;;  %9885 = vmatmul.mubr.msk.f32.vlgmr.msra.gmra.mrb[36].mxu0 %vm629_vm8, %v17632_v37  ;;  %v10672_v4 = vpack.c.bf16 %v6021_v54, %v5973_v62  ;;  %v12396_v52 = vunpack.i.h.bf16 %v17426_v36  ;;  %v12406_v17 = vunpack.i.h.bf16 %v17430_v9 }
 0xa88   :  { %v10674_v27 = vpack.c.bf16 %v6022_v3, %v5974_v31  ;;  %10697 = vmatprep.subr.bf16.mxu1 %v10696_v7  ;;  %6670 = vmatprep.mubr.f32.mxu0 %v20235_v28  ;;  %v20115_v7 = vunpack.i.h.bf16 %v17623_v58  ;;  %v12401_v3 = vunpack.i.h.bf16 %v17424_v41 }
 0xa89   :  { %10699 = vmatpush1.bf16.msra.mxu1 %v10698_v20  ;;  %v17671_v22 = vpop.permute.xlu0 %12538  ;;  %v17673_v16 = vpop.permute.xlu1 %12513  ;;  %10673 = vmatprep.subr.bf16.mxu0 %v10672_v4  ;;  %v20111_v20 = vunpack.i.l.bf16 %v17623_v58 }
 0xa8a   :  { %v20117_v47 = vunpack.i.h.bf16 %v17673_v16  ;;  %v20110_v46 = vunpack.i.l.bf16 %v17673_v16  ;;  %10675 = vmatpush1.bf16.msra.mxu0 %v10674_v27 }
 0xa8b   :  { %v6222_v41 = vsel %vm1363_vm13, %v12401_v3, %v20111_v20  ;;  %v12540_v20 = vunpack.i.l.bf16 %v17671_v22 }
 0xa8c   :  { %v6175_v62 = vsel %vm140_vm0, %v20117_v47, %v12396_v52  ;;  %v6174_v11 = vsel %vm140_vm0, %v12396_v52, %v20110_v46  ;;  %v20423_v47 = vunpack.i.h.bf16 %v17468_v44 }
 0xa8d   :  { %v17686_v35 = vpop.permute.xlu0 %12548  ;;  %v17688_v13 = vpop.permute.xlu1 %12523  ;;  %v10700_v36 = vpack.c.bf16 %v6174_v11, %v17294_v45  ;;  %v10702_v60 = vpack.c.bf16 %v6175_v62, %v17291_v51  ;;  %v6223_v51 = vsel %vm1363_vm13, %v20115_v7, %v12401_v3  ;;  %v20119_v3 = vunpack.i.h.bf16 %v17671_v22 }
 0xa8f   :  { %10701 = vmatprep.subr.bf16.mxu1 %v10700_v36  ;;  %v12411_v36 = vunpack.i.h.bf16 %v17434_v61 }
 0xa90   :  { %10703 = vmatpush1.bf16.msra.mxu1 %v10702_v60 }
 0xa91   :  { %v6048_v54 = vpop.permute.xlu0 %6047  ;;  %v17694_v15 = vpop.permute.xlu1 %12528 }
 0xa92   :  { %v20113_v31 = vunpack.i.h.bf16 %v17694_v15  ;;  %v20112_v27 = vunpack.i.l.bf16 %v17694_v15 }
 0xa94   :  { %v6271_v45 = vsel %vm238_vm2, %v20113_v31, %v12406_v17  ;;  %v6270_v9 = vsel %vm238_vm2, %v12406_v17, %v20112_v27 }
 0xa95   :  { %v17716_v4 = vpop.permute.xlu0 %12558  ;;  %v17718_v52 = vpop.permute.xlu1 %12533  ;;  %v10704_v62 = vpack.c.bf16 %v6270_v9, %v6222_v41  ;;  %v10706_v11 = vpack.c.bf16 %v6271_v45, %v6223_v51  ;;  %v12525_v9 = vunpack.i.l.bf16 %v17688_v13 }
 0xa96   :  { %v20114_v60 = vunpack.i.h.bf16 %v17718_v52  ;;  %v20116_v46 = vunpack.i.l.bf16 %v17718_v52 }
 0xa97   :  { %10705 = vmatprep.subr.bf16.mxu1 %v10704_v62 }
 0xa98   :  { %v6319_v17 = vsel %vm287_vm3, %v20114_v60, %v12411_v36  ;;  %10707 = vmatpush1.bf16.msra.mxu1 %v10706_v11  ;;  %v6318_v61 = vsel %vm287_vm3, %v12411_v36, %v20116_v46  ;;  %v12550_v11 = vunpack.i.l.bf16 %v17686_v35  ;;  %v5968_v36 = vsel %vm1107_vm9, %v20119_v3, %v12540_v20 }
 0xa99   :  { %v17733_v51 = vpop.permute.xlu1 %12543  ;;  %v10708_v45 = vpack.c.bf16 %v20228_v1, %v6318_v61  ;;  %v10710_v41 = vpack.c.bf16 %v20228_v1, %v6319_v17  ;;  %v6158_v7 = vpop.permute.xlu0 %6157  ;;  %v20422_v61 = vunpack.i.h.bf16 %v17470_v39 }
 0xa9a   :  { %v12546_v62 = vunpack.i.h.bf16 %v17733_v51  ;;  %v12545_v27 = vunpack.i.l.bf16 %v17733_v51  ;;  %v20447_v51 = vunpack.i.l.bf16 %v17557_v0 }
 0xa9b   :  { %10709 = vmatprep.subr.bf16.mxu1 %v10708_v45  ;;  %v5967_v46 = vsel %vm1107_vm9, %v12540_v20, %v20422_v61  ;;  %v20425_v20 = vunpack.i.h.bf16 %v17686_v35 }
 0xa9c   :  { %v6016_v17 = vsel %vm1156_vm10, %v12546_v62, %v12545_v27  ;;  %10711 = vmatpush1.bf16.msra.mxu1 %v10710_v41  ;;  %v6015_v45 = vsel %vm1156_vm10, %v12545_v27, %v20423_v47  ;;  %v20424_v41 = vunpack.i.h.bf16 %v17466_v53  ;;  %v20426_v47 = vunpack.i.h.bf16 %v17688_v13 }
 0xa9d   :  { %v17759_v49 = vpop.permute.xlu1 %12553  ;;  %v10732_v60 = vpack.c.bf16 %v6015_v45, %v5967_v46  ;;  %v10734_v3 = vpack.c.bf16 %v6016_v17, %v5968_v36  ;;  %v6064_v44 = vsel %vm1205_vm11, %v20425_v20, %v12550_v11  ;;  %v20427_v27 = vunpack.i.h.bf16 %v17490_v32  ;;  %v6206_v45 = vpop.permute.xlu0 %6205 }
 0xa9e   :  { %v12556_v31 = vunpack.i.h.bf16 %v17759_v49  ;;  %v12555_v8 = vunpack.i.l.bf16 %v17759_v49  ;;  %v6182_v39 = vsel %vm140_vm0, %v12525_v9, %v20424_v41  ;;  %v6171_v46 = vsel %vm140_vm0, %v20426_v47, %v12525_v9 }
 0xa9f   :  { %10733 = vmatprep.subr.bf16.mxu1 %v10732_v60  ;;  %9888 = vmatmul.mubr.msk.f32.vlgmr.msra.gmra.mrb[38].mxu1 %vm629_vm8, %v17632_v37  ;;  %v6063_v36 = vsel %vm1205_vm11, %v12550_v11, %v20427_v27  ;;  %v20428_v17 = vunpack.i.h.bf16 %v17492_v18  ;;  %v20429_v60 = vunpack.i.h.bf16 %v17625_v50  ;;  %v10740_v32 = vpack.c.bf16 %v6182_v39, %v17318_v48 }
 0xaa0   :  { %v6112_v53 = vsel %vm1254_vm12, %v12556_v31, %v12555_v8  ;;  %10735 = vmatpush1.bf16.msra.mxu1 %v10734_v3  ;;  %6883 = vmatprep.mubr.f32.mxu1 %v20235_v28  ;;  %v20430_v11 = vunpack.i.h.bf16 %v17418_v59  ;;  %v20432_v27 = vunpack.i.h.bf16 %v17575_v33  ;;  %v12561_v59 = vunpack.i.h.bf16 %v17716_v4 }
 0xaa1   :  { %v6111_v9 = vsel %vm1254_vm12, %v12555_v8, %v20428_v17  ;;  %v6069_v61 = vsel %vm1205_vm11, %v6048_v54, %v20429_v60  ;;  %v6096_v41 = vpop.permute.xlu1 %6095  ;;  %v10738_v20 = vpack.c.bf16 %v6112_v53, %v6064_v44  ;;  %v20431_v8 = vunpack.i.h.bf16 %v17673_v16 }
 0xaa2   :  { %v10736_v3 = vpack.c.bf16 %v6111_v9, %v6063_v36  ;;  %v6070_v18 = vsel %vm1205_vm11, %v20430_v11, %v6048_v54  ;;  %v6117_v17 = vsel %vm1254_vm12, %v6096_v41, %v20432_v27  ;;  %v20433_v36 = vunpack.i.h.bf16 %v17420_v29 }
 0xaa3   :  { %v6176_v47 = vsel %vm140_vm0, %v6158_v7, %v20431_v8  ;;  %v12560_v39 = vunpack.i.l.bf16 %v17716_v4  ;;  %v10676_v44 = vpack.c.bf16 %v6117_v17, %v6069_v61  ;;  %v20434_v53 = vunpack.i.h.bf16 %v17515_v57  ;;  %v6302_v61 = vpop.permute.xlu0 %6301 }
 0xaa4   :  { %v6118_v48 = vsel %vm1254_vm12, %v20433_v36, %v6096_v41  ;;  %10737 = vmatprep.subr.bf16.mxu1 %v10736_v3  ;;  %v10680_v29 = vpack.c.bf16 %v6176_v47, %v17334_v12  ;;  %v10742_v3 = vpack.c.bf16 %v6171_v46, %v17357_v63  ;;  %v20436_v46 = vunpack.i.h.bf16 %v17559_v14 }
 0xaa5   :  { %v10678_v54 = vpack.c.bf16 %v6118_v48, %v6070_v18  ;;  %10739 = vmatpush1.bf16.msra.mxu1 %v10738_v20  ;;  %v6177_v9 = vsel %vm140_vm0, %v20434_v53, %v6158_v7  ;;  %v17817_v60 = vpop.permute.xlu1 %12563  ;;  %10677 = vmatprep.subr.bf16.mxu0 %v10676_v44  ;;  %v6219_v57 = vsel %vm1363_vm13, %v12561_v59, %v12560_v39  ;;  %v20435_v20 = vunpack.i.h.bf16 %v17533_v21 }
 0xaa6   :  { %10741 = vmatprep.subr.bf16.mxu1 %v10740_v32  ;;  %v12566_v41 = vunpack.i.h.bf16 %v17817_v60  ;;  %v12565_v11 = vunpack.i.l.bf16 %v17817_v60  ;;  %v10682_v7 = vpack.c.bf16 %v6177_v9, %v17325_v2  ;;  %v20437_v14 = vunpack.i.h.bf16 %v17593_v34 }
 0xaa7   :  { %10679 = vmatpush1.bf16.msra.mxu0 %v10678_v54  ;;  %v6230_v63 = vsel %vm1363_vm13, %v12560_v39, %v20435_v20  ;;  %v20438_v36 = vunpack.i.h.bf16 %v17623_v58  ;;  %v6008_v39 = vpop.permute.xlu0 %6007  ;;  %v20439_v9 = vunpack.i.h.bf16 %v17535_v30  ;;  %v20440_v34 = vunpack.i.h.bf16 %v17718_v52 }
 0xaa8   :  { %10681 = vmatprep.subr.bf16.mxu0 %v10680_v29  ;;  %v6267_v12 = vsel %vm238_vm2, %v12566_v41, %v12565_v11  ;;  %v6278_v32 = vsel %vm238_vm2, %v12565_v11, %v20436_v46 }
 0xaa9   :  { %10743 = vmatpush1.bf16.msra.mxu1 %v10742_v3  ;;  %v17840_v18 = vpop.permute.xlu1 %12568  ;;  %v10744_v8 = vpack.c.bf16 %v6278_v32, %v6230_v63  ;;  %v10746_v2 = vpack.c.bf16 %v6267_v12, %v6219_v57  ;;  %v6224_v48 = vsel %vm1363_vm13, %v6206_v45, %v20438_v36  ;;  %v6225_v29 = vsel %vm1363_vm13, %v20439_v9, %v6206_v45 }
 0xaaa   :  { %v12571_v47 = vunpack.i.h.bf16 %v17840_v18  ;;  %v12570_v27 = vunpack.i.l.bf16 %v17840_v18  ;;  %v6320_v11 = vsel %vm287_vm3, %v6302_v61, %v20440_v34  ;;  %v20441_v3 = vunpack.i.h.bf16 %v17694_v15 }
 0xaab   :  { %10683 = vmatpush1.bf16.msra.mxu0 %v10682_v7  ;;  %10745 = vmatprep.subr.bf16.mxu1 %v10744_v8  ;;  %v20442_v7 = vunpack.i.h.bf16 %v17513_v38  ;;  %v20443_v45 = vunpack.i.h.bf16 %v17577_v40  ;;  %v10688_v32 = vpack.c.bf16 %v20228_v1, %v6320_v11  ;;  %v20444_v8 = vunpack.i.h.bf16 %v17671_v22 }
 0xaac   :  { %v6315_v21 = vsel %vm287_vm3, %v12571_v47, %v12570_v27  ;;  %v6326_v17 = vsel %vm287_vm3, %v12570_v27, %v20437_v14  ;;  %v20445_v22 = vunpack.i.l.bf16 %v17595_v23 }
 0xaad   :  { %10747 = vmatpush1.bf16.msra.mxu1 %v10746_v2  ;;  %v6254_v54 = vpop.permute.xlu1 %6253  ;;  %v10748_v44 = vpack.c.bf16 %v20228_v1, %v6326_v17  ;;  %v10750_v53 = vpack.c.bf16 %v20228_v1, %v6315_v21  ;;  %v6321_v63 = vsel %vm287_vm3, %v20443_v45, %v6302_v61  ;;  %v6104_v2 = vpop.permute.xlu0 %6103  ;;  %v6017_v61 = vsel %vm1156_vm10, %v6008_v39, %v12546_v62 }
 0xaae   :  { %v6272_v57 = vsel %vm238_vm2, %v6254_v54, %v20441_v3  ;;  %v6273_v12 = vsel %vm238_vm2, %v20442_v7, %v6254_v54  ;;  %v10690_v40 = vpack.c.bf16 %v20228_v1, %v6321_v63  ;;  %v20446_v17 = vunpack.i.h.bf16 %v17686_v35 }
 0xaaf   :  { %v10686_v20 = vpack.c.bf16 %v6273_v12, %v6225_v29  ;;  %10749 = vmatprep.subr.bf16.mxu1 %v10748_v44  ;;  %v10684_v30 = vpack.c.bf16 %v6272_v57, %v6224_v48  ;;  %v6018_v62 = vsel %vm1156_vm10, %v20447_v51, %v6008_v39  ;;  %v6113_v23 = vsel %vm1254_vm12, %v6104_v2, %v12556_v31 }
 0xab0   :  { %v20448_v44 = vunpack.i.l.bf16 %v17625_v50  ;;  %v20449_v39 = vunpack.i.h.bf16 %v17688_v13  ;;  %v20450_v31 = vunpack.i.l.bf16 %v17575_v33  ;;  %v20451_v29 = vunpack.i.l.bf16 %v17673_v16 }
 0xab1   :  { %10751 = vmatpush1.bf16.msra.mxu1 %v10750_v53  ;;  %v5960_v46 = vpop.permute.xlu1 %5959  ;;  %10685 = vmatprep.subr.bf16.mxu0 %v10684_v30  ;;  %v6214_v54 = vpop.permute.xlu0 %6213  ;;  %v20452_v7 = vunpack.i.l.bf16 %v17694_v15 }
 0xab2   :  { %v5969_v38 = vsel %vm1107_vm9, %v5960_v46, %v20444_v8  ;;  %10687 = vmatpush1.bf16.msra.mxu0 %v10686_v20  ;;  %v5970_v27 = vsel %vm1107_vm9, %v20445_v22, %v5960_v46  ;;  %v6114_v50 = vsel %vm1254_vm12, %v20450_v31, %v6104_v2  ;;  %v6220_v57 = vsel %vm1363_vm13, %v6214_v54, %v12561_v59 }
 0xab3   :  { %10689 = vmatprep.subr.bf16.mxu0 %v10688_v32  ;;  %v10712_v14 = vpack.c.bf16 %v6017_v61, %v5969_v38  ;;  %v10714_v48 = vpack.c.bf16 %v6018_v62, %v5970_v27 }
 0xab4   :  { %9890 = vmatmul.mubr.msk.f32.vlgmr.msra.gmra.mrb[40].mxu1 %vm629_vm8, %v17632_v37 }
 0xab5   :  { %7570 = vmatprep.mubr.f32.mxu1 %v20235_v28  ;;  %v6056_v21 = vpop.permute.xlu1 %6055  ;;  %v6310_v33 = vpop.permute.xlu0 %6309 }
 0xab6   :  { %v6065_v36 = vsel %vm1205_vm11, %v6056_v21, %v20446_v17  ;;  %10691 = vmatpush1.bf16.msra.mxu0 %v10690_v40  ;;  %v6066_v35 = vsel %vm1205_vm11, %v20448_v44, %v6056_v21  ;;  %v6316_v60 = vsel %vm287_vm3, %v6310_v33, %v12571_v47 }
 0xab7   :  { %10713 = vmatprep.subr.bf16.mxu0 %v10712_v14  ;;  %v10716_v0 = vpack.c.bf16 %v6113_v23, %v6065_v36  ;;  %v10718_v9 = vpack.c.bf16 %v6114_v50, %v6066_v35  ;;  %v10728_v20 = vpack.c.bf16 %v20228_v1, %v6316_v60  ;;  %v20457_v60 = vld [vmem:[#allocation9_spill] sm:$0xff] }
 0xab9   :  { %v6166_v53 = vpop.permute.xlu1 %6165  ;;  %9887 = vmatmul.mubr.msk.f32.vlgmr.msra.gmra.mrb[38].mxu0 %vm629_vm8, %v17632_v37 }
 0xaba   :  { %v6172_v49 = vsel %vm140_vm0, %v6166_v53, %v20449_v39  ;;  %10715 = vmatpush1.bf16.msra.mxu0 %v10714_v48  ;;  %6812 = vmatprep.mubr.f32.mxu0 %v20235_v28  ;;  %v6173_v34 = vsel %vm140_vm0, %v20451_v29, %v6166_v53 }
 0xabb   :  { %10717 = vmatprep.subr.bf16.mxu0 %v10716_v0  ;;  %v10720_v13 = vpack.c.bf16 %v6172_v49, %v17354_v56  ;;  %v10722_v16 = vpack.c.bf16 %v6173_v34, %v17345_v24  ;;  %v20454_v24 = vunpack.i.l.bf16 %v17718_v52  ;;  %v20455_v34 = vld [vmem:[#allocation7_spill] sm:$0xff] }
 0xabd   :  { %v6262_v11 = vpop.permute.xlu1 %6261  ;;  %v6317_v15 = vsel %vm287_vm3, %v20454_v24, %v6310_v33 }
 0xabe   :  { %v6268_v3 = vsel %vm238_vm2, %v6262_v11, %v12566_v41  ;;  %10719 = vmatpush1.bf16.msra.mxu0 %v10718_v9  ;;  %v6269_v56 = vsel %vm238_vm2, %v20452_v7, %v6262_v11  ;;  %v20453_v41 = vunpack.i.l.bf16 %v17623_v58  ;;  %v10730_v18 = vpack.c.bf16 %v20228_v1, %v6317_v15 }
 0xabf   :  { %10721 = vmatprep.subr.bf16.mxu0 %v10720_v13  ;;  %v10724_v12 = vpack.c.bf16 %v6268_v3, %v6220_v57  ;;  %v20456_v13 = vld [vmem:[#allocation8_spill] sm:$0xff] }
 0xac0   :  { %v6221_v4 = vsel %vm1363_vm13, %v20453_v41, %v6214_v54 }
 0xac1   :  { %v10726_v59 = vpack.c.bf16 %v6269_v56, %v6221_v4  ;;  %v20458_v4 = vld [vmem:[#allocation10_spill] sm:$0xff] }
 0xac2   :  { %10723 = vmatpush1.bf16.msra.mxu0 %v10722_v16 }
 0xac3   :  { %10725 = vmatprep.subr.bf16.mxu0 %v10724_v12 }
 0xac6   :  { %10727 = vmatpush1.bf16.msra.mxu0 %v10726_v59 }
 0xac7   :  { %10729 = vmatprep.subr.bf16.mxu0 %v10728_v20 }
 0xaca   :  { %10731 = vmatpush1.bf16.msra.mxu0 %v10730_v18 }
 0xacd   :  { %9889 = vmatmul.mubr.msk.f32.vlgmr.msra.gmra.mrb[40].mxu0 %vm629_vm8, %v17632_v37 }
 0xace   :  { %7499 = vmatprep.mubr.f32.mxu0 %v20235_v28 }
 0xb57   :  { %v6601_v58 = vpop.f32.mrb[36].mxu1 }
 0xb58   :  { %v6892_v47 = vmax.f32 %v6601_v58, 0.0  ;;  %v6603_v30 = vpop.f32.mrb[37].mxu1 }
 0xb59   :  { %v6893_v45 = vmax.f32 %v6603_v30, 0.0 }
 0xb5a   :  { %v6530_v52 = vpop.f32.mrb[36].mxu0  ;;  %v17958_v63 = vmul.f32 %v6892_v47, %v13996_v6 }
 0xb5b   :  { %v6890_v46 = vmax.f32 %v6530_v52, 0.0  ;;  %v6532_v32 = vpop.f32.mrb[37].mxu0  ;;  %v17961_v8 = vmul.f32 %v6893_v45, %v14001_v42 }
 0xb5c   :  { %v6891_v38 = vmax.f32 %v6532_v32, 0.0 }
 0xb5d   :  { %v17964_v2 = vmul.f32 %v6890_v46, %v20410_v10  ;;  %v12577_v37 = vpack.i.bf16 %v17961_v8, %v17958_v63 }
 0xb5e   :  { %v17969_v40 = vmul.f32 %v6891_v38, %v14023_v5 }
 0xb5f   :  { %12578 = vrot.lane.b32.xlu0 %v12577_v37, %s13212_s20 }
 0xb60   :  { %v12572_v61 = vpack.i.bf16 %v17969_v40, %v17964_v2  ;;  %v12617_v22 = vpack.i.bf16 %v17958_v63, %v17969_v40 }
 0xb62   :  { %12573 = vrot.lane.b32.xlu1 %v12572_v61, %s13212_s20 }
 0xb63   :  { %12588 = vrot.lane.b32.xlu0 %v12577_v37, %s13213_s23 }
 0xb66   :  { %12583 = vrot.lane.b32.xlu1 %v12572_v61, %s13213_s23 }
 0xb67   :  { %12598 = vrot.lane.b32.xlu0 %v12577_v37, %s13214_s25 }
 0xb6a   :  { %12593 = vrot.lane.b32.xlu1 %v12572_v61, %s13214_s25 }
 0xb6b   :  { %12608 = vrot.lane.b32.xlu0 %v12577_v37, %s13215_s26 }
 0xb6e   :  { %12603 = vrot.lane.b32.xlu1 %v12572_v61, %s13215_s26 }
 0xb6f   :  { %12618 = vrot.lane.b32.xlu0 %v12617_v22, %s13216_s27 }
 0xb72   :  { %12613 = vrot.lane.b32.xlu1 %v12617_v22, %s13203_s21  ;;  %v6743_v27 = vpop.f32.mrb[38].mxu1 }
 0xb73   :  { %12623 = vrot.lane.b32.xlu0 %v12617_v22, %s13204_s22  ;;  %v6745_v21 = vpop.f32.mrb[39].mxu1  ;;  %v6896_v53 = vmax.f32 %v6743_v27, 0.0 }
 0xb74   :  { %v6897_v0 = vmax.f32 %v6745_v21, 0.0 }
 0xb75   :  { %v18005_v49 = vmul.f32 %v6896_v53, %v14072_v55 }
 0xb76   :  { %v18008_v29 = vmul.f32 %v6897_v0, %v14078_v25 }
 0xb77   :  { %12628 = vrot.lane.b32.xlu0 %v12617_v22, %s13206_s24 }
 0xb78   :  { %v12727_v7 = vpack.i.bf16 %v18008_v29, %v18005_v49 }
 0xb87   :  { %v6885_v14 = vpop.f32.mrb[40].mxu1 }
 0xb88   :  { %v6887_v17 = vpop.f32.mrb[41].mxu1  ;;  %v6900_v56 = vmax.f32 %v6885_v14, 0.0 }
 0xb89   :  { %v6901_v31 = vmax.f32 %v6887_v17, 0.0 }
 0xb8a   :  { %v18048_v41 = vmul.f32 %v6900_v56, %v20457_v60 }
 0xb8b   :  { %v18015_v3 = vmul.f32 %v6901_v31, %v20456_v13 }
 0xb8c   :  { %v6672_v36 = vpop.f32.mrb[38].mxu0 }
 0xb8d   :  { %v6894_v51 = vmax.f32 %v6672_v36, 0.0  ;;  %v6674_v62 = vpop.f32.mrb[39].mxu0 }
 0xb8e   :  { %v6895_v23 = vmax.f32 %v6674_v62, 0.0 }
 0xb8f   :  { %v17988_v48 = vmul.f32 %v6894_v51, %v20412_v43 }
 0xb90   :  { %v17991_v54 = vmul.f32 %v6895_v23, %v20413_v26 }
 0xb91   :  { %v12637_v44 = vpack.i.bf16 %v17988_v48, %v17961_v8  ;;  %v12692_v16 = vpack.i.bf16 %v17988_v48, %v18015_v3 }
 0xb92   :  { %v12657_v35 = vpack.i.bf16 %v17991_v54, %v17964_v2  ;;  %v12672_v33 = vpack.i.bf16 %v18005_v49, %v17991_v54 }
 0xb93   :  { %12638 = vrot.lane.b32.xlu1 %v12637_v44, %s13216_s27  ;;  %12633 = vrot.lane.b32.xlu0 %v12637_v44, %s13203_s21 }
 0xb97   :  { %12643 = vrot.lane.b32.xlu1 %v12637_v44, %s13204_s22  ;;  %12658 = vrot.lane.b32.xlu0 %v12657_v35, %s13216_s27 }
 0xb9b   :  { %12648 = vrot.lane.b32.xlu1 %v12637_v44, %s13206_s24  ;;  %12668 = vrot.lane.b32.xlu0 %v12657_v35, %s13206_s24 }
 0xb9f   :  { %12653 = vrot.lane.b32.xlu1 %v12657_v35, %s13203_s21 }
 0xba0   :  { %v6814_v39 = vpop.f32.mrb[40].mxu0 }
 0xba1   :  { %v6898_v50 = vmax.f32 %v6814_v39, 0.0  ;;  %v6816_v9 = vpop.f32.mrb[41].mxu0 }
 0xba2   :  { %v6899_v12 = vmax.f32 %v6816_v9, 0.0 }
 0xba3   :  { %v18011_v11 = vmul.f32 %v6898_v50, %v20455_v34  ;;  %12663 = vrot.lane.b32.xlu1 %v12657_v35, %s13204_s22 }
 0xba4   :  { %v18051_v59 = vmul.f32 %v6899_v12, %v20458_v4 }
 0xba5   :  { %v12682_v57 = vpack.i.bf16 %v18011_v11, %v18008_v29 }
 0xba6   :  { %v12752_v24 = vpack.i.bf16 %v18048_v41, %v18051_v59  ;;  %v12762_v15 = vpack.i.bf16 %v18051_v59, %v18011_v11 }
 0xba7   :  { %12673 = vrot.lane.b32.xlu1 %v12672_v33, %s13212_s20  ;;  %12683 = vrot.lane.b32.xlu0 %v12682_v57, %s13212_s20 }
 0xbab   :  { %12678 = vrot.lane.b32.xlu1 %v12672_v33, %s13213_s23  ;;  %12693 = vrot.lane.b32.xlu0 %v12692_v16, %s13213_s23 }
 0xbaf   :  { %12688 = vrot.lane.b32.xlu1 %v12692_v16, %s13212_s20  ;;  %12703 = vrot.lane.b32.xlu0 %v12692_v16, %s13215_s26 }
 0xbb3   :  { %12698 = vrot.lane.b32.xlu1 %v12692_v16, %s13214_s25  ;;  %12708 = vrot.lane.b32.xlu0 %v12682_v57, %s13213_s23 }
 0xbb7   :  { %12713 = vrot.lane.b32.xlu1 %v12672_v33, %s13214_s25  ;;  %12718 = vrot.lane.b32.xlu0 %v12682_v57, %s13214_s25 }
 0xbbb   :  { %12723 = vrot.lane.b32.xlu1 %v12672_v33, %s13215_s26  ;;  %7072 = vrot.lane.b32.xlu0 %v18008_v29, %s13215_s26 }
 0xbbf   :  { %12728 = vrot.lane.b32.xlu1 %v12727_v7, %s13203_s21  ;;  %7134 = vrot.lane.b32.xlu0 %v18011_v11, %s13203_s21 }
 0xbc3   :  { %12733 = vrot.lane.b32.xlu1 %v12727_v7, %s13216_s27  ;;  %7182 = vrot.lane.b32.xlu0 %v18011_v11, %s13216_s27 }
 0xbc7   :  { %12738 = vrot.lane.b32.xlu1 %v12727_v7, %s13204_s22  ;;  %7230 = vrot.lane.b32.xlu0 %v18011_v11, %s13204_s22 }
 0xbcb   :  { %12743 = vrot.lane.b32.xlu1 %v12727_v7, %s13206_s24  ;;  %7278 = vrot.lane.b32.xlu0 %v18011_v11, %s13206_s24 }
 0xbcf   :  { %7078 = vrot.lane.b32.xlu1 %v18048_v41, %s13215_s26  ;;  %12753 = vrot.lane.b32.xlu0 %v12752_v24, %s13213_s23 }
 0xbd1   :  { %v18063_v20 = vpop.permute.xlu0 %12578 }
 0xbd2   :  { %v20124_v18 = vunpack.i.h.bf16 %v18063_v20  ;;  %v12580_v58 = vunpack.i.l.bf16 %v18063_v20 }
 0xbd3   :  { %12763 = vrot.lane.b32.xlu0 %v12762_v15, %s13215_s26  ;;  %12748 = vrot.lane.b32.xlu1 %v12752_v24, %s13212_s20 }
 0xbd4   :  { %v18069_v47 = vpop.permute.xlu1 %12573  ;;  %v6946_v38 = vsel %vm1107_vm9, %v12580_v58, %v20124_v18 }
 0xbd5   :  { %v12576_v30 = vunpack.i.h.bf16 %v18069_v47  ;;  %v12575_v45 = vunpack.i.l.bf16 %v18069_v47  ;;  %v18073_v52 = vpop.permute.xlu0 %12588 }
 0xbd6   :  { %v20123_v46 = vunpack.i.h.bf16 %v18073_v52  ;;  %v12590_v32 = vunpack.i.l.bf16 %v18073_v52 }
 0xbd7   :  { %12768 = vrot.lane.b32.xlu0 %v12752_v24, %s13203_s21  ;;  %12758 = vrot.lane.b32.xlu1 %v12752_v24, %s13214_s25  ;;  %v6947_v37 = vsel %vm1107_vm9, %v12576_v30, %v12580_v58  ;;  %v6948_v36 = vsel %vm1107_vm9, %v12575_v45, %v12576_v30 }
 0xbd8   :  { %v18085_v61 = vpop.permute.xlu1 %12583  ;;  %v6994_v22 = vsel %vm1156_vm10, %v12590_v32, %v20123_v46 }
 0xbd9   :  { %v12586_v27 = vunpack.i.h.bf16 %v18085_v61  ;;  %v12585_v21 = vunpack.i.l.bf16 %v18085_v61  ;;  %v18093_v14 = vpop.permute.xlu0 %12598  ;;  %v10772_v17 = vpack.c.bf16 %v6994_v22, %v6946_v38 }
 0xbda   :  { %v20121_v51 = vunpack.i.h.bf16 %v18093_v14  ;;  %v12600_v62 = vunpack.i.l.bf16 %v18093_v14 }
 0xbdb   :  { %12773 = vrot.lane.b32.xlu0 %v12752_v24, %s13216_s27  ;;  %7140 = vrot.lane.b32.xlu1 %v18015_v3, %s13203_s21  ;;  %v6995_v23 = vsel %vm1156_vm10, %v12586_v27, %v12590_v32  ;;  %v6996_v44 = vsel %vm1156_vm10, %v12585_v21, %v12586_v27 }
 0xbdc   :  { %v18110_v35 = vpop.permute.xlu1 %12593  ;;  %10773 = vmatprep.subr.bf16.mxu1 %v10772_v17  ;;  %v10774_v53 = vpack.c.bf16 %v6995_v23, %v6947_v37  ;;  %v10752_v0 = vpack.c.bf16 %v6996_v44, %v6948_v36  ;;  %v7042_v57 = vsel %vm1205_vm11, %v12600_v62, %v20121_v51 }
 0xbdd   :  { %v12596_v39 = vunpack.i.h.bf16 %v18110_v35  ;;  %v20131_v31 = vunpack.i.l.bf16 %v18110_v35  ;;  %v18114_v50 = vpop.permute.xlu0 %12608 }
 0xbde   :  { %v20120_v9 = vunpack.i.h.bf16 %v18114_v50  ;;  %v12610_v33 = vunpack.i.l.bf16 %v18114_v50  ;;  %10775 = vmatpush1.bf16.msra.mxu1 %v10774_v53  ;;  %10753 = vmatprep.subr.bf16.mxu0 %v10752_v0 }
 0xbdf   :  { %12778 = vrot.lane.b32.xlu0 %v12752_v24, %s13204_s22  ;;  %7188 = vrot.lane.b32.xlu1 %v18015_v3, %s13216_s27  ;;  %v7043_v16 = vsel %vm1205_vm11, %v12596_v39, %v12600_v62  ;;  %v18139_v30 = vsel %vm1205_vm11, %v20131_v31, %v12596_v39 }
 0xbe0   :  { %v18127_v7 = vpop.permute.xlu1 %12603  ;;  %v7090_v56 = vsel %vm1254_vm12, %v12610_v33, %v20120_v9 }
 0xbe1   :  { %v12606_v12 = vunpack.i.h.bf16 %v18127_v7  ;;  %v20132_v15 = vunpack.i.l.bf16 %v18127_v7  ;;  %v10776_v58 = vpack.c.bf16 %v7090_v56, %v7042_v57 }
 0xbe3   :  { %12783 = vrot.lane.b32.xlu0 %v12752_v24, %s13206_s24  ;;  %7236 = vrot.lane.b32.xlu1 %v18015_v3, %s13204_s22  ;;  %v7091_v32 = vsel %vm1254_vm12, %v12606_v12, %v12610_v33  ;;  %v18150_v38 = vsel %vm1254_vm12, %v20132_v15, %v12606_v12  ;;  %v18156_v24 = vpop.permute.xlu0 %12618 }
 0xbe4   :  { %10777 = vmatprep.subr.bf16.mxu1 %v10776_v58  ;;  %v10778_v37 = vpack.c.bf16 %v7091_v32, %v7043_v16  ;;  %v18160_v17 = vpop.permute.xlu1 %12613  ;;  %v20130_v32 = vunpack.i.h.bf16 %v18156_v24  ;;  %v12620_v31 = vunpack.i.l.bf16 %v18156_v24 }
 0xbe5   :  { %v20133_v44 = vunpack.i.h.bf16 %v18160_v17  ;;  %v20460_v15 = vunpack.i.h.bf16 %v18160_v17 }
 0xbe6   :  { %10779 = vmatpush1.bf16.msra.mxu1 %v10778_v37 }
 0xbe7   :  { %7284 = vrot.lane.b32.xlu1 %v18015_v3, %s13206_s24  ;;  %v18158_v27 = vpop.permute.xlu0 %12623 }
 0xbe8   :  { %v20125_v37 = vunpack.i.h.bf16 %v18158_v27  ;;  %v12625_v43 = vunpack.i.l.bf16 %v18158_v27 }
 0xbeb   :  { %v18162_v36 = vpop.permute.xlu0 %12628 }
 0xbec   :  { %v20129_v46 = vunpack.i.h.bf16 %v18162_v36  ;;  %v12630_v10 = vunpack.i.l.bf16 %v18162_v36 }
 0xc05   :  { %v18164_v62 = vpop.permute.xlu1 %12638  ;;  %v18166_v23 = vpop.permute.xlu0 %12633 }
 0xc06   :  { %v20122_v53 = vunpack.i.h.bf16 %v18166_v23  ;;  %v12635_v0 = vunpack.i.l.bf16 %v18166_v23  ;;  %v20126_v39 = vunpack.i.h.bf16 %v18164_v62  ;;  %v12640_v33 = vunpack.i.l.bf16 %v18164_v62 }
 0xc08   :  { %v7150_v57 = vsel %vm140_vm0, %v20133_v44, %v12635_v0  ;;  %v7149_v16 = vsel %vm140_vm0, %v12635_v0, %v20122_v53  ;;  %v7198_v0 = vsel %vm1363_vm13, %v20130_v32, %v12640_v33 }
 0xc09   :  { %v18181_v56 = vpop.permute.xlu1 %12643  ;;  %v10780_v12 = vpack.c.bf16 %v7149_v16, %v17961_v8  ;;  %v10782_v58 = vpack.c.bf16 %v7150_v57, %v17958_v63  ;;  %v7197_v63 = vsel %vm1363_vm13, %v12640_v33, %v20126_v39 }
 0xc0a   :  { %v20127_v9 = vunpack.i.h.bf16 %v18181_v56  ;;  %v12645_v51 = vunpack.i.l.bf16 %v18181_v56 }
 0xc0b   :  { %10781 = vmatprep.subr.bf16.mxu1 %v10780_v12 }
 0xc0c   :  { %v7246_v8 = vsel %vm238_vm2, %v20125_v37, %v12645_v51  ;;  %10783 = vmatpush1.bf16.msra.mxu1 %v10782_v58  ;;  %v7245_v57 = vsel %vm238_vm2, %v12645_v51, %v20127_v9  ;;  %v18210_v37 = vpop.permute.xlu0 %12658 }
 0xc0d   :  { %v18205_v16 = vpop.permute.xlu1 %12648  ;;  %v10784_v12 = vpack.c.bf16 %v7245_v57, %v7197_v63  ;;  %v10786_v53 = vpack.c.bf16 %v7246_v8, %v7198_v0  ;;  %v18227_v57 = vld [vmem:[%s19933_s1 + $0x38] sm:$0xff] }
 0xc0e   :  { %v20128_v18 = vunpack.i.h.bf16 %v18205_v16  ;;  %v12650_v58 = vunpack.i.l.bf16 %v18205_v16 }
 0xc0f   :  { %10785 = vmatprep.subr.bf16.mxu1 %v10784_v12 }
 0xc10   :  { %v7294_v33 = vsel %vm287_vm3, %v20129_v46, %v12650_v58  ;;  %10787 = vmatpush1.bf16.msra.mxu1 %v10786_v53  ;;  %v7293_v51 = vsel %vm287_vm3, %v12650_v58, %v20128_v18  ;;  %v18229_v12 = vpop.permute.xlu0 %12668  ;;  %v12615_v46 = vunpack.i.l.bf16 %v18160_v17 }
 0xc11   :  { %v18220_v0 = vpop.permute.xlu1 %12653  ;;  %v10788_v8 = vpack.c.bf16 %v20228_v1, %v7293_v51  ;;  %v10790_v63 = vpack.c.bf16 %v20228_v1, %v7294_v33 }
 0xc12   :  { %v7151_v4 = vsel %vm140_vm0, %v12615_v46, %v20460_v15  ;;  %v20469_v13 = vunpack.i.l.bf16 %v18220_v0 }
 0xc13   :  { %10789 = vmatprep.subr.bf16.mxu1 %v10788_v8 }
 0xc14   :  { %10791 = vmatpush1.bf16.msra.mxu1 %v10790_v63 }
 0xc15   :  { %v18231_v53 = vpop.permute.xlu1 %12663 }
 0xc17   :  { %9893 = vmatmul.mubr.msk.f32.vlgmr.msra.gmra.mrb[42].mxu1 %vm629_vm8, %v18227_v57 }
 0xc18   :  { %7712 = vmatprep.mubr.f32.mxu1 %v20235_v28 }
 0xc19   :  { %v18236_v58 = vpop.permute.xlu1 %12673  ;;  %v18238_v51 = vpop.permute.xlu0 %12683 }
 0xc1a   :  { %v12676_v32 = vunpack.i.h.bf16 %v18236_v58  ;;  %v20465_v15 = vunpack.i.l.bf16 %v18238_v51 }
 0xc1d   :  { %v18240_v33 = vpop.permute.xlu1 %12678  ;;  %v18242_v8 = vpop.permute.xlu0 %12693 }
 0xc1e   :  { %v20135_v63 = vunpack.i.l.bf16 %v18242_v8  ;;  %v12681_v22 = vunpack.i.h.bf16 %v18240_v33 }
 0xc20   :  { %v6997_v44 = vsel %vm1156_vm10, %v20135_v63, %v12585_v21  ;;  %v20463_v63 = vunpack.i.l.bf16 %v18110_v35  ;;  %v20467_v35 = vunpack.i.l.bf16 %v18236_v58 }
 0xc21   :  { %v18245_v39 = vpop.permute.xlu1 %12688  ;;  %v18247_v9 = vpop.permute.xlu0 %12703 }
 0xc22   :  { %v20137_v18 = vunpack.i.l.bf16 %v18245_v39 }
 0xc24   :  { %v6949_v60 = vsel %vm1107_vm9, %v20137_v18, %v12575_v45  ;;  %v20459_v45 = vunpack.i.l.bf16 %v18240_v33 }
 0xc25   :  { %v18270_v34 = vpop.permute.xlu1 %12698  ;;  %v18272_v61 = vpop.permute.xlu0 %12708  ;;  %v10754_v26 = vpack.c.bf16 %v6997_v44, %v6949_v60  ;;  %v20461_v60 = vunpack.i.l.bf16 %v18127_v7  ;;  %v20462_v44 = vunpack.i.l.bf16 %v18247_v9  ;;  %v6942_v7 = vsel %vm1107_vm9, %v12676_v32, %v20465_v15 }
 0xc26   :  { %v20138_v47 = vunpack.i.l.bf16 %v18270_v34  ;;  %v6991_v18 = vsel %vm1156_vm10, %v20459_v45, %v12681_v22  ;;  %v20466_v17 = vunpack.i.l.bf16 %v18272_v61 }
 0xc27   :  { %10755 = vmatpush1.bf16.msra.mxu0 %v10754_v26  ;;  %v7093_v21 = vsel %vm1254_vm12, %v20462_v44, %v20461_v60  ;;  %v20464_v26 = vpack.c.bf16 %v18150_v38, %v18139_v30  ;;  %v6943_v44 = vsel %vm1107_vm9, %v20467_v35, %v12676_v32  ;;  %v10760_v32 = vpack.c.bf16 %v7151_v4, %v17969_v40 }
 0xc28   :  { %v7045_v45 = vsel %vm1205_vm11, %v20138_v47, %v20463_v63  ;;  %v6990_v60 = vsel %vm1156_vm10, %v12681_v22, %v20466_v17  ;;  %v7152_v22 = vsel %vm140_vm0, %v20469_v13, %v12615_v46  ;;  %v20141_v17 = vunpack.i.l.bf16 %v18231_v53 }
 0xc29   :  { %10757 = vmatprep.subr.bf16.mxu0 %v20464_v26  ;;  %v18313_v63 = vpop.permute.xlu1 %12713  ;;  %v18315_v47 = vpop.permute.xlu0 %12718  ;;  %v10758_v30 = vpack.c.bf16 %v7093_v21, %v7045_v45  ;;  %v10812_v38 = vpack.c.bf16 %v6990_v60, %v6942_v7  ;;  %v20468_v26 = vunpack.i.h.bf16 %v18156_v24  ;;  %v10814_v35 = vpack.c.bf16 %v6991_v18, %v6943_v44 }
 0xc2a   :  { %v12660_v21 = vunpack.i.l.bf16 %v18210_v37  ;;  %v20140_v45 = vunpack.i.l.bf16 %v18229_v12  ;;  %v20470_v24 = vunpack.i.h.bf16 %v18158_v27  ;;  %v12716_v13 = vunpack.i.h.bf16 %v18313_v63 }
 0xc2b   :  { %v7199_v15 = vsel %vm1363_vm13, %v12620_v31, %v20468_v26  ;;  %10759 = vmatpush1.bf16.msra.mxu0 %v10758_v30  ;;  %10813 = vmatprep.subr.bf16.mxu1 %v10812_v38  ;;  %v12715_v46 = vunpack.i.l.bf16 %v18313_v63  ;;  %v12720_v40 = vunpack.i.l.bf16 %v18315_v47  ;;  %v10762_v60 = vpack.c.bf16 %v7152_v22, %v17964_v2 }
 0xc2c   :  { %v7247_v7 = vsel %vm238_vm2, %v12625_v43, %v20470_v24  ;;  %10761 = vmatprep.subr.bf16.mxu0 %v10760_v32  ;;  %10815 = vmatpush1.bf16.msra.mxu1 %v10814_v35  ;;  %v7248_v27 = vsel %vm238_vm2, %v20141_v17, %v12625_v43  ;;  %v7200_v63 = vsel %vm1363_vm13, %v12660_v21, %v12620_v31  ;;  %v12691_v2 = vunpack.i.h.bf16 %v18245_v39 }
 0xc2d   :  { %v12724_v4 = vpop.permute.xlu1 %12723  ;;  %v18337_v18 = vpop.permute.xlu0 %7072  ;;  %v10764_v38 = vpack.c.bf16 %v7247_v7, %v7199_v15  ;;  %v7296_v26 = vsel %vm287_vm3, %v20140_v45, %v12630_v10  ;;  %v20471_v22 = vunpack.i.h.bf16 %v18162_v36  ;;  %v7039_v15 = vsel %vm1205_vm11, %v12715_v46, %v12716_v13 }
 0xc2e   :  { %v12726_v44 = vunpack.i.h.bf16 %v12724_v4  ;;  %v12725_v30 = vunpack.i.l.bf16 %v12724_v4  ;;  %v7038_v35 = vsel %vm1205_vm11, %v12716_v13, %v12720_v40  ;;  %v12696_v36 = vunpack.i.h.bf16 %v18242_v8 }
 0xc2f   :  { %10763 = vmatpush1.bf16.msra.mxu0 %v10762_v60  ;;  %v7295_v43 = vsel %vm287_vm3, %v12630_v10, %v20471_v22  ;;  %v10766_v7 = vpack.c.bf16 %v7248_v27, %v7200_v63  ;;  %v10770_v63 = vpack.c.bf16 %v20228_v1, %v7296_v26  ;;  %v12701_v26 = vunpack.i.h.bf16 %v18270_v34 }
 0xc30   :  { %v7087_v32 = vsel %vm1254_vm12, %v12725_v30, %v12726_v44  ;;  %v7086_v31 = vsel %vm1254_vm12, %v12726_v44, %v18337_v18  ;;  %10765 = vmatprep.subr.bf16.mxu0 %v10764_v38  ;;  %v10768_v17 = vpack.c.bf16 %v20228_v1, %v7295_v43  ;;  %v20472_v44 = vunpack.i.l.bf16 %v18236_v58 }
 0xc31   :  { %v12729_v24 = vpop.permute.xlu1 %12728  ;;  %v18369_v10 = vpop.permute.xlu0 %7134  ;;  %v10816_v4 = vpack.c.bf16 %v7086_v31, %v7038_v35  ;;  %v10818_v60 = vpack.c.bf16 %v7087_v32, %v7039_v15  ;;  %v12706_v43 = vunpack.i.h.bf16 %v18247_v9  ;;  %v20473_v31 = vunpack.i.l.bf16 %v18240_v33 }
 0xc32   :  { %v12731_v22 = vunpack.i.h.bf16 %v12729_v24  ;;  %v12730_v45 = vunpack.i.l.bf16 %v12729_v24  ;;  %v6944_v38 = vsel %vm1107_vm9, %v12691_v2, %v20472_v44  ;;  %v20475_v33 = vunpack.i.h.bf16 %v18073_v52 }
 0xc33   :  { %10767 = vmatpush1.bf16.msra.mxu0 %v10766_v7  ;;  %10817 = vmatprep.subr.bf16.mxu1 %v10816_v4  ;;  %v6992_v35 = vsel %vm1156_vm10, %v12696_v36, %v20473_v31  ;;  %v20474_v7 = vunpack.i.h.bf16 %v18063_v20  ;;  %v12656_v20 = vunpack.i.h.bf16 %v18220_v0 }
 0xc34   :  { %v7146_v13 = vsel %vm140_vm0, %v12730_v45, %v12731_v22  ;;  %v7145_v27 = vsel %vm140_vm0, %v12731_v22, %v18369_v10  ;;  %10769 = vmatprep.subr.bf16.mxu0 %v10768_v17  ;;  %10819 = vmatpush1.bf16.msra.mxu1 %v10818_v60  ;;  %v10792_v4 = vpack.c.bf16 %v6992_v35, %v6944_v38 }
 0xc35   :  { %v12734_v15 = vpop.permute.xlu1 %12733  ;;  %v18383_v32 = vpop.permute.xlu0 %7182  ;;  %v10820_v58 = vpack.c.bf16 %v7145_v27, %v18008_v29  ;;  %v10822_v24 = vpack.c.bf16 %v7146_v13, %v18005_v49  ;;  %v6945_v17 = vsel %vm1107_vm9, %v20474_v7, %v12691_v2  ;;  %v7088_v29 = vsel %vm1254_vm12, %v12706_v43, %v12725_v30 }
 0xc36   :  { %v6993_v60 = vsel %vm1156_vm10, %v20475_v33, %v12696_v36  ;;  %v12736_v22 = vunpack.i.h.bf16 %v12734_v15  ;;  %v12735_v49 = vunpack.i.l.bf16 %v12734_v15  ;;  %v7040_v13 = vsel %vm1205_vm11, %v12701_v26, %v12715_v46 }
 0xc37   :  { %10771 = vmatpush1.bf16.msra.mxu0 %v10770_v63  ;;  %10821 = vmatprep.subr.bf16.mxu1 %v10820_v58  ;;  %v10794_v38 = vpack.c.bf16 %v6993_v60, %v6945_v17  ;;  %v20476_v30 = vunpack.i.h.bf16 %v18093_v14  ;;  %v10796_v63 = vpack.c.bf16 %v7088_v29, %v7040_v13  ;;  %v12671_v15 = vunpack.i.h.bf16 %v18229_v12 }
 0xc38   :  { %10793 = vmatprep.subr.bf16.mxu0 %v10792_v4  ;;  %10823 = vmatpush1.bf16.msra.mxu1 %v10822_v24  ;;  %v20477_v58 = vunpack.i.h.bf16 %v18114_v50  ;;  %v7147_v14 = vsel %vm140_vm0, %v12656_v20, %v12730_v45  ;;  %v7194_v46 = vsel %vm1363_vm13, %v12735_v49, %v12736_v22  ;;  %v7193_v35 = vsel %vm1363_vm13, %v12736_v22, %v18383_v32 }
 0xc39   :  { %v12739_v2 = vpop.permute.xlu1 %12738  ;;  %v18403_v44 = vpop.permute.xlu0 %7230  ;;  %v7041_v52 = vsel %vm1205_vm11, %v20476_v30, %v12701_v26  ;;  %v20478_v29 = vunpack.i.h.bf16 %v18166_v23 }
 0xc3a   :  { %v12741_v27 = vunpack.i.h.bf16 %v12739_v2  ;;  %v12740_v36 = vunpack.i.l.bf16 %v12739_v2  ;;  %9892 = vmatmul.mubr.msk.f32.vlgmr.msra.gmra.mrb[42].mxu0 %vm629_vm8, %v18227_v57  ;;  %v7089_v31 = vsel %vm1254_vm12, %v20477_v58, %v12706_v43  ;;  %v12666_v43 = vunpack.i.h.bf16 %v18231_v53 }
 0xc3b   :  { %10795 = vmatpush1.bf16.msra.mxu0 %v10794_v38  ;;  %7641 = vmatprep.mubr.f32.mxu0 %v20235_v28  ;;  %v10798_v17 = vpack.c.bf16 %v7089_v31, %v7041_v52  ;;  %v7148_v33 = vsel %vm140_vm0, %v20478_v29, %v12656_v20  ;;  %v10800_v2 = vpack.c.bf16 %v7147_v14, %v17991_v54  ;;  %v12661_v38 = vunpack.i.h.bf16 %v18210_v37 }
 0xc3c   :  { %v7242_v24 = vsel %vm238_vm2, %v12740_v36, %v12741_v27  ;;  %v7241_v50 = vsel %vm238_vm2, %v12741_v27, %v18403_v44  ;;  %10797 = vmatprep.subr.bf16.mxu0 %v10796_v63  ;;  %v7243_v13 = vsel %vm238_vm2, %v12666_v43, %v12740_v36  ;;  %v10802_v54 = vpack.c.bf16 %v7148_v33, %v17988_v48 }
 0xc3d   :  { %v12744_v45 = vpop.permute.xlu1 %12743  ;;  %v18432_v7 = vpop.permute.xlu0 %7278  ;;  %v10824_v26 = vpack.c.bf16 %v7241_v50, %v7193_v35  ;;  %v10826_v4 = vpack.c.bf16 %v7242_v24, %v7194_v46  ;;  %v7195_v63 = vsel %vm1363_vm13, %v12661_v38, %v12735_v49  ;;  %v20479_v58 = vunpack.i.h.bf16 %v18205_v16 }
 0xc3e   :  { %v12746_v60 = vunpack.i.h.bf16 %v12744_v45  ;;  %v12745_v22 = vunpack.i.l.bf16 %v12744_v45  ;;  %v20480_v14 = vunpack.i.h.bf16 %v18181_v56  ;;  %v12686_v35 = vunpack.i.h.bf16 %v18238_v51 }
 0xc3f   :  { %10799 = vmatpush1.bf16.msra.mxu0 %v10798_v17  ;;  %10825 = vmatprep.subr.bf16.mxu1 %v10824_v26  ;;  %v7292_v31 = vsel %vm287_vm3, %v20479_v58, %v12671_v15  ;;  %v10804_v48 = vpack.c.bf16 %v7243_v13, %v7195_v63  ;;  %v12711_v24 = vunpack.i.h.bf16 %v18272_v61  ;;  %v20481_v49 = vunpack.i.h.bf16 %v18164_v62 }
 0xc40   :  { %v7290_v30 = vsel %vm287_vm3, %v12745_v22, %v12746_v60  ;;  %v7289_v23 = vsel %vm287_vm3, %v12746_v60, %v18432_v7  ;;  %10801 = vmatprep.subr.bf16.mxu0 %v10800_v2  ;;  %10827 = vmatpush1.bf16.msra.mxu1 %v10826_v4  ;;  %v7244_v46 = vsel %vm238_vm2, %v20480_v14, %v12666_v43  ;;  %v20482_v2 = vunpack.i.l.bf16 %v18238_v51 }
 0xc41   :  { %v7079_v20 = vpop.permute.xlu1 %7078  ;;  %v12754_v52 = vpop.permute.xlu0 %12753  ;;  %v10828_v27 = vpack.c.bf16 %v20228_v1, %v7289_v23  ;;  %v10830_v36 = vpack.c.bf16 %v20228_v1, %v7290_v30  ;;  %v7291_v16 = vsel %vm287_vm3, %v12671_v15, %v12745_v22  ;;  %v7196_v56 = vsel %vm1363_vm13, %v20481_v49, %v12661_v38 }
 0xc42   :  { %v12756_v50 = vunpack.i.h.bf16 %v12754_v52  ;;  %v12755_v45 = vunpack.i.l.bf16 %v12754_v52  ;;  %v10806_v26 = vpack.c.bf16 %v7244_v46, %v7196_v56  ;;  %v10808_v33 = vpack.c.bf16 %v20228_v1, %v7291_v16 }
 0xc43   :  { %10803 = vmatpush1.bf16.msra.mxu0 %v10802_v54  ;;  %10829 = vmatprep.subr.bf16.mxu1 %v10828_v27  ;;  %v10810_v60 = vpack.c.bf16 %v20228_v1, %v7292_v31  ;;  %v6941_v15 = vsel %vm1107_vm9, %v20482_v2, %v12686_v35  ;;  %v20483_v62 = vunpack.i.l.bf16 %v18272_v61  ;;  %v20484_v23 = vunpack.i.l.bf16 %v18245_v39 }
 0xc44   :  { %10805 = vmatprep.subr.bf16.mxu0 %v10804_v48  ;;  %10831 = vmatpush1.bf16.msra.mxu1 %v10830_v36  ;;  %v6987_v38 = vsel %vm1156_vm10, %v12755_v45, %v12756_v50  ;;  %v20485_v52 = vunpack.i.l.bf16 %v18242_v8  ;;  %v12721_v27 = vunpack.i.h.bf16 %v18315_v47  ;;  %v20486_v39 = vunpack.i.l.bf16 %v18247_v9 }
 0xc45   :  { %v12764_v43 = vpop.permute.xlu0 %12763  ;;  %v12749_v17 = vpop.permute.xlu1 %12748  ;;  %v6989_v22 = vsel %vm1156_vm10, %v20483_v62, %v12711_v24  ;;  %v20487_v9 = vunpack.i.l.bf16 %v18270_v34  ;;  %v20488_v2 = vunpack.i.l.bf16 %v18220_v0 }
 0xc46   :  { %v12751_v4 = vunpack.i.h.bf16 %v12749_v17  ;;  %v12750_v29 = vunpack.i.l.bf16 %v12749_v17  ;;  %v12766_v13 = vunpack.i.h.bf16 %v12764_v43  ;;  %v12765_v30 = vunpack.i.l.bf16 %v12764_v43 }
 0xc47   :  { %10807 = vmatpush1.bf16.msra.mxu0 %v10806_v26  ;;  %9895 = vmatmul.mubr.msk.f32.vlgmr.msra.gmra.mrb[44].mxu1 %vm629_vm8, %v18227_v57  ;;  %v6986_v54 = vsel %vm1156_vm10, %v12756_v50, %v20485_v52  ;;  %v7082_v46 = vsel %vm1254_vm12, %v7079_v20, %v20486_v39  ;;  %v6988_v50 = vsel %vm1156_vm10, %v12711_v24, %v12755_v45 }
 0xc48   :  { %v6939_v51 = vsel %vm1107_vm9, %v12750_v29, %v12751_v4  ;;  %10809 = vmatprep.subr.bf16.mxu0 %v10808_v33  ;;  %v6938_v61 = vsel %vm1107_vm9, %v12751_v4, %v20484_v23  ;;  %v6940_v31 = vsel %vm1107_vm9, %v12686_v35, %v12750_v29  ;;  %7854 = vmatprep.mubr.f32.mxu1 %v20235_v28 }
 0xc49   :  { %v12769_v63 = vpop.permute.xlu0 %12768  ;;  %v12759_v36 = vpop.permute.xlu1 %12758  ;;  %v10852_v58 = vpack.c.bf16 %v6986_v54, %v6938_v61  ;;  %v10854_v14 = vpack.c.bf16 %v6987_v38, %v6939_v51  ;;  %v7083_v16 = vsel %vm1254_vm12, %v12766_v13, %v7079_v20  ;;  %v10832_v35 = vpack.c.bf16 %v6988_v50, %v6940_v31 }
 0xc4a   :  { %v12761_v8 = vunpack.i.h.bf16 %v12759_v36  ;;  %v12760_v48 = vunpack.i.l.bf16 %v12759_v36  ;;  %v12771_v49 = vunpack.i.h.bf16 %v12769_v63  ;;  %v12770_v56 = vunpack.i.l.bf16 %v12769_v63 }
 0xc4b   :  { %10811 = vmatpush1.bf16.msra.mxu0 %v10810_v60  ;;  %10853 = vmatprep.subr.bf16.mxu1 %v10852_v58  ;;  %v7084_v20 = vsel %vm1254_vm12, %v12765_v30, %v12766_v13  ;;  %v10834_v4 = vpack.c.bf16 %v6989_v22, %v6941_v15  ;;  %v7085_v34 = vsel %vm1254_vm12, %v18337_v18, %v12765_v30 }
 0xc4c   :  { %v7035_v43 = vsel %vm1205_vm11, %v12760_v48, %v12761_v8  ;;  %10855 = vmatpush1.bf16.msra.mxu1 %v10854_v14  ;;  %v7034_v17 = vsel %vm1205_vm11, %v12761_v8, %v20487_v9  ;;  %v7036_v24 = vsel %vm1205_vm11, %v12721_v27, %v12760_v48  ;;  %10833 = vmatprep.subr.bf16.mxu0 %v10832_v35  ;;  %v20490_v35 = vunpack.i.l.bf16 %v18229_v12 }
 0xc4d   :  { %v12774_v45 = vpop.permute.xlu0 %12773  ;;  %v7141_v26 = vpop.permute.xlu1 %7140  ;;  %v10856_v29 = vpack.c.bf16 %v7082_v46, %v7034_v17  ;;  %v10836_v33 = vpack.c.bf16 %v7084_v20, %v7036_v24  ;;  %v10858_v60 = vpack.c.bf16 %v7083_v16, %v7035_v43  ;;  %v7143_v22 = vsel %vm140_vm0, %v12770_v56, %v12771_v49 }
 0xc4e   :  { %v7153_v62 = vsel %vm140_vm0, %v7141_v26, %v20488_v2  ;;  %9894 = vmatmul.mubr.msk.f32.vlgmr.msra.gmra.mrb[44].mxu0 %vm629_vm8, %v18227_v57  ;;  %v7142_v38 = vsel %vm140_vm0, %v12771_v49, %v7141_v26  ;;  %v7037_v0 = vsel %vm1205_vm11, %v12720_v40, %v12721_v27  ;;  %v12776_v18 = vunpack.i.h.bf16 %v12774_v45 }
 0xc4f   :  { %10835 = vmatpush1.bf16.msra.mxu0 %v10834_v4  ;;  %10857 = vmatprep.subr.bf16.mxu1 %v10856_v29  ;;  %v10860_v15 = vpack.c.bf16 %v7153_v62, %v18015_v3  ;;  %v12775_v13 = vunpack.i.l.bf16 %v12774_v45  ;;  %v7144_v30 = vsel %vm140_vm0, %v18369_v10, %v12770_v56  ;;  %v10838_v3 = vpack.c.bf16 %v7085_v34, %v7037_v0 }
 0xc50   :  { %10837 = vmatprep.subr.bf16.mxu0 %v10836_v33  ;;  %10859 = vmatpush1.bf16.msra.mxu1 %v10858_v60  ;;  %v10862_v61 = vpack.c.bf16 %v7142_v38, %v18048_v41  ;;  %v10840_v40 = vpack.c.bf16 %v7143_v22, %v18051_v59  ;;  %v10842_v54 = vpack.c.bf16 %v7144_v30, %v18011_v11  ;;  %v20489_v46 = vunpack.i.l.bf16 %v18231_v53 }
 0xc51   :  { %v12779_v51 = vpop.permute.xlu0 %12778  ;;  %v7189_v23 = vpop.permute.xlu1 %7188  ;;  %10861 = vmatprep.subr.bf16.mxu1 %v10860_v15  ;;  %7783 = vmatprep.mubr.f32.mxu0 %v20235_v28  ;;  %v7191_v10 = vsel %vm1363_vm13, %v12775_v13, %v12776_v18  ;;  %v7192_v37 = vsel %vm1363_vm13, %v18383_v32, %v12775_v13 }
 0xc52   :  { %v12781_v47 = vunpack.i.h.bf16 %v12779_v51  ;;  %v12780_v52 = vunpack.i.l.bf16 %v12779_v51  ;;  %v7190_v41 = vsel %vm1363_vm13, %v12776_v18, %v7189_v23  ;;  %v7201_v59 = vsel %vm1363_vm13, %v7189_v23, %v12660_v21  ;;  %v20491_v23 = vld [vmem:[#allocation3_spill] sm:$0xff] }
 0xc53   :  { %10839 = vmatpush1.bf16.msra.mxu0 %v10838_v3 }
 0xc54   :  { %10841 = vmatprep.subr.bf16.mxu0 %v10840_v40  ;;  %10863 = vmatpush1.bf16.msra.mxu1 %v10862_v61  ;;  %v7239_v27 = vsel %vm238_vm2, %v12780_v52, %v12781_v47  ;;  %v7240_v63 = vsel %vm238_vm2, %v18403_v44, %v12780_v52 }
 0xc55   :  { %v12784_v36 = vpop.permute.xlu0 %12783  ;;  %v7237_v11 = vpop.permute.xlu1 %7236  ;;  %v10844_v58 = vpack.c.bf16 %v7239_v27, %v7191_v10  ;;  %v10846_v16 = vpack.c.bf16 %v7240_v63, %v7192_v37  ;;  %v20492_v27 = vld [vmem:[#allocation8_spill] sm:$0xff] }
 0xc56   :  { %v12786_v31 = vunpack.i.h.bf16 %v12784_v36  ;;  %v12785_v14 = vunpack.i.l.bf16 %v12784_v36  ;;  %v7238_v39 = vsel %vm238_vm2, %v12781_v47, %v7237_v11  ;;  %v7249_v44 = vsel %vm238_vm2, %v7237_v11, %v20489_v46  ;;  %v20493_v36 = vld [vmem:[#allocation4_spill] sm:$0xff] }
 0xc57   :  { %v10866_v8 = vpack.c.bf16 %v7238_v39, %v7190_v41  ;;  %10843 = vmatpush1.bf16.msra.mxu0 %v10842_v54  ;;  %v10864_v48 = vpack.c.bf16 %v7249_v44, %v7201_v59 }
 0xc58   :  { %10845 = vmatprep.subr.bf16.mxu0 %v10844_v58  ;;  %v7287_v21 = vsel %vm287_vm3, %v12785_v14, %v12786_v31  ;;  %v7288_v53 = vsel %vm287_vm3, %v18432_v7, %v12785_v14  ;;  %v20494_v14 = vld [vmem:[#allocation5_spill] sm:$0xff] }
 0xc59   :  { %v7285_v50 = vpop.permute.xlu1 %7284  ;;  %10865 = vmatprep.subr.bf16.mxu1 %v10864_v48  ;;  %v10848_v49 = vpack.c.bf16 %v20228_v1, %v7287_v21  ;;  %v10850_v17 = vpack.c.bf16 %v20228_v1, %v7288_v53  ;;  %v20497_v53 = vld [vmem:[#allocation9_spill] sm:$0xff] }
 0xc5a   :  { %v7286_v56 = vsel %vm287_vm3, %v12786_v31, %v7285_v50  ;;  %v7297_v32 = vsel %vm287_vm3, %v7285_v50, %v20490_v35  ;;  %10867 = vmatpush1.bf16.msra.mxu1 %v10866_v8  ;;  %v20495_v8 = vld [vmem:[#allocation7_spill] sm:$0xff] }
 0xc5b   :  { %v10870_v43 = vpack.c.bf16 %v20228_v1, %v7286_v56  ;;  %10847 = vmatpush1.bf16.msra.mxu0 %v10846_v16  ;;  %v10868_v9 = vpack.c.bf16 %v20228_v1, %v7297_v32  ;;  %v20496_v16 = vld [vmem:[#allocation10_spill] sm:$0xff] }
 0xc5c   :  { %10849 = vmatprep.subr.bf16.mxu0 %v10848_v49 }
 0xc5d   :  { %10869 = vmatprep.subr.bf16.mxu1 %v10868_v9 }
 0xc5e   :  { %10871 = vmatpush1.bf16.msra.mxu1 %v10870_v43 }
 0xc5f   :  { %10851 = vmatpush1.bf16.msra.mxu0 %v10850_v17 }
 0xc61   :  { %9897 = vmatmul.mubr.msk.f32.vlgmr.msra.gmra.mrb[46].mxu1 %vm629_vm8, %v18227_v57 }
 0xc62   :  { %9896 = vmatmul.mubr.msk.f32.vlgmr.msra.gmra.mrb[46].mxu0 %vm629_vm8, %v18227_v57  ;;  %8541 = vmatprep.mubr.f32.mxu1 %v20235_v28 }
 0xc63   :  { %8470 = vmatprep.mubr.f32.mxu0 %v20235_v28 }
 0xcea   :  { %v7572_v12 = vpop.f32.mrb[42].mxu1 }
 0xceb   :  { %v7863_v7 = vmax.f32 %v7572_v12, 0.0  ;;  %v7574_v24 = vpop.f32.mrb[43].mxu1 }
 0xcec   :  { %v7864_v20 = vmax.f32 %v7574_v24, 0.0 }
 0xced   :  { %v18583_v45 = vmul.f32 %v7863_v7, %v13996_v6 }
 0xcee   :  { %v18586_v26 = vmul.f32 %v7864_v20, %v14001_v42 }
 0xcf0   :  { %v12787_v4 = vpack.i.bf16 %v18586_v26, %v18583_v45 }
 0xcf2   :  { %12788 = vrot.lane.b32.xlu0 %v12787_v4, %s13212_s20  ;;  %12793 = vrot.lane.b32.xlu1 %v12787_v4, %s13213_s23 }
 0xcf6   :  { %12798 = vrot.lane.b32.xlu0 %v12787_v4, %s13214_s25  ;;  %12803 = vrot.lane.b32.xlu1 %v12787_v4, %s13215_s26 }
 0xd0d   :  { %v7501_v57 = vpop.f32.mrb[42].mxu0 }
 0xd0e   :  { %v7503_v29 = vpop.f32.mrb[43].mxu0  ;;  %v7861_v51 = vmax.f32 %v7501_v57, 0.0 }
 0xd0f   :  { %v7862_v60 = vmax.f32 %v7503_v29, 0.0 }
 0xd10   :  { %v18615_v3 = vmul.f32 %v7861_v51, %v20491_v23 }
 0xd11   :  { %v18601_v22 = vmul.f32 %v7862_v60, %v14023_v5 }
 0xd13   :  { %v12847_v47 = vpack.i.bf16 %v18615_v3, %v18601_v22 }
 0xd1a   :  { %v7714_v33 = vpop.f32.mrb[44].mxu1 }
 0xd1b   :  { %v7867_v34 = vmax.f32 %v7714_v33, 0.0  ;;  %v7716_v2 = vpop.f32.mrb[45].mxu1 }
 0xd1c   :  { %v7868_v62 = vmax.f32 %v7716_v2, 0.0 }
 0xd1d   :  { %v18595_v38 = vmul.f32 %v7867_v34, %v14072_v55 }
 0xd1e   :  { %v18598_v15 = vmul.f32 %v7868_v62, %v14078_v25 }
 0xd1f   :  { %v12827_v30 = vpack.i.bf16 %v18595_v38, %v18601_v22 }
 0xd20   :  { %v12812_v0 = vpack.i.bf16 %v18598_v15, %v18583_v45 }
 0xd21   :  { %v7643_v18 = vpop.f32.mrb[44].mxu0 }
 0xd22   :  { %v7645_v13 = vpop.f32.mrb[45].mxu0  ;;  %12813 = vrot.lane.b32.xlu0 %v12812_v0, %s13216_s27  ;;  %12808 = vrot.lane.b32.xlu1 %v12812_v0, %s13203_s21  ;;  %v7865_v41 = vmax.f32 %v7643_v18, 0.0 }
 0xd23   :  { %v7866_v58 = vmax.f32 %v7645_v13, 0.0 }
 0xd24   :  { %v18629_v11 = vmul.f32 %v7865_v41, %v20493_v36 }
 0xd25   :  { %v18638_v39 = vmul.f32 %v7866_v58, %v20494_v14 }
 0xd26   :  { %12828 = vrot.lane.b32.xlu0 %v12827_v30, %s13212_s20  ;;  %12818 = vrot.lane.b32.xlu1 %v12812_v0, %s13204_s22  ;;  %v12882_v31 = vpack.i.bf16 %v18629_v11, %v18586_v26 }
 0xd27   :  { %v12907_v46 = vpack.i.bf16 %v18638_v39, %v18598_v15 }
 0xd2a   :  { %12838 = vrot.lane.b32.xlu0 %v12827_v30, %s13214_s25  ;;  %12823 = vrot.lane.b32.xlu1 %v12812_v0, %s13206_s24 }
 0xd2e   :  { %12833 = vrot.lane.b32.xlu1 %v12827_v30, %s13213_s23 }
 0xd32   :  { %12843 = vrot.lane.b32.xlu1 %v12827_v30, %s13215_s26 }
 0xd34   :  { %v7856_v61 = vpop.f32.mrb[46].mxu1 }
 0xd35   :  { %v7785_v52 = vpop.f32.mrb[46].mxu0  ;;  %v7858_v40 = vpop.f32.mrb[47].mxu1  ;;  %v7871_v50 = vmax.f32 %v7856_v61, 0.0 }
 0xd36   :  { %v7872_v54 = vmax.f32 %v7858_v40, 0.0  ;;  %12848 = vrot.lane.b32.xlu1 %v12847_v47, %s13203_s21  ;;  %v7787_v10 = vpop.f32.mrb[47].mxu0  ;;  %v7869_v44 = vmax.f32 %v7785_v52, 0.0 }
 0xd37   :  { %v7870_v37 = vmax.f32 %v7787_v10, 0.0  ;;  %v18661_v56 = vmul.f32 %v7871_v50, %v20497_v53 }
 0xd38   :  { %v18622_v63 = vmul.f32 %v7872_v54, %v20492_v27  ;;  %v18649_v48 = vmul.f32 %v7869_v44, %v20495_v8 }
 0xd39   :  { %v18658_v49 = vmul.f32 %v7870_v37, %v20496_v16 }
 0xd3a   :  { %v12857_v59 = vpack.i.bf16 %v18622_v63, %v18615_v3  ;;  %v12932_v21 = vpack.i.bf16 %v18595_v38, %v18649_v48  ;;  %v12937_v32 = vpack.i.bf16 %v18661_v56, %v18622_v63 }
 0xd3b   :  { %v12952_v35 = vpack.i.bf16 %v18658_v49, %v18661_v56 }
 0xd3c   :  { %12858 = vrot.lane.b32.xlu1 %v12857_v59, %s13213_s23  ;;  %12853 = vrot.lane.b32.xlu0 %v12857_v59, %s13212_s20 }
 0xd40   :  { %12863 = vrot.lane.b32.xlu1 %v12857_v59, %s13214_s25  ;;  %12868 = vrot.lane.b32.xlu0 %v12857_v59, %s13215_s26 }
 0xd44   :  { %12883 = vrot.lane.b32.xlu1 %v12882_v31, %s13204_s22  ;;  %12873 = vrot.lane.b32.xlu0 %v12882_v31, %s13203_s21 }
 0xd48   :  { %12888 = vrot.lane.b32.xlu1 %v12847_v47, %s13216_s27  ;;  %12878 = vrot.lane.b32.xlu0 %v12882_v31, %s13216_s27 }
 0xd4c   :  { %12908 = vrot.lane.b32.xlu1 %v12907_v46, %s13213_s23  ;;  %12893 = vrot.lane.b32.xlu0 %v12847_v47, %s13204_s22 }
 0xd50   :  { %12918 = vrot.lane.b32.xlu1 %v12907_v46, %s13215_s26  ;;  %12898 = vrot.lane.b32.xlu0 %v12882_v31, %s13206_s24 }
 0xd54   :  { %12923 = vrot.lane.b32.xlu1 %v12847_v47, %s13206_s24  ;;  %12903 = vrot.lane.b32.xlu0 %v12907_v46, %s13212_s20 }
 0xd58   :  { %12933 = vrot.lane.b32.xlu1 %v12932_v21, %s13216_s27  ;;  %12913 = vrot.lane.b32.xlu0 %v12907_v46, %s13214_s25 }
 0xd5c   :  { %7941 = vrot.lane.b32.xlu1 %v18629_v11, %s13213_s23  ;;  %7893 = vrot.lane.b32.xlu0 %v18629_v11, %s13212_s20 }
 0xd60   :  { %12953 = vrot.lane.b32.xlu1 %v12952_v35, %s13212_s20  ;;  %12928 = vrot.lane.b32.xlu0 %v12932_v21, %s13203_s21 }
 0xd64   :  { %12963 = vrot.lane.b32.xlu1 %v12952_v35, %s13214_s25  ;;  %12938 = vrot.lane.b32.xlu0 %v12937_v32, %s13203_s21  ;;  %v18675_v43 = vpop.permute.xlu0 %12788  ;;  %v18677_v9 = vpop.permute.xlu1 %12793 }
 0xd65   :  { %v20146_v17 = vunpack.i.h.bf16 %v18675_v43  ;;  %v12790_v12 = vunpack.i.l.bf16 %v18675_v43  ;;  %v20148_v7 = vunpack.i.h.bf16 %v18677_v9  ;;  %v12795_v24 = vunpack.i.l.bf16 %v18677_v9 }
 0xd67   :  { %v7917_v20 = vsel %vm1107_vm9, %v12790_v12, %v20146_v17  ;;  %v7965_v4 = vsel %vm1156_vm10, %v12795_v24, %v20148_v7 }
 0xd68   :  { %7989 = vrot.lane.b32.xlu1 %v18629_v11, %s13214_s25  ;;  %12943 = vrot.lane.b32.xlu0 %v12932_v21, %s13204_s22  ;;  %v10892_v57 = vpack.c.bf16 %v7965_v4, %v7917_v20  ;;  %v18722_v29 = vpop.permute.xlu0 %12798  ;;  %v18724_v33 = vpop.permute.xlu1 %12803 }
 0xd69   :  { %v20143_v18 = vunpack.i.h.bf16 %v18722_v29  ;;  %v12800_v13 = vunpack.i.l.bf16 %v18722_v29  ;;  %v20142_v30 = vunpack.i.h.bf16 %v18724_v33  ;;  %v12805_v51 = vunpack.i.l.bf16 %v18724_v33 }
 0xd6a   :  { %10893 = vmatprep.subr.bf16.mxu1 %v10892_v57 }
 0xd6b   :  { %v8013_v54 = vsel %vm1205_vm11, %v12800_v13, %v20143_v18  ;;  %v8061_v10 = vsel %vm1254_vm12, %v12805_v51, %v20142_v30 }
 0xd6c   :  { %12973 = vrot.lane.b32.xlu1 %v12937_v32, %s13216_s27  ;;  %12948 = vrot.lane.b32.xlu0 %v12932_v21, %s13206_s24  ;;  %v10896_v37 = vpack.c.bf16 %v8061_v10, %v8013_v54 }
 0xd70   :  { %8099 = vrot.lane.b32.xlu1 %v18638_v39, %s13203_s21  ;;  %12958 = vrot.lane.b32.xlu0 %v12952_v35, %s13213_s23 }
 0xd74   :  { %8147 = vrot.lane.b32.xlu1 %v18638_v39, %s13216_s27  ;;  %12968 = vrot.lane.b32.xlu0 %v12952_v35, %s13215_s26 }
 0xd78   :  { %8243 = vrot.lane.b32.xlu1 %v18638_v39, %s13206_s24  ;;  %8037 = vrot.lane.b32.xlu0 %v18629_v11, %s13215_s26 }
 0xd7c   :  { %7949 = vrot.lane.b32.xlu1 %v18649_v48, %s13213_s23  ;;  %12978 = vrot.lane.b32.xlu0 %v12937_v32, %s13204_s22 }
 0xd80   :  { %8045 = vrot.lane.b32.xlu1 %v18649_v48, %s13215_s26  ;;  %12983 = vrot.lane.b32.xlu0 %v12937_v32, %s13206_s24 }
 0xd84   :  { %8155 = vrot.lane.b32.xlu1 %v18658_v49, %s13216_s27  ;;  %8195 = vrot.lane.b32.xlu0 %v18638_v39, %s13204_s22 }
 0xd88   :  { %8251 = vrot.lane.b32.xlu1 %v18658_v49, %s13206_s24  ;;  %7901 = vrot.lane.b32.xlu0 %v18649_v48, %s13212_s20 }
 0xd8c   :  { %7997 = vrot.lane.b32.xlu0 %v18649_v48, %s13214_s25 }
 0xd90   :  { %8107 = vrot.lane.b32.xlu0 %v18658_v49, %s13203_s21 }
 0xd94   :  { %v18728_v60 = vpop.permute.xlu0 %12813  ;;  %v18730_v34 = vpop.permute.xlu1 %12808  ;;  %8203 = vrot.lane.b32.xlu0 %v18658_v49, %s13204_s22 }
 0xd98   :  { %v18734_v2 = vpop.permute.xlu1 %12818  ;;  %v18736_v62 = vpop.permute.xlu0 %12828 }
 0xd99   :  { %v12830_v61 = vunpack.i.l.bf16 %v18736_v62 }
 0xd9b   :  { %v7918_v41 = vsel %vm1107_vm9, %v12830_v61, %v12790_v12 }
 0xd9c   :  { %v18738_v0 = vpop.permute.xlu1 %12823  ;;  %v18745_v47 = vpop.permute.xlu0 %12838 }
 0xd9d   :  { %v12840_v59 = vunpack.i.l.bf16 %v18745_v47 }
 0xd9f   :  { %v8014_v21 = vsel %vm1205_vm11, %v12840_v59, %v12800_v13 }
 0xda0   :  { %v18747_v52 = vpop.permute.xlu1 %12833 }
 0xda1   :  { %v12835_v40 = vunpack.i.l.bf16 %v18747_v52 }
 0xda3   :  { %v7966_v58 = vsel %vm1156_vm10, %v12835_v40, %v12795_v24 }
 0xda4   :  { %v10894_v31 = vpack.c.bf16 %v7966_v58, %v7918_v41  ;;  %v18763_v46 = vpop.permute.xlu1 %12843 }
 0xda5   :  { %v12845_v44 = vunpack.i.l.bf16 %v18763_v46 }
 0xda6   :  { %10895 = vmatpush1.bf16.msra.mxu1 %v10894_v31  ;;  %v12810_v31 = vunpack.i.l.bf16 %v18730_v34 }
 0xda7   :  { %v8062_v50 = vsel %vm1254_vm12, %v12845_v44, %v12805_v51  ;;  %10897 = vmatprep.subr.bf16.mxu1 %v10896_v37 }
 0xda8   :  { %v10898_v35 = vpack.c.bf16 %v8062_v50, %v8014_v21  ;;  %v18770_v32 = vpop.permute.xlu1 %12848 }
 0xda9   :  { %v12850_v54 = vunpack.i.l.bf16 %v18770_v32 }
 0xdaa   :  { %10899 = vmatpush1.bf16.msra.mxu1 %v10898_v35 }
 0xdae   :  { %v18772_v12 = vpop.permute.xlu1 %12858  ;;  %v18774_v24 = vpop.permute.xlu0 %12853 }
 0xdaf   :  { %v20144_v20 = vunpack.i.h.bf16 %v18772_v12  ;;  %v12860_v4 = vunpack.i.l.bf16 %v18772_v12  ;;  %v20145_v57 = vunpack.i.h.bf16 %v18774_v24  ;;  %v12855_v13 = vunpack.i.l.bf16 %v18774_v24 }
 0xdb1   :  { %v7968_v51 = vsel %vm1156_vm10, %v20144_v20, %v12860_v4  ;;  %v7920_v10 = vsel %vm1107_vm9, %v20145_v57, %v12855_v13  ;;  %v7919_v41 = vsel %vm1107_vm9, %v12855_v13, %v12830_v61  ;;  %v7967_v58 = vsel %vm1156_vm10, %v12860_v4, %v12835_v40 }
 0xdb2   :  { %v18794_v37 = vpop.permute.xlu1 %12863  ;;  %v18796_v21 = vpop.permute.xlu0 %12868  ;;  %v10872_v50 = vpack.c.bf16 %v7967_v58, %v7919_v41  ;;  %v10874_v35 = vpack.c.bf16 %v7968_v51, %v7920_v10  ;;  %v20155_v61 = vunpack.i.h.bf16 %v18770_v32  ;;  %v8122_v40 = vsel %vm140_vm0, %v12850_v54, %v12810_v31 }
 0xdb3   :  { %v20147_v30 = vunpack.i.h.bf16 %v18794_v37  ;;  %v12865_v18 = vunpack.i.l.bf16 %v18794_v37  ;;  %v20153_v20 = vunpack.i.h.bf16 %v18796_v21  ;;  %v12870_v57 = vunpack.i.l.bf16 %v18796_v21 }
 0xdb4   :  { %10873 = vmatprep.subr.bf16.mxu0 %v10872_v50 }
 0xdb5   :  { %v8016_v4 = vsel %vm1205_vm11, %v20147_v30, %v12865_v18  ;;  %v8064_v13 = vsel %vm1254_vm12, %v20153_v20, %v12870_v57  ;;  %10875 = vmatpush1.bf16.msra.mxu0 %v10874_v35  ;;  %v8015_v51 = vsel %vm1205_vm11, %v12865_v18, %v12840_v59  ;;  %v8063_v10 = vsel %vm1254_vm12, %v12870_v57, %v12845_v44 }
 0xdb6   :  { %v10878_v41 = vpack.c.bf16 %v8064_v13, %v8016_v4  ;;  %v18817_v58 = vpop.permute.xlu1 %12883  ;;  %v18819_v50 = vpop.permute.xlu0 %12873  ;;  %v10876_v17 = vpack.c.bf16 %v8063_v10, %v8015_v51  ;;  %v8123_v35 = vsel %vm140_vm0, %v20155_v61, %v12850_v54  ;;  %v10880_v44 = vpack.c.bf16 %v8122_v40, %v18601_v22 }
 0xdb7   :  { %v20150_v30 = vunpack.i.h.bf16 %v18819_v50  ;;  %v12875_v7 = vunpack.i.l.bf16 %v18819_v50  ;;  %v20149_v18 = vunpack.i.h.bf16 %v18817_v58  ;;  %v12885_v59 = vunpack.i.l.bf16 %v18817_v58 }
 0xdb8   :  { %10877 = vmatprep.subr.bf16.mxu0 %v10876_v17  ;;  %v12820_v13 = vunpack.i.l.bf16 %v18734_v2  ;;  %v12815_v17 = vunpack.i.l.bf16 %v18728_v60 }
 0xdb9   :  { %v8121_v57 = vsel %vm140_vm0, %v12810_v31, %v12875_v7  ;;  %10879 = vmatpush1.bf16.msra.mxu0 %v10878_v41  ;;  %v8120_v4 = vsel %vm140_vm0, %v12875_v7, %v20150_v30  ;;  %v10882_v31 = vpack.c.bf16 %v8123_v35, %v18615_v3 }
 0xdba   :  { %v10902_v54 = vpack.c.bf16 %v8121_v57, %v18583_v45  ;;  %v18838_v51 = vpop.permute.xlu1 %12888  ;;  %v18840_v10 = vpop.permute.xlu0 %12878  ;;  %10881 = vmatprep.subr.bf16.mxu0 %v10880_v44  ;;  %v10900_v22 = vpack.c.bf16 %v8120_v4, %v18586_v26  ;;  %v8217_v7 = vsel %vm238_vm2, %v12820_v13, %v12885_v59  ;;  %v8216_v45 = vsel %vm238_vm2, %v12885_v59, %v20149_v18 }
 0xdbb   :  { %v20151_v40 = vunpack.i.h.bf16 %v18840_v10  ;;  %v12880_v41 = vunpack.i.l.bf16 %v18840_v10  ;;  %v20152_v44 = vunpack.i.h.bf16 %v18838_v51  ;;  %v12890_v26 = vunpack.i.l.bf16 %v18838_v51 }
 0xdbc   :  { %10901 = vmatprep.subr.bf16.mxu1 %v10900_v22 }
 0xdbd   :  { %v8169_v3 = vsel %vm1363_vm13, %v12815_v17, %v12880_v41  ;;  %10883 = vmatpush1.bf16.msra.mxu0 %v10882_v31  ;;  %10903 = vmatpush1.bf16.msra.mxu1 %v10902_v54  ;;  %v8168_v35 = vsel %vm1363_vm13, %v12880_v41, %v20151_v40  ;;  %v8171_v54 = vsel %vm1363_vm13, %v20152_v44, %v12890_v26  ;;  %v12825_v40 = vunpack.i.l.bf16 %v18738_v0 }
 0xdbe   :  { %v10906_v57 = vpack.c.bf16 %v8217_v7, %v8169_v3  ;;  %v18861_v4 = vpop.permute.xlu1 %12908  ;;  %v18863_v22 = vpop.permute.xlu0 %12893  ;;  %v10904_v59 = vpack.c.bf16 %v8216_v45, %v8168_v35  ;;  %v8170_v41 = vsel %vm1363_vm13, %v12890_v26, %v12815_v17  ;;  %v12831_v17 = vunpack.i.h.bf16 %v18736_v62 }
 0xdbf   :  { %v20154_v18 = vunpack.i.h.bf16 %v18863_v22  ;;  %v12895_v30 = vunpack.i.l.bf16 %v18863_v22  ;;  %v12836_v26 = vunpack.i.h.bf16 %v18747_v52 }
 0xdc0   :  { %10905 = vmatprep.subr.bf16.mxu1 %v10904_v59 }
 0xdc1   :  { %v8219_v31 = vsel %vm238_vm2, %v20154_v18, %v12895_v30  ;;  %10907 = vmatpush1.bf16.msra.mxu1 %v10906_v57  ;;  %v8218_v7 = vsel %vm238_vm2, %v12895_v30, %v12820_v13  ;;  %v12911_v57 = vunpack.i.h.bf16 %v18861_v4  ;;  %v20157_v18 = vunpack.i.l.bf16 %v18861_v4 }
 0xdc2   :  { %v10886_v45 = vpack.c.bf16 %v8219_v31, %v8171_v54  ;;  %v18879_v3 = vpop.permute.xlu1 %12918  ;;  %v18881_v35 = vpop.permute.xlu0 %12898  ;;  %v10884_v59 = vpack.c.bf16 %v8218_v7, %v8170_v41  ;;  %v12846_v54 = vunpack.i.h.bf16 %v18763_v46 }
 0xdc3   :  { %v20156_v44 = vunpack.i.h.bf16 %v18881_v35  ;;  %v12900_v20 = vunpack.i.l.bf16 %v18881_v35  ;;  %v7962_v52 = vsel %vm1156_vm10, %v12911_v57, %v12836_v26 }
 0xdc4   :  { %10885 = vmatprep.subr.bf16.mxu0 %v10884_v59 }
 0xdc5   :  { %v8265_v30 = vsel %vm287_vm3, %v12825_v40, %v12900_v20  ;;  %10887 = vmatpush1.bf16.msra.mxu0 %v10886_v45  ;;  %v8264_v13 = vsel %vm287_vm3, %v12900_v20, %v20156_v44 }
 0xdc6   :  { %v10910_v31 = vpack.c.bf16 %v20228_v1, %v8265_v30  ;;  %v18898_v41 = vpop.permute.xlu1 %12923  ;;  %v18900_v7 = vpop.permute.xlu0 %12903  ;;  %v10908_v62 = vpack.c.bf16 %v20228_v1, %v8264_v13  ;;  %v7961_v13 = vsel %vm1156_vm10, %v12836_v26, %v20157_v18 }
 0xdc7   :  { %v20158_v59 = vunpack.i.h.bf16 %v18898_v41  ;;  %v12925_v45 = vunpack.i.l.bf16 %v18898_v41  ;;  %v12906_v61 = vunpack.i.h.bf16 %v18900_v7  ;;  %v20498_v30 = vunpack.i.l.bf16 %v18900_v7 }
 0xdc8   :  { %10909 = vmatprep.subr.bf16.mxu1 %v10908_v62 }
 0xdc9   :  { %v8267_v44 = vsel %vm287_vm3, %v20158_v59, %v12925_v45  ;;  %v7914_v20 = vsel %vm1107_vm9, %v12906_v61, %v12831_v17  ;;  %10911 = vmatpush1.bf16.msra.mxu1 %v10910_v31  ;;  %v8266_v46 = vsel %vm287_vm3, %v12925_v45, %v12825_v40  ;;  %v7913_v62 = vsel %vm1107_vm9, %v12831_v17, %v20498_v30  ;;  %v18936_v31 = vld [vmem:[%s19933_s1 + $0x40] sm:$0xff] }
 0xdca   :  { %v10890_v16 = vpack.c.bf16 %v20228_v1, %v8267_v44  ;;  %v10934_v26 = vpack.c.bf16 %v7962_v52, %v7914_v20  ;;  %v18928_v18 = vpop.permute.xlu1 %12933  ;;  %v18930_v53 = vpop.permute.xlu0 %12913  ;;  %v10888_v59 = vpack.c.bf16 %v20228_v1, %v8266_v46  ;;  %v10932_v27 = vpack.c.bf16 %v7961_v13, %v7913_v62 }
 0xdcb   :  { %v12841_v40 = vunpack.i.h.bf16 %v18745_v47  ;;  %v20168_v45 = vunpack.i.h.bf16 %v18930_v53  ;;  %v20159_v17 = vunpack.i.l.bf16 %v18930_v53  ;;  %v20499_v44 = vunpack.i.h.bf16 %v18879_v3 }
 0xdcc   :  { %10889 = vmatprep.subr.bf16.mxu0 %v10888_v59  ;;  %10933 = vmatprep.subr.bf16.mxu1 %v10932_v27  ;;  %v20500_v46 = vunpack.i.l.bf16 %v18879_v3 }
 0xdcd   :  { %v8058_v20 = vsel %vm1254_vm12, %v20499_v44, %v12846_v54  ;;  %v8010_v52 = vsel %vm1205_vm11, %v20168_v45, %v12841_v40  ;;  %10891 = vmatpush1.bf16.msra.mxu0 %v10890_v16  ;;  %9900 = vmatmul.mubr.msk.f32.vlgmr.msra.gmra.mrb[48].mxu1 %vm629_vm8, %v18936_v31  ;;  %v8009_v47 = vsel %vm1205_vm11, %v12841_v40, %v20159_v17  ;;  %v20501_v44 = vunpack.i.h.bf16 %v18677_v9 }
 0xdce   :  { %v8057_v59 = vsel %vm1254_vm12, %v12846_v54, %v20500_v46  ;;  %v10938_v27 = vpack.c.bf16 %v8058_v20, %v8010_v52  ;;  %10935 = vmatpush1.bf16.msra.mxu1 %v10934_v26  ;;  %v7942_v30 = vpop.permute.xlu1 %7941  ;;  %v7894_v13 = vpop.permute.xlu0 %7893  ;;  %8683 = vmatprep.mubr.f32.mxu1 %v20235_v28  ;;  %v20502_v54 = vunpack.i.h.bf16 %v18675_v43 }
 0xdcf   :  { %v10936_v62 = vpack.c.bf16 %v8057_v59, %v8009_v47  ;;  %v7963_v16 = vsel %vm1156_vm10, %v7942_v30, %v12911_v57  ;;  %v7964_v40 = vsel %vm1156_vm10, %v20501_v44, %v7942_v30  ;;  %v7915_v17 = vsel %vm1107_vm9, %v7894_v13, %v12906_v61 }
 0xdd0   :  { %v7916_v26 = vsel %vm1107_vm9, %v20502_v54, %v7894_v13  ;;  %v10912_v20 = vpack.c.bf16 %v7963_v16, %v7915_v17  ;;  %9899 = vmatmul.mubr.msk.f32.vlgmr.msra.gmra.mrb[48].mxu0 %vm629_vm8, %v18936_v31  ;;  %v12811_v61 = vunpack.i.h.bf16 %v18730_v34  ;;  %v20165_v13 = vunpack.i.h.bf16 %v18928_v18 }
 0xdd1   :  { %v10914_v52 = vpack.c.bf16 %v7964_v40, %v7916_v26  ;;  %10937 = vmatprep.subr.bf16.mxu1 %v10936_v62  ;;  %8612 = vmatprep.mubr.f32.mxu0 %v20235_v28  ;;  %v20161_v62 = vunpack.i.l.bf16 %v18928_v18  ;;  %v12816_v40 = vunpack.i.h.bf16 %v18728_v60  ;;  %v12821_v54 = vunpack.i.h.bf16 %v18734_v2 }
 0xdd2   :  { %10939 = vmatpush1.bf16.msra.mxu1 %v10938_v27  ;;  %v18975_v9 = vpop.permute.xlu1 %12953  ;;  %v18977_v57 = vpop.permute.xlu0 %12928  ;;  %10913 = vmatprep.subr.bf16.mxu0 %v10912_v20 }
 0xdd3   :  { %v20167_v43 = vunpack.i.h.bf16 %v18977_v57  ;;  %v20160_v47 = vunpack.i.l.bf16 %v18977_v57  ;;  %10915 = vmatpush1.bf16.msra.mxu0 %v10914_v52  ;;  %v8164_v60 = vsel %vm1363_vm13, %v12816_v40, %v20161_v62  ;;  %v12955_v62 = vunpack.i.l.bf16 %v18975_v9 }
 0xdd5   :  { %v8117_v17 = vsel %vm140_vm0, %v20167_v43, %v12811_v61  ;;  %v8116_v46 = vsel %vm140_vm0, %v12811_v61, %v20160_v47  ;;  %v20504_v43 = vunpack.i.h.bf16 %v18772_v12 }
 0xdd6   :  { %v10942_v59 = vpack.c.bf16 %v8117_v17, %v18595_v38  ;;  %v18991_v27 = vpop.permute.xlu1 %12963  ;;  %v18993_v34 = vpop.permute.xlu0 %12938  ;;  %v10940_v30 = vpack.c.bf16 %v8116_v46, %v18598_v15  ;;  %v8165_v15 = vsel %vm1363_vm13, %v20165_v13, %v12816_v40  ;;  %v20169_v40 = vunpack.i.h.bf16 %v18975_v9 }
 0xdd8   :  { %10941 = vmatprep.subr.bf16.mxu1 %v10940_v30 }
 0xdd9   :  { %10943 = vmatpush1.bf16.msra.mxu1 %v10942_v59  ;;  %v12826_v59 = vunpack.i.h.bf16 %v18738_v0 }
 0xdda   :  { %v7990_v16 = vpop.permute.xlu1 %7989  ;;  %v18998_v44 = vpop.permute.xlu0 %12943 }
 0xddb   :  { %v20163_v38 = vunpack.i.h.bf16 %v18998_v44  ;;  %v20162_v26 = vunpack.i.l.bf16 %v18998_v44 }
 0xddd   :  { %v8213_v20 = vsel %vm238_vm2, %v20163_v38, %v12821_v54  ;;  %v8212_v2 = vsel %vm238_vm2, %v12821_v54, %v20162_v26 }
 0xdde   :  { %v10946_v52 = vpack.c.bf16 %v8213_v20, %v8165_v15  ;;  %v19020_v61 = vpop.permute.xlu1 %12973  ;;  %v19022_v17 = vpop.permute.xlu0 %12948  ;;  %v10944_v46 = vpack.c.bf16 %v8212_v2, %v8164_v60  ;;  %v12940_v2 = vunpack.i.l.bf16 %v18993_v34 }
 0xddf   :  { %v20164_v30 = vunpack.i.h.bf16 %v19022_v17  ;;  %v20166_v47 = vunpack.i.l.bf16 %v19022_v17 }
 0xde0   :  { %10945 = vmatprep.subr.bf16.mxu1 %v10944_v46 }
 0xde1   :  { %v8261_v54 = vsel %vm287_vm3, %v20164_v30, %v12826_v59  ;;  %10947 = vmatpush1.bf16.msra.mxu1 %v10946_v52  ;;  %v8260_v0 = vsel %vm287_vm3, %v12826_v59, %v20166_v47  ;;  %v12965_v52 = vunpack.i.l.bf16 %v18991_v27  ;;  %v7910_v59 = vsel %vm1107_vm9, %v20169_v40, %v12955_v62 }
 0xde2   :  { %v10950_v15 = vpack.c.bf16 %v20228_v1, %v8261_v54  ;;  %v19038_v20 = vpop.permute.xlu0 %12958  ;;  %v10948_v60 = vpack.c.bf16 %v20228_v1, %v8260_v0  ;;  %v8100_v13 = vpop.permute.xlu1 %8099  ;;  %v20503_v0 = vunpack.i.h.bf16 %v18774_v24 }
 0xde3   :  { %v12961_v46 = vunpack.i.h.bf16 %v19038_v20  ;;  %v12960_v26 = vunpack.i.l.bf16 %v19038_v20 }
 0xde4   :  { %10949 = vmatprep.subr.bf16.mxu1 %v10948_v60  ;;  %v7909_v47 = vsel %vm1107_vm9, %v12955_v62, %v20503_v0  ;;  %v20506_v62 = vunpack.i.h.bf16 %v18991_v27 }
 0xde5   :  { %v7958_v54 = vsel %vm1156_vm10, %v12961_v46, %v12960_v26  ;;  %10951 = vmatpush1.bf16.msra.mxu1 %v10950_v15  ;;  %v7957_v60 = vsel %vm1156_vm10, %v12960_v26, %v20504_v43  ;;  %v20505_v15 = vunpack.i.h.bf16 %v18770_v32  ;;  %v20507_v43 = vunpack.i.h.bf16 %v18993_v34 }
 0xde6   :  { %v10974_v45 = vpack.c.bf16 %v7958_v54, %v7910_v59  ;;  %v19063_v30 = vpop.permute.xlu0 %12968  ;;  %v10972_v40 = vpack.c.bf16 %v7957_v60, %v7909_v47  ;;  %v8006_v12 = vsel %vm1205_vm11, %v20506_v62, %v12965_v52  ;;  %v20508_v47 = vunpack.i.h.bf16 %v18794_v37  ;;  %v8148_v60 = vpop.permute.xlu1 %8147 }
 0xde7   :  { %v12971_v38 = vunpack.i.h.bf16 %v19063_v30  ;;  %v12970_v8 = vunpack.i.l.bf16 %v19063_v30  ;;  %v8124_v24 = vsel %vm140_vm0, %v12940_v2, %v20505_v15  ;;  %v8113_v26 = vsel %vm140_vm0, %v20507_v43, %v12940_v2 }
 0xde8   :  { %10973 = vmatprep.subr.bf16.mxu1 %v10972_v40  ;;  %9902 = vmatmul.mubr.msk.f32.vlgmr.msra.gmra.mrb[50].mxu1 %vm629_vm8, %v18936_v31  ;;  %v8005_v59 = vsel %vm1205_vm11, %v12965_v52, %v20508_v47  ;;  %v20509_v54 = vunpack.i.h.bf16 %v18796_v21  ;;  %v20510_v40 = vunpack.i.h.bf16 %v18930_v53  ;;  %v10980_v37 = vpack.c.bf16 %v8124_v24, %v18622_v63 }
 0xde9   :  { %v8054_v32 = vsel %vm1254_vm12, %v12971_v38, %v12970_v8  ;;  %10975 = vmatpush1.bf16.msra.mxu1 %v10974_v45  ;;  %8825 = vmatprep.mubr.f32.mxu1 %v20235_v28  ;;  %v20511_v52 = vunpack.i.h.bf16 %v18722_v29  ;;  %v20513_v47 = vunpack.i.h.bf16 %v18879_v3  ;;  %v12976_v29 = vunpack.i.h.bf16 %v19020_v61 }
 0xdea   :  { %v8053_v2 = vsel %vm1254_vm12, %v12970_v8, %v20509_v54  ;;  %v8011_v0 = vsel %vm1205_vm11, %v7990_v16, %v20510_v40  ;;  %v10978_v15 = vpack.c.bf16 %v8054_v32, %v8006_v12  ;;  %v8038_v45 = vpop.permute.xlu0 %8037  ;;  %v20512_v8 = vunpack.i.h.bf16 %v18977_v57 }
 0xdeb   :  { %v10976_v62 = vpack.c.bf16 %v8053_v2, %v8005_v59  ;;  %v8012_v21 = vsel %vm1205_vm11, %v20511_v52, %v7990_v16  ;;  %v8059_v54 = vsel %vm1254_vm12, %v8038_v45, %v20513_v47  ;;  %v20514_v12 = vunpack.i.h.bf16 %v18724_v33 }
 0xdec   :  { %v8118_v43 = vsel %vm140_vm0, %v8100_v13, %v20512_v8  ;;  %v12975_v24 = vunpack.i.l.bf16 %v19020_v61  ;;  %v10916_v16 = vpack.c.bf16 %v8059_v54, %v8011_v0  ;;  %v20515_v59 = vunpack.i.h.bf16 %v18819_v50 }
 0xded   :  { %v8060_v63 = vsel %vm1254_vm12, %v20514_v12, %v8038_v45  ;;  %10977 = vmatprep.subr.bf16.mxu1 %v10976_v62  ;;  %v10920_v40 = vpack.c.bf16 %v8118_v43, %v18638_v39  ;;  %v10982_v33 = vpack.c.bf16 %v8113_v26, %v18661_v56  ;;  %v20516_v56 = vunpack.i.h.bf16 %v18838_v51 }
 0xdee   :  { %v10918_v32 = vpack.c.bf16 %v8060_v63, %v8012_v21  ;;  %10979 = vmatpush1.bf16.msra.mxu1 %v10978_v15  ;;  %v8119_v2 = vsel %vm140_vm0, %v20515_v59, %v8100_v13  ;;  %v19122_v52 = vpop.permute.xlu0 %12978  ;;  %10917 = vmatprep.subr.bf16.mxu0 %v10916_v16  ;;  %v8161_v50 = vsel %vm1363_vm13, %v12976_v29, %v12975_v24  ;;  %v8244_v15 = vpop.permute.xlu1 %8243  ;;  %v20517_v62 = vunpack.i.h.bf16 %v18863_v22 }
 0xdef   :  { %10981 = vmatprep.subr.bf16.mxu1 %v10980_v37  ;;  %v12981_v45 = vunpack.i.h.bf16 %v19122_v52  ;;  %v12980_v0 = vunpack.i.l.bf16 %v19122_v52  ;;  %v10922_v39 = vpack.c.bf16 %v8119_v2, %v18629_v11  ;;  %v8172_v26 = vsel %vm1363_vm13, %v12975_v24, %v20516_v56 }
 0xdf0   :  { %10919 = vmatpush1.bf16.msra.mxu0 %v10918_v32  ;;  %v20518_v22 = vunpack.i.h.bf16 %v18898_v41  ;;  %v20519_v12 = vunpack.i.h.bf16 %v18928_v18  ;;  %v20520_v2 = vunpack.i.h.bf16 %v18840_v10  ;;  %v20521_v41 = vunpack.i.h.bf16 %v19022_v17 }
 0xdf1   :  { %10921 = vmatprep.subr.bf16.mxu0 %v10920_v40  ;;  %v8209_v13 = vsel %vm238_vm2, %v12981_v45, %v12980_v0  ;;  %v8220_v37 = vsel %vm238_vm2, %v12980_v0, %v20517_v62  ;;  %v20522_v0 = vunpack.i.h.bf16 %v18998_v44 }
 0xdf2   :  { %10983 = vmatpush1.bf16.msra.mxu1 %v10982_v33  ;;  %v10986_v21 = vpack.c.bf16 %v8209_v13, %v8161_v50  ;;  %v19144_v8 = vpop.permute.xlu0 %12983  ;;  %v10984_v11 = vpack.c.bf16 %v8220_v37, %v8172_v26  ;;  %v8166_v63 = vsel %vm1363_vm13, %v8148_v60, %v20519_v12  ;;  %v7950_v24 = vpop.permute.xlu1 %7949  ;;  %v8167_v40 = vsel %vm1363_vm13, %v20520_v2, %v8148_v60 }
 0xdf3   :  { %v12986_v43 = vunpack.i.h.bf16 %v19144_v8  ;;  %v12985_v47 = vunpack.i.l.bf16 %v19144_v8  ;;  %v8262_v33 = vsel %vm287_vm3, %v8244_v15, %v20521_v41  ;;  %v20524_v60 = vunpack.i.h.bf16 %v18881_v35 }
 0xdf4   :  { %10923 = vmatpush1.bf16.msra.mxu0 %v10922_v39  ;;  %10985 = vmatprep.subr.bf16.mxu1 %v10984_v11  ;;  %v20523_v39 = vunpack.i.h.bf16 %v18817_v58  ;;  %v10928_v62 = vpack.c.bf16 %v20228_v1, %v8262_v33  ;;  %v7959_v35 = vsel %vm1156_vm10, %v7950_v24, %v12961_v46  ;;  %v20528_v46 = vunpack.i.l.bf16 %v18861_v4 }
 0xdf5   :  { %v8257_v51 = vsel %vm287_vm3, %v12986_v43, %v12985_v47  ;;  %v8268_v54 = vsel %vm287_vm3, %v12985_v47, %v20518_v22  ;;  %v8263_v26 = vsel %vm287_vm3, %v20524_v60, %v8244_v15  ;;  %v20526_v15 = vunpack.i.l.bf16 %v18900_v7 }
 0xdf6   :  { %10987 = vmatpush1.bf16.msra.mxu1 %v10986_v21  ;;  %v10990_v16 = vpack.c.bf16 %v20228_v1, %v8257_v51  ;;  %v8196_v32 = vpop.permute.xlu0 %8195  ;;  %v10988_v59 = vpack.c.bf16 %v20228_v1, %v8268_v54  ;;  %v20525_v21 = vunpack.i.h.bf16 %v18975_v9  ;;  %v8046_v11 = vpop.permute.xlu1 %8045  ;;  %v10930_v47 = vpack.c.bf16 %v20228_v1, %v8263_v26 }
 0xdf7   :  { %v8214_v50 = vsel %vm238_vm2, %v8196_v32, %v20522_v0  ;;  %v8215_v13 = vsel %vm238_vm2, %v20523_v39, %v8196_v32  ;;  %v20527_v54 = vunpack.i.h.bf16 %v18991_v27  ;;  %v7960_v12 = vsel %vm1156_vm10, %v20528_v46, %v7950_v24 }
 0xdf8   :  { %v10924_v56 = vpack.c.bf16 %v8214_v50, %v8166_v63  ;;  %v10926_v10 = vpack.c.bf16 %v8215_v13, %v8167_v40  ;;  %10989 = vmatprep.subr.bf16.mxu1 %v10988_v59  ;;  %v8055_v7 = vsel %vm1254_vm12, %v8046_v11, %v12971_v38  ;;  %v20529_v32 = vunpack.i.l.bf16 %v18930_v53 }
 0xdf9   :  { %v20530_v4 = vunpack.i.h.bf16 %v18993_v34  ;;  %v20531_v38 = vunpack.i.l.bf16 %v18879_v3  ;;  %v20532_v40 = vunpack.i.l.bf16 %v18977_v57  ;;  %v20533_v39 = vunpack.i.l.bf16 %v18998_v44 }
 0xdfa   :  { %10991 = vmatpush1.bf16.msra.mxu1 %v10990_v16  ;;  %v7902_v37 = vpop.permute.xlu0 %7901  ;;  %10925 = vmatprep.subr.bf16.mxu0 %v10924_v56  ;;  %v8156_v16 = vpop.permute.xlu1 %8155 }
 0xdfb   :  { %v7911_v58 = vsel %vm1107_vm9, %v7902_v37, %v20525_v21  ;;  %10927 = vmatpush1.bf16.msra.mxu0 %v10926_v10  ;;  %v7912_v9 = vsel %vm1107_vm9, %v20526_v15, %v7902_v37  ;;  %v8056_v53 = vsel %vm1254_vm12, %v20531_v38, %v8046_v11  ;;  %v8162_v50 = vsel %vm1363_vm13, %v8156_v16, %v12976_v29 }
 0xdfc   :  { %10929 = vmatprep.subr.bf16.mxu0 %v10928_v62  ;;  %v10952_v51 = vpack.c.bf16 %v7959_v35, %v7911_v58  ;;  %v10954_v63 = vpack.c.bf16 %v7960_v12, %v7912_v9 }
 0xdfd   :  { %9904 = vmatmul.mubr.msk.f32.vlgmr.msra.gmra.mrb[52].mxu1 %vm629_vm8, %v18936_v31 }
 0xdfe   :  { %v7998_v22 = vpop.permute.xlu0 %7997  ;;  %9512 = vmatprep.mubr.f32.mxu1 %v20235_v28  ;;  %v8252_v3 = vpop.permute.xlu1 %8251 }
 0xdff   :  { %v8007_v20 = vsel %vm1205_vm11, %v7998_v22, %v20527_v54  ;;  %10931 = vmatpush1.bf16.msra.mxu0 %v10930_v47  ;;  %v8008_v27 = vsel %vm1205_vm11, %v20529_v32, %v7998_v22  ;;  %v8258_v52 = vsel %vm287_vm3, %v8252_v3, %v12986_v43 }
 0xe00   :  { %10953 = vmatprep.subr.bf16.mxu0 %v10952_v51  ;;  %v10956_v59 = vpack.c.bf16 %v8055_v7, %v8007_v20  ;;  %v10958_v24 = vpack.c.bf16 %v8056_v53, %v8008_v27  ;;  %v10968_v56 = vpack.c.bf16 %v20228_v1, %v8258_v52  ;;  %v20538_v52 = vld [vmem:[#allocation9_spill] sm:$0xff] }
 0xe02   :  { %v8108_v2 = vpop.permute.xlu0 %8107  ;;  %9901 = vmatmul.mubr.msk.f32.vlgmr.msra.gmra.mrb[50].mxu0 %vm629_vm8, %v18936_v31 }
 0xe03   :  { %v8114_v30 = vsel %vm140_vm0, %v8108_v2, %v20530_v4  ;;  %10955 = vmatpush1.bf16.msra.mxu0 %v10954_v63  ;;  %8754 = vmatprep.mubr.f32.mxu0 %v20235_v28  ;;  %v8115_v41 = vsel %vm140_vm0, %v20532_v40, %v8108_v2 }
 0xe04   :  { %10957 = vmatprep.subr.bf16.mxu0 %v10956_v59  ;;  %v10960_v34 = vpack.c.bf16 %v8114_v30, %v18658_v49  ;;  %v10962_v57 = vpack.c.bf16 %v8115_v41, %v18649_v48  ;;  %v20535_v48 = vunpack.i.l.bf16 %v19022_v17  ;;  %v20536_v41 = vld [vmem:[#allocation7_spill] sm:$0xff] }
 0xe06   :  { %v8204_v33 = vpop.permute.xlu0 %8203  ;;  %v8259_v44 = vsel %vm287_vm3, %v20535_v48, %v8252_v3 }
 0xe07   :  { %v8210_v0 = vsel %vm238_vm2, %v8204_v33, %v12981_v45  ;;  %10959 = vmatpush1.bf16.msra.mxu0 %v10958_v24  ;;  %v8211_v49 = vsel %vm238_vm2, %v20533_v39, %v8204_v33  ;;  %v20534_v45 = vunpack.i.l.bf16 %v18928_v18  ;;  %v10970_v8 = vpack.c.bf16 %v20228_v1, %v8259_v44  ;;  %v20537_v33 = vld [vmem:[#allocation8_spill] sm:$0xff] }
 0xe08   :  { %10961 = vmatprep.subr.bf16.mxu0 %v10960_v34  ;;  %v10964_v13 = vpack.c.bf16 %v8210_v0, %v8162_v50 }
 0xe09   :  { %v8163_v61 = vsel %vm1363_vm13, %v20534_v45, %v8156_v16 }
 0xe0a   :  { %v10966_v29 = vpack.c.bf16 %v8211_v49, %v8163_v61  ;;  %v20539_v61 = vld [vmem:[#allocation10_spill] sm:$0xff] }
 0xe0b   :  { %10963 = vmatpush1.bf16.msra.mxu0 %v10962_v57 }
 0xe0c   :  { %10965 = vmatprep.subr.bf16.mxu0 %v10964_v13 }
 0xe0f   :  { %10967 = vmatpush1.bf16.msra.mxu0 %v10966_v29 }
 0xe10   :  { %10969 = vmatprep.subr.bf16.mxu0 %v10968_v56 }
 0xe13   :  { %10971 = vmatpush1.bf16.msra.mxu0 %v10970_v8 }
 0xe16   :  { %9903 = vmatmul.mubr.msk.f32.vlgmr.msra.gmra.mrb[52].mxu0 %vm629_vm8, %v18936_v31 }
 0xe17   :  { %9441 = vmatprep.mubr.f32.mxu0 %v20235_v28 }
 0xea0   :  { %v8543_v18 = vpop.f32.mrb[48].mxu1 }
 0xea1   :  { %v8834_v43 = vmax.f32 %v8543_v18, 0.0  ;;  %v8545_v10 = vpop.f32.mrb[49].mxu1 }
 0xea2   :  { %v8835_v60 = vmax.f32 %v8545_v10, 0.0 }
 0xea3   :  { %v8472_v17 = vpop.f32.mrb[48].mxu0  ;;  %v19262_v26 = vmul.f32 %v8834_v43, %v13996_v6 }
 0xea4   :  { %v8832_v62 = vmax.f32 %v8472_v17, 0.0  ;;  %v8474_v37 = vpop.f32.mrb[49].mxu0  ;;  %v19265_v21 = vmul.f32 %v8835_v60, %v14001_v42 }
 0xea5   :  { %v8833_v58 = vmax.f32 %v8474_v37, 0.0 }
 0xea6   :  { %v19268_v11 = vmul.f32 %v8832_v62, %v20491_v23  ;;  %v12992_v31 = vpack.i.bf16 %v19265_v21, %v19262_v26 }
 0xea7   :  { %v19273_v47 = vmul.f32 %v8833_v58, %v14023_v5 }
 0xea8   :  { %12993 = vrot.lane.b32.xlu1 %v12992_v31, %s13212_s20 }
 0xea9   :  { %v12987_v35 = vpack.i.bf16 %v19273_v47, %v19268_v11  ;;  %v13032_v15 = vpack.i.bf16 %v19262_v26, %v19273_v47 }
 0xeab   :  { %12988 = vrot.lane.b32.xlu0 %v12987_v35, %s13212_s20 }
 0xeac   :  { %13003 = vrot.lane.b32.xlu1 %v12992_v31, %s13213_s23 }
 0xeaf   :  { %12998 = vrot.lane.b32.xlu0 %v12987_v35, %s13213_s23 }
 0xeb0   :  { %13013 = vrot.lane.b32.xlu1 %v12992_v31, %s13214_s25 }
 0xeb3   :  { %13008 = vrot.lane.b32.xlu0 %v12987_v35, %s13214_s25 }
 0xeb4   :  { %13023 = vrot.lane.b32.xlu1 %v12992_v31, %s13215_s26 }
 0xeb7   :  { %13018 = vrot.lane.b32.xlu0 %v12987_v35, %s13215_s26 }
 0xeb8   :  { %13033 = vrot.lane.b32.xlu1 %v13032_v15, %s13216_s27 }
 0xebb   :  { %13028 = vrot.lane.b32.xlu0 %v13032_v15, %s13203_s21  ;;  %v8685_v9 = vpop.f32.mrb[50].mxu1 }
 0xebc   :  { %13038 = vrot.lane.b32.xlu1 %v13032_v15, %s13204_s22  ;;  %v8687_v51 = vpop.f32.mrb[51].mxu1  ;;  %v8838_v59 = vmax.f32 %v8685_v9, 0.0 }
 0xebd   :  { %v8839_v2 = vmax.f32 %v8687_v51, 0.0 }
 0xebe   :  { %v19309_v30 = vmul.f32 %v8838_v59, %v14072_v55 }
 0xebf   :  { %v19312_v40 = vmul.f32 %v8839_v2, %v14078_v25 }
 0xec0   :  { %13043 = vrot.lane.b32.xlu1 %v13032_v15, %s13206_s24 }
 0xec1   :  { %v13142_v39 = vpack.i.bf16 %v19312_v40, %v19309_v30 }
 0xed0   :  { %v8827_v22 = vpop.f32.mrb[52].mxu1 }
 0xed1   :  { %v8829_v54 = vpop.f32.mrb[53].mxu1  ;;  %v8842_v49 = vmax.f32 %v8827_v22, 0.0 }
 0xed2   :  { %v8843_v38 = vmax.f32 %v8829_v54, 0.0 }
 0xed3   :  { %v19352_v45 = vmul.f32 %v8842_v49, %v20538_v52 }
 0xed4   :  { %v19319_v0 = vmul.f32 %v8843_v38, %v20537_v33 }
 0xed5   :  { %v8614_v20 = vpop.f32.mrb[50].mxu0 }
 0xed6   :  { %v8836_v46 = vmax.f32 %v8614_v20, 0.0  ;;  %v8616_v12 = vpop.f32.mrb[51].mxu0 }
 0xed7   :  { %v8837_v7 = vmax.f32 %v8616_v12, 0.0 }
 0xed8   :  { %v19292_v63 = vmul.f32 %v8836_v46, %v20493_v36 }
 0xed9   :  { %v19295_v16 = vmul.f32 %v8837_v7, %v20494_v14 }
 0xeda   :  { %v13052_v32 = vpack.i.bf16 %v19292_v63, %v19265_v21  ;;  %v13107_v57 = vpack.i.bf16 %v19292_v63, %v19319_v0 }
 0xedb   :  { %v13072_v27 = vpack.i.bf16 %v19295_v16, %v19268_v11  ;;  %v13087_v3 = vpack.i.bf16 %v19309_v30, %v19295_v16 }
 0xedc   :  { %13053 = vrot.lane.b32.xlu0 %v13052_v32, %s13216_s27  ;;  %13048 = vrot.lane.b32.xlu1 %v13052_v32, %s13203_s21 }
 0xee0   :  { %13058 = vrot.lane.b32.xlu0 %v13052_v32, %s13204_s22  ;;  %13073 = vrot.lane.b32.xlu1 %v13072_v27, %s13216_s27 }
 0xee4   :  { %13063 = vrot.lane.b32.xlu0 %v13052_v32, %s13206_s24  ;;  %13083 = vrot.lane.b32.xlu1 %v13072_v27, %s13206_s24 }
 0xee8   :  { %13068 = vrot.lane.b32.xlu0 %v13072_v27, %s13203_s21 }
 0xee9   :  { %v8756_v4 = vpop.f32.mrb[52].mxu0 }
 0xeea   :  { %v8840_v53 = vmax.f32 %v8756_v4, 0.0  ;;  %v8758_v24 = vpop.f32.mrb[53].mxu0 }
 0xeeb   :  { %v8841_v13 = vmax.f32 %v8758_v24, 0.0 }
 0xeec   :  { %v19315_v34 = vmul.f32 %v8840_v53, %v20536_v41  ;;  %13078 = vrot.lane.b32.xlu0 %v13072_v27, %s13204_s22 }
 0xeed   :  { %v19355_v29 = vmul.f32 %v8841_v13, %v20539_v61 }
 0xeee   :  { %v13097_v50 = vpack.i.bf16 %v19315_v34, %v19312_v40 }
 0xeef   :  { %v13167_v48 = vpack.i.bf16 %v19352_v45, %v19355_v29  ;;  %v13177_v44 = vpack.i.bf16 %v19355_v29, %v19315_v34 }
 0xef0   :  { %13088 = vrot.lane.b32.xlu0 %v13087_v3, %s13212_s20  ;;  %13098 = vrot.lane.b32.xlu1 %v13097_v50, %s13212_s20 }
 0xef4   :  { %13093 = vrot.lane.b32.xlu0 %v13087_v3, %s13213_s23  ;;  %13108 = vrot.lane.b32.xlu1 %v13107_v57, %s13213_s23 }
 0xef8   :  { %13103 = vrot.lane.b32.xlu0 %v13107_v57, %s13212_s20  ;;  %13118 = vrot.lane.b32.xlu1 %v13107_v57, %s13215_s26 }
 0xefc   :  { %13113 = vrot.lane.b32.xlu0 %v13107_v57, %s13214_s25  ;;  %13123 = vrot.lane.b32.xlu1 %v13097_v50, %s13213_s23 }
 0xf00   :  { %13128 = vrot.lane.b32.xlu0 %v13087_v3, %s13214_s25  ;;  %13133 = vrot.lane.b32.xlu1 %v13097_v50, %s13214_s25 }
 0xf04   :  { %13138 = vrot.lane.b32.xlu0 %v13087_v3, %s13215_s26  ;;  %9014 = vrot.lane.b32.xlu1 %v19312_v40, %s13215_s26 }
 0xf08   :  { %13143 = vrot.lane.b32.xlu0 %v13142_v39, %s13203_s21  ;;  %9076 = vrot.lane.b32.xlu1 %v19315_v34, %s13203_s21 }
 0xf0c   :  { %13148 = vrot.lane.b32.xlu0 %v13142_v39, %s13216_s27  ;;  %9124 = vrot.lane.b32.xlu1 %v19315_v34, %s13216_s27 }
 0xf10   :  { %13153 = vrot.lane.b32.xlu0 %v13142_v39, %s13204_s22  ;;  %9172 = vrot.lane.b32.xlu1 %v19315_v34, %s13204_s22 }
 0xf14   :  { %13158 = vrot.lane.b32.xlu0 %v13142_v39, %s13206_s24  ;;  %9220 = vrot.lane.b32.xlu1 %v19315_v34, %s13206_s24 }
 0xf18   :  { %9020 = vrot.lane.b32.xlu0 %v19352_v45, %s13215_s26  ;;  %13168 = vrot.lane.b32.xlu1 %v13167_v48, %s13213_s23 }
 0xf1a   :  { %v19367_v56 = vpop.permute.xlu1 %12993 }
 0xf1b   :  { %v20174_v8 = vunpack.i.h.bf16 %v19367_v56  ;;  %v12995_v18 = vunpack.i.l.bf16 %v19367_v56 }
 0xf1c   :  { %13178 = vrot.lane.b32.xlu1 %v13177_v44, %s13215_s26  ;;  %13163 = vrot.lane.b32.xlu0 %v13167_v48, %s13212_s20 }
 0xf1d   :  { %v19373_v43 = vpop.permute.xlu0 %12988  ;;  %v8888_v58 = vsel %vm1107_vm9, %v12995_v18, %v20174_v8 }
 0xf1e   :  { %v12991_v10 = vunpack.i.h.bf16 %v19373_v43  ;;  %v12990_v60 = vunpack.i.l.bf16 %v19373_v43  ;;  %v19377_v17 = vpop.permute.xlu1 %13003 }
 0xf1f   :  { %v20173_v62 = vunpack.i.h.bf16 %v19377_v17  ;;  %v13005_v37 = vunpack.i.l.bf16 %v19377_v17 }
 0xf20   :  { %13183 = vrot.lane.b32.xlu1 %v13167_v48, %s13203_s21  ;;  %13173 = vrot.lane.b32.xlu0 %v13167_v48, %s13214_s25  ;;  %v8889_v31 = vsel %vm1107_vm9, %v12991_v10, %v12995_v18  ;;  %v8890_v20 = vsel %vm1107_vm9, %v12990_v60, %v12991_v10 }
 0xf21   :  { %v19389_v35 = vpop.permute.xlu0 %12998  ;;  %v8936_v15 = vsel %vm1156_vm10, %v13005_v37, %v20173_v62 }
 0xf22   :  { %v13001_v9 = vunpack.i.h.bf16 %v19389_v35  ;;  %v13000_v51 = vunpack.i.l.bf16 %v19389_v35  ;;  %v19397_v22 = vpop.permute.xlu1 %13013  ;;  %v11012_v54 = vpack.c.bf16 %v8936_v15, %v8888_v58 }
 0xf23   :  { %v20171_v46 = vunpack.i.h.bf16 %v19397_v22  ;;  %v13015_v12 = vunpack.i.l.bf16 %v19397_v22 }
 0xf24   :  { %13188 = vrot.lane.b32.xlu1 %v13167_v48, %s13216_s27  ;;  %9082 = vrot.lane.b32.xlu0 %v19319_v0, %s13203_s21  ;;  %v8937_v7 = vsel %vm1156_vm10, %v13001_v9, %v13005_v37  ;;  %v8938_v32 = vsel %vm1156_vm10, %v13000_v51, %v13001_v9 }
 0xf25   :  { %v11014_v27 = vpack.c.bf16 %v8937_v7, %v8889_v31  ;;  %v19414_v59 = vpop.permute.xlu0 %13008  ;;  %11013 = vmatprep.subr.bf16.mxu1 %v11012_v54  ;;  %v10992_v2 = vpack.c.bf16 %v8938_v32, %v8890_v20  ;;  %v8984_v50 = vsel %vm1205_vm11, %v13015_v12, %v20171_v46 }
 0xf26   :  { %v13011_v4 = vunpack.i.h.bf16 %v19414_v59  ;;  %v20181_v38 = vunpack.i.l.bf16 %v19414_v59  ;;  %v19418_v53 = vpop.permute.xlu1 %13023 }
 0xf27   :  { %v20170_v24 = vunpack.i.h.bf16 %v19418_v53  ;;  %v13025_v3 = vunpack.i.l.bf16 %v19418_v53  ;;  %11015 = vmatpush1.bf16.msra.mxu1 %v11014_v27  ;;  %10993 = vmatprep.subr.bf16.mxu0 %v10992_v2 }
 0xf28   :  { %13193 = vrot.lane.b32.xlu1 %v13167_v48, %s13204_s22  ;;  %9130 = vrot.lane.b32.xlu0 %v19319_v0, %s13216_s27  ;;  %v19433_v57 = vsel %vm1205_vm11, %v20181_v38, %v13011_v4  ;;  %v8985_v13 = vsel %vm1205_vm11, %v13011_v4, %v13015_v12 }
 0xf29   :  { %v19435_v39 = vpop.permute.xlu0 %13018  ;;  %v9032_v49 = vsel %vm1254_vm12, %v13025_v3, %v20170_v24 }
 0xf2a   :  { %v13021_v44 = vunpack.i.h.bf16 %v19435_v39  ;;  %v20182_v18 = vunpack.i.l.bf16 %v19435_v39  ;;  %v11016_v10 = vpack.c.bf16 %v9032_v49, %v8984_v50 }
 0xf2c   :  { %13198 = vrot.lane.b32.xlu1 %v13167_v48, %s13206_s24  ;;  %9178 = vrot.lane.b32.xlu0 %v19319_v0, %s13204_s22  ;;  %v9033_v37 = vsel %vm1254_vm12, %v13021_v44, %v13025_v3  ;;  %v19454_v58 = vsel %vm1254_vm12, %v20182_v18, %v13021_v44  ;;  %v19460_v48 = vpop.permute.xlu1 %13033  ;;  %v20542_v18 = vunpack.i.l.bf16 %v19435_v39 }
 0xf2d   :  { %v11018_v31 = vpack.c.bf16 %v9033_v37, %v8985_v13  ;;  %11017 = vmatprep.subr.bf16.mxu1 %v11016_v10  ;;  %v19464_v54 = vpop.permute.xlu0 %13028  ;;  %v20180_v37 = vunpack.i.h.bf16 %v19460_v48  ;;  %v13035_v38 = vunpack.i.l.bf16 %v19460_v48 }
 0xf2e   :  { %v20183_v32 = vunpack.i.h.bf16 %v19464_v54 }
 0xf2f   :  { %11019 = vmatpush1.bf16.msra.mxu1 %v11018_v31 }
 0xf30   :  { %9226 = vrot.lane.b32.xlu0 %v19319_v0, %s13206_s24  ;;  %v19462_v9 = vpop.permute.xlu1 %13038 }
 0xf31   :  { %v20175_v31 = vunpack.i.h.bf16 %v19462_v9  ;;  %v13040_v14 = vunpack.i.l.bf16 %v19462_v9 }
 0xf34   :  { %v19466_v20 = vpop.permute.xlu1 %13043 }
 0xf35   :  { %v20179_v62 = vunpack.i.h.bf16 %v19466_v20 }
 0xf4e   :  { %v19468_v12 = vpop.permute.xlu0 %13053  ;;  %v19470_v7 = vpop.permute.xlu1 %13048 }
 0xf4f   :  { %v20172_v27 = vunpack.i.h.bf16 %v19470_v7  ;;  %v13050_v2 = vunpack.i.l.bf16 %v19470_v7  ;;  %v20176_v4 = vunpack.i.h.bf16 %v19468_v12  ;;  %v13055_v3 = vunpack.i.l.bf16 %v19468_v12 }
 0xf51   :  { %v9092_v50 = vsel %vm140_vm0, %v20183_v32, %v13050_v2  ;;  %v9091_v49 = vsel %vm140_vm0, %v13050_v2, %v20172_v27  ;;  %v9140_v2 = vsel %vm1363_vm13, %v20180_v37, %v13055_v3 }
 0xf52   :  { %v11022_v13 = vpack.c.bf16 %v9092_v50, %v19262_v26  ;;  %v19486_v44 = vpop.permute.xlu0 %13058  ;;  %v11020_v10 = vpack.c.bf16 %v9091_v49, %v19265_v21  ;;  %v9139_v21 = vsel %vm1363_vm13, %v13055_v3, %v20176_v4 }
 0xf53   :  { %v20177_v24 = vunpack.i.h.bf16 %v19486_v44  ;;  %v13060_v46 = vunpack.i.l.bf16 %v19486_v44 }
 0xf54   :  { %11021 = vmatprep.subr.bf16.mxu1 %v11020_v10 }
 0xf55   :  { %v9188_v26 = vsel %vm238_vm2, %v20175_v31, %v13060_v46  ;;  %11023 = vmatpush1.bf16.msra.mxu1 %v11022_v13  ;;  %v9187_v50 = vsel %vm238_vm2, %v13060_v46, %v20177_v24  ;;  %v19514_v31 = vpop.permute.xlu1 %13073 }
 0xf56   :  { %v11026_v49 = vpack.c.bf16 %v9188_v26, %v9140_v2  ;;  %v19509_v10 = vpop.permute.xlu0 %13063  ;;  %v11024_v27 = vpack.c.bf16 %v9187_v50, %v9139_v21 }
 0xf57   :  { %v20178_v8 = vunpack.i.h.bf16 %v19509_v10  ;;  %v13065_v13 = vunpack.i.l.bf16 %v19509_v10 }
 0xf58   :  { %11025 = vmatprep.subr.bf16.mxu1 %v11024_v27  ;;  %v19531_v27 = vld [vmem:[%s19933_s1 + $0x48] sm:$0xff] }
 0xf59   :  { %v9236_v3 = vsel %vm287_vm3, %v20179_v62, %v13065_v13  ;;  %11027 = vmatpush1.bf16.msra.mxu1 %v11026_v49  ;;  %v9235_v46 = vsel %vm287_vm3, %v13065_v13, %v20178_v8  ;;  %v19533_v50 = vpop.permute.xlu1 %13083  ;;  %v13030_v62 = vunpack.i.l.bf16 %v19464_v54 }
 0xf5a   :  { %v11030_v2 = vpack.c.bf16 %v20228_v1, %v9236_v3  ;;  %v19525_v26 = vpop.permute.xlu0 %13068  ;;  %v11028_v21 = vpack.c.bf16 %v20228_v1, %v9235_v46 }
 0xf5b   :  { %v20549_v36 = vunpack.i.l.bf16 %v19525_v26 }
 0xf5c   :  { %11029 = vmatprep.subr.bf16.mxu1 %v11028_v21 }
 0xf5d   :  { %11031 = vmatpush1.bf16.msra.mxu1 %v11030_v2 }
 0xf5e   :  { %v19535_v49 = vpop.permute.xlu0 %13078 }
 0xf60   :  { %9907 = vmatmul.mubr.msk.f32.vlgmr.msra.gmra.mrb[54].mxu1 %vm629_vm8, %v19531_v27 }
 0xf61   :  { %9654 = vmatprep.mubr.f32.mxu1 %v20235_v28 }
 0xf62   :  { %v19540_v13 = vpop.permute.xlu0 %13088  ;;  %v19542_v3 = vpop.permute.xlu1 %13098 }
 0xf63   :  { %v13091_v37 = vunpack.i.h.bf16 %v19540_v13 }
 0xf66   :  { %v19544_v46 = vpop.permute.xlu0 %13093  ;;  %v19546_v2 = vpop.permute.xlu1 %13108 }
 0xf67   :  { %v20184_v21 = vunpack.i.l.bf16 %v19546_v2  ;;  %v13096_v15 = vunpack.i.h.bf16 %v19544_v46 }
 0xf69   :  { %v8939_v32 = vsel %vm1156_vm10, %v20184_v21, %v13000_v51  ;;  %v20543_v21 = vunpack.i.l.bf16 %v19414_v59  ;;  %v20547_v59 = vunpack.i.l.bf16 %v19540_v13 }
 0xf6a   :  { %v19549_v4 = vpop.permute.xlu0 %13103  ;;  %v19551_v24 = vpop.permute.xlu1 %13118 }
 0xf6b   :  { %v20186_v8 = vunpack.i.l.bf16 %v19549_v4  ;;  %v20187_v33 = vunpack.i.l.bf16 %v19551_v24 }
 0xf6d   :  { %v8891_v61 = vsel %vm1107_vm9, %v20186_v8, %v12990_v60  ;;  %v20540_v60 = vunpack.i.l.bf16 %v19544_v46  ;;  %v9035_v51 = vsel %vm1254_vm12, %v20187_v33, %v20542_v18  ;;  %v8885_v33 = vsel %vm1107_vm9, %v20547_v59, %v13091_v37 }
 0xf6e   :  { %v10994_v41 = vpack.c.bf16 %v8939_v32, %v8891_v61  ;;  %v19574_v35 = vpop.permute.xlu0 %13113  ;;  %v19576_v52 = vpop.permute.xlu1 %13123  ;;  %v20541_v61 = vunpack.i.h.bf16 %v19464_v54  ;;  %v20545_v54 = vunpack.i.l.bf16 %v19542_v3 }
 0xf6f   :  { %v20188_v43 = vunpack.i.l.bf16 %v19574_v35  ;;  %v8933_v8 = vsel %vm1156_vm10, %v20540_v60, %v13096_v15 }
 0xf70   :  { %10995 = vmatpush1.bf16.msra.mxu0 %v10994_v41  ;;  %v9093_v32 = vsel %vm140_vm0, %v13030_v62, %v20541_v61  ;;  %v20544_v41 = vpack.c.bf16 %v19454_v58, %v19433_v57  ;;  %v8884_v39 = vsel %vm1107_vm9, %v13091_v37, %v20545_v54  ;;  %v20546_v61 = vunpack.i.l.bf16 %v19576_v52 }
 0xf71   :  { %v8987_v60 = vsel %vm1205_vm11, %v20188_v43, %v20543_v21  ;;  %v11054_v25 = vpack.c.bf16 %v8933_v8, %v8885_v33  ;;  %v11000_v37 = vpack.c.bf16 %v9093_v32, %v19273_v47 }
 0xf72   :  { %10997 = vmatprep.subr.bf16.mxu0 %v20544_v41  ;;  %v8932_v18 = vsel %vm1156_vm10, %v13096_v15, %v20546_v61  ;;  %v10998_v21 = vpack.c.bf16 %v9035_v51, %v8987_v60  ;;  %v19617_v43 = vpop.permute.xlu0 %13128  ;;  %v19619_v57 = vpop.permute.xlu1 %13133  ;;  %v20548_v41 = vunpack.i.h.bf16 %v19460_v48  ;;  %v9094_v15 = vsel %vm140_vm0, %v20549_v36, %v13030_v62 }
 0xf73   :  { %v11052_v58 = vpack.c.bf16 %v8932_v18, %v8884_v39  ;;  %v20192_v61 = vunpack.i.l.bf16 %v19535_v49  ;;  %v13045_v51 = vunpack.i.l.bf16 %v19466_v20  ;;  %v13075_v60 = vunpack.i.l.bf16 %v19514_v31 }
 0xf74   :  { %v9141_v54 = vsel %vm1363_vm13, %v13035_v38, %v20548_v41  ;;  %v20191_v39 = vunpack.i.l.bf16 %v19533_v50  ;;  %10999 = vmatpush1.bf16.msra.mxu0 %v10998_v21  ;;  %v20550_v48 = vunpack.i.h.bf16 %v19462_v9  ;;  %v13131_v36 = vunpack.i.h.bf16 %v19617_v43 }
 0xf75   :  { %11053 = vmatprep.subr.bf16.mxu1 %v11052_v58  ;;  %v13130_v62 = vunpack.i.l.bf16 %v19617_v43  ;;  %v13135_v33 = vunpack.i.l.bf16 %v19619_v57  ;;  %11001 = vmatprep.subr.bf16.mxu0 %v11000_v37  ;;  %v11002_v47 = vpack.c.bf16 %v9094_v15, %v19268_v11  ;;  %v9190_v9 = vsel %vm238_vm2, %v20192_v61, %v13040_v14 }
 0xf76   :  { %v9189_v18 = vsel %vm238_vm2, %v13040_v14, %v20550_v48  ;;  %11055 = vmatpush1.bf16.msra.mxu1 %v11054_v25  ;;  %v13139_v8 = vpop.permute.xlu0 %13138  ;;  %v19642_v32 = vpop.permute.xlu1 %9014  ;;  %v9142_v43 = vsel %vm1363_vm13, %v13075_v60, %v13035_v38  ;;  %v9238_v25 = vsel %vm287_vm3, %v20191_v39, %v13045_v51  ;;  %v13106_v11 = vunpack.i.h.bf16 %v19549_v4 }
 0xf77   :  { %v13141_v59 = vunpack.i.h.bf16 %v13139_v8  ;;  %v13140_v21 = vunpack.i.l.bf16 %v13139_v8  ;;  %v11004_v58 = vpack.c.bf16 %v9189_v18, %v9141_v54  ;;  %v20551_v41 = vunpack.i.h.bf16 %v19466_v20 }
 0xf78   :  { %11003 = vmatpush1.bf16.msra.mxu0 %v11002_v47  ;;  %v8981_v54 = vsel %vm1205_vm11, %v13130_v62, %v13131_v36  ;;  %v8980_v38 = vsel %vm1205_vm11, %v13131_v36, %v13135_v33  ;;  %v11006_v20 = vpack.c.bf16 %v9190_v9, %v9142_v43  ;;  %v13111_v48 = vunpack.i.h.bf16 %v19546_v2 }
 0xf79   :  { %v9237_v14 = vsel %vm287_vm3, %v13045_v51, %v20551_v41  ;;  %v9029_v15 = vsel %vm1254_vm12, %v13140_v21, %v13141_v59  ;;  %v9028_v37 = vsel %vm1254_vm12, %v13141_v59, %v19642_v32  ;;  %11005 = vmatprep.subr.bf16.mxu0 %v11004_v58  ;;  %v20552_v36 = vunpack.i.l.bf16 %v19540_v13 }
 0xf7a   :  { %v11058_v51 = vpack.c.bf16 %v9029_v15, %v8981_v54  ;;  %v11056_v18 = vpack.c.bf16 %v9028_v37, %v8980_v38  ;;  %v13144_v47 = vpop.permute.xlu0 %13143  ;;  %v19673_v8 = vpop.permute.xlu1 %9076  ;;  %v11008_v61 = vpack.c.bf16 %v20228_v1, %v9237_v14  ;;  %v11010_v9 = vpack.c.bf16 %v20228_v1, %v9238_v25 }
 0xf7b   :  { %v13146_v41 = vunpack.i.h.bf16 %v13144_v47  ;;  %v13145_v39 = vunpack.i.l.bf16 %v13144_v47  ;;  %v8886_v59 = vsel %vm1107_vm9, %v13106_v11, %v20552_v36  ;;  %v13121_v14 = vunpack.i.h.bf16 %v19551_v24 }
 0xf7c   :  { %11007 = vmatpush1.bf16.msra.mxu0 %v11006_v20  ;;  %11057 = vmatprep.subr.bf16.mxu1 %v11056_v18  ;;  %v20553_v25 = vunpack.i.l.bf16 %v19544_v46  ;;  %v20554_v20 = vunpack.i.h.bf16 %v19367_v56  ;;  %v13071_v56 = vunpack.i.h.bf16 %v19525_v26 }
 0xf7d   :  { %v9088_v58 = vsel %vm140_vm0, %v13145_v39, %v13146_v41  ;;  %v9087_v43 = vsel %vm140_vm0, %v13146_v41, %v19673_v8  ;;  %11009 = vmatprep.subr.bf16.mxu0 %v11008_v61  ;;  %11059 = vmatpush1.bf16.msra.mxu1 %v11058_v51  ;;  %v13116_v51 = vunpack.i.h.bf16 %v19574_v35 }
 0xf7e   :  { %v11062_v54 = vpack.c.bf16 %v9088_v58, %v19309_v30  ;;  %v11060_v13 = vpack.c.bf16 %v9087_v43, %v19312_v40  ;;  %v13149_v15 = vpop.permute.xlu0 %13148  ;;  %v19689_v38 = vpop.permute.xlu1 %9124  ;;  %v8934_v37 = vsel %vm1156_vm10, %v13111_v48, %v20553_v25  ;;  %v8887_v61 = vsel %vm1107_vm9, %v20554_v20, %v13106_v11 }
 0xf7f   :  { %v11032_v18 = vpack.c.bf16 %v8934_v37, %v8886_v59  ;;  %v9030_v30 = vsel %vm1254_vm12, %v13121_v14, %v13140_v21  ;;  %v20555_v40 = vunpack.i.h.bf16 %v19377_v17  ;;  %v13151_v47 = vunpack.i.h.bf16 %v13149_v15 }
 0xf80   :  { %11011 = vmatpush1.bf16.msra.mxu0 %v11010_v9  ;;  %11061 = vmatprep.subr.bf16.mxu1 %v11060_v13  ;;  %v13150_v41 = vunpack.i.l.bf16 %v13149_v15  ;;  %v8982_v59 = vsel %vm1205_vm11, %v13116_v51, %v13130_v62  ;;  %v20556_v21 = vunpack.i.h.bf16 %v19397_v22  ;;  %v20557_v13 = vunpack.i.h.bf16 %v19418_v53 }
 0xf81   :  { %v8935_v46 = vsel %vm1156_vm10, %v20555_v40, %v13111_v48  ;;  %11033 = vmatprep.subr.bf16.mxu0 %v11032_v18  ;;  %11063 = vmatpush1.bf16.msra.mxu1 %v11062_v54  ;;  %v11036_v43 = vpack.c.bf16 %v9030_v30, %v8982_v59  ;;  %v13086_v54 = vunpack.i.h.bf16 %v19533_v50  ;;  %v9089_v22 = vsel %vm140_vm0, %v13071_v56, %v13145_v39 }
 0xf82   :  { %v11034_v11 = vpack.c.bf16 %v8935_v46, %v8887_v61  ;;  %v13154_v36 = vpop.permute.xlu0 %13153  ;;  %v19707_v58 = vpop.permute.xlu1 %9172  ;;  %v8983_v17 = vsel %vm1205_vm11, %v20556_v21, %v13116_v51  ;;  %v9031_v15 = vsel %vm1254_vm12, %v20557_v13, %v13121_v14  ;;  %v9136_v62 = vsel %vm1363_vm13, %v13150_v41, %v13151_v47 }
 0xf83   :  { %v13156_v9 = vunpack.i.h.bf16 %v13154_v36  ;;  %v13155_v48 = vunpack.i.l.bf16 %v13154_v36  ;;  %9906 = vmatmul.mubr.msk.f32.vlgmr.msra.gmra.mrb[54].mxu0 %vm629_vm8, %v19531_v27  ;;  %v9135_v25 = vsel %vm1363_vm13, %v13151_v47, %v19689_v38  ;;  %v13081_v14 = vunpack.i.h.bf16 %v19535_v49 }
 0xf84   :  { %11035 = vmatpush1.bf16.msra.mxu0 %v11034_v11  ;;  %9583 = vmatprep.mubr.f32.mxu0 %v20235_v28  ;;  %v11038_v39 = vpack.c.bf16 %v9031_v15, %v8983_v17  ;;  %v20558_v30 = vunpack.i.h.bf16 %v19470_v7  ;;  %v11040_v11 = vpack.c.bf16 %v9089_v22, %v19295_v16  ;;  %v13076_v36 = vunpack.i.h.bf16 %v19514_v31 }
 0xf85   :  { %v9184_v37 = vsel %vm238_vm2, %v13155_v48, %v13156_v9  ;;  %v9183_v53 = vsel %vm238_vm2, %v13156_v9, %v19707_v58  ;;  %11037 = vmatprep.subr.bf16.mxu0 %v11036_v43  ;;  %v9185_v59 = vsel %vm238_vm2, %v13081_v14, %v13155_v48  ;;  %v20559_v13 = vunpack.i.h.bf16 %v19509_v10 }
 0xf86   :  { %v11066_v20 = vpack.c.bf16 %v9184_v37, %v9136_v62  ;;  %v11064_v61 = vpack.c.bf16 %v9183_v53, %v9135_v25  ;;  %v13159_v51 = vpop.permute.xlu0 %13158  ;;  %v19736_v18 = vpop.permute.xlu1 %9220  ;;  %v9090_v40 = vsel %vm140_vm0, %v20558_v30, %v13071_v56  ;;  %v9137_v48 = vsel %vm1363_vm13, %v13076_v36, %v13150_v41 }
 0xf87   :  { %v13161_v46 = vunpack.i.h.bf16 %v13159_v51  ;;  %v13160_v47 = vunpack.i.l.bf16 %v13159_v51  ;;  %v11042_v56 = vpack.c.bf16 %v9090_v40, %v19292_v63  ;;  %v9234_v15 = vsel %vm287_vm3, %v20559_v13, %v13086_v54 }
 0xf88   :  { %11039 = vmatpush1.bf16.msra.mxu0 %v11038_v39  ;;  %11065 = vmatprep.subr.bf16.mxu1 %v11064_v61  ;;  %v20560_v22 = vunpack.i.h.bf16 %v19486_v44  ;;  %v13101_v63 = vunpack.i.h.bf16 %v19542_v3  ;;  %v11044_v25 = vpack.c.bf16 %v9185_v59, %v9137_v48  ;;  %v13126_v37 = vunpack.i.h.bf16 %v19576_v52 }
 0xf89   :  { %v9232_v21 = vsel %vm287_vm3, %v13160_v47, %v13161_v46  ;;  %v9231_v7 = vsel %vm287_vm3, %v13161_v46, %v19736_v18  ;;  %11041 = vmatprep.subr.bf16.mxu0 %v11040_v11  ;;  %11067 = vmatpush1.bf16.msra.mxu1 %v11066_v20  ;;  %v9233_v10 = vsel %vm287_vm3, %v13086_v54, %v13160_v47  ;;  %v20561_v41 = vunpack.i.h.bf16 %v19468_v12 }
 0xf8a   :  { %v11070_v16 = vpack.c.bf16 %v20228_v1, %v9232_v21  ;;  %v11068_v17 = vpack.c.bf16 %v20228_v1, %v9231_v7  ;;  %v9021_v9 = vpop.permute.xlu0 %9020  ;;  %v13169_v43 = vpop.permute.xlu1 %13168  ;;  %v9186_v62 = vsel %vm238_vm2, %v20560_v22, %v13081_v14  ;;  %v11050_v51 = vpack.c.bf16 %v20228_v1, %v9234_v15 }
 0xf8b   :  { %v13171_v53 = vunpack.i.h.bf16 %v13169_v43  ;;  %v13170_v39 = vunpack.i.l.bf16 %v13169_v43  ;;  %v9138_v44 = vsel %vm1363_vm13, %v20561_v41, %v13076_v36  ;;  %v11048_v46 = vpack.c.bf16 %v20228_v1, %v9233_v10 }
 0xf8c   :  { %11043 = vmatpush1.bf16.msra.mxu0 %v11042_v56  ;;  %11069 = vmatprep.subr.bf16.mxu1 %v11068_v17  ;;  %v11046_v14 = vpack.c.bf16 %v9186_v62, %v9138_v44  ;;  %v20562_v11 = vunpack.i.l.bf16 %v19542_v3  ;;  %v20563_v12 = vunpack.i.l.bf16 %v19576_v52  ;;  %v20564_v7 = vunpack.i.l.bf16 %v19549_v4 }
 0xf8d   :  { %11045 = vmatprep.subr.bf16.mxu0 %v11044_v25  ;;  %11071 = vmatpush1.bf16.msra.mxu1 %v11070_v16  ;;  %v8929_v36 = vsel %vm1156_vm10, %v13170_v39, %v13171_v53  ;;  %v20565_v56 = vunpack.i.l.bf16 %v19546_v2  ;;  %v13136_v17 = vunpack.i.h.bf16 %v19619_v57  ;;  %v20566_v4 = vunpack.i.l.bf16 %v19551_v24 }
 0xf8e   :  { %v13179_v20 = vpop.permute.xlu1 %13178  ;;  %v13164_v61 = vpop.permute.xlu0 %13163  ;;  %v8883_v54 = vsel %vm1107_vm9, %v20562_v11, %v13101_v63  ;;  %v8931_v47 = vsel %vm1156_vm10, %v20563_v12, %v13126_v37  ;;  %v20567_v24 = vunpack.i.l.bf16 %v19574_v35  ;;  %v20568_v11 = vunpack.i.l.bf16 %v19525_v26 }
 0xf8f   :  { %v13166_v30 = vunpack.i.h.bf16 %v13164_v61  ;;  %v13165_v40 = vunpack.i.l.bf16 %v13164_v61  ;;  %v13181_v59 = vunpack.i.h.bf16 %v13179_v20  ;;  %v13180_v21 = vunpack.i.l.bf16 %v13179_v20 }
 0xf90   :  { %11047 = vmatpush1.bf16.msra.mxu0 %v11046_v14  ;;  %9909 = vmatmul.mubr.msk.f32.vlgmr.msra.gmra.mrb[56].mxu1 %vm629_vm8, %v19531_v27  ;;  %v8928_v16 = vsel %vm1156_vm10, %v13171_v53, %v20565_v56  ;;  %v9024_v62 = vsel %vm1254_vm12, %v9021_v9, %v20566_v4  ;;  %v8930_v53 = vsel %vm1156_vm10, %v13126_v37, %v13170_v39  ;;  %v20569_v4 = vunpack.i.l.bf16 %v19535_v49 }
 0xf91   :  { %v8881_v3 = vsel %vm1107_vm9, %v13165_v40, %v13166_v30  ;;  %11049 = vmatprep.subr.bf16.mxu0 %v11048_v46  ;;  %v8880_v52 = vsel %vm1107_vm9, %v13166_v30, %v20564_v7  ;;  %v8882_v22 = vsel %vm1107_vm9, %v13101_v63, %v13165_v40  ;;  %9796 = vmatprep.mubr.f32.mxu1 %v20235_v28 }
 0xf92   :  { %v11094_v43 = vpack.c.bf16 %v8929_v36, %v8881_v3  ;;  %v13184_v48 = vpop.permute.xlu1 %13183  ;;  %v13174_v13 = vpop.permute.xlu0 %13173  ;;  %v11092_v15 = vpack.c.bf16 %v8928_v16, %v8880_v52  ;;  %v9025_v10 = vsel %vm1254_vm12, %v13181_v59, %v9021_v9  ;;  %v11072_v63 = vpack.c.bf16 %v8930_v53, %v8882_v22 }
 0xf93   :  { %v13176_v2 = vunpack.i.h.bf16 %v13174_v13  ;;  %v13175_v25 = vunpack.i.l.bf16 %v13174_v13  ;;  %v13186_v41 = vunpack.i.h.bf16 %v13184_v48  ;;  %v13185_v44 = vunpack.i.l.bf16 %v13184_v48 }
 0xf94   :  { %11051 = vmatpush1.bf16.msra.mxu0 %v11050_v51  ;;  %11093 = vmatprep.subr.bf16.mxu1 %v11092_v15  ;;  %v9026_v9 = vsel %vm1254_vm12, %v13180_v21, %v13181_v59  ;;  %v11074_v39 = vpack.c.bf16 %v8931_v47, %v8883_v54  ;;  %v9027_v35 = vsel %vm1254_vm12, %v19642_v32, %v13180_v21 }
 0xf95   :  { %v8977_v14 = vsel %vm1205_vm11, %v13175_v25, %v13176_v2  ;;  %11095 = vmatpush1.bf16.msra.mxu1 %v11094_v43  ;;  %v8976_v20 = vsel %vm1205_vm11, %v13176_v2, %v20567_v24  ;;  %v8978_v37 = vsel %vm1205_vm11, %v13136_v17, %v13175_v25  ;;  %11073 = vmatprep.subr.bf16.mxu0 %v11072_v63 }
 0xf96   :  { %v11098_v61 = vpack.c.bf16 %v9025_v10, %v8977_v14  ;;  %v13189_v51 = vpop.permute.xlu1 %13188  ;;  %v9083_v30 = vpop.permute.xlu0 %9082  ;;  %v11096_v40 = vpack.c.bf16 %v9024_v62, %v8976_v20  ;;  %v11076_v46 = vpack.c.bf16 %v9026_v9, %v8978_v37  ;;  %v9085_v36 = vsel %vm140_vm0, %v13185_v44, %v13186_v41 }
 0xf97   :  { %v9095_v12 = vsel %vm140_vm0, %v9083_v30, %v20568_v11  ;;  %9908 = vmatmul.mubr.msk.f32.vlgmr.msra.gmra.mrb[56].mxu0 %vm629_vm8, %v19531_v27  ;;  %v9084_v54 = vsel %vm140_vm0, %v13186_v41, %v9083_v30  ;;  %v8979_v26 = vsel %vm1205_vm11, %v13135_v33, %v13136_v17  ;;  %v13191_v32 = vunpack.i.h.bf16 %v13189_v51  ;;  %v20571_v11 = vld [vmem:[#allocation6_spill] sm:$0xff] }
 0xf98   :  { %v11100_v47 = vpack.c.bf16 %v9095_v12, %v19319_v0  ;;  %11075 = vmatpush1.bf16.msra.mxu0 %v11074_v39  ;;  %11097 = vmatprep.subr.bf16.mxu1 %v11096_v40  ;;  %v13190_v59 = vunpack.i.l.bf16 %v13189_v51  ;;  %v11078_v21 = vpack.c.bf16 %v9027_v35, %v8979_v26  ;;  %v9086_v3 = vsel %vm140_vm0, %v19673_v8, %v13185_v44 }
 0xf99   :  { %11077 = vmatprep.subr.bf16.mxu0 %v11076_v46  ;;  %11099 = vmatpush1.bf16.msra.mxu1 %v11098_v61  ;;  %v11102_v52 = vpack.c.bf16 %v9084_v54, %v19352_v45  ;;  %v11080_v33 = vpack.c.bf16 %v9085_v36, %v19355_v29  ;;  %v11082_v16 = vpack.c.bf16 %v9086_v3, %v19315_v34  ;;  %v20570_v44 = vunpack.i.l.bf16 %v19533_v50  ;;  %v20572_v36 = vld [vmem:[#allocation4_spill] sm:$0xff] }
 0xf9a   :  { %v13194_v0 = vpop.permute.xlu1 %13193  ;;  %v9131_v7 = vpop.permute.xlu0 %9130  ;;  %11101 = vmatprep.subr.bf16.mxu1 %v11100_v47  ;;  %9725 = vmatprep.mubr.f32.mxu0 %v20235_v28  ;;  %v9133_v17 = vsel %vm1363_vm13, %v13190_v59, %v13191_v32  ;;  %v9134_v31 = vsel %vm1363_vm13, %v19689_v38, %v13190_v59 }
 0xf9b   :  { %v13196_v57 = vunpack.i.h.bf16 %v13194_v0  ;;  %v13195_v56 = vunpack.i.l.bf16 %v13194_v0  ;;  %v9132_v45 = vsel %vm1363_vm13, %v13191_v32, %v9131_v7  ;;  %v9143_v34 = vsel %vm1363_vm13, %v9131_v7, %v13075_v60  ;;  %v20573_v32 = vld [vmem:[#allocation5_spill] sm:$0xff] }
 0xf9c   :  { %11079 = vmatpush1.bf16.msra.mxu0 %v11078_v21 }
 0xf9d   :  { %11081 = vmatprep.subr.bf16.mxu0 %v11080_v33  ;;  %11103 = vmatpush1.bf16.msra.mxu1 %v11102_v52  ;;  %v9181_v8 = vsel %vm238_vm2, %v13195_v56, %v13196_v57  ;;  %v9182_v28 = vsel %vm238_vm2, %v19707_v58, %v13195_v56  ;;  %v20574_v56 = vld [vmem:[#allocation9_spill] sm:$0xff] }
 0xf9e   :  { %v13199_v29 = vpop.permute.xlu1 %13198  ;;  %v9179_v43 = vpop.permute.xlu0 %9178  ;;  %v11084_v48 = vpack.c.bf16 %v9181_v8, %v9133_v17  ;;  %v11086_v25 = vpack.c.bf16 %v9182_v28, %v9134_v31  ;;  %v20575_v17 = vld [vmem:[#allocation7_spill] sm:$0xff]  ;;  %v20576_v28 = vld [vmem:[#allocation8_spill] sm:$0xff] }
 0xf9f   :  { %v13201_v13 = vunpack.i.h.bf16 %v13199_v29  ;;  %v13200_v15 = vunpack.i.l.bf16 %v13199_v29  ;;  %v9180_v22 = vsel %vm238_vm2, %v13196_v57, %v9179_v43  ;;  %v9191_v58 = vsel %vm238_vm2, %v9179_v43, %v20569_v4 }
 0xfa0   :  { %v11104_v62 = vpack.c.bf16 %v9191_v58, %v9143_v34  ;;  %v11106_v2 = vpack.c.bf16 %v9180_v22, %v9132_v45  ;;  %11083 = vmatpush1.bf16.msra.mxu0 %v11082_v16  ;;  %v20577_v34 = vld [vmem:[#allocation10_spill] sm:$0xff] }
 0xfa1   :  { %11085 = vmatprep.subr.bf16.mxu0 %v11084_v48  ;;  %v9229_v60 = vsel %vm287_vm3, %v13200_v15, %v13201_v13  ;;  %v9230_v49 = vsel %vm287_vm3, %v19736_v18, %v13200_v15 }
 0xfa2   :  { %v9227_v53 = vpop.permute.xlu0 %9226  ;;  %11105 = vmatprep.subr.bf16.mxu1 %v11104_v62  ;;  %v11088_v10 = vpack.c.bf16 %v20228_v1, %v9229_v60  ;;  %v11090_v24 = vpack.c.bf16 %v20228_v1, %v9230_v49 }
 0xfa3   :  { %v9228_v41 = vsel %vm287_vm3, %v13201_v13, %v9227_v53  ;;  %v9239_v38 = vsel %vm287_vm3, %v9227_v53, %v20570_v44  ;;  %11107 = vmatpush1.bf16.msra.mxu1 %v11106_v2 }
 0xfa4   :  { %v11108_v63 = vpack.c.bf16 %v20228_v1, %v9239_v38  ;;  %v11110_v14 = vpack.c.bf16 %v20228_v1, %v9228_v41  ;;  %11087 = vmatpush1.bf16.msra.mxu0 %v11086_v25 }
 0xfa5   :  { %11089 = vmatprep.subr.bf16.mxu0 %v11088_v10 }
 0xfa6   :  { %11109 = vmatprep.subr.bf16.mxu1 %v11108_v63 }
 0xfa7   :  { %11111 = vmatpush1.bf16.msra.mxu1 %v11110_v14 }
 0xfa8   :  { %11091 = vmatpush1.bf16.msra.mxu0 %v11090_v24 }
 0xfaa   :  { %9911 = vmatmul.mubr.msk.f32.vlgmr.msra.gmra.mrb[58].mxu1 %vm629_vm8, %v19531_v27 }
 0xfab   :  { %9910 = vmatmul.mubr.msk.f32.vlgmr.msra.gmra.mrb[58].mxu0 %vm629_vm8, %v19531_v27 }
0x1033   :  { %v9514_v19 = vpop.f32.mrb[54].mxu1 }
0x1034   :  { %v9805_v50 = vmax.f32 %v9514_v19, 0.0  ;;  %v9516_v18 = vpop.f32.mrb[55].mxu1 }
0x1035   :  { %v9806_v20 = vmax.f32 %v9516_v18, 0.0 }
0x1036   :  { %v9817_v37 = vmul.f32 %v9805_v50, %v13996_v6 }
0x1037   :  { %v9818_v9 = vmul.f32 %v9806_v20, %v14001_v42 }
0x1038   :  { %9829 = vst [vmem:[%s19935_s3 + $0x10] sm:$0xff] %v9817_v37 }
0x1039   :  { %9830 = vst [vmem:[%s19935_s3 + $0x18] sm:$0xff] %v9818_v9 }
0x1056   :  { %v9443_v1 = vpop.f32.mrb[54].mxu0 }
0x1057   :  { %v9803_v39 = vmax.f32 %v9443_v1, 0.0  ;;  %v9445_v61 = vpop.f32.mrb[55].mxu0 }
0x1058   :  { %v9804_v27 = vmax.f32 %v9445_v61, 0.0 }
0x1059   :  { %v9815_v51 = vmul.f32 %v9803_v39, %v20491_v23 }
0x105a   :  { %v9816_v30 = vmul.f32 %v9804_v27, %v14023_v5 }
0x105b   :  { %9827 = vst [vmem:[%s19935_s3] sm:$0xff] %v9815_v51 }
0x105c   :  { %9828 = vst [vmem:[%s19935_s3 + $0x8] sm:$0xff] %v9816_v30 }
0x1063   :  { %v9656_v6 = vpop.f32.mrb[56].mxu1 }
0x1064   :  { %v9809_v42 = vmax.f32 %v9656_v6, 0.0  ;;  %v9658_v40 = vpop.f32.mrb[57].mxu1 }
0x1065   :  { %v9810_v46 = vmax.f32 %v9658_v40, 0.0 }
0x1066   :  { %v9821_v35 = vmul.f32 %v9809_v42, %v14072_v55 }
0x1067   :  { %v9822_v12 = vmul.f32 %v9810_v46, %v20571_v11 }
0x1068   :  { %9833 = vst [vmem:[%s19935_s3 + $0x30] sm:$0xff] %v9821_v35 }
0x1069   :  { %9834 = vst [vmem:[%s19935_s3 + $0x38] sm:$0xff] %v9822_v12 }
0x106a   :  { %v9585_v5 = vpop.f32.mrb[56].mxu0 }
0x106b   :  { %v9807_v23 = vmax.f32 %v9585_v5, 0.0  ;;  %v9587_v54 = vpop.f32.mrb[57].mxu0 }
0x106c   :  { %v9808_v47 = vmax.f32 %v9587_v54, 0.0 }
0x106d   :  { %v9819_v26 = vmul.f32 %v9807_v23, %v20572_v36 }
0x106e   :  { %v9820_v59 = vmul.f32 %v9808_v47, %v20573_v32 }
0x106f   :  { %9831 = vst [vmem:[%s19935_s3 + $0x20] sm:$0xff] %v9819_v26 }
0x1070   :  { %9832 = vst [vmem:[%s19935_s3 + $0x28] sm:$0xff] %v9820_v59 }
0x107d   :  { %v9798_v55 = vpop.f32.mrb[58].mxu1 }
0x107e   :  { %v9813_v21 = vmax.f32 %v9798_v55, 0.0  ;;  %v9727_v3 = vpop.f32.mrb[58].mxu0  ;;  %v9800_v0 = vpop.f32.mrb[59].mxu1 }
0x107f   :  { %v9811_v7 = vmax.f32 %v9727_v3, 0.0  ;;  %v9814_v52 = vmax.f32 %v9800_v0, 0.0  ;;  %v9729_v57 = vpop.f32.mrb[59].mxu0 }
0x1080   :  { %v9825_v33 = vmul.f32 %v9813_v21, %v20574_v56  ;;  %v9812_v16 = vmax.f32 %v9729_v57, 0.0 }
0x1081   :  { %v9823_v8 = vmul.f32 %v9811_v7, %v20575_v17  ;;  %v9826_v45 = vmul.f32 %v9814_v52, %v20576_v28 }
0x1082   :  { %9837 = vst [vmem:[%s19935_s3 + $0x50] sm:$0xff] %v9825_v33  ;;  %v9824_v29 = vmul.f32 %v9812_v16, %v20577_v34 }
0x1083   :  { %9835 = vst [vmem:[%s19935_s3 + $0x40] sm:$0xff] %v9823_v8  ;;  %9838 = vst [vmem:[%s19935_s3 + $0x58] sm:$0xff] %v9826_v45 }
0x1084   :  { %9836 = vst [vmem:[%s19935_s3 + $0x48] sm:$0xff] %v9824_v29 }

</bundles_post_ra>
